<compile_context>
chip_gen: v7x
topology: tpu7x:2x2x1
jax: 0.10.0
libtpu: 0.0.40
codegen_flags: <defaults>
</compile_context>

<pallas_src>
import functools

import jax
import jax.numpy as jnp
from jax import lax
from jax.experimental import pallas as pl
from jax.experimental.pallas import tpu as pltpu

EPS = 1e-5      # torch.nn.InstanceNorm2d default eps
PADL = 16       # left-border width in the W dim of the pad scratch.  A multiple of 16
                # keeps the bf16 interior stores tile-aligned/unmasked; only column
                # PADL-1 of the border is ever read by the 3x3 taps.


def _round_up(x, m):
    return (x + m - 1) // m * m


def _in_relu(v):
    """InstanceNorm2d(affine=False, biased var, eps=1e-5) + ReLU over axis 0 (pixels).

    Single-pass statistics (E[x], E[x^2]); all math in f32.  Zero-padded channels
    stay exactly zero: mean = var = 0 -> (0 - 0) * rsqrt(eps) = 0 -> relu -> 0.
    """
    m = jnp.mean(v, axis=0, keepdims=True)
    ex2 = jnp.mean(v * v, axis=0, keepdims=True)
    var = jnp.maximum(ex2 - m * m, 0.0)
    return jnp.maximum((v - m) * lax.rsqrt(var + EPS), 0.0)


# ------------------------------- fused kernel ------------------------------ #

def _bottleneck_kernel(x_ref, w1_ref, wo_ref, w2_ref, w4_ref, o_ref, pad_ref,
                       *, H, W, Co):
    # x_ref  : (1, HW, Ci)          f32   channels-last, spatial flattened
    # w1_ref : (Ci, Ck)             bf16  1x1 conv1
    # wo_ref : (Ci, Co8)            bf16  1x1 conv_o (residual path)
    # w2_ref : (9, Ck, Ck)          bf16  3x3 conv2, tap-major
    # w4_ref : (9, Ck, Co8)         bf16  3x3 conv4, tap-major
    # o_ref  : (1, Co, HW)          f32   channels-first output (lane-dense HW)
    # pad_ref: VMEM (H+2, Wp, Ck)   bf16  zero-bordered activation scratch;
    #          the image interior lives at [1:H+1, PADL:PADL+W, :].
    HW = H * W
    Ck = w1_ref.shape[1]
    Wp = pad_ref.shape[1]

    x = x_ref[0]                                             # (HW, Ci) f32

    # Residual path conv_o(x): seeds the conv4 register accumulator.
    acc4 = jnp.dot(x.astype(jnp.bfloat16), wo_ref[...],
                   preferred_element_type=jnp.float32)       # (HW, Co8) f32

    # t1 = conv1(relu(in1(x)))
    t1 = jnp.dot(_in_relu(x).astype(jnp.bfloat16), w1_ref[...],
                 preferred_element_type=jnp.float32)         # (HW, Ck) f32

    # Zero ONLY the border strips the 3x3 taps actually read (rows 0 / H+1 and the
    # two columns adjacent to the image).  The interior is fully overwritten below;
    # columns outside [PADL-1, PADL+W] are never read.  Re-done every grid step on
    # purpose (must not be gated on program_id under megacore "parallel").
    zrow = jnp.zeros((1, Wp, Ck), jnp.bfloat16)
    zcol = jnp.zeros((H, 1, Ck), jnp.bfloat16)
    pad_ref[0:1, :, :] = zrow
    pad_ref[H + 1:H + 2, :, :] = zrow
    pad_ref[1:H + 1, PADL - 1:PADL, :] = zcol
    pad_ref[1:H + 1, PADL + W:PADL + W + 1, :] = zcol

    def write_interior(v):
        # IN + ReLU from the register value, cast once to bf16, tile-aligned store.
        pad_ref[1:H + 1, PADL:PADL + W, :] = (
            _in_relu(v).astype(jnp.bfloat16).reshape(H, W, Ck))

    def conv3x3(w_ref, acc):
        # 9 taps; bf16 patches read straight from pad_ref, f32 register accumulation
        # (no VMEM accumulator round trips).  Contraction K = Ck (16), not 128.
        for kh in range(3):
            for kw in range(3):
                patch = pad_ref[kh:kh + H, PADL - 1 + kw:PADL - 1 + kw + W, :]
                contrib = jnp.dot(patch.reshape(HW, Ck), w_ref[kh * 3 + kw],
                                  preferred_element_type=jnp.float32)
                acc = contrib if acc is None else acc + contrib
        return acc

    # out2 = conv2(relu(in2(t1)))  -- result stays in registers, never hits VMEM.
    write_interior(t1)
    t2 = conv3x3(w2_ref, None)                               # (HW, Ck) f32

    # out = conv_o(x) + conv4(relu(in4(out2)))
    write_interior(t2)
    out = conv3x3(w4_ref, acc4)                              # (HW, Co8) f32

    # Channels-first store: transpose only the 8-wide accumulator (not 128 padded
    # channels); the HBM store stays lane-dense over HW and writes only Co channels.
    o_ref[0] = jnp.transpose(out)[:Co, :]


# ------------------------------- wrapper ----------------------------------- #

def bottleneck_block(x_nchw, w_o, w1, w2, w4):
    """BottleneckBlock forward (droprate=0).  Inputs/outputs in PyTorch NCHW layout.

    w_o: (out, in, 1, 1)        w1: (inter, in, 1, 1)
    w2:  (inter, inter, 3, 3)   w4: (out, inter, 3, 3)
    """
    N, Ci, H, W = x_nchw.shape
    inter = w1.shape[0]
    Co = w_o.shape[0]
    HW = H * W
    Ck = _round_up(inter, 16)      # bf16 sublane packing; NOT padded to 128 lanes
    Co8 = _round_up(Co, 8)         # sublane-aligned output channels (cheap transpose)
    Wp = PADL + W + 1              # pad-scratch W extent (interior at [PADL, PADL+W))

    # Activations -> channels-last flattened (N, HW, Ci).  Single tiny boundary op;
    # in a full network this layout would be carried across blocks.
    x_flat = jnp.transpose(x_nchw, (0, 2, 3, 1)).reshape(N, HW, Ci).astype(jnp.float32)

    # Weights -> matmul form, zero-padded channels, bf16 MXU operands (f32 accumulation
    # inside the kernel).  Padding must stay exactly zero: the instance norms rely on
    # padded channels remaining 0.
    def pad_cols(m, cols):
        return jnp.pad(m, ((0, 0), (0, cols - m.shape[1])))

    w1_m = pad_cols(jnp.transpose(w1[:, :, 0, 0]), Ck).astype(jnp.bfloat16)     # (Ci, Ck)
    wo_m = pad_cols(jnp.transpose(w_o[:, :, 0, 0]), Co8).astype(jnp.bfloat16)   # (Ci, Co8)

    def prep3x3(w, cin_p, cout_p):
        # (Cout, Cin, 3, 3) -> (9, cin_p, cout_p), zero padded, tap-major.
        w9 = jnp.transpose(w, (2, 3, 1, 0)).reshape(9, w.shape[1], w.shape[0])
        return jnp.pad(w9, ((0, 0), (0, cin_p - w.shape[1]),
                            (0, cout_p - w.shape[0]))).astype(jnp.bfloat16)

    w2_9 = prep3x3(w2, Ck, Ck)       # (9, Ck, Ck)
    w4_9 = prep3x3(w4, Ck, Co8)      # (9, Ck, Co8)

    kernel = functools.partial(_bottleneck_kernel, H=H, W=W, Co=Co)

    out_chw = pl.pallas_call(
        kernel,
        out_shape=jax.ShapeDtypeStruct((N, Co, HW), jnp.float32),
        grid=(N,),
        in_specs=[
            pl.BlockSpec((1, HW, Ci), lambda n: (n, 0, 0)),
            pl.BlockSpec((Ci, Ck), lambda n: (0, 0)),
            pl.BlockSpec((Ci, Co8), lambda n: (0, 0)),
            pl.BlockSpec((9, Ck, Ck), lambda n: (0, 0, 0)),
            pl.BlockSpec((9, Ck, Co8), lambda n: (0, 0, 0)),
        ],
        out_specs=pl.BlockSpec((1, Co, HW), lambda n: (n, 0, 0)),
        scratch_shapes=[
            # Zero-border bf16 activation scratch; ~200 KiB physical at these shapes,
            # so the default scoped-VMEM limit is plenty (no vmem_limit_bytes needed).
            pltpu.VMEM((H + 2, Wp, Ck), jnp.bfloat16),
        ],
        compiler_params=pltpu.CompilerParams(
            # Lets v7x's 2 TensorCores split the batch; harmless on v5e/v6e.
            dimension_semantics=("parallel",),
        ),
    )(x_flat, w1_m, wo_m, w2_9, w4_9)

    return out_chw.reshape(N, Co, H, W)


# ------------------------------- reference --------------------------------- #

def _reference(x, w_o, w1, w2, w4):
    def inorm(v):
        m = jnp.mean(v, axis=(2, 3), keepdims=True)
        var = jnp.mean(jnp.square(v - m), axis=(2, 3), keepdims=True)
        return (v - m) * lax.rsqrt(var + EPS)

    def conv(v, w, pad):
        return lax.conv_general_dilated(
            v, w, (1, 1), [(pad, pad), (pad, pad)],
            dimension_numbers=("NCHW", "OIHW", "NCHW"),
            precision=lax.Precision.HIGHEST)

    relu = lambda v: jnp.maximum(v, 0.0)
    out = conv(relu(inorm(x)), w1, 0)
    out = conv(relu(inorm(out)), w2, 1)
    outx = conv(x, w_o, 0)
    return outx + conv(relu(inorm(out)), w4, 1)


if __name__ == "__main__":
    key = jax.random.PRNGKey(0)
    N, in_planes, H, W = 2, 4, 16, 16
    out_planes = 4
    inter_planes = out_planes * 3

    k_x, k_o, k_1, k_2, k_4 = jax.random.split(key, 5)
    x = jax.random.normal(k_x, (N, in_planes, H, W), jnp.float32)
    w_o = 0.1 * jax.random.normal(k_o, (out_planes, in_planes, 1, 1), jnp.float32)
    w1 = 0.1 * jax.random.normal(k_1, (inter_planes, in_planes, 1, 1), jnp.float32)
    w2 = 0.1 * jax.random.normal(k_2, (inter_planes, inter_planes, 3, 3), jnp.float32)
    w4 = 0.1 * jax.random.normal(k_4, (out_planes, inter_planes, 3, 3), jnp.float32)

    out = bottleneck_block(x, w_o, w1, w2, w4)
    jax.block_until_ready(out)
    assert out.shape == (N, out_planes, H, W)

    ref = _reference(x, w_o, w1, w2, w4)
    err = float(jnp.max(jnp.abs(out - ref)))
    assert err < 0.15, f"max abs error vs f32 reference too large: {err}"

    print("KERNEL_OK")
</pallas_src>

<mosaic_0001>
module attributes {stable_mosaic.version = 11 : i64} {
  func.func @_bottleneck_kernel(%arg0: i32, %arg1: memref<1x256x4xf32, #tpu.memory_space<vmem>>, %arg2: memref<4x16xbf16, #tpu.memory_space<vmem>>, %arg3: memref<4x8xbf16, #tpu.memory_space<vmem>>, %arg4: memref<9x16x16xbf16, #tpu.memory_space<vmem>>, %arg5: memref<9x16x8xbf16, #tpu.memory_space<vmem>>, %arg6: memref<1x4x256xf32, #tpu.memory_space<vmem>>, %arg7: memref<18x33x16xbf16, #tpu.memory_space<vmem>>) attributes {dimension_semantics = [#tpu.dimension_semantics<parallel>], iteration_bounds = array<i64: 2>, scalar_prefetch = 0 : i64, scratch_operands = 1 : i64, tpu.core_type = #tpu.core_type<tc>, window_params = [{transform_indices = @transform_0, window_bounds = array<i64: 1, 256, 4>}, {pipeline_mode = #tpu.pipeline_mode<synchronous>, transform_indices = @transform_1, window_bounds = array<i64: 4, 16>}, {pipeline_mode = #tpu.pipeline_mode<synchronous>, transform_indices = @transform_2, window_bounds = array<i64: 4, 8>}, {pipeline_mode = #tpu.pipeline_mode<synchronous>, transform_indices = @transform_3, window_bounds = array<i64: 9, 16, 16>}, {pipeline_mode = #tpu.pipeline_mode<synchronous>, transform_indices = @transform_4, window_bounds = array<i64: 9, 16, 8>}, {transform_indices = @transform_5, window_bounds = array<i64: 1, 4, 256>}]} {
    %c0 = arith.constant 0 : index
    %c0_0 = arith.constant 0 : index
    %c0_1 = arith.constant 0 : index
    %0 = vector.load %arg1[%c0, %c0_0, %c0_1] : memref<1x256x4xf32, #tpu.memory_space<vmem>>, vector<1x256x4xf32>
    %1 = vector.shape_cast %0 : vector<1x256x4xf32> to vector<256x4xf32>
    %2 = arith.truncf %1 : vector<256x4xf32> to vector<256x4xbf16>
    %c0_2 = arith.constant 0 : index
    %c0_3 = arith.constant 0 : index
    %3 = vector.load %arg3[%c0_2, %c0_3] : memref<4x8xbf16, #tpu.memory_space<vmem>>, vector<4x8xbf16>
    %cst = arith.constant dense<0.000000e+00> : vector<256x8xf32>
    %4 = tpu.matmul %2, %3, %cst {dimension_numbers = #tpu.dot_dimension_numbers<[1], [0], [0], [1], [0, 0, 1, 1], [], []>} : vector<256x4xbf16>, vector<4x8xbf16>, vector<256x8xf32> -> vector<256x8xf32>
    %cst_4 = arith.constant dense<0.000000e+00> : vector<4xf32>
    %5 = vector.multi_reduction <add>, %1, %cst_4 [0] : vector<256x4xf32> to vector<4xf32>
    %6 = vector.shape_cast %5 : vector<4xf32> to vector<1x4xf32>
    %cst_5 = arith.constant 2.560000e+02 : f32
    %7 = vector.broadcast %cst_5 : f32 to vector<1x4xf32>
    %8 = arith.divf %6, %7 : vector<1x4xf32>
    %9 = arith.mulf %1, %1 : vector<256x4xf32>
    %cst_6 = arith.constant dense<0.000000e+00> : vector<4xf32>
    %10 = vector.multi_reduction <add>, %9, %cst_6 [0] : vector<256x4xf32> to vector<4xf32>
    %11 = vector.shape_cast %10 : vector<4xf32> to vector<1x4xf32>
    %cst_7 = arith.constant 2.560000e+02 : f32
    %12 = vector.broadcast %cst_7 : f32 to vector<1x4xf32>
    %13 = arith.divf %11, %12 : vector<1x4xf32>
    %14 = arith.mulf %8, %8 : vector<1x4xf32>
    %15 = arith.subf %13, %14 : vector<1x4xf32>
    %cst_8 = arith.constant 0.000000e+00 : f32
    %16 = vector.broadcast %cst_8 : f32 to vector<1x4xf32>
    %17 = arith.maximumf %15, %16 : vector<1x4xf32>
    %18 = vector.broadcast %8 : vector<1x4xf32> to vector<256x4xf32>
    %19 = arith.subf %1, %18 : vector<256x4xf32>
    %cst_9 = arith.constant 9.99999974E-6 : f32
    %20 = vector.broadcast %cst_9 : f32 to vector<1x4xf32>
    %21 = arith.addf %17, %20 : vector<1x4xf32>
    %22 = math.rsqrt %21 : vector<1x4xf32>
    %23 = vector.broadcast %22 : vector<1x4xf32> to vector<256x4xf32>
    %24 = arith.mulf %19, %23 : vector<256x4xf32>
    %cst_10 = arith.constant 0.000000e+00 : f32
    %25 = vector.broadcast %cst_10 : f32 to vector<256x4xf32>
    %26 = arith.maximumf %24, %25 : vector<256x4xf32>
    %27 = arith.truncf %26 : vector<256x4xf32> to vector<256x4xbf16>
    %c0_11 = arith.constant 0 : index
    %c0_12 = arith.constant 0 : index
    %28 = vector.load %arg2[%c0_11, %c0_12] : memref<4x16xbf16, #tpu.memory_space<vmem>>, vector<4x16xbf16>
    %cst_13 = arith.constant dense<0.000000e+00> : vector<256x16xf32>
    %29 = tpu.matmul %27, %28, %cst_13 {dimension_numbers = #tpu.dot_dimension_numbers<[1], [0], [0], [1], [0, 0, 1, 1], [], []>} : vector<256x4xbf16>, vector<4x16xbf16>, vector<256x16xf32> -> vector<256x16xf32>
    %cst_14 = arith.constant 0.000000e+00 : bf16
    %30 = vector.broadcast %cst_14 : bf16 to vector<1x33x16xbf16>
    %cst_15 = arith.constant 0.000000e+00 : bf16
    %31 = vector.broadcast %cst_15 : bf16 to vector<16x1x16xbf16>
    %c0_16 = arith.constant 0 : index
    %c0_17 = arith.constant 0 : index
    %c0_18 = arith.constant 0 : index
    %32 = vector.load %arg7[%c0_16, %c0_17, %c0_18] : memref<18x33x16xbf16, #tpu.memory_space<vmem>>, vector<1x33x16xbf16>
    tpu.vector_store %arg7[%c0_16, %c0_17, %c0_18], %30 {strides = array<i32>} : memref<18x33x16xbf16, #tpu.memory_space<vmem>>, vector<1x33x16xbf16>,
    %c17 = arith.constant 17 : index
    %c0_19 = arith.constant 0 : index
    %c0_20 = arith.constant 0 : index
    %33 = vector.load %arg7[%c17, %c0_19, %c0_20] : memref<18x33x16xbf16, #tpu.memory_space<vmem>>, vector<1x33x16xbf16>
    tpu.vector_store %arg7[%c17, %c0_19, %c0_20], %30 {strides = array<i32>} : memref<18x33x16xbf16, #tpu.memory_space<vmem>>, vector<1x33x16xbf16>,
    %c1 = arith.constant 1 : index
    %c15 = arith.constant 15 : index
    %c0_21 = arith.constant 0 : index
    %34 = vector.load %arg7[%c1, %c15, %c0_21] : memref<18x33x16xbf16, #tpu.memory_space<vmem>>, vector<16x1x16xbf16>
    tpu.vector_store %arg7[%c1, %c15, %c0_21], %31 {strides = array<i32>} : memref<18x33x16xbf16, #tpu.memory_space<vmem>>, vector<16x1x16xbf16>,
    %c1_22 = arith.constant 1 : index
    %c32 = arith.constant 32 : index
    %c0_23 = arith.constant 0 : index
    %35 = vector.load %arg7[%c1_22, %c32, %c0_23] : memref<18x33x16xbf16, #tpu.memory_space<vmem>>, vector<16x1x16xbf16>
    tpu.vector_store %arg7[%c1_22, %c32, %c0_23], %31 {strides = array<i32>} : memref<18x33x16xbf16, #tpu.memory_space<vmem>>, vector<16x1x16xbf16>,
    %cst_24 = arith.constant dense<0.000000e+00> : vector<16xf32>
    %36 = vector.multi_reduction <add>, %29, %cst_24 [0] : vector<256x16xf32> to vector<16xf32>
    %37 = vector.shape_cast %36 : vector<16xf32> to vector<1x16xf32>
    %cst_25 = arith.constant 2.560000e+02 : f32
    %38 = vector.broadcast %cst_25 : f32 to vector<1x16xf32>
    %39 = arith.divf %37, %38 : vector<1x16xf32>
    %40 = arith.mulf %29, %29 : vector<256x16xf32>
    %cst_26 = arith.constant dense<0.000000e+00> : vector<16xf32>
    %41 = vector.multi_reduction <add>, %40, %cst_26 [0] : vector<256x16xf32> to vector<16xf32>
    %42 = vector.shape_cast %41 : vector<16xf32> to vector<1x16xf32>
    %cst_27 = arith.constant 2.560000e+02 : f32
    %43 = vector.broadcast %cst_27 : f32 to vector<1x16xf32>
    %44 = arith.divf %42, %43 : vector<1x16xf32>
    %45 = arith.mulf %39, %39 : vector<1x16xf32>
    %46 = arith.subf %44, %45 : vector<1x16xf32>
    %cst_28 = arith.constant 0.000000e+00 : f32
    %47 = vector.broadcast %cst_28 : f32 to vector<1x16xf32>
    %48 = arith.maximumf %46, %47 : vector<1x16xf32>
    %49 = vector.broadcast %39 : vector<1x16xf32> to vector<256x16xf32>
    %50 = arith.subf %29, %49 : vector<256x16xf32>
    %cst_29 = arith.constant 9.99999974E-6 : f32
    %51 = vector.broadcast %cst_29 : f32 to vector<1x16xf32>
    %52 = arith.addf %48, %51 : vector<1x16xf32>
    %53 = math.rsqrt %52 : vector<1x16xf32>
    %54 = vector.broadcast %53 : vector<1x16xf32> to vector<256x16xf32>
    %55 = arith.mulf %50, %54 : vector<256x16xf32>
    %cst_30 = arith.constant 0.000000e+00 : f32
    %56 = vector.broadcast %cst_30 : f32 to vector<256x16xf32>
    %57 = arith.maximumf %55, %56 : vector<256x16xf32>
    %58 = arith.truncf %57 : vector<256x16xf32> to vector<256x16xbf16>
    %59 = vector.shape_cast %58 : vector<256x16xbf16> to vector<16x16x16xbf16>
    %c1_31 = arith.constant 1 : index
    %c16 = arith.constant 16 : index
    %c0_32 = arith.constant 0 : index
    %60 = vector.load %arg7[%c1_31, %c16, %c0_32] : memref<18x33x16xbf16, #tpu.memory_space<vmem>>, vector<16x16x16xbf16>
    tpu.vector_store %arg7[%c1_31, %c16, %c0_32], %59 {strides = array<i32>} : memref<18x33x16xbf16, #tpu.memory_space<vmem>>, vector<16x16x16xbf16>,
    %c0_33 = arith.constant 0 : index
    %c15_34 = arith.constant 15 : index
    %c0_35 = arith.constant 0 : index
    %61 = vector.load %arg7[%c0_33, %c15_34, %c0_35] : memref<18x33x16xbf16, #tpu.memory_space<vmem>>, vector<16x16x16xbf16>
    %62 = vector.shape_cast %61 : vector<16x16x16xbf16> to vector<256x16xbf16>
    %c0_36 = arith.constant 0 : index
    %c0_37 = arith.constant 0 : index
    %c0_38 = arith.constant 0 : index
    %63 = vector.load %arg4[%c0_36, %c0_37, %c0_38] : memref<9x16x16xbf16, #tpu.memory_space<vmem>>, vector<1x16x16xbf16>
    %64 = vector.shape_cast %63 : vector<1x16x16xbf16> to vector<16x16xbf16>
    %cst_39 = arith.constant dense<0.000000e+00> : vector<256x16xf32>
    %65 = tpu.matmul %62, %64, %cst_39 {dimension_numbers = #tpu.dot_dimension_numbers<[1], [0], [0], [1], [0, 0, 1, 1], [], []>} : vector<256x16xbf16>, vector<16x16xbf16>, vector<256x16xf32> -> vector<256x16xf32>
    %c0_40 = arith.constant 0 : index
    %c16_41 = arith.constant 16 : index
    %c0_42 = arith.constant 0 : index
    %66 = vector.load %arg7[%c0_40, %c16_41, %c0_42] : memref<18x33x16xbf16, #tpu.memory_space<vmem>>, vector<16x16x16xbf16>
    %67 = vector.shape_cast %66 : vector<16x16x16xbf16> to vector<256x16xbf16>
    %c1_43 = arith.constant 1 : index
    %c0_44 = arith.constant 0 : index
    %c0_45 = arith.constant 0 : index
    %68 = vector.load %arg4[%c1_43, %c0_44, %c0_45] : memref<9x16x16xbf16, #tpu.memory_space<vmem>>, vector<1x16x16xbf16>
    %69 = vector.shape_cast %68 : vector<1x16x16xbf16> to vector<16x16xbf16>
    %cst_46 = arith.constant dense<0.000000e+00> : vector<256x16xf32>
    %70 = tpu.matmul %67, %69, %cst_46 {dimension_numbers = #tpu.dot_dimension_numbers<[1], [0], [0], [1], [0, 0, 1, 1], [], []>} : vector<256x16xbf16>, vector<16x16xbf16>, vector<256x16xf32> -> vector<256x16xf32>
    %71 = arith.addf %65, %70 : vector<256x16xf32>
    %c0_47 = arith.constant 0 : index
    %c17_48 = arith.constant 17 : index
    %c0_49 = arith.constant 0 : index
    %72 = vector.load %arg7[%c0_47, %c17_48, %c0_49] : memref<18x33x16xbf16, #tpu.memory_space<vmem>>, vector<16x16x16xbf16>
    %73 = vector.shape_cast %72 : vector<16x16x16xbf16> to vector<256x16xbf16>
    %c2 = arith.constant 2 : index
    %c0_50 = arith.constant 0 : index
    %c0_51 = arith.constant 0 : index
    %74 = vector.load %arg4[%c2, %c0_50, %c0_51] : memref<9x16x16xbf16, #tpu.memory_space<vmem>>, vector<1x16x16xbf16>
    %75 = vector.shape_cast %74 : vector<1x16x16xbf16> to vector<16x16xbf16>
    %cst_52 = arith.constant dense<0.000000e+00> : vector<256x16xf32>
    %76 = tpu.matmul %73, %75, %cst_52 {dimension_numbers = #tpu.dot_dimension_numbers<[1], [0], [0], [1], [0, 0, 1, 1], [], []>} : vector<256x16xbf16>, vector<16x16xbf16>, vector<256x16xf32> -> vector<256x16xf32>
    %77 = arith.addf %71, %76 : vector<256x16xf32>
    %c1_53 = arith.constant 1 : index
    %c15_54 = arith.constant 15 : index
    %c0_55 = arith.constant 0 : index
    %78 = vector.load %arg7[%c1_53, %c15_54, %c0_55] : memref<18x33x16xbf16, #tpu.memory_space<vmem>>, vector<16x16x16xbf16>
    %79 = vector.shape_cast %78 : vector<16x16x16xbf16> to vector<256x16xbf16>
    %c3 = arith.constant 3 : index
    %c0_56 = arith.constant 0 : index
    %c0_57 = arith.constant 0 : index
    %80 = vector.load %arg4[%c3, %c0_56, %c0_57] : memref<9x16x16xbf16, #tpu.memory_space<vmem>>, vector<1x16x16xbf16>
    %81 = vector.shape_cast %80 : vector<1x16x16xbf16> to vector<16x16xbf16>
    %cst_58 = arith.constant dense<0.000000e+00> : vector<256x16xf32>
    %82 = tpu.matmul %79, %81, %cst_58 {dimension_numbers = #tpu.dot_dimension_numbers<[1], [0], [0], [1], [0, 0, 1, 1], [], []>} : vector<256x16xbf16>, vector<16x16xbf16>, vector<256x16xf32> -> vector<256x16xf32>
    %83 = arith.addf %77, %82 : vector<256x16xf32>
    %c1_59 = arith.constant 1 : index
    %c16_60 = arith.constant 16 : index
    %c0_61 = arith.constant 0 : index
    %84 = vector.load %arg7[%c1_59, %c16_60, %c0_61] : memref<18x33x16xbf16, #tpu.memory_space<vmem>>, vector<16x16x16xbf16>
    %85 = vector.shape_cast %84 : vector<16x16x16xbf16> to vector<256x16xbf16>
    %c4 = arith.constant 4 : index
    %c0_62 = arith.constant 0 : index
    %c0_63 = arith.constant 0 : index
    %86 = vector.load %arg4[%c4, %c0_62, %c0_63] : memref<9x16x16xbf16, #tpu.memory_space<vmem>>, vector<1x16x16xbf16>
    %87 = vector.shape_cast %86 : vector<1x16x16xbf16> to vector<16x16xbf16>
    %cst_64 = arith.constant dense<0.000000e+00> : vector<256x16xf32>
    %88 = tpu.matmul %85, %87, %cst_64 {dimension_numbers = #tpu.dot_dimension_numbers<[1], [0], [0], [1], [0, 0, 1, 1], [], []>} : vector<256x16xbf16>, vector<16x16xbf16>, vector<256x16xf32> -> vector<256x16xf32>
    %89 = arith.addf %83, %88 : vector<256x16xf32>
    %c1_65 = arith.constant 1 : index
    %c17_66 = arith.constant 17 : index
    %c0_67 = arith.constant 0 : index
    %90 = vector.load %arg7[%c1_65, %c17_66, %c0_67] : memref<18x33x16xbf16, #tpu.memory_space<vmem>>, vector<16x16x16xbf16>
    %91 = vector.shape_cast %90 : vector<16x16x16xbf16> to vector<256x16xbf16>
    %c5 = arith.constant 5 : index
    %c0_68 = arith.constant 0 : index
    %c0_69 = arith.constant 0 : index
    %92 = vector.load %arg4[%c5, %c0_68, %c0_69] : memref<9x16x16xbf16, #tpu.memory_space<vmem>>, vector<1x16x16xbf16>
    %93 = vector.shape_cast %92 : vector<1x16x16xbf16> to vector<16x16xbf16>
    %cst_70 = arith.constant dense<0.000000e+00> : vector<256x16xf32>
    %94 = tpu.matmul %91, %93, %cst_70 {dimension_numbers = #tpu.dot_dimension_numbers<[1], [0], [0], [1], [0, 0, 1, 1], [], []>} : vector<256x16xbf16>, vector<16x16xbf16>, vector<256x16xf32> -> vector<256x16xf32>
    %95 = arith.addf %89, %94 : vector<256x16xf32>
    %c2_71 = arith.constant 2 : index
    %c15_72 = arith.constant 15 : index
    %c0_73 = arith.constant 0 : index
    %96 = vector.load %arg7[%c2_71, %c15_72, %c0_73] : memref<18x33x16xbf16, #tpu.memory_space<vmem>>, vector<16x16x16xbf16>
    %97 = vector.shape_cast %96 : vector<16x16x16xbf16> to vector<256x16xbf16>
    %c6 = arith.constant 6 : index
    %c0_74 = arith.constant 0 : index
    %c0_75 = arith.constant 0 : index
    %98 = vector.load %arg4[%c6, %c0_74, %c0_75] : memref<9x16x16xbf16, #tpu.memory_space<vmem>>, vector<1x16x16xbf16>
    %99 = vector.shape_cast %98 : vector<1x16x16xbf16> to vector<16x16xbf16>
    %cst_76 = arith.constant dense<0.000000e+00> : vector<256x16xf32>
    %100 = tpu.matmul %97, %99, %cst_76 {dimension_numbers = #tpu.dot_dimension_numbers<[1], [0], [0], [1], [0, 0, 1, 1], [], []>} : vector<256x16xbf16>, vector<16x16xbf16>, vector<256x16xf32> -> vector<256x16xf32>
    %101 = arith.addf %95, %100 : vector<256x16xf32>
    %c2_77 = arith.constant 2 : index
    %c16_78 = arith.constant 16 : index
    %c0_79 = arith.constant 0 : index
    %102 = vector.load %arg7[%c2_77, %c16_78, %c0_79] : memref<18x33x16xbf16, #tpu.memory_space<vmem>>, vector<16x16x16xbf16>
    %103 = vector.shape_cast %102 : vector<16x16x16xbf16> to vector<256x16xbf16>
    %c7 = arith.constant 7 : index
    %c0_80 = arith.constant 0 : index
    %c0_81 = arith.constant 0 : index
    %104 = vector.load %arg4[%c7, %c0_80, %c0_81] : memref<9x16x16xbf16, #tpu.memory_space<vmem>>, vector<1x16x16xbf16>
    %105 = vector.shape_cast %104 : vector<1x16x16xbf16> to vector<16x16xbf16>
    %cst_82 = arith.constant dense<0.000000e+00> : vector<256x16xf32>
    %106 = tpu.matmul %103, %105, %cst_82 {dimension_numbers = #tpu.dot_dimension_numbers<[1], [0], [0], [1], [0, 0, 1, 1], [], []>} : vector<256x16xbf16>, vector<16x16xbf16>, vector<256x16xf32> -> vector<256x16xf32>
    %107 = arith.addf %101, %106 : vector<256x16xf32>
    %c2_83 = arith.constant 2 : index
    %c17_84 = arith.constant 17 : index
    %c0_85 = arith.constant 0 : index
    %108 = vector.load %arg7[%c2_83, %c17_84, %c0_85] : memref<18x33x16xbf16, #tpu.memory_space<vmem>>, vector<16x16x16xbf16>
    %109 = vector.shape_cast %108 : vector<16x16x16xbf16> to vector<256x16xbf16>
    %c8 = arith.constant 8 : index
    %c0_86 = arith.constant 0 : index
    %c0_87 = arith.constant 0 : index
    %110 = vector.load %arg4[%c8, %c0_86, %c0_87] : memref<9x16x16xbf16, #tpu.memory_space<vmem>>, vector<1x16x16xbf16>
    %111 = vector.shape_cast %110 : vector<1x16x16xbf16> to vector<16x16xbf16>
    %cst_88 = arith.constant dense<0.000000e+00> : vector<256x16xf32>
    %112 = tpu.matmul %109, %111, %cst_88 {dimension_numbers = #tpu.dot_dimension_numbers<[1], [0], [0], [1], [0, 0, 1, 1], [], []>} : vector<256x16xbf16>, vector<16x16xbf16>, vector<256x16xf32> -> vector<256x16xf32>
    %113 = arith.addf %107, %112 : vector<256x16xf32>
    %cst_89 = arith.constant dense<0.000000e+00> : vector<16xf32>
    %114 = vector.multi_reduction <add>, %113, %cst_89 [0] : vector<256x16xf32> to vector<16xf32>
    %115 = vector.shape_cast %114 : vector<16xf32> to vector<1x16xf32>
    %cst_90 = arith.constant 2.560000e+02 : f32
    %116 = vector.broadcast %cst_90 : f32 to vector<1x16xf32>
    %117 = arith.divf %115, %116 : vector<1x16xf32>
    %118 = arith.mulf %113, %113 : vector<256x16xf32>
    %cst_91 = arith.constant dense<0.000000e+00> : vector<16xf32>
    %119 = vector.multi_reduction <add>, %118, %cst_91 [0] : vector<256x16xf32> to vector<16xf32>
    %120 = vector.shape_cast %119 : vector<16xf32> to vector<1x16xf32>
    %cst_92 = arith.constant 2.560000e+02 : f32
    %121 = vector.broadcast %cst_92 : f32 to vector<1x16xf32>
    %122 = arith.divf %120, %121 : vector<1x16xf32>
    %123 = arith.mulf %117, %117 : vector<1x16xf32>
    %124 = arith.subf %122, %123 : vector<1x16xf32>
    %cst_93 = arith.constant 0.000000e+00 : f32
    %125 = vector.broadcast %cst_93 : f32 to vector<1x16xf32>
    %126 = arith.maximumf %124, %125 : vector<1x16xf32>
    %127 = vector.broadcast %117 : vector<1x16xf32> to vector<256x16xf32>
    %128 = arith.subf %113, %127 : vector<256x16xf32>
    %cst_94 = arith.constant 9.99999974E-6 : f32
    %129 = vector.broadcast %cst_94 : f32 to vector<1x16xf32>
    %130 = arith.addf %126, %129 : vector<1x16xf32>
    %131 = math.rsqrt %130 : vector<1x16xf32>
    %132 = vector.broadcast %131 : vector<1x16xf32> to vector<256x16xf32>
    %133 = arith.mulf %128, %132 : vector<256x16xf32>
    %cst_95 = arith.constant 0.000000e+00 : f32
    %134 = vector.broadcast %cst_95 : f32 to vector<256x16xf32>
    %135 = arith.maximumf %133, %134 : vector<256x16xf32>
    %136 = arith.truncf %135 : vector<256x16xf32> to vector<256x16xbf16>
    %137 = vector.shape_cast %136 : vector<256x16xbf16> to vector<16x16x16xbf16>
    %c1_96 = arith.constant 1 : index
    %c16_97 = arith.constant 16 : index
    %c0_98 = arith.constant 0 : index
    %138 = vector.load %arg7[%c1_96, %c16_97, %c0_98] : memref<18x33x16xbf16, #tpu.memory_space<vmem>>, vector<16x16x16xbf16>
    tpu.vector_store %arg7[%c1_96, %c16_97, %c0_98], %137 {strides = array<i32>} : memref<18x33x16xbf16, #tpu.memory_space<vmem>>, vector<16x16x16xbf16>,
    %c0_99 = arith.constant 0 : index
    %c15_100 = arith.constant 15 : index
    %c0_101 = arith.constant 0 : index
    %139 = vector.load %arg7[%c0_99, %c15_100, %c0_101] : memref<18x33x16xbf16, #tpu.memory_space<vmem>>, vector<16x16x16xbf16>
    %140 = vector.shape_cast %139 : vector<16x16x16xbf16> to vector<256x16xbf16>
    %c0_102 = arith.constant 0 : index
    %c0_103 = arith.constant 0 : index
    %c0_104 = arith.constant 0 : index
    %141 = vector.load %arg5[%c0_102, %c0_103, %c0_104] : memref<9x16x8xbf16, #tpu.memory_space<vmem>>, vector<1x16x8xbf16>
    %142 = vector.shape_cast %141 : vector<1x16x8xbf16> to vector<16x8xbf16>
    %cst_105 = arith.constant dense<0.000000e+00> : vector<256x8xf32>
    %143 = tpu.matmul %140, %142, %cst_105 {dimension_numbers = #tpu.dot_dimension_numbers<[1], [0], [0], [1], [0, 0, 1, 1], [], []>} : vector<256x16xbf16>, vector<16x8xbf16>, vector<256x8xf32> -> vector<256x8xf32>
    %144 = arith.addf %4, %143 : vector<256x8xf32>
    %c0_106 = arith.constant 0 : index
    %c16_107 = arith.constant 16 : index
    %c0_108 = arith.constant 0 : index
    %145 = vector.load %arg7[%c0_106, %c16_107, %c0_108] : memref<18x33x16xbf16, #tpu.memory_space<vmem>>, vector<16x16x16xbf16>
    %146 = vector.shape_cast %145 : vector<16x16x16xbf16> to vector<256x16xbf16>
    %c1_109 = arith.constant 1 : index
    %c0_110 = arith.constant 0 : index
    %c0_111 = arith.constant 0 : index
    %147 = vector.load %arg5[%c1_109, %c0_110, %c0_111] : memref<9x16x8xbf16, #tpu.memory_space<vmem>>, vector<1x16x8xbf16>
    %148 = vector.shape_cast %147 : vector<1x16x8xbf16> to vector<16x8xbf16>
    %cst_112 = arith.constant dense<0.000000e+00> : vector<256x8xf32>
    %149 = tpu.matmul %146, %148, %cst_112 {dimension_numbers = #tpu.dot_dimension_numbers<[1], [0], [0], [1], [0, 0, 1, 1], [], []>} : vector<256x16xbf16>, vector<16x8xbf16>, vector<256x8xf32> -> vector<256x8xf32>
    %150 = arith.addf %144, %149 : vector<256x8xf32>
    %c0_113 = arith.constant 0 : index
    %c17_114 = arith.constant 17 : index
    %c0_115 = arith.constant 0 : index
    %151 = vector.load %arg7[%c0_113, %c17_114, %c0_115] : memref<18x33x16xbf16, #tpu.memory_space<vmem>>, vector<16x16x16xbf16>
    %152 = vector.shape_cast %151 : vector<16x16x16xbf16> to vector<256x16xbf16>
    %c2_116 = arith.constant 2 : index
    %c0_117 = arith.constant 0 : index
    %c0_118 = arith.constant 0 : index
    %153 = vector.load %arg5[%c2_116, %c0_117, %c0_118] : memref<9x16x8xbf16, #tpu.memory_space<vmem>>, vector<1x16x8xbf16>
    %154 = vector.shape_cast %153 : vector<1x16x8xbf16> to vector<16x8xbf16>
    %cst_119 = arith.constant dense<0.000000e+00> : vector<256x8xf32>
    %155 = tpu.matmul %152, %154, %cst_119 {dimension_numbers = #tpu.dot_dimension_numbers<[1], [0], [0], [1], [0, 0, 1, 1], [], []>} : vector<256x16xbf16>, vector<16x8xbf16>, vector<256x8xf32> -> vector<256x8xf32>
    %156 = arith.addf %150, %155 : vector<256x8xf32>
    %c1_120 = arith.constant 1 : index
    %c15_121 = arith.constant 15 : index
    %c0_122 = arith.constant 0 : index
    %157 = vector.load %arg7[%c1_120, %c15_121, %c0_122] : memref<18x33x16xbf16, #tpu.memory_space<vmem>>, vector<16x16x16xbf16>
    %158 = vector.shape_cast %157 : vector<16x16x16xbf16> to vector<256x16xbf16>
    %c3_123 = arith.constant 3 : index
    %c0_124 = arith.constant 0 : index
    %c0_125 = arith.constant 0 : index
    %159 = vector.load %arg5[%c3_123, %c0_124, %c0_125] : memref<9x16x8xbf16, #tpu.memory_space<vmem>>, vector<1x16x8xbf16>
    %160 = vector.shape_cast %159 : vector<1x16x8xbf16> to vector<16x8xbf16>
    %cst_126 = arith.constant dense<0.000000e+00> : vector<256x8xf32>
    %161 = tpu.matmul %158, %160, %cst_126 {dimension_numbers = #tpu.dot_dimension_numbers<[1], [0], [0], [1], [0, 0, 1, 1], [], []>} : vector<256x16xbf16>, vector<16x8xbf16>, vector<256x8xf32> -> vector<256x8xf32>
    %162 = arith.addf %156, %161 : vector<256x8xf32>
    %c1_127 = arith.constant 1 : index
    %c16_128 = arith.constant 16 : index
    %c0_129 = arith.constant 0 : index
    %163 = vector.load %arg7[%c1_127, %c16_128, %c0_129] : memref<18x33x16xbf16, #tpu.memory_space<vmem>>, vector<16x16x16xbf16>
    %164 = vector.shape_cast %163 : vector<16x16x16xbf16> to vector<256x16xbf16>
    %c4_130 = arith.constant 4 : index
    %c0_131 = arith.constant 0 : index
    %c0_132 = arith.constant 0 : index
    %165 = vector.load %arg5[%c4_130, %c0_131, %c0_132] : memref<9x16x8xbf16, #tpu.memory_space<vmem>>, vector<1x16x8xbf16>
    %166 = vector.shape_cast %165 : vector<1x16x8xbf16> to vector<16x8xbf16>
    %cst_133 = arith.constant dense<0.000000e+00> : vector<256x8xf32>
    %167 = tpu.matmul %164, %166, %cst_133 {dimension_numbers = #tpu.dot_dimension_numbers<[1], [0], [0], [1], [0, 0, 1, 1], [], []>} : vector<256x16xbf16>, vector<16x8xbf16>, vector<256x8xf32> -> vector<256x8xf32>
    %168 = arith.addf %162, %167 : vector<256x8xf32>
    %c1_134 = arith.constant 1 : index
    %c17_135 = arith.constant 17 : index
    %c0_136 = arith.constant 0 : index
    %169 = vector.load %arg7[%c1_134, %c17_135, %c0_136] : memref<18x33x16xbf16, #tpu.memory_space<vmem>>, vector<16x16x16xbf16>
    %170 = vector.shape_cast %169 : vector<16x16x16xbf16> to vector<256x16xbf16>
    %c5_137 = arith.constant 5 : index
    %c0_138 = arith.constant 0 : index
    %c0_139 = arith.constant 0 : index
    %171 = vector.load %arg5[%c5_137, %c0_138, %c0_139] : memref<9x16x8xbf16, #tpu.memory_space<vmem>>, vector<1x16x8xbf16>
    %172 = vector.shape_cast %171 : vector<1x16x8xbf16> to vector<16x8xbf16>
    %cst_140 = arith.constant dense<0.000000e+00> : vector<256x8xf32>
    %173 = tpu.matmul %170, %172, %cst_140 {dimension_numbers = #tpu.dot_dimension_numbers<[1], [0], [0], [1], [0, 0, 1, 1], [], []>} : vector<256x16xbf16>, vector<16x8xbf16>, vector<256x8xf32> -> vector<256x8xf32>
    %174 = arith.addf %168, %173 : vector<256x8xf32>
    %c2_141 = arith.constant 2 : index
    %c15_142 = arith.constant 15 : index
    %c0_143 = arith.constant 0 : index
    %175 = vector.load %arg7[%c2_141, %c15_142, %c0_143] : memref<18x33x16xbf16, #tpu.memory_space<vmem>>, vector<16x16x16xbf16>
    %176 = vector.shape_cast %175 : vector<16x16x16xbf16> to vector<256x16xbf16>
    %c6_144 = arith.constant 6 : index
    %c0_145 = arith.constant 0 : index
    %c0_146 = arith.constant 0 : index
    %177 = vector.load %arg5[%c6_144, %c0_145, %c0_146] : memref<9x16x8xbf16, #tpu.memory_space<vmem>>, vector<1x16x8xbf16>
    %178 = vector.shape_cast %177 : vector<1x16x8xbf16> to vector<16x8xbf16>
    %cst_147 = arith.constant dense<0.000000e+00> : vector<256x8xf32>
    %179 = tpu.matmul %176, %178, %cst_147 {dimension_numbers = #tpu.dot_dimension_numbers<[1], [0], [0], [1], [0, 0, 1, 1], [], []>} : vector<256x16xbf16>, vector<16x8xbf16>, vector<256x8xf32> -> vector<256x8xf32>
    %180 = arith.addf %174, %179 : vector<256x8xf32>
    %c2_148 = arith.constant 2 : index
    %c16_149 = arith.constant 16 : index
    %c0_150 = arith.constant 0 : index
    %181 = vector.load %arg7[%c2_148, %c16_149, %c0_150] : memref<18x33x16xbf16, #tpu.memory_space<vmem>>, vector<16x16x16xbf16>
    %182 = vector.shape_cast %181 : vector<16x16x16xbf16> to vector<256x16xbf16>
    %c7_151 = arith.constant 7 : index
    %c0_152 = arith.constant 0 : index
    %c0_153 = arith.constant 0 : index
    %183 = vector.load %arg5[%c7_151, %c0_152, %c0_153] : memref<9x16x8xbf16, #tpu.memory_space<vmem>>, vector<1x16x8xbf16>
    %184 = vector.shape_cast %183 : vector<1x16x8xbf16> to vector<16x8xbf16>
    %cst_154 = arith.constant dense<0.000000e+00> : vector<256x8xf32>
    %185 = tpu.matmul %182, %184, %cst_154 {dimension_numbers = #tpu.dot_dimension_numbers<[1], [0], [0], [1], [0, 0, 1, 1], [], []>} : vector<256x16xbf16>, vector<16x8xbf16>, vector<256x8xf32> -> vector<256x8xf32>
    %186 = arith.addf %180, %185 : vector<256x8xf32>
    %c2_155 = arith.constant 2 : index
    %c17_156 = arith.constant 17 : index
    %c0_157 = arith.constant 0 : index
    %187 = vector.load %arg7[%c2_155, %c17_156, %c0_157] : memref<18x33x16xbf16, #tpu.memory_space<vmem>>, vector<16x16x16xbf16>
    %188 = vector.shape_cast %187 : vector<16x16x16xbf16> to vector<256x16xbf16>
    %c8_158 = arith.constant 8 : index
    %c0_159 = arith.constant 0 : index
    %c0_160 = arith.constant 0 : index
    %189 = vector.load %arg5[%c8_158, %c0_159, %c0_160] : memref<9x16x8xbf16, #tpu.memory_space<vmem>>, vector<1x16x8xbf16>
    %190 = vector.shape_cast %189 : vector<1x16x8xbf16> to vector<16x8xbf16>
    %cst_161 = arith.constant dense<0.000000e+00> : vector<256x8xf32>
    %191 = tpu.matmul %188, %190, %cst_161 {dimension_numbers = #tpu.dot_dimension_numbers<[1], [0], [0], [1], [0, 0, 1, 1], [], []>} : vector<256x16xbf16>, vector<16x8xbf16>, vector<256x8xf32> -> vector<256x8xf32>
    %192 = arith.addf %186, %191 : vector<256x8xf32>
    %193 = tpu.transpose %192, [1, 0] : vector<256x8xf32> -> vector<8x256xf32>
    %194 = vector.extract_strided_slice %193 {offsets = [0, 0], sizes = [4, 256], strides = [1, 1]} : vector<8x256xf32> to vector<4x256xf32>
    %c0_162 = arith.constant 0 : index
    %c0_163 = arith.constant 0 : index
    %c0_164 = arith.constant 0 : index
    %195 = vector.load %arg6[%c0_162, %c0_163, %c0_164] : memref<1x4x256xf32, #tpu.memory_space<vmem>>, vector<1x4x256xf32>
    %196 = vector.shape_cast %195 : vector<1x4x256xf32> to vector<4x256xf32>
    %197 = vector.shape_cast %194 : vector<4x256xf32> to vector<1x4x256xf32>
    tpu.vector_store %arg6[%c0_162, %c0_163, %c0_164], %197 {strides = array<i32>} : memref<1x4x256xf32, #tpu.memory_space<vmem>>, vector<1x4x256xf32>,
    return
  }
  func.func @transform_0(%arg0: i32) -> (i32, i32, i32) {
    %c0_i32 = arith.constant 0 : i32
    %c0_i32_0 = arith.constant 0 : i32
    %c0_i32_1 = arith.constant 0 : i32
    return %arg0, %c0_i32, %c0_i32_0 : i32, i32, i32
  }
  func.func @transform_1(%arg0: i32) -> (i32, i32) {
    %c0_i32 = arith.constant 0 : i32
    %c0_i32_0 = arith.constant 0 : i32
    %c0_i32_1 = arith.constant 0 : i32
    return %c0_i32, %c0_i32_0 : i32, i32
  }
  func.func @transform_2(%arg0: i32) -> (i32, i32) {
    %c0_i32 = arith.constant 0 : i32
    %c0_i32_0 = arith.constant 0 : i32
    %c0_i32_1 = arith.constant 0 : i32
    return %c0_i32, %c0_i32_0 : i32, i32
  }
  func.func @transform_3(%arg0: i32) -> (i32, i32, i32) {
    %c0_i32 = arith.constant 0 : i32
    %c0_i32_0 = arith.constant 0 : i32
    %c0_i32_1 = arith.constant 0 : i32
    %c0_i32_2 = arith.constant 0 : i32
    return %c0_i32, %c0_i32_0, %c0_i32_1 : i32, i32, i32
  }
  func.func @transform_4(%arg0: i32) -> (i32, i32, i32) {
    %c0_i32 = arith.constant 0 : i32
    %c0_i32_0 = arith.constant 0 : i32
    %c0_i32_1 = arith.constant 0 : i32
    %c0_i32_2 = arith.constant 0 : i32
    return %c0_i32, %c0_i32_0, %c0_i32_1 : i32, i32, i32
  }
  func.func @transform_5(%arg0: i32) -> (i32, i32, i32) {
    %c0_i32 = arith.constant 0 : i32
    %c0_i32_0 = arith.constant 0 : i32
    %c0_i32_1 = arith.constant 0 : i32
    return %arg0, %c0_i32, %c0_i32_0 : i32, i32, i32
  }
}

</mosaic_0001>

<bundles_post_ra>
// kernel: tpu_custom_call.1
= control target key start
LH: loop header
LB: loop body
LE: loop exit
PB: predicated region body
PF: predicated region fallthrough
CT: control target
= control target key end

     0   :  { %10 = vsyncpa [#allocation4], 0  ;;  %s19597_s0 = inlined_call_operand.vmem [shape: f32[2,256,4], index: 0, kind: input, shape index: {}]   ;;  %s19598_s1 = inlined_call_operand.vmem [shape: bf16[4,16], index: 1, kind: input, shape index: {}]   ;;  %s19599_s2 = inlined_call_operand.vmem [shape: bf16[4,8], index: 2, kind: input, shape index: {}]   ;;  %s19600_s3 = inlined_call_operand.vmem [shape: bf16[9,16,16], index: 3, kind: input, shape index: {}]   ;;  %s19601_s4 = inlined_call_operand.vmem [shape: bf16[9,16,8], index: 4, kind: input, shape index: {}]   ;;  %s19602_s5 = inlined_call_operand.hbm [shape: f32[2,4,256], index: 5, kind: output, shape index: {}]  }
   0x1   :  { %12 = vsyncpa [#allocation4 + $0x1], 0  ;;  %s15340_s18 = smov 0   ;;  %s15342_s19 = smov 0  }
   0x2   :  { %s15344_s20 = smov 0   ;;  %s15346_s21 = smov 0  }
   0x3 LB: > { %s15361_s22 = sadd.s32 4294967295, %s15306_s21   ;;  %s12575_s23 = sadd.s32 4294967294, %s15306_s21   ;;  %s15306_s21 = sphi %s15346_s21, %s19716_s21   ;;  %s15302_s20 = sphi %s15344_s20, %s19715_s20   ;;  %s15298_s19 = sphi %s15342_s19, %s19714_s19   ;;  %s15294_s18 = sphi %s15340_s18, %s19713_s18  }
   0x4   : > { %s15365_s24 = sadd.s32 1, %s15306_s21   ;;  %s135_s25 = sadd.s32 1, %s15302_s20 }
   0x5   : > { %s132_s26 = ssub.s32 %s15306_s21, %s15365_s24  ;;  %p145_p0 = scmp.ne.s32.totalorder %s15302_s20, %s15298_s19 }
   0x6   : > { %p133_p1 = scmp.eq.s32.totalorder %s132_s26, 0  ;;  %p146_p2 = scmp.eq.s32.totalorder %s15361_s22, 1 }
   0x7   : > { %p151_p3 = scmp.ne.s32.totalorder %s15298_s19, %s15294_s18  ;;  %p152_p4 = scmp.eq.s32.totalorder %s12575_s23, 1 }
   0x8   : > { %s15376_s27 = scalar_select %p133_p1, %s15302_s20, %s135_s25  }
   0x9   : > { %p15378_p5 = por %p146_p2, %p145_p0  ;;  %p15382_p6 = por %p152_p4, %p151_p3 }
   0xa   : > { %p12578_p7 = scmp.ge.s32.totalorder %s15306_s21, 1  ;;  %p190_p8 = scmp.lt.s32.totalorder %s15306_s21, 3 }
   0xc   : > { %p191_p9 = pnand %p12578_p7, %p190_p8 }
   0xe   : > { %194 = sbr.rel (%p191_p9) target bundleno = 2307 (0x903), region = 40 }
  0x15   : > { %v564_v0 = vld [vmem:[%s19598_s1] sm:$0x3]  ;;  %vm613_vm0 = vcmask 1041408   ;;  %p218_p10 = scmp.lt.s32.totalorder %s15361_s22, 1  ;;  %vm273_vm1 = vcmask 31744   ;;  %vm778_vm2 = vcmask 125952  }
  0x16   : > { %15035 = vmatprep.subr.msk.bf16.mxu1 %vm613_vm0, %v564_v0  ;;  %v615_v1 = vsel %vm613_vm0, %v564_v0, 0  ;;  %vm798_vm3 = vcmask 125955   ;;  %vm799_vm4 = vsmask.f32 7950  ;;  %vm897_vm5 = vcmask 130048   ;;  %s215_s25 = sand.u32 1, %s15298_s19  }
  0x17   : > { %13812 = vmatpush3.bf16.msra.mxu1 %v615_v1  ;;  %s219_s7 = scalar_select %p218_p10, %s15361_s22, 1  ;;  %vm15797_vm6 = vmand %vm798_vm3, %vm799_vm4  ;;  %vm784_vm7 = vsmask.f32 256  ;;  %vm783_vm8 = vcmask 122880   ;;  %vm1379_vm10 = vsmask.f32 4368 }
  0x18   : > { %vm15981_vm9 = vmand %vm783_vm8, %vm784_vm7  ;;  %vm2344_vm12 = vsmask.f32 3328  ;;  %vm2345_vm13 = vsmask.f32 7440  ;;  %s12579_s26 = sshll.u32 %s215_s25, 3  ;;  %s13470_s30 = sshll.u32 %s15361_s22, 7 }
  0x19   : > { %s13405_s8 = sshll.u32 %s219_s7, 8  ;;  %vm16047_vm11 = vmor %vm784_vm7, %vm1379_vm10  ;;  %s217_s6 = scalar_lea.vmem [#allocation3], %s12579_s26 }
  0x1a   : > { %s15398_s11 = scalar_lea.vmem %s19597_s0, %s13405_s8  ;;  %vm16610_vm14 = vmor %vm2344_vm12, %vm2345_vm13  ;;  %s12516_s7 = sshll.u32 %s217_s6, 4  ;;  %s19557_s7 = int_to_ptr.vmem [resolvable:$true] %s12516_s7 }
  0x1b   : > { %v15401_v2 = vld [vmem:[%s15398_s11] sm:$0xff]  ;;  %v15404_v3 = vld [vmem:[%s15398_s11 + $0x8] sm:$0xff]  ;;  %v15407_v4 = vld [vmem:[%s15398_s11 + $0x10] sm:$0xff]  ;;  %s19555_s9 = scalar_lea.hbm %s19602_s5, %s13470_s30  ;;  %s12502_s10 = scalar_lea.sflag [#allocation4], %s215_s25 }
  0x1c   : > { %v15410_v5 = vld [vmem:[%s15398_s11 + $0x18] sm:$0xff]  ;;  %v274_v6 = vsel %vm273_vm1, %v15401_v2, 0.0  ;;  %v275_v7 = vsel %vm273_vm1, %v15404_v3, 0.0  ;;  %v277_v8 = vsel %vm273_vm1, %v15407_v4, 0.0  ;;  %v15419_v9 = vld [vmem:[%s15398_s11 + $0x20] sm:$0xff]  ;;  %v15424_v12 = vld [vmem:[%s15398_s11 + $0x28] sm:$0xff]  ;;  %v345_v33 = vmul.f32 %v15401_v2, %v15401_v2 }
  0x1d   : > { %v276_v10 = vadd.f32 %v275_v7, %v274_v6  ;;  %v279_v11 = vsel %vm273_vm1, %v15410_v5, 0.0  ;;  %v281_v14 = vsel %vm273_vm1, %v15419_v9, 0.0  ;;  %v15429_v15 = vld [vmem:[%s15398_s11 + $0x30] sm:$0xff]  ;;  %v15432_v17 = vld [vmem:[%s15398_s11 + $0x38] sm:$0xff]  ;;  %v15435_v18 = vld [vmem:[%s15398_s11 + $0x40] sm:$0xff]  ;;  %v283_v20 = vsel %vm273_vm1, %v15424_v12, 0.0 }
  0x1e   : > { %v15438_v19 = vld [vmem:[%s15398_s11 + $0x48] sm:$0xff]  ;;  %v15443_v21 = vld [vmem:[%s15398_s11 + $0x50] sm:$0xff]  ;;  %v15446_v22 = vld [vmem:[%s15398_s11 + $0x58] sm:$0xff]  ;;  %v285_v24 = vsel %vm273_vm1, %v15429_v15, 0.0  ;;  %v287_v26 = vsel %vm273_vm1, %v15432_v17, 0.0  ;;  %v289_v27 = vsel %vm273_vm1, %v15435_v18, 0.0  ;;  %v346_v34 = vmul.f32 %v15404_v3, %v15404_v3 }
  0x1f   : > { %v278_v13 = vadd.f32 %v277_v8, %v276_v10  ;;  %v291_v28 = vsel %vm273_vm1, %v15438_v19, 0.0  ;;  %v293_v29 = vsel %vm273_vm1, %v15443_v21, 0.0  ;;  %v295_v30 = vsel %vm273_vm1, %v15446_v22, 0.0  ;;  %v15467_v36 = vld [vmem:[%s15398_s11 + $0x60] sm:$0xff]  ;;  %v15477_v44 = vld [vmem:[%s15398_s11 + $0x68] sm:$0xff]  ;;  %v15485_v50 = vld [vmem:[%s15398_s11 + $0x70] sm:$0xff] }
  0x20   : > { %v347_v35 = vmul.f32 %v15407_v4, %v15407_v4  ;;  %v348_v38 = vmul.f32 %v15410_v5, %v15410_v5  ;;  %v349_v40 = vmul.f32 %v15419_v9, %v15419_v9  ;;  %v377_v41 = vsel %vm273_vm1, %v345_v33, 0.0  ;;  %v15493_v56 = vld [vmem:[%s15398_s11 + $0x78] sm:$0xff]  ;;  %v15501_v62 = vld [vmem:[%s15398_s11 + $0x80] sm:$0xff]  ;;  %v15509_v8 = vld [vmem:[%s15398_s11 + $0x88] sm:$0xff]  ;;  %s15244_s12 = scalar_lea.vmem %s19557_s7, 128  ;;  %s15309_s22 = smov [#allocation3]  }
  0x21   : > { %v280_v16 = vadd.f32 %v279_v11, %v278_v13  ;;  %v378_v42 = vsel %vm273_vm1, %v346_v34, 0.0  ;;  %v297_v47 = vsel %vm273_vm1, %v15467_v36, 0.0  ;;  %v350_v48 = vmul.f32 %v15424_v12, %v15424_v12  ;;  %v15533_v34 = vld [vmem:[%s15398_s11 + $0xa0] sm:$0xff]  ;;  %p15245_p11 = scmp.ne.s32.totalorder %s19557_s7, %s15244_s12  ;;  %s15248_s13 = sshll.u32 %s15309_s22, 4  ;;  %s15249_s13 = int_to_ptr.vmem [resolvable:$false] %s15248_s13 }
  0x22   : > { %v380_v43 = vsel %vm273_vm1, %v347_v35, 0.0  ;;  %v379_v46 = vadd.f32 %v378_v42, %v377_v41  ;;  %v382_v49 = vsel %vm273_vm1, %v348_v38, 0.0  ;;  %v299_v53 = vsel %vm273_vm1, %v15477_v44, 0.0  ;;  %v15541_v41 = vld [vmem:[%s15398_s11 + $0xa8] sm:$0xff]  ;;  %s15250_s14 = scalar_lea.vmem %s15249_s13, 256  ;;  %p15251_p0 = scmp.lt.s32.totalorder %s19557_s7, %s15249_s13 }
  0x23   : > { %v282_v23 = vadd.f32 %v281_v14, %v280_v16  ;;  %v351_v54 = vmul.f32 %v15429_v15, %v15429_v15  ;;  %v384_v55 = vsel %vm273_vm1, %v349_v40, 0.0  ;;  %v301_v59 = vsel %vm273_vm1, %v15485_v50, 0.0  ;;  %p15246_p12 = pnand %p15245_p11, %p15378_p5  ;;  %p15252_p1 = scmp.lt.s32.totalorder %s15250_s14, %s15244_s12 }
  0x24   : > { %v381_v52 = vadd.f32 %v380_v43, %v379_v46  ;;  %v352_v60 = vmul.f32 %v15432_v17, %v15432_v17  ;;  %v386_v61 = vsel %vm273_vm1, %v350_v48, 0.0  ;;  %v303_v1 = vsel %vm273_vm1, %v15493_v56, 0.0  ;;  %v15549_v48 = vld [vmem:[%s15398_s11 + $0xb0] sm:$0xff] }
  0x25   : > { %v284_v25 = vadd.f32 %v283_v20, %v282_v23  ;;  %v353_v6 = vmul.f32 %v15435_v18, %v15435_v18  ;;  %v388_v7 = vsel %vm273_vm1, %v351_v54, 0.0  ;;  %v305_v13 = vsel %vm273_vm1, %v15501_v62, 0.0  ;;  %v15517_v20 = vld [vmem:[%s15398_s11 + $0x90] sm:$0xff]  ;;  %p15247_p13 = pneg %p15246_p12  ;;  %p15253_p2 = por %p15252_p1, %p15251_p0 }
  0x26   : > { %v383_v58 = vadd.f32 %v382_v49, %v381_v52  ;;  %v354_v14 = vmul.f32 %v15438_v19, %v15438_v19  ;;  %v390_v16 = vsel %vm273_vm1, %v352_v60, 0.0  ;;  %v358_v46 = vmul.f32 %v15477_v44, %v15477_v44 }
  0x27   : > { %v286_v31 = vadd.f32 %v285_v24, %v284_v25  ;;  %v307_v25 = vsel %vm273_vm1, %v15509_v8, 0.0  ;;  %v315_v52 = vsel %vm273_vm1, %v15541_v41, 0.0  ;;  %v360_v60 = vmul.f32 %v15493_v56, %v15493_v56  ;;  %p15254_p3 = pnand %p15253_p2, %p15247_p13 }
  0x28   : > { %v385_v0 = vadd.f32 %v384_v55, %v383_v58  ;;  %v394_v33 = vsel %vm273_vm1, %v354_v14, 0.0  ;;  %v15557_v55 = vld [vmem:[%s15398_s11 + $0xb8] sm:$0xff] }
  0x29   : > { %v288_v32 = vadd.f32 %v287_v26, %v286_v31  ;;  %v355_v26 = vmul.f32 %v15443_v21, %v15443_v21  ;;  %v309_v31 = vsel %vm273_vm1, %v15517_v20, 0.0 }
  0x2a   : > { %v387_v11 = vadd.f32 %v386_v61, %v385_v0  ;;  %v402_v61 = vsel %vm273_vm1, %v358_v46, 0.0  ;;  %v365_v46 = vmul.f32 %v15533_v34, %v15533_v34 }
  0x2b   : > { %v290_v37 = vadd.f32 %v289_v27, %v288_v32  ;;  %v392_v27 = vsel %vm273_vm1, %v353_v6, 0.0  ;;  %v356_v32 = vmul.f32 %v15446_v22, %v15446_v22  ;;  %v396_v40 = vsel %vm273_vm1, %v355_v26, 0.0 }
  0x2c   : > { %v389_v24 = vadd.f32 %v388_v7, %v387_v11  ;;  %v319_v6 = vsel %vm273_vm1, %v15557_v55, 0.0  ;;  %v361_v7 = vmul.f32 %v15501_v62, %v15501_v62  ;;  %v15573_v11 = vld [vmem:[%s15398_s11 + $0xc8] sm:$0xff] }
  0x2d   : > { %v292_v39 = vadd.f32 %v291_v28, %v290_v37  ;;  %v15525_v28 = vld [vmem:[%s15398_s11 + $0x98] sm:$0xff] }
  0x2e   : > { %v311_v38 = vsel %vm273_vm1, %v15525_v28, 0.0 }
  0x2f   : > { %v294_v45 = vadd.f32 %v293_v29, %v292_v39  ;;  %v357_v39 = vmul.f32 %v15467_v36, %v15467_v36 }
  0x31   : > { %v296_v51 = vadd.f32 %v295_v30, %v294_v45  ;;  %v391_v30 = vadd.f32 %v390_v16, %v389_v24  ;;  %v313_v45 = vsel %vm273_vm1, %v15533_v34, 0.0  ;;  %v400_v54 = vsel %vm273_vm1, %v357_v39, 0.0 }
  0x32   : > { %v406_v24 = vsel %vm273_vm1, %v360_v60, 0.0 }
  0x33   : > { %v298_v57 = vadd.f32 %v297_v47, %v296_v51  ;;  %v393_v37 = vadd.f32 %v392_v27, %v391_v30  ;;  %v398_v47 = vsel %vm273_vm1, %v356_v32, 0.0  ;;  %v363_v30 = vmul.f32 %v15517_v20, %v15517_v20  ;;  %v15589_v32 = vld [vmem:[%s15398_s11 + $0xd8] sm:$0xff] }
  0x35   : > { %v300_v63 = vadd.f32 %v299_v53, %v298_v57  ;;  %v395_v43 = vadd.f32 %v394_v33, %v393_v37  ;;  %v359_v53 = vmul.f32 %v15485_v50, %v15485_v50 }
  0x37   : > { %v302_v10 = vadd.f32 %v301_v59, %v300_v63  ;;  %v397_v51 = vadd.f32 %v396_v40, %v395_v43  ;;  %v317_v59 = vsel %vm273_vm1, %v15549_v48, 0.0  ;;  %v15565_v63 = vld [vmem:[%s15398_s11 + $0xc0] sm:$0xff] }
  0x38   : > { %v321_v16 = vsel %vm273_vm1, %v15565_v63, 0.0  ;;  %v15597_v40 = vld [vmem:[%s15398_s11 + $0xe0] sm:$0xff] }
  0x39   : > { %v304_v23 = vadd.f32 %v303_v1, %v302_v10  ;;  %v399_v58 = vadd.f32 %v398_v47, %v397_v51  ;;  %v404_v10 = vsel %vm273_vm1, %v359_v53, 0.0  ;;  %v412_v47 = vsel %vm273_vm1, %v363_v30, 0.0 }
  0x3a   : > { %v329_v53 = vsel %vm273_vm1, %v15597_v40, 0.0 }
  0x3b   : > { %v306_v29 = vadd.f32 %v305_v13, %v304_v23  ;;  %v401_v1 = vadd.f32 %v400_v54, %v399_v58  ;;  %v362_v23 = vmul.f32 %v15509_v8, %v15509_v8  ;;  %v366_v54 = vmul.f32 %v15541_v41, %v15541_v41  ;;  %v15613_v58 = vld [vmem:[%s15398_s11 + $0xf0] sm:$0xff] }
  0x3d   : > { %v308_v35 = vadd.f32 %v307_v25, %v306_v29  ;;  %v403_v14 = vadd.f32 %v402_v61, %v401_v1  ;;  %v15581_v25 = vld [vmem:[%s15398_s11 + $0xd0] sm:$0xff]  ;;  %v323_v29 = vsel %vm273_vm1, %v15573_v11, 0.0  ;;  %v410_v39 = vsel %vm273_vm1, %v362_v23, 0.0 }
  0x3e   : > { %v325_v37 = vsel %vm273_vm1, %v15581_v25, 0.0  ;;  %v416_v1 = vsel %vm273_vm1, %v365_v46, 0.0  ;;  %v372_v46 = vmul.f32 %v15589_v32, %v15589_v32 }
  0x3f   : > { %v310_v42 = vadd.f32 %v309_v31, %v308_v35  ;;  %v405_v27 = vadd.f32 %v404_v10, %v403_v14  ;;  %v408_v31 = vsel %vm273_vm1, %v361_v7, 0.0  ;;  %v368_v14 = vmul.f32 %v15557_v55, %v15557_v55 }
  0x41   : > { %v312_v49 = vadd.f32 %v311_v38, %v310_v42  ;;  %v407_v35 = vadd.f32 %v406_v24, %v405_v27  ;;  %v364_v38 = vmul.f32 %v15525_v28, %v15525_v28  ;;  %v369_v27 = vmul.f32 %v15565_v63, %v15565_v63 }
  0x43   : > { %v314_v57 = vadd.f32 %v313_v45, %v312_v49  ;;  %v409_v43 = vadd.f32 %v408_v31, %v407_v35  ;;  %v327_v45 = vsel %vm273_vm1, %v15589_v32, 0.0  ;;  %v15605_v49 = vld [vmem:[%s15398_s11 + $0xe8] sm:$0xff]  ;;  %v422_v35 = vsel %vm273_vm1, %v368_v14, 0.0 }
  0x44   : > { %v331_v61 = vsel %vm273_vm1, %v15605_v49, 0.0 }
  0x45   : > { %v316_v0 = vadd.f32 %v315_v52, %v314_v57  ;;  %v411_v52 = vadd.f32 %v410_v39, %v409_v43  ;;  %v414_v57 = vsel %vm273_vm1, %v364_v38, 0.0  ;;  %v371_v39 = vmul.f32 %v15581_v25, %v15581_v25 }
  0x47   : > { %v318_v13 = vadd.f32 %v317_v59, %v316_v0  ;;  %v413_v60 = vadd.f32 %v412_v47, %v411_v52  ;;  %v367_v0 = vmul.f32 %v15549_v48, %v15549_v48  ;;  %v373_v52 = vmul.f32 %v15597_v40, %v15597_v40 }
  0x49   : > { %v320_v26 = vadd.f32 %v319_v6, %v318_v13  ;;  %v15621_v6 = vld [vmem:[%s15398_s11 + $0xf8] sm:$0xff]  ;;  %v415_v10 = vadd.f32 %v414_v57, %v413_v60  ;;  %v333_v13 = vsel %vm273_vm1, %v15613_v58, 0.0  ;;  %v430_v60 = vsel %vm273_vm1, %v372_v46, 0.0 }
  0x4b   : > { %v322_v33 = vadd.f32 %v321_v16, %v320_v26  ;;  %v418_v16 = vsel %vm273_vm1, %v366_v54, 0.0  ;;  %v417_v24 = vadd.f32 %v416_v1, %v415_v10  ;;  %v335_v26 = vsel %vm273_vm1, %v15621_v6, 0.0 }
  0x4c   : > { %v432_v1 = vsel %vm273_vm1, %v373_v52, 0.0 }
  0x4d   : > { %v324_v42 = vadd.f32 %v323_v29, %v322_v33  ;;  %v420_v29 = vsel %vm273_vm1, %v367_v0, 0.0  ;;  %v419_v31 = vadd.f32 %v418_v16, %v417_v24  ;;  %v370_v33 = vmul.f32 %v15573_v11, %v15573_v11 }
  0x4e   : > { %v375_v0 = vmul.f32 %v15613_v58, %v15613_v58 }
  0x4f   : > { %v326_v51 = vadd.f32 %v325_v37, %v324_v42  ;;  %v421_v38 = vadd.f32 %v420_v29, %v419_v31  ;;  %v424_v42 = vsel %vm273_vm1, %v369_v27, 0.0  ;;  %v426_v47 = vsel %vm273_vm1, %v370_v33, 0.0 }
  0x51   : > { %v328_v59 = vadd.f32 %v327_v45, %v326_v51  ;;  %v423_v45 = vadd.f32 %v422_v35, %v421_v38 }
  0x53   : > { %v330_v7 = vadd.f32 %v329_v53, %v328_v59  ;;  %v425_v51 = vadd.f32 %v424_v42, %v423_v45  ;;  %v428_v53 = vsel %vm273_vm1, %v371_v39, 0.0  ;;  %v374_v59 = vmul.f32 %v15605_v49, %v15605_v49 }
  0x55   : > { %v332_v23 = vadd.f32 %v331_v61, %v330_v7  ;;  %v427_v57 = vadd.f32 %v426_v47, %v425_v51  ;;  %v434_v14 = vsel %vm273_vm1, %v374_v59, 0.0 }
  0x57   : > { %v334_v30 = vadd.f32 %v333_v13, %v332_v23  ;;  %v429_v61 = vadd.f32 %v428_v53, %v427_v57  ;;  %v376_v13 = vmul.f32 %v15621_v6, %v15621_v6  ;;  %v436_v23 = vsel %vm273_vm1, %v375_v0, 0.0 }
  0x59   : > { %v336_v37 = vadd.f32 %v335_v26, %v334_v30  ;;  %v431_v10 = vadd.f32 %v430_v60, %v429_v61  ;;  %v438_v27 = vsel %vm273_vm1, %v376_v13, 0.0 }
  0x5b   : > { %v337_v43 = vrot.slane %v336_v37, 4  ;;  %v433_v16 = vadd.f32 %v432_v1, %v431_v10 }
  0x5d   : > { %v338_v54 = vadd.f32 %v337_v43, %v336_v37  ;;  %v435_v26 = vadd.f32 %v434_v14, %v433_v16 }
  0x5f   : > { %v339_v7 = vrot.slane %v338_v54, 2  ;;  %v437_v29 = vadd.f32 %v436_v23, %v435_v26 }
  0x61   : > { %v340_v24 = vadd.f32 %v339_v7, %v338_v54  ;;  %v439_v31 = vadd.f32 %v438_v27, %v437_v29 }
  0x63   : > { %v341_v30 = vrot.slane %v340_v24, 1  ;;  %v440_v33 = vrot.slane %v439_v31, 4 }
  0x65   : > { %v342_v35 = vadd.f32 %v341_v30, %v340_v24  ;;  %v441_v37 = vadd.f32 %v440_v33, %v439_v31 }
  0x67   : > { %v442_v38 = vrot.slane %v441_v37, 2  ;;  %v15656_v39 = vmul.f32 0.00390625, %v342_v35 }
  0x69   : > { %v443_v42 = vadd.f32 %v442_v38, %v441_v37  ;;  %v447_v46 = vmul.f32 %v15656_v39, %v15656_v39  ;;  %v450_v54 = vsub.f32 %v15401_v2, %v15656_v39  ;;  %v451_v57 = vsub.f32 %v15404_v3, %v15656_v39 }
  0x6a   : > { %v452_v59 = vsub.f32 %v15407_v4, %v15656_v39  ;;  %v453_v60 = vsub.f32 %v15410_v5, %v15656_v39  ;;  %v454_v61 = vsub.f32 %v15419_v9, %v15656_v39  ;;  %v455_v0 = vsub.f32 %v15424_v12, %v15656_v39 }
  0x6b   : > { %v444_v43 = vrot.slane %v443_v42, 1  ;;  %v456_v2 = vsub.f32 %v15429_v15, %v15656_v39  ;;  %v457_v3 = vsub.f32 %v15432_v17, %v15656_v39  ;;  %v458_v4 = vsub.f32 %v15435_v18, %v15656_v39 }
  0x6c   : > { %v459_v5 = vsub.f32 %v15438_v19, %v15656_v39  ;;  %v460_v38 = vsub.f32 %v15443_v21, %v15656_v39 }
  0x6d   : > { %v445_v45 = vadd.f32 %v444_v43, %v443_v42  ;;  %v461_v42 = vsub.f32 %v15446_v22, %v15656_v39 }
  0x6f   : > { %v446_v47 = vmul.f32 0.00390625, %v445_v45 }
  0x71   : > { %v448_v51 = vsub.f32 %v446_v47, %v447_v46  ;;  %v462_v46 = vsub.f32 %v15467_v36, %v15656_v39  ;;  %v463_v47 = vsub.f32 %v15477_v44, %v15656_v39  ;;  %v464_v36 = vsub.f32 %v15485_v50, %v15656_v39 }
  0x73   : > { %v449_v52 = vmax.f32 %v448_v51, 0.0 }
  0x75   : > { %v482_v53 = vadd.f32 1e-05, %v449_v52 }
  0x77   : > { %15191 = vrsqrt.f32 %v482_v53 }
  0x81   : > { %v15672_v1 = vpop.eup %15191 }
  0x82   : > { %v484_v7 = vmul.f32 %v15672_v1, %v450_v54  ;;  %v485_v9 = vmul.f32 %v15672_v1, %v451_v57  ;;  %v486_v12 = vmul.f32 %v15672_v1, %v452_v59  ;;  %v487_v10 = vmul.f32 %v15672_v1, %v453_v60 }
  0x83   : > { %v488_v13 = vmul.f32 %v15672_v1, %v454_v61  ;;  %v489_v15 = vmul.f32 %v15672_v1, %v455_v0  ;;  %v490_v19 = vmul.f32 %v15672_v1, %v456_v2  ;;  %v491_v26 = vmul.f32 %v15672_v1, %v457_v3 }
  0x84   : > { %v516_v14 = vmax.f32 %v484_v7, 0.0  ;;  %v517_v17 = vmax.f32 %v485_v9, 0.0  ;;  %v518_v16 = vmax.f32 %v486_v12, 0.0  ;;  %v519_v23 = vmax.f32 %v487_v10, 0.0 }
  0x85   : > { %v520_v18 = vmax.f32 %v488_v13, 0.0  ;;  %v521_v24 = vmax.f32 %v489_v15, 0.0  ;;  %v492_v30 = vmul.f32 %v15672_v1, %v458_v4  ;;  %v493_v31 = vmul.f32 %v15672_v1, %v459_v5 }
  0x86   : > { %v548_v27 = vpack.c.bf16 %v517_v17, %v516_v14  ;;  %v549_v29 = vpack.c.bf16 %v519_v23, %v518_v16  ;;  %v522_v35 = vmax.f32 %v490_v19, 0.0  ;;  %v523_v37 = vmax.f32 %v491_v26, 0.0 }
  0x87   : > { %v550_v33 = vpack.c.bf16 %v521_v24, %v520_v18  ;;  %v524_v43 = vmax.f32 %v492_v30, 0.0  ;;  %v525_v45 = vmax.f32 %v493_v31, 0.0  ;;  %v494_v52 = vmul.f32 %v15672_v1, %v460_v38 }
  0x88   : > { %13813 = vmatprep.mubr.msk.bf16.mxu1 %vm273_vm1, %v548_v27  ;;  %v551_v51 = vpack.c.bf16 %v523_v37, %v522_v35  ;;  %v495_v53 = vmul.f32 %v15672_v1, %v461_v42  ;;  %v496_v21 = vmul.f32 %v15672_v1, %v462_v46  ;;  %v497_v22 = vmul.f32 %v15672_v1, %v463_v47 }
  0x89   : > { %13814 = vmatmul.mubr.msk.bf16.vlgmr.msra.gmra.mrb[0].mxu1 %vm273_vm1, %v549_v29  ;;  %v552_v54 = vpack.c.bf16 %v525_v45, %v524_v43  ;;  %v480_v57 = vsub.f32 %v15613_v58, %v15656_v39  ;;  %v481_v59 = vsub.f32 %v15621_v6, %v15656_v39  ;;  %v526_v44 = vmax.f32 %v494_v52, 0.0 }
  0x8a   : > { %13817 = vmatprep.mubr.msk.bf16.mxu1 %vm273_vm1, %v550_v33  ;;  %v527_v60 = vmax.f32 %v495_v53, 0.0  ;;  %v465_v61 = vsub.f32 %v15493_v56, %v15656_v39  ;;  %v528_v0 = vmax.f32 %v496_v21, 0.0  ;;  %v529_v2 = vmax.f32 %v497_v22, 0.0 }
  0x8b   : > { %v466_v58 = vsub.f32 %v15501_v62, %v15656_v39  ;;  %v467_v6 = vsub.f32 %v15509_v8, %v15656_v39  ;;  %v514_v3 = vmul.f32 %v15672_v1, %v480_v57  ;;  %v515_v50 = vmul.f32 %v15672_v1, %v481_v59 }
  0x8c   : > { %v498_v4 = vmul.f32 %v15672_v1, %v464_v36  ;;  %v553_v5 = vpack.c.bf16 %v527_v60, %v526_v44  ;;  %v499_v7 = vmul.f32 %v15672_v1, %v465_v61  ;;  %v554_v12 = vpack.c.bf16 %v529_v2, %v528_v0 }
  0x8d   : > { %v546_v56 = vmax.f32 %v514_v3, 0.0  ;;  %v547_v9 = vmax.f32 %v515_v50, 0.0  ;;  %v500_v10 = vmul.f32 %v15672_v1, %v466_v58  ;;  %v501_v13 = vmul.f32 %v15672_v1, %v467_v6  ;;  %v15790_v6 = vld [vmem:[%s19600_s3] sm:$0xff]   ;;  %v801_v50 = vld [vmem:[#allocation2 + $0x18] sm:$0x8] }
  0x8e   : > { %v530_v8 = vmax.f32 %v498_v4, 0.0  ;;  %v531_v15 = vmax.f32 %v499_v7, 0.0  ;;  %v468_v14 = vsub.f32 %v15517_v20, %v15656_v39  ;;  %v469_v17 = vsub.f32 %v15525_v28, %v15656_v39 }
  0x8f   : > { %v563_v62 = vpack.c.bf16 %v547_v9, %v546_v56  ;;  %v532_v16 = vmax.f32 %v500_v10, 0.0  ;;  %v533_v23 = vmax.f32 %v501_v13, 0.0  ;;  %v470_v18 = vsub.f32 %v15533_v34, %v15656_v39  ;;  %v804_v9 = vld [vmem:[#allocation2 + $0x2c] sm:$0x8] }
  0x90   : > { %v471_v24 = vsub.f32 %v15541_v41, %v15656_v39  ;;  %v555_v19 = vpack.c.bf16 %v531_v15, %v530_v8  ;;  %v502_v26 = vmul.f32 %v15672_v1, %v468_v14  ;;  %v503_v27 = vmul.f32 %v15672_v1, %v469_v17  ;;  %v810_v17 = vld [vmem:[#allocation2 + $0x54] sm:$0x8] }
  0x91   : > { %13818 = vmatmul.mubr.msk.bf16.gmra.mrb[4].mxu1 %vm273_vm1, %v551_v51  ;;  %v556_v29 = vpack.c.bf16 %v533_v23, %v532_v16  ;;  %v504_v20 = vmul.f32 %v15672_v1, %v470_v18  ;;  %v472_v34 = vsub.f32 %v15549_v48, %v15656_v39  ;;  %v473_v41 = vsub.f32 %v15557_v55, %v15656_v39 }
  0x92   : > { %13821 = vmatprep.mubr.msk.bf16.mxu1 %vm273_vm1, %v552_v54  ;;  %v505_v28 = vmul.f32 %v15672_v1, %v471_v24  ;;  %v534_v30 = vmax.f32 %v502_v26, 0.0  ;;  %v535_v31 = vmax.f32 %v503_v27, 0.0  ;;  %v474_v37 = vsub.f32 %v15565_v63, %v15656_v39 }
  0x93   : > { %v536_v33 = vmax.f32 %v504_v20, 0.0  ;;  %v475_v38 = vsub.f32 %v15573_v11, %v15656_v39  ;;  %v506_v43 = vmul.f32 %v15672_v1, %v472_v34  ;;  %v507_v45 = vmul.f32 %v15672_v1, %v473_v41 }
  0x94   : > { %v537_v35 = vmax.f32 %v505_v28, 0.0  ;;  %v557_v42 = vpack.c.bf16 %v535_v31, %v534_v30  ;;  %v508_v48 = vmul.f32 %v15672_v1, %v474_v37  ;;  %v476_v63 = vsub.f32 %v15581_v25, %v15656_v39 }
  0x95   : > { %v509_v55 = vmul.f32 %v15672_v1, %v475_v38  ;;  %v538_v47 = vmax.f32 %v506_v43, 0.0  ;;  %v539_v51 = vmax.f32 %v507_v45, 0.0  ;;  %v477_v11 = vsub.f32 %v15589_v32, %v15656_v39 }
  0x96   : > { %v558_v46 = vpack.c.bf16 %v537_v35, %v536_v33  ;;  %v540_v52 = vmax.f32 %v508_v48, 0.0  ;;  %v478_v54 = vsub.f32 %v15597_v40, %v15656_v39  ;;  %v479_v21 = vsub.f32 %v15605_v49, %v15656_v39  ;;  %v15077_v39 = vld [vmem:[%s19600_s3 + $0x8] sm:$0xff]  }
  0x97   : > { %v541_v53 = vmax.f32 %v509_v55, 0.0  ;;  %v559_v22 = vpack.c.bf16 %v539_v51, %v538_v47  ;;  %v510_v57 = vmul.f32 %v15672_v1, %v476_v63  ;;  %v511_v59 = vmul.f32 %v15672_v1, %v477_v11  ;;  %13845 = vmatprep.subr.bf16.mxu1 %v15077_v39  ;;  %v813_v33 = vld [vmem:[#allocation2 + $0x68] sm:$0x8] }
  0x98   : > { %v512_v25 = vmul.f32 %v15672_v1, %v478_v54  ;;  %v513_v32 = vmul.f32 %v15672_v1, %v479_v21  ;;  %13846 = vmatpush3.bf16.msra.mxu1 %v15077_v39  ;;  %v15308_v1 = vmov 0   ;;  %v802_v56 = vsel %vm15797_vm6, 0, %v801_v50  ;;  %v816_v54 = vld [vmem:[#allocation2 + $0x7c] sm:$0x8]  ;;  %v822_v50 = vld [vmem:[#allocation2 + $0xa4] sm:$0x8] }
  0x99   : > { %13822 = vmatmul.mubr.msk.bf16.gmra.mrb[8].mxu1 %vm273_vm1, %v553_v5  ;;  %v560_v36 = vpack.c.bf16 %v541_v53, %v540_v52  ;;  %v542_v44 = vmax.f32 %v510_v57, 0.0  ;;  %v543_v60 = vmax.f32 %v511_v59, 0.0  ;;  %781 = vst.msk [vmem:[#allocation2 + $0x8] sm:$0xf] %vm778_vm2, %v15308_v1  ;;  %782 = vst.msk [vmem:[#allocation2 + $0xc] sm:$0xf] %vm778_vm2, %v15308_v1  ;;  %13879 = vmatprep.subr.bf16.mxu1 %v15790_v6 }
  0x9a   : > { %13825 = vmatprep.mubr.msk.bf16.mxu1 %vm273_vm1, %v554_v12  ;;  %v544_v40 = vmax.f32 %v512_v25, 0.0  ;;  %v545_v61 = vmax.f32 %v513_v32, 0.0  ;;  %780 = vst.msk [vmem:[#allocation2 + $0x4] sm:$0xf] %vm778_vm2, %v15308_v1  ;;  %791 = vst.msk [vmem:[#allocation2 + $0x158] sm:$0xf] %vm778_vm2, %v15308_v1 }
  0x9b   : > { %v561_v0 = vpack.c.bf16 %v543_v60, %v542_v44  ;;  %792 = vst.msk [vmem:[#allocation2 + $0x15c] sm:$0xf] %vm778_vm2, %v15308_v1  ;;  %793 = vst.msk [vmem:[#allocation2 + $0x160] sm:$0xf] %vm778_vm2, %v15308_v1  ;;  %v805_v13 = vsel %vm15797_vm6, 0, %v804_v9  ;;  %v811_v24 = vsel %vm15797_vm6, 0, %v810_v17 }
  0x9c   : > { %v562_v49 = vpack.c.bf16 %v545_v61, %v544_v40  ;;  %803 = vst [vmem:[#allocation2 + $0x18] sm:$0x8] %v802_v56  ;;  %806 = vst [vmem:[#allocation2 + $0x2c] sm:$0x8] %v805_v13  ;;  %v814_v48 = vsel %vm15797_vm6, 0, %v813_v33  ;;  %v817_v60 = vsel %vm15797_vm6, 0, %v816_v54 }
  0x9d   : > { %812 = vst [vmem:[#allocation2 + $0x54] sm:$0x8] %v811_v24  ;;  %815 = vst [vmem:[#allocation2 + $0x68] sm:$0x8] %v814_v48  ;;  %v819_v57 = vld [vmem:[#allocation2 + $0x90] sm:$0x8] }
  0x9e   : > { %818 = vst [vmem:[#allocation2 + $0x7c] sm:$0x8] %v817_v60 }
  0xa0   : > { %v15783_v2 = vld [vmem:[#allocation2 + $0x8] sm:$0xf]  ;;  %v15785_v58 = vld [vmem:[#allocation2 + $0xc] sm:$0xf] }
  0xa1   : > { %13826 = vmatmul.mubr.msk.bf16.gmra.mrb[12].mxu1 %vm273_vm1, %v555_v19  ;;  %v12648_v3 = vcombine.low %v15783_v2, %v15785_v58 }
  0xa2   : > { %13829 = vmatprep.mubr.msk.bf16.mxu1 %vm273_vm1, %v556_v29 }
  0xa9   : > { %13830 = vmatmul.mubr.msk.bf16.gmra.mrb[16].mxu1 %vm273_vm1, %v557_v42 }
  0xaa   : > { %13833 = vmatprep.mubr.msk.bf16.mxu1 %vm273_vm1, %v558_v46 }
  0xb1   : > { %13834 = vmatmul.mubr.msk.bf16.gmra.mrb[20].mxu1 %vm273_vm1, %v559_v22 }
  0xb2   : > { %13837 = vmatprep.mubr.msk.bf16.mxu1 %vm273_vm1, %v560_v36 }
  0xb9   : > { %13838 = vmatmul.mubr.msk.bf16.gmra.mrb[24].mxu1 %vm273_vm1, %v561_v0 }
  0xba   : > { %13841 = vmatprep.mubr.msk.bf16.mxu1 %vm273_vm1, %v562_v49  ;;  %v820_v49 = vsel %vm15797_vm6, 0, %v819_v57 }
  0xbb   : > { %821 = vst [vmem:[#allocation2 + $0x90] sm:$0x8] %v820_v49 }
  0xc1   : > { %13842 = vmatmul.mubr.msk.bf16.gmra.mrb[28].mxu1 %vm273_vm1, %v563_v62  ;;  %v807_v62 = vld [vmem:[#allocation2 + $0x40] sm:$0x8] }
  0xc2   : > { %13847 = vmatprep.mubr.msk.bf16.mxu1 %vm897_vm5, %v12648_v3  ;;  %v808_v14 = vsel %vm15797_vm6, 0, %v807_v62  ;;  %v823_v62 = vsel %vm15797_vm6, 0, %v822_v50 }
  0xc3   : > { %809 = vst [vmem:[#allocation2 + $0x40] sm:$0x8] %v808_v14  ;;  %824 = vst [vmem:[#allocation2 + $0xa4] sm:$0x8] %v823_v62 }
 0x15c   : > { %v15795_v4 = vpop.f32.mrb[0].mxu1 }
 0x15d   : > { %v15801_v7 = vpop.f32.mrb[1].mxu1  ;;  %v970_v8 = vmul.f32 %v15795_v4, %v15795_v4  ;;  %v901_v26 = vsel %vm897_vm5, %v15795_v4, 0.0 }
 0x15e   : > { %v968_v12 = vmul.f32 %v15801_v7, %v15801_v7  ;;  %v15808_v10 = vpop.f32.mrb[2].mxu1  ;;  %v898_v16 = vsel %vm897_vm5, %v15801_v7, 0.0 }
 0x15f   : > { %v15814_v15 = vpop.f32.mrb[3].mxu1  ;;  %v971_v29 = vmul.f32 %v15808_v10, %v15808_v10  ;;  %v1003_v31 = vsel %vm897_vm5, %v970_v8, 0.0  ;;  %v903_v34 = vsel %vm897_vm5, %v15808_v10, 0.0 }
 0x160   : > { %v899_v23 = vsel %vm897_vm5, %v15814_v15, 0.0  ;;  %v969_v18 = vmul.f32 %v15814_v15, %v15814_v15  ;;  %v1000_v27 = vsel %vm897_vm5, %v968_v12, 0.0 }
 0x161   : > { %v900_v19 = vadd.f32 %v899_v23, %v898_v16  ;;  %v1005_v42 = vsel %vm897_vm5, %v971_v29, 0.0 }
 0x162   : > { %v1001_v20 = vsel %vm897_vm5, %v969_v18, 0.0 }
 0x163   : > { %v902_v28 = vadd.f32 %v901_v26, %v900_v19  ;;  %v1002_v30 = vadd.f32 %v1001_v20, %v1000_v27  ;;  %v825_v19 = vld [vmem:[#allocation2 + $0xb8] sm:$0x8] }
 0x164   : > { %v15835_v41 = vpop.f32.mrb[4].mxu1  ;;  %v826_v29 = vsel %vm15797_vm6, 0, %v825_v19 }
 0x165   : > { %v1004_v35 = vadd.f32 %v1003_v31, %v1002_v30  ;;  %v15837_v37 = vpop.f32.mrb[5].mxu1  ;;  %v904_v38 = vadd.f32 %v903_v34, %v902_v28  ;;  %v974_v63 = vmul.f32 %v15835_v41, %v15835_v41  ;;  %v909_v59 = vsel %vm897_vm5, %v15835_v41, 0.0  ;;  %827 = vst [vmem:[#allocation2 + $0xb8] sm:$0x8] %v826_v29  ;;  %v828_v31 = vld [vmem:[#allocation2 + $0xcc] sm:$0x8] }
 0x166   : > { %v905_v43 = vsel %vm897_vm5, %v15837_v37, 0.0  ;;  %v972_v45 = vmul.f32 %v15837_v37, %v15837_v37  ;;  %v15844_v46 = vpop.f32.mrb[6].mxu1  ;;  %v840_v29 = vld [vmem:[#allocation2 + $0x11c] sm:$0x8] }
 0x167   : > { %v906_v55 = vadd.f32 %v905_v43, %v904_v38  ;;  %v1006_v47 = vadd.f32 %v1005_v42, %v1004_v35  ;;  %v15848_v51 = vpop.f32.mrb[7].mxu1  ;;  %v975_v36 = vmul.f32 %v15844_v46, %v15844_v46  ;;  %v1011_v40 = vsel %vm897_vm5, %v974_v63, 0.0 }
 0x168   : > { %v1007_v11 = vsel %vm897_vm5, %v972_v45, 0.0  ;;  %v907_v52 = vsel %vm897_vm5, %v15848_v51, 0.0  ;;  %v973_v53 = vmul.f32 %v15848_v51, %v15848_v51  ;;  %v911_v61 = vsel %vm897_vm5, %v15844_v46, 0.0 }
 0x169   : > { %v1008_v21 = vadd.f32 %v1007_v11, %v1006_v47  ;;  %v908_v22 = vadd.f32 %v907_v52, %v906_v55  ;;  %v1013_v56 = vsel %vm897_vm5, %v975_v36, 0.0  ;;  %v829_v35 = vsel %vm15797_vm6, 0, %v828_v31 }
 0x16a   : > { %v1009_v25 = vsel %vm897_vm5, %v973_v53, 0.0  ;;  %830 = vst [vmem:[#allocation2 + $0xcc] sm:$0x8] %v829_v35 }
 0x16b   : > { %v910_v32 = vadd.f32 %v909_v59, %v908_v22  ;;  %v1010_v44 = vadd.f32 %v1009_v25, %v1008_v21  ;;  %v831_v22 = vld [vmem:[#allocation2 + $0xe0] sm:$0x8] }
 0x16c   : > { %v15867_v0 = vpop.f32.mrb[8].mxu1 }
 0x16d   : > { %v1012_v39 = vadd.f32 %v1011_v40, %v1010_v44  ;;  %v15871_v1 = vpop.f32.mrb[9].mxu1  ;;  %v912_v3 = vadd.f32 %v911_v61, %v910_v32  ;;  %v978_v16 = vmul.f32 %v15867_v0, %v15867_v0  ;;  %v917_v20 = vsel %vm897_vm5, %v15867_v0, 0.0  ;;  %v834_v32 = vld [vmem:[#allocation2 + $0xf4] sm:$0x8] }
 0x16e   : > { %v913_v9 = vsel %vm897_vm5, %v15871_v1, 0.0  ;;  %v976_v12 = vmul.f32 %v15871_v1, %v15871_v1  ;;  %v15878_v13 = vpop.f32.mrb[10].mxu1 }
 0x16f   : > { %v914_v8 = vadd.f32 %v913_v9, %v912_v3  ;;  %v1014_v14 = vadd.f32 %v1013_v56, %v1012_v39  ;;  %v15882_v17 = vpop.f32.mrb[11].mxu1  ;;  %v979_v28 = vmul.f32 %v15878_v13, %v15878_v13  ;;  %v1019_v38 = vsel %vm897_vm5, %v978_v16, 0.0  ;;  %v837_v9 = vld [vmem:[#allocation2 + $0x108] sm:$0x8] }
 0x170   : > { %v1015_v23 = vsel %vm897_vm5, %v976_v12, 0.0  ;;  %v915_v18 = vsel %vm897_vm5, %v15882_v17, 0.0  ;;  %v977_v24 = vmul.f32 %v15882_v17, %v15882_v17  ;;  %v919_v42 = vsel %vm897_vm5, %v15878_v13, 0.0 }
 0x171   : > { %v1016_v26 = vadd.f32 %v1015_v23, %v1014_v14  ;;  %v916_v27 = vadd.f32 %v915_v18, %v914_v8  ;;  %v1021_v47 = vsel %vm897_vm5, %v979_v28, 0.0  ;;  %v832_v39 = vsel %vm15797_vm6, 0, %v831_v22 }
 0x172   : > { %v1017_v30 = vsel %vm897_vm5, %v977_v24, 0.0  ;;  %833 = vst [vmem:[#allocation2 + $0xe0] sm:$0x8] %v832_v39  ;;  %v835_v56 = vsel %vm15797_vm6, 0, %v834_v32  ;;  %v838_v14 = vsel %vm15797_vm6, 0, %v837_v9 }
 0x173   : > { %v918_v34 = vadd.f32 %v917_v20, %v916_v27  ;;  %v1018_v33 = vadd.f32 %v1017_v30, %v1016_v26  ;;  %836 = vst [vmem:[#allocation2 + $0xf4] sm:$0x8] %v835_v56  ;;  %839 = vst [vmem:[#allocation2 + $0x108] sm:$0x8] %v838_v14 }
 0x174   : > { %v15903_v43 = vpop.f32.mrb[12].mxu1 }
 0x175   : > { %v1020_v45 = vadd.f32 %v1019_v38, %v1018_v33  ;;  %v15905_v48 = vpop.f32.mrb[13].mxu1  ;;  %v920_v55 = vadd.f32 %v919_v42, %v918_v34  ;;  %v982_v57 = vmul.f32 %v15903_v43, %v15903_v43  ;;  %v925_v40 = vsel %vm897_vm5, %v15903_v43, 0.0 }
 0x176   : > { %v921_v63 = vsel %vm897_vm5, %v15905_v48, 0.0  ;;  %v980_v11 = vmul.f32 %v15905_v48, %v15905_v48  ;;  %v15912_v52 = vpop.f32.mrb[14].mxu1 }
 0x177   : > { %v922_v53 = vadd.f32 %v921_v63, %v920_v55  ;;  %v1022_v54 = vadd.f32 %v1021_v47, %v1020_v45  ;;  %v15914_v21 = vpop.f32.mrb[15].mxu1  ;;  %v983_v61 = vmul.f32 %v15912_v52, %v15912_v52  ;;  %v1027_v12 = vsel %vm897_vm5, %v982_v57, 0.0  ;;  %v843_v55 = vld [vmem:[#allocation2 + $0x130] sm:$0x8] }
 0x178   : > { %v1023_v59 = vsel %vm897_vm5, %v980_v11, 0.0  ;;  %v923_v36 = vsel %vm897_vm5, %v15914_v21, 0.0  ;;  %v981_v25 = vmul.f32 %v15914_v21, %v15914_v21  ;;  %v927_v62 = vsel %vm897_vm5, %v15912_v52, 0.0 }
 0x179   : > { %v1024_v44 = vadd.f32 %v1023_v59, %v1022_v54  ;;  %v924_v60 = vadd.f32 %v923_v36, %v922_v53  ;;  %v1029_v24 = vsel %vm897_vm5, %v983_v61, 0.0  ;;  %v841_v45 = vsel %vm15797_vm6, 0, %v840_v29 }
 0x17a   : > { %v1025_v49 = vsel %vm897_vm5, %v981_v25, 0.0  ;;  %842 = vst [vmem:[#allocation2 + $0x11c] sm:$0x8] %v841_v45  ;;  %v844_v53 = vsel %vm15797_vm6, 0, %v843_v55  ;;  %v852_v45 = vld [vmem:[#allocation2 + $0x38] sm:$0x1] }
 0x17b   : > { %v926_v3 = vadd.f32 %v925_v40, %v924_v60  ;;  %v1026_v50 = vadd.f32 %v1025_v49, %v1024_v44  ;;  %845 = vst [vmem:[#allocation2 + $0x130] sm:$0x8] %v844_v53 }
 0x17c   : > { %v15935_v8 = vpop.f32.mrb[16].mxu1 }
 0x17d   : > { %v1028_v16 = vadd.f32 %v1027_v12, %v1026_v50  ;;  %v15939_v23 = vpop.f32.mrb[17].mxu1  ;;  %v928_v18 = vadd.f32 %v927_v62, %v926_v3  ;;  %v986_v31 = vmul.f32 %v15935_v8, %v15935_v8  ;;  %v933_v47 = vsel %vm897_vm5, %v15935_v8, 0.0  ;;  %v849_v3 = vld [vmem:[#allocation2 + $0x24] sm:$0x1] }
 0x17e   : > { %v929_v19 = vsel %vm897_vm5, %v15939_v23, 0.0  ;;  %v984_v26 = vmul.f32 %v15939_v23, %v15939_v23  ;;  %v15946_v27 = vpop.f32.mrb[18].mxu1 }
 0x17f   : > { %v930_v20 = vadd.f32 %v929_v19, %v928_v18  ;;  %v1030_v28 = vadd.f32 %v1029_v24, %v1028_v16  ;;  %v15948_v30 = vpop.f32.mrb[19].mxu1  ;;  %v987_v63 = vmul.f32 %v15946_v27, %v15946_v27  ;;  %v1035_v57 = vsel %vm897_vm5, %v986_v31, 0.0 }
 0x180   : > { %v1031_v34 = vsel %vm897_vm5, %v984_v26, 0.0  ;;  %v931_v33 = vsel %vm897_vm5, %v15948_v30, 0.0  ;;  %v985_v35 = vmul.f32 %v15948_v30, %v15948_v30  ;;  %v935_v59 = vsel %vm897_vm5, %v15946_v27, 0.0 }
 0x181   : > { %v1032_v38 = vadd.f32 %v1031_v34, %v1030_v28  ;;  %v932_v42 = vadd.f32 %v931_v33, %v930_v20  ;;  %v1037_v60 = vsel %vm897_vm5, %v987_v63, 0.0  ;;  %v850_v19 = vsel %vm15981_vm9, 0, %v849_v3 }
 0x182   : > { %v1033_v11 = vsel %vm897_vm5, %v985_v35, 0.0  ;;  %851 = vst [vmem:[#allocation2 + $0x24] sm:$0x1] %v850_v19  ;;  %v1387_v34 = vshrl.u32 %v15783_v2, 16  ;;  %v1396_v33 = vshrl.u32 %v15785_v58, 16 }
 0x183   : > { %v934_v54 = vadd.f32 %v933_v47, %v932_v42  ;;  %v1034_v22 = vadd.f32 %v1033_v11, %v1032_v38  ;;  %v1399_v11 = vshll.u32 %v15785_v58, 16 }
 0x184   : > { %v15969_v36 = vpop.f32.mrb[20].mxu1 }
 0x185   : > { %v1036_v25 = vadd.f32 %v1035_v57, %v1034_v22  ;;  %v15971_v32 = vpop.f32.mrb[21].mxu1  ;;  %v936_v44 = vadd.f32 %v935_v59, %v934_v54  ;;  %v990_v12 = vmul.f32 %v15969_v36, %v15969_v36  ;;  %v941_v26 = vsel %vm897_vm5, %v15969_v36, 0.0 }
 0x186   : > { %v937_v40 = vsel %vm897_vm5, %v15971_v32, 0.0  ;;  %v988_v61 = vmul.f32 %v15971_v32, %v15971_v32  ;;  %v15978_v49 = vpop.f32.mrb[22].mxu1  ;;  %v853_v59 = vsel %vm15981_vm9, 0, %v852_v45 }
 0x187   : > { %v938_v50 = vadd.f32 %v937_v40, %v936_v44  ;;  %v1038_v56 = vadd.f32 %v1037_v60, %v1036_v25  ;;  %v15985_v9 = vpop.f32.mrb[23].mxu1  ;;  %v991_v29 = vmul.f32 %v15978_v49, %v15978_v49  ;;  %v1043_v35 = vsel %vm897_vm5, %v990_v12, 0.0  ;;  %854 = vst [vmem:[#allocation2 + $0x38] sm:$0x1] %v853_v59 }
 0x188   : > { %v1039_v62 = vsel %vm897_vm5, %v988_v61, 0.0  ;;  %v939_v14 = vsel %vm897_vm5, %v15985_v9, 0.0  ;;  %v989_v16 = vmul.f32 %v15985_v9, %v15985_v9  ;;  %v943_v38 = vsel %vm897_vm5, %v15978_v49, 0.0 }
 0x189   : > { %v1040_v18 = vadd.f32 %v1039_v62, %v1038_v56  ;;  %v940_v24 = vadd.f32 %v939_v14, %v938_v50  ;;  %v1045_v53 = vsel %vm897_vm5, %v991_v29, 0.0  ;;  %v1389_v40 = vrot.slane %v1387_v34, 7 }
 0x18a   : > { %v1041_v20 = vsel %vm897_vm5, %v989_v16, 0.0  ;;  %v1398_v61 = vrot.slane %v1396_v33, 7  ;;  %v1390_v29 = vshll.u32 %v15783_v2, 16  ;;  %v1331_v33 = vld [vmem:[#allocation2 + $0x4] sm:$0x8] }
 0x18b   : > { %v942_v28 = vadd.f32 %v941_v26, %v940_v24  ;;  %v1042_v31 = vadd.f32 %v1041_v20, %v1040_v18  ;;  %v855_v24 = vld [vmem:[#allocation2 + $0x4c] sm:$0x1]  ;;  %v1382_v59 = vshrl.u32 %v1331_v33, 16 }
 0x18c   : > { %v16006_v42 = vpop.f32.mrb[24].mxu1  ;;  %v856_v20 = vsel %vm15981_vm9, 0, %v855_v24 }
 0x18d   : > { %v1044_v55 = vadd.f32 %v1043_v35, %v1042_v31  ;;  %v16008_v47 = vpop.f32.mrb[25].mxu1  ;;  %v944_v63 = vadd.f32 %v943_v38, %v942_v28  ;;  %v994_v58 = vmul.f32 %v16006_v42, %v16006_v42  ;;  %v949_v16 = vsel %vm897_vm5, %v16006_v42, 0.0  ;;  %857 = vst [vmem:[#allocation2 + $0x4c] sm:$0x1] %v856_v20 }
 0x18e   : > { %v945_v54 = vsel %vm897_vm5, %v16008_v47, 0.0  ;;  %v992_v22 = vmul.f32 %v16008_v47, %v16008_v47  ;;  %v16016_v57 = vpop.f32.mrb[26].mxu1  ;;  %v1394_v35 = vrot.slane %v1389_v40, 4  ;;  %v1401_v38 = vor.u32 %v1399_v11, %v1398_v61 }
 0x18f   : > { %v946_v25 = vadd.f32 %v945_v54, %v944_v63  ;;  %v1046_v44 = vadd.f32 %v1045_v53, %v1044_v55  ;;  %v16020_v60 = vpop.f32.mrb[27].mxu1  ;;  %v995_v62 = vmul.f32 %v16016_v57, %v16016_v57  ;;  %v1051_v28 = vsel %vm897_vm5, %v994_v58, 0.0 }
 0x190   : > { %v1047_v3 = vsel %vm897_vm5, %v992_v22, 0.0  ;;  %v947_v50 = vsel %vm897_vm5, %v16020_v60, 0.0  ;;  %v993_v56 = vmul.f32 %v16020_v60, %v16020_v60  ;;  %v951_v31 = vsel %vm897_vm5, %v16016_v57, 0.0 }
 0x191   : > { %v1048_v12 = vadd.f32 %v1047_v3, %v1046_v44  ;;  %v948_v14 = vadd.f32 %v947_v50, %v946_v25  ;;  %v1053_v45 = vsel %vm897_vm5, %v995_v62, 0.0  ;;  %v1402_v25 = vsel %vm16047_vm11, %v1394_v35, %v1401_v38  ;;  %v858_v50 = vld [vmem:[#allocation2 + $0x60] sm:$0x1] }
 0x192   : > { %v1049_v18 = vsel %vm897_vm5, %v993_v56, 0.0  ;;  %v1392_v3 = vor.u32 %v1390_v29, %v1389_v40  ;;  %v861_v56 = vld [vmem:[#allocation2 + $0x74] sm:$0x1]  ;;  %v859_v20 = vsel %vm15981_vm9, 0, %v858_v50  ;;  %v867_v50 = vld [vmem:[#allocation2 + $0x9c] sm:$0x1] }
 0x193   : > { %v950_v19 = vadd.f32 %v949_v16, %v948_v14  ;;  %v1050_v26 = vadd.f32 %v1049_v18, %v1048_v12  ;;  %860 = vst [vmem:[#allocation2 + $0x60] sm:$0x1] %v859_v20 }
 0x194   : > { %v16040_v34 = vpop.f32.mrb[28].mxu1 }
 0x195   : > { %v1052_v55 = vadd.f32 %v1051_v28, %v1050_v26  ;;  %v16043_v63 = vpop.f32.mrb[29].mxu1  ;;  %v952_v2 = vadd.f32 %v951_v31, %v950_v19  ;;  %v998_v12 = vmul.f32 %v16040_v34, %v16040_v34  ;;  %v957_v18 = vsel %vm897_vm5, %v16040_v34, 0.0 }
 0x196   : > { %v953_v54 = vsel %vm897_vm5, %v16043_v63, 0.0  ;;  %v996_v22 = vmul.f32 %v16043_v63, %v16043_v63  ;;  %v16055_v11 = vpop.f32.mrb[30].mxu1  ;;  %v12630_v26 = vrot.slane %v1382_v59, 11  ;;  %v862_v28 = vsel %vm15981_vm9, 0, %v861_v56 }
 0x197   : > { %v954_v44 = vadd.f32 %v953_v54, %v952_v2  ;;  %v1054_v61 = vadd.f32 %v1053_v45, %v1052_v55  ;;  %v16059_v58 = vpop.f32.mrb[31].mxu1  ;;  %v999_v40 = vmul.f32 %v16055_v11, %v16055_v11  ;;  %863 = vst [vmem:[#allocation2 + $0x74] sm:$0x1] %v862_v28  ;;  %v1059_v38 = vsel %vm897_vm5, %v998_v12, 0.0  ;;  %v864_v2 = vld [vmem:[#allocation2 + $0x88] sm:$0x1] }
 0x198   : > { %v1055_v62 = vsel %vm897_vm5, %v996_v22, 0.0  ;;  %v955_v14 = vsel %vm897_vm5, %v16059_v58, 0.0  ;;  %v997_v16 = vmul.f32 %v16059_v58, %v16059_v58  ;;  %v1393_v35 = vsel %vm16047_vm11, %v12630_v26, %v1392_v3  ;;  %v873_v26 = vld [vmem:[#allocation2 + $0xc4] sm:$0x1] }
 0x199   : > { %v1056_v24 = vadd.f32 %v1055_v62, %v1054_v61  ;;  %v956_v19 = vadd.f32 %v955_v14, %v954_v44  ;;  %v959_v45 = vsel %vm897_vm5, %v16055_v11, 0.0  ;;  %v16082_v55 = vcombine.low %v1393_v35, %v1402_v25 }
 0x19a   : > { %v1057_v29 = vsel %vm897_vm5, %v997_v16, 0.0  ;;  %v865_v59 = vsel %vm15981_vm9, 0, %v864_v2  ;;  %v1061_v44 = vsel %vm897_vm5, %v999_v40, 0.0  ;;  %v868_v56 = vsel %vm15981_vm9, 0, %v867_v50  ;;  %v870_v16 = vld [vmem:[#allocation2 + $0xb0] sm:$0x1] }
 0x19b   : > { %v958_v31 = vadd.f32 %v957_v18, %v956_v19  ;;  %v1058_v33 = vadd.f32 %v1057_v29, %v1056_v24  ;;  %866 = vst [vmem:[#allocation2 + $0x88] sm:$0x1] %v865_v59  ;;  %869 = vst [vmem:[#allocation2 + $0x9c] sm:$0x1] %v868_v56  ;;  %v871_v18 = vsel %vm15981_vm9, 0, %v870_v16  ;;  %v874_v20 = vsel %vm15981_vm9, 0, %v873_v26 }
 0x19c   : > { %872 = vst [vmem:[#allocation2 + $0xb0] sm:$0x1] %v871_v18  ;;  %875 = vst [vmem:[#allocation2 + $0xc4] sm:$0x1] %v874_v20  ;;  %v885_v16 = vld [vmem:[#allocation2 + $0x114] sm:$0x1] }
 0x19d   : > { %v960_v54 = vadd.f32 %v959_v45, %v958_v31  ;;  %v1060_v22 = vadd.f32 %v1059_v38, %v1058_v33  ;;  %v876_v38 = vld [vmem:[#allocation2 + $0xd8] sm:$0x1] }
 0x19e   : > { %v877_v45 = vsel %vm15981_vm9, 0, %v876_v38 }
 0x19f   : > { %v961_v61 = vrot.slane %v960_v54, 4  ;;  %v1062_v3 = vadd.f32 %v1061_v44, %v1060_v22  ;;  %878 = vst [vmem:[#allocation2 + $0xd8] sm:$0x1] %v877_v45 }
 0x1a1   : > { %v962_v12 = vadd.f32 %v961_v61, %v960_v54  ;;  %v1063_v62 = vrot.slane %v1062_v3, 4 }
 0x1a3   : > { %v963_v25 = vrot.slane %v962_v12, 2  ;;  %v1064_v14 = vadd.f32 %v1063_v62, %v1062_v3 }
 0x1a5   : > { %v964_v24 = vadd.f32 %v963_v25, %v962_v12  ;;  %v1065_v19 = vrot.slane %v1064_v14, 2 }
 0x1a7   : > { %v965_v40 = vrot.slane %v964_v24, 1  ;;  %v1066_v29 = vadd.f32 %v1065_v19, %v1064_v14  ;;  %v879_v14 = vld [vmem:[#allocation2 + $0xec] sm:$0x1] }
 0x1a9   : > { %v966_v28 = vadd.f32 %v965_v40, %v964_v24  ;;  %v1067_v31 = vrot.slane %v1066_v29, 1 }
 0x1ab   : > { %v16093_v33 = vmul.f32 0.00390625, %v966_v28  ;;  %v1068_v35 = vadd.f32 %v1067_v31, %v1066_v29 }
 0x1ad   : > { %v1069_v2 = vmul.f32 0.00390625, %v1068_v35  ;;  %v1070_v54 = vmul.f32 %v16093_v33, %v16093_v33  ;;  %v1102_v22 = vsub.f32 %v16059_v58, %v16093_v33  ;;  %v1073_v59 = vsub.f32 %v15801_v7, %v16093_v33 }
 0x1ae   : > { %v1074_v44 = vsub.f32 %v15814_v15, %v16093_v33  ;;  %v1075_v61 = vsub.f32 %v15795_v4, %v16093_v33  ;;  %v1076_v3 = vsub.f32 %v15808_v10, %v16093_v33  ;;  %v1077_v50 = vsub.f32 %v15837_v37, %v16093_v33 }
 0x1af   : > { %v1071_v56 = vsub.f32 %v1069_v2, %v1070_v54  ;;  %v1078_v58 = vsub.f32 %v15848_v51, %v16093_v33  ;;  %v1079_v7 = vsub.f32 %v15835_v41, %v16093_v33  ;;  %v1080_v12 = vsub.f32 %v15844_v46, %v16093_v33 }
 0x1b0   : > { %v1081_v15 = vsub.f32 %v15871_v1, %v16093_v33  ;;  %v1082_v4 = vsub.f32 %v15882_v17, %v16093_v33  ;;  %v1083_v10 = vsub.f32 %v15867_v0, %v16093_v33  ;;  %v1084_v37 = vsub.f32 %v15878_v13, %v16093_v33 }
 0x1b1   : > { %v1072_v62 = vmax.f32 %v1071_v56, 0.0  ;;  %v1085_v51 = vsub.f32 %v15905_v48, %v16093_v33  ;;  %v1086_v41 = vsub.f32 %v15914_v21, %v16093_v33  ;;  %v1087_v46 = vsub.f32 %v15903_v43, %v16093_v33 }
 0x1b2   : > { %v1088_v1 = vsub.f32 %v15912_v52, %v16093_v33  ;;  %v1089_v17 = vsub.f32 %v15939_v23, %v16093_v33  ;;  %v1090_v0 = vsub.f32 %v15948_v30, %v16093_v33  ;;  %v1091_v13 = vsub.f32 %v15935_v8, %v16093_v33 }
 0x1b3   : > { %v1105_v25 = vadd.f32 1e-05, %v1072_v62  ;;  %v1092_v48 = vsub.f32 %v15946_v27, %v16093_v33  ;;  %v1093_v21 = vsub.f32 %v15971_v32, %v16093_v33  ;;  %v1094_v43 = vsub.f32 %v15985_v9, %v16093_v33  ;;  %v882_v27 = vld [vmem:[#allocation2 + $0x100] sm:$0x1] }
 0x1b4   : > { %v1095_v52 = vsub.f32 %v15969_v36, %v16093_v33  ;;  %v1096_v23 = vsub.f32 %v15978_v49, %v16093_v33  ;;  %v1097_v30 = vsub.f32 %v16008_v47, %v16093_v33  ;;  %v1098_v8 = vsub.f32 %v16020_v60, %v16093_v33 }
 0x1b5   : > { %15193 = vrsqrt.f32 %v1105_v25  ;;  %v1099_v32 = vsub.f32 %v16006_v42, %v16093_v33  ;;  %v1100_v9 = vsub.f32 %v16016_v57, %v16093_v33  ;;  %v1101_v36 = vsub.f32 %v16043_v63, %v16093_v33  ;;  %v888_v57 = vld [vmem:[#allocation2 + $0x128] sm:$0x1] }
 0x1b6   : > { %v1103_v49 = vsub.f32 %v16040_v34, %v16093_v33  ;;  %v1104_v47 = vsub.f32 %v16055_v11, %v16093_v33  ;;  %v880_v60 = vsel %vm15981_vm9, 0, %v879_v14  ;;  %v883_v18 = vsel %vm15981_vm9, 0, %v882_v27 }
 0x1b7   : > { %v886_v42 = vsel %vm15981_vm9, 0, %v885_v16  ;;  %881 = vst [vmem:[#allocation2 + $0xec] sm:$0x1] %v880_v60  ;;  %884 = vst [vmem:[#allocation2 + $0x100] sm:$0x1] %v883_v18  ;;  %v889_v34 = vsel %vm15981_vm9, 0, %v888_v57 }
 0x1b8   : > { %887 = vst [vmem:[#allocation2 + $0x114] sm:$0x1] %v886_v42  ;;  %890 = vst [vmem:[#allocation2 + $0x128] sm:$0x1] %v889_v34 }
 0x1bf   : > { %v15194_v63 = vpop.eup %15193 }
 0x1c0   : > { %v1136_v11 = vmul.f32 %v15194_v63, %v1102_v22  ;;  %v16171_v24 = vmul.f32 %v15194_v63, %v1073_v59  ;;  %v16173_v19 = vmul.f32 %v15194_v63, %v1074_v44  ;;  %v16175_v26 = vmul.f32 %v15194_v63, %v1075_v61 }
 0x1c1   : > { %v16177_v40 = vmul.f32 %v15194_v63, %v1076_v3  ;;  %v16179_v29 = vmul.f32 %v15194_v63, %v1077_v50  ;;  %v16181_v20 = vmul.f32 %v15194_v63, %v1078_v58  ;;  %v16183_v28 = vmul.f32 %v15194_v63, %v1079_v7 }
 0x1c2   : > { %v1168_v31 = vmax.f32 %v1136_v11, 0.0  ;;  %v16185_v33 = vmul.f32 %v15194_v63, %v1080_v12  ;;  %v16187_v35 = vmul.f32 %v15194_v63, %v1081_v15  ;;  %v16189_v38 = vmul.f32 %v15194_v63, %v1082_v4 }
 0x1c3   : > { %v16191_v45 = vmul.f32 %v15194_v63, %v1083_v10  ;;  %v16193_v2 = vmul.f32 %v15194_v63, %v1084_v37  ;;  %v16195_v54 = vmul.f32 %v15194_v63, %v1085_v51  ;;  %v16197_v22 = vmul.f32 %v15194_v63, %v1086_v41 }
 0x1c4   : > { %v13435_v59 = vpack.c.bf16 %v1168_v31, %v1168_v31  ;;  %v16199_v44 = vmul.f32 %v15194_v63, %v1087_v46  ;;  %v16201_v61 = vmul.f32 %v15194_v63, %v1088_v1  ;;  %v16203_v3 = vmul.f32 %v15194_v63, %v1089_v17 }
 0x1c5   : > { %v16205_v50 = vmul.f32 %v15194_v63, %v1090_v0  ;;  %v16207_v56 = vmul.f32 %v15194_v63, %v1091_v13  ;;  %v16209_v58 = vmul.f32 %v15194_v63, %v1092_v48  ;;  %v16211_v7 = vmul.f32 %v15194_v63, %v1093_v21 }
 0x1c6   : > { %1328 = vst.msk [vmem:[#allocation2 + $0x138] sm:$0xf] %vm778_vm2, %v13435_v59  ;;  %v16214_v12 = vmul.f32 %v15194_v63, %v1094_v43  ;;  %v16216_v15 = vmul.f32 %v15194_v63, %v1095_v52  ;;  %v16218_v4 = vmul.f32 %v15194_v63, %v1096_v23  ;;  %v16220_v10 = vmul.f32 %v15194_v63, %v1097_v30 }
 0x1c7   : > { %v16222_v37 = vmul.f32 %v15194_v63, %v1098_v8  ;;  %v16224_v62 = vmul.f32 %v15194_v63, %v1099_v32  ;;  %v16226_v51 = vmul.f32 %v15194_v63, %v1100_v9  ;;  %v16228_v41 = vmul.f32 %v15194_v63, %v1101_v36 }
 0x1c8   : > { %v16230_v46 = vmul.f32 %v15194_v63, %v1103_v49  ;;  %v16232_v1 = vmul.f32 %v15194_v63, %v1104_v47  ;;  %v1139_v17 = vmax.f32 %v16171_v24, 0.0  ;;  %v1140_v0 = vmax.f32 %v16173_v19, 0.0 }
 0x1c9   : > { %v1141_v13 = vmax.f32 %v16175_v26, 0.0  ;;  %v1142_v25 = vmax.f32 %v16177_v40, 0.0  ;;  %v1143_v48 = vmax.f32 %v16179_v29, 0.0  ;;  %v1144_v21 = vmax.f32 %v16181_v20, 0.0 }
 0x1ca   : > { %v1145_v43 = vmax.f32 %v16183_v28, 0.0  ;;  %v1146_v52 = vmax.f32 %v16185_v33, 0.0  ;;  %v1147_v23 = vmax.f32 %v16187_v35, 0.0  ;;  %v1148_v30 = vmax.f32 %v16189_v38, 0.0 }
 0x1cb   : > { %v1149_v8 = vmax.f32 %v16191_v45, 0.0  ;;  %v1150_v14 = vmax.f32 %v16193_v2, 0.0  ;;  %v1151_v27 = vmax.f32 %v16195_v54, 0.0  ;;  %v1152_v32 = vmax.f32 %v16197_v22, 0.0 }
 0x1cc   : > { %v1153_v9 = vmax.f32 %v16199_v44, 0.0  ;;  %v1154_v36 = vmax.f32 %v16201_v61, 0.0  ;;  %v1155_v49 = vmax.f32 %v16203_v3, 0.0  ;;  %v1156_v47 = vmax.f32 %v16205_v50, 0.0 }
 0x1cd   : > { %v1157_v16 = vmax.f32 %v16207_v56, 0.0  ;;  %v1158_v60 = vmax.f32 %v16209_v58, 0.0  ;;  %v1159_v18 = vmax.f32 %v16211_v7, 0.0  ;;  %v1160_v42 = vmax.f32 %v16214_v12, 0.0 }
 0x1ce   : > { %v1161_v57 = vmax.f32 %v16216_v15, 0.0  ;;  %v1162_v34 = vmax.f32 %v16218_v4, 0.0  ;;  %v1163_v63 = vmax.f32 %v16220_v10, 0.0  ;;  %v1164_v11 = vmax.f32 %v16222_v37, 0.0 }
 0x1cf   : > { %v1165_v24 = vmax.f32 %v16224_v62, 0.0  ;;  %v1166_v19 = vmax.f32 %v16226_v51, 0.0  ;;  %v1167_v26 = vmax.f32 %v16228_v41, 0.0  ;;  %v1169_v40 = vmax.f32 %v16230_v46, 0.0  ;;  %v786_v62 = vld [vmem:[#allocation2 + $0x10] sm:$0x1] }
 0x1d0   : > { %v1170_v29 = vmax.f32 %v16232_v1, 0.0  ;;  %v13406_v20 = vpack.c.bf16 %v1139_v17, %v1139_v17  ;;  %v13407_v28 = vpack.c.bf16 %v1140_v0, %v1140_v0  ;;  %v13408_v31 = vpack.c.bf16 %v1141_v13, %v1141_v13 }
 0x1d1   : > { %v13409_v33 = vpack.c.bf16 %v1142_v25, %v1142_v25  ;;  %v13410_v35 = vpack.c.bf16 %v1143_v48, %v1143_v48  ;;  %v13411_v38 = vpack.c.bf16 %v1144_v21, %v1144_v21  ;;  %v13412_v45 = vpack.c.bf16 %v1145_v43, %v1145_v43 }
 0x1d2   : > { %v13413_v2 = vpack.c.bf16 %v1146_v52, %v1146_v52  ;;  %v13414_v54 = vpack.c.bf16 %v1147_v23, %v1147_v23  ;;  %v13415_v22 = vpack.c.bf16 %v1148_v30, %v1148_v30  ;;  %v13416_v59 = vpack.c.bf16 %v1149_v8, %v1149_v8  ;;  %1299 = vst.msk [vmem:[#allocation2 + $0x1c] sm:$0xf] %vm778_vm2, %v13406_v20  ;;  %v16311_v8 = vld [vmem:[%s19600_s3 + $0x10] sm:$0xff]  }
 0x1d3   : > { %1300 = vst.msk [vmem:[#allocation2 + $0x20] sm:$0xf] %vm778_vm2, %v13407_v28  ;;  %1301 = vst.msk [vmem:[#allocation2 + $0x30] sm:$0xf] %vm778_vm2, %v13408_v31  ;;  %v13417_v44 = vpack.c.bf16 %v1150_v14, %v1150_v14  ;;  %v13418_v61 = vpack.c.bf16 %v1151_v27, %v1151_v27  ;;  %v13419_v3 = vpack.c.bf16 %v1152_v32, %v1152_v32  ;;  %v787_v48 = vsel %vm15981_vm9, 0, %v786_v62 }
 0x1d4   : > { %v13420_v50 = vpack.c.bf16 %v1153_v9, %v1153_v9  ;;  %1302 = vst.msk [vmem:[#allocation2 + $0x34] sm:$0xf] %vm778_vm2, %v13409_v33  ;;  %1303 = vst.msk [vmem:[#allocation2 + $0x44] sm:$0xf] %vm778_vm2, %v13410_v35  ;;  %v13421_v56 = vpack.c.bf16 %v1154_v36, %v1154_v36  ;;  %v13422_v58 = vpack.c.bf16 %v1155_v49, %v1155_v49 }
 0x1d5   : > { %1304 = vst.msk [vmem:[#allocation2 + $0x48] sm:$0xf] %vm778_vm2, %v13411_v38  ;;  %1305 = vst.msk [vmem:[#allocation2 + $0x58] sm:$0xf] %vm778_vm2, %v13412_v45  ;;  %v13423_v7 = vpack.c.bf16 %v1156_v47, %v1156_v47  ;;  %v13424_v12 = vpack.c.bf16 %v1157_v16, %v1157_v16  ;;  %v13425_v15 = vpack.c.bf16 %v1158_v60, %v1158_v60 }
 0x1d6   : > { %1306 = vst.msk [vmem:[#allocation2 + $0x5c] sm:$0xf] %vm778_vm2, %v13413_v2  ;;  %1307 = vst.msk [vmem:[#allocation2 + $0x6c] sm:$0xf] %vm778_vm2, %v13414_v54  ;;  %v13426_v4 = vpack.c.bf16 %v1159_v18, %v1159_v18  ;;  %v13427_v10 = vpack.c.bf16 %v1160_v42, %v1160_v42  ;;  %v13428_v37 = vpack.c.bf16 %v1161_v57, %v1161_v57 }
 0x1d7   : > { %1308 = vst.msk [vmem:[#allocation2 + $0x70] sm:$0xf] %vm778_vm2, %v13415_v22  ;;  %1309 = vst.msk [vmem:[#allocation2 + $0x80] sm:$0xf] %vm778_vm2, %v13416_v59  ;;  %v13429_v51 = vpack.c.bf16 %v1162_v34, %v1162_v34  ;;  %v13430_v41 = vpack.c.bf16 %v1163_v63, %v1163_v63  ;;  %v13431_v46 = vpack.c.bf16 %v1164_v11, %v1164_v11  ;;  %v1334_v59 = vld [vmem:[#allocation2 + $0x18] sm:$0x8] }
 0x1d8   : > { %1310 = vst.msk [vmem:[#allocation2 + $0x84] sm:$0xf] %vm778_vm2, %v13417_v44  ;;  %1311 = vst.msk [vmem:[#allocation2 + $0x94] sm:$0xf] %vm778_vm2, %v13418_v61  ;;  %v13432_v1 = vpack.c.bf16 %v1165_v24, %v1165_v24  ;;  %v13433_v17 = vpack.c.bf16 %v1166_v19, %v1166_v19  ;;  %v13434_v0 = vpack.c.bf16 %v1167_v26, %v1167_v26 }
 0x1d9   : > { %1312 = vst.msk [vmem:[#allocation2 + $0x98] sm:$0xf] %vm778_vm2, %v13419_v3  ;;  %1313 = vst.msk [vmem:[#allocation2 + $0xa8] sm:$0xf] %vm778_vm2, %v13420_v50  ;;  %v13436_v13 = vpack.c.bf16 %v1169_v40, %v1169_v40  ;;  %v13437_v25 = vpack.c.bf16 %v1170_v29, %v1170_v29  ;;  %v16298_v21 = vld [vmem:[#allocation2 + $0x1c] sm:$0xf] }
 0x1da   : > { %1314 = vst.msk [vmem:[#allocation2 + $0xac] sm:$0xf] %vm778_vm2, %v13421_v56  ;;  %1315 = vst.msk [vmem:[#allocation2 + $0xbc] sm:$0xf] %vm778_vm2, %v13422_v58  ;;  %v16300_v43 = vld [vmem:[#allocation2 + $0x20] sm:$0xf] }
 0x1db   : > { %1316 = vst.msk [vmem:[#allocation2 + $0xc0] sm:$0xf] %vm778_vm2, %v13423_v7  ;;  %1317 = vst.msk [vmem:[#allocation2 + $0xd0] sm:$0xf] %vm778_vm2, %v13424_v12  ;;  %v16302_v52 = vld [vmem:[#allocation2 + $0x30] sm:$0xf]  ;;  %v12649_v23 = vcombine.low %v16298_v21, %v16300_v43 }
 0x1dc   : > { %1318 = vst.msk [vmem:[#allocation2 + $0xd4] sm:$0xf] %vm778_vm2, %v13425_v15  ;;  %1319 = vst.msk [vmem:[#allocation2 + $0xe4] sm:$0xf] %vm778_vm2, %v13426_v4  ;;  %v16306_v30 = vld [vmem:[#allocation2 + $0x34] sm:$0xf] }
 0x1dd   : > { %1320 = vst.msk [vmem:[#allocation2 + $0xe8] sm:$0xf] %vm778_vm2, %v13427_v10  ;;  %1321 = vst.msk [vmem:[#allocation2 + $0xf8] sm:$0xf] %vm778_vm2, %v13428_v37  ;;  %v12650_v14 = vcombine.low %v16302_v52, %v16306_v30  ;;  %13848 = vmatmul.mubr.msk.bf16.vlgmr.msra.gmra.mrb[32].mxu1 %vm897_vm5, %v12649_v23  ;;  %v16319_v27 = vld [vmem:[#allocation2 + $0x44] sm:$0xf] }
 0x1de   : > { %1322 = vst.msk [vmem:[#allocation2 + $0xfc] sm:$0xf] %vm778_vm2, %v13429_v51  ;;  %1323 = vst.msk [vmem:[#allocation2 + $0x10c] sm:$0xf] %vm778_vm2, %v13430_v41  ;;  %13880 = vmatpush3.bf16.msra.mxu1 %v15790_v6  ;;  %v16321_v32 = vld [vmem:[#allocation2 + $0x48] sm:$0xf] }
 0x1df   : > { %1324 = vst.msk [vmem:[#allocation2 + $0x110] sm:$0xf] %vm778_vm2, %v13431_v46  ;;  %1325 = vst.msk [vmem:[#allocation2 + $0x120] sm:$0xf] %vm778_vm2, %v13432_v1  ;;  %13851 = vmatprep.mubr.msk.bf16.mxu1 %vm897_vm5, %v12650_v14  ;;  %13913 = vmatprep.subr.bf16.mxu1 %v16311_v8  ;;  %v16323_v9 = vld [vmem:[#allocation2 + $0x58] sm:$0xf]  ;;  %v12651_v49 = vcombine.low %v16319_v27, %v16321_v32 }
 0x1e0   : > { %1326 = vst.msk [vmem:[#allocation2 + $0x124] sm:$0xf] %vm778_vm2, %v13433_v17  ;;  %1327 = vst.msk [vmem:[#allocation2 + $0x134] sm:$0xf] %vm778_vm2, %v13434_v0  ;;  %v16325_v36 = vld [vmem:[#allocation2 + $0x5c] sm:$0xf] }
 0x1e1   : > { %1329 = vst.msk [vmem:[#allocation2 + $0x148] sm:$0xf] %vm778_vm2, %v13436_v13  ;;  %1330 = vst.msk [vmem:[#allocation2 + $0x14c] sm:$0xf] %vm778_vm2, %v13437_v25  ;;  %v12652_v47 = vcombine.low %v16323_v9, %v16325_v36  ;;  %v16333_v6 = vld [vmem:[#allocation2 + $0x6c] sm:$0xf] }
 0x1e2   : > { %788 = vst [vmem:[#allocation2 + $0x10] sm:$0x1] %v787_v48  ;;  %v16335_v16 = vld [vmem:[#allocation2 + $0x70] sm:$0xf]  ;;  %v16337_v60 = vld [vmem:[#allocation2 + $0x80] sm:$0xf] }
 0x1e3   : > { %v16339_v18 = vld [vmem:[#allocation2 + $0x84] sm:$0xf]  ;;  %v12653_v42 = vcombine.low %v16333_v6, %v16335_v16  ;;  %v16347_v34 = vld [vmem:[#allocation2 + $0x94] sm:$0xf]  ;;  %v16349_v63 = vld [vmem:[#allocation2 + $0x98] sm:$0xf] }
 0x1e4   : > { %v12654_v57 = vcombine.low %v16337_v60, %v16339_v18  ;;  %v16351_v11 = vld [vmem:[#allocation2 + $0xa8] sm:$0xf]  ;;  %v16353_v24 = vld [vmem:[#allocation2 + $0xac] sm:$0xf]  ;;  %v12655_v19 = vcombine.low %v16347_v34, %v16349_v63  ;;  %v16361_v40 = vld [vmem:[#allocation2 + $0xbc] sm:$0xf] }
 0x1e5   : > { %13852 = vmatmul.mubr.msk.bf16.gmra.mrb[36].mxu1 %vm897_vm5, %v12651_v49  ;;  %v12656_v26 = vcombine.low %v16351_v11, %v16353_v24  ;;  %v16363_v29 = vld [vmem:[#allocation2 + $0xc0] sm:$0xf]  ;;  %v16365_v20 = vld [vmem:[#allocation2 + $0xd0] sm:$0xf]  ;;  %v16367_v28 = vld [vmem:[#allocation2 + $0xd4] sm:$0xf] }
 0x1e6   : > { %13855 = vmatprep.mubr.msk.bf16.mxu1 %vm897_vm5, %v12652_v47  ;;  %v12657_v31 = vcombine.low %v16361_v40, %v16363_v29  ;;  %v12658_v33 = vcombine.low %v16365_v20, %v16367_v28  ;;  %v16375_v35 = vld [vmem:[#allocation2 + $0xe4] sm:$0xf]  ;;  %v16377_v38 = vld [vmem:[#allocation2 + $0xe8] sm:$0xf]  ;;  %v16379_v45 = vld [vmem:[#allocation2 + $0xf8] sm:$0xf] }
 0x1e7   : > { %v16381_v2 = vld [vmem:[#allocation2 + $0xfc] sm:$0xf]  ;;  %v12659_v54 = vcombine.low %v16375_v35, %v16377_v38  ;;  %v16389_v44 = vld [vmem:[#allocation2 + $0x10c] sm:$0xf]  ;;  %v16391_v61 = vld [vmem:[#allocation2 + $0x110] sm:$0xf] }
 0x1e8   : > { %v12660_v22 = vcombine.low %v16379_v45, %v16381_v2  ;;  %v16393_v3 = vld [vmem:[#allocation2 + $0x120] sm:$0xf]  ;;  %v16395_v50 = vld [vmem:[#allocation2 + $0x124] sm:$0xf]  ;;  %v1404_v56 = vshrl.u32 %v1334_v59, 16  ;;  %v12661_v58 = vcombine.low %v16389_v44, %v16391_v61  ;;  %v1409_v7 = vshrl.u32 %v16298_v21, 16 }
 0x1e9   : > { %v1418_v12 = vshrl.u32 %v16300_v43, 16  ;;  %v1337_v15 = vld [vmem:[#allocation2 + $0x2c] sm:$0x8]  ;;  %v12662_v4 = vcombine.low %v16393_v3, %v16395_v50  ;;  %v1431_v10 = vshrl.u32 %v16302_v52, 16  ;;  %v1340_v37 = vld [vmem:[#allocation2 + $0x40] sm:$0x8] }
 0x1ea   : > { %v1440_v62 = vshrl.u32 %v16306_v30, 16  ;;  %v1343_v51 = vld [vmem:[#allocation2 + $0x54] sm:$0x8]  ;;  %v1346_v41 = vld [vmem:[#allocation2 + $0x68] sm:$0x8]  ;;  %v12631_v46 = vrot.slane %v1404_v56, 11 }
 0x1eb   : > { %v1426_v1 = vshrl.u32 %v1337_v15, 16  ;;  %v1349_v17 = vld [vmem:[#allocation2 + $0x7c] sm:$0x8]  ;;  %v16407_v0 = vld [vmem:[#allocation2 + $0x134] sm:$0xf]  ;;  %v1411_v25 = vrot.slane %v1409_v7, 7 }
 0x1ec   : > { %v16409_v13 = vld [vmem:[#allocation2 + $0x138] sm:$0xf]  ;;  %v1420_v48 = vrot.slane %v1418_v12, 7  ;;  %v1433_v23 = vrot.slane %v1431_v10, 7  ;;  %v1448_v14 = vshrl.u32 %v1340_v37, 16  ;;  %v1470_v49 = vshrl.u32 %v1343_v51, 16 }
 0x1ed   : > { %13856 = vmatmul.mubr.msk.bf16.gmra.mrb[40].mxu1 %vm897_vm5, %v12653_v42  ;;  %v1492_v47 = vshrl.u32 %v1346_v41, 16  ;;  %v1412_v42 = vshll.u32 %v16298_v21, 16  ;;  %v1416_v56 = vrot.slane %v1411_v25, 4  ;;  %v1443_v7 = vshll.u32 %v16306_v30, 16  ;;  %v1352_v15 = vld [vmem:[#allocation2 + $0x90] sm:$0x8] }
 0x1ee   : > { %13859 = vmatprep.mubr.msk.bf16.mxu1 %vm897_vm5, %v12654_v57  ;;  %v1421_v57 = vshll.u32 %v16300_v43, 16  ;;  %v12632_v12 = vrot.slane %v1426_v1, 11  ;;  %v1438_v43 = vrot.slane %v1433_v23, 4  ;;  %v1475_v10 = vshrl.u32 %v16323_v9, 16  ;;  %v1355_v37 = vld [vmem:[#allocation2 + $0xa4] sm:$0x8] }
 0x1ef   : > { %v1414_v59 = vor.u32 %v1412_v42, %v1411_v25  ;;  %v16430_v25 = vrot.slane %v1492_v47, 11  ;;  %v1465_v42 = vshll.u32 %v16321_v32, 16 }
 0x1f1   : > { %v1415_v30 = vsel %vm16047_vm11, %v12631_v46, %v1414_v59  ;;  %v1477_v46 = vrot.slane %v1475_v10, 7  ;;  %v1506_v59 = vshrl.u32 %v16335_v16, 16  ;;  %v1367_v10 = vld [vmem:[#allocation2 + $0xf4] sm:$0x8] }
 0x1f5   : > { %13860 = vmatmul.mubr.msk.bf16.gmra.mrb[44].mxu1 %vm897_vm5, %v12655_v19  ;;  %v1442_v19 = vrot.slane %v1440_v62, 7  ;;  %v12633_v62 = vrot.slane %v1448_v14, 11  ;;  %v1558_v14 = vshrl.u32 %v1355_v37, 16 }
 0x1f6   : > { %13863 = vmatprep.mubr.msk.bf16.mxu1 %vm897_vm5, %v12656_v26  ;;  %v1514_v26 = vshrl.u32 %v1349_v17, 16  ;;  %v16424_v17 = vrot.slane %v1470_v49, 11 }
 0x1fd   : > { %13864 = vmatmul.mubr.msk.bf16.gmra.mrb[48].mxu1 %vm897_vm5, %v12657_v31  ;;  %v12663_v31 = vcombine.low %v16407_v0, %v16409_v13 }
 0x1fe   : > { %13867 = vmatprep.mubr.msk.bf16.mxu1 %vm897_vm5, %v12658_v33  ;;  %v1434_v33 = vshll.u32 %v16302_v52, 16  ;;  %v1484_v52 = vshrl.u32 %v16325_v36, 16 }
 0x200   : > { %v1436_v21 = vor.u32 %v1434_v33, %v1433_v23  ;;  %v1456_v23 = vshll.u32 %v16319_v27, 16 }
 0x202   : > { %v1437_v49 = vsel %vm16047_vm11, %v12632_v12, %v1436_v21  ;;  %v1361_v21 = vld [vmem:[#allocation2 + $0xcc] sm:$0x8] }
 0x205   : > { %13868 = vmatmul.mubr.msk.bf16.gmra.mrb[52].mxu1 %vm897_vm5, %v12659_v54  ;;  %v1453_v54 = vshrl.u32 %v16319_v27, 16  ;;  %v1487_v27 = vshll.u32 %v16325_v36, 16  ;;  %v1482_v36 = vrot.slane %v1477_v46, 4 }
 0x206   : > { %13871 = vmatprep.mubr.msk.bf16.mxu1 %vm897_vm5, %v12660_v22  ;;  %v1462_v22 = vshrl.u32 %v16321_v32, 16  ;;  %v1497_v32 = vshrl.u32 %v16333_v6, 16 }
 0x207   : > { %v1455_v51 = vrot.slane %v1453_v54, 7 }
 0x208   : > { %v1464_v41 = vrot.slane %v1462_v22, 7  ;;  %v1478_v22 = vshll.u32 %v16323_v9, 16 }
 0x209   : > { %v1458_v33 = vor.u32 %v1456_v23, %v1455_v51  ;;  %v1460_v47 = vrot.slane %v1455_v51, 4  ;;  %v16460_v51 = vrot.slane %v1558_v14, 11  ;;  %v1602_v23 = vshrl.u32 %v1361_v21, 16 }
 0x20a   : > { %v1467_v54 = vor.u32 %v1465_v42, %v1464_v41  ;;  %v1480_v9 = vor.u32 %v1478_v22, %v1477_v46  ;;  %v1563_v22 = vshrl.u32 %v16351_v11, 16  ;;  %v1572_v21 = vshrl.u32 %v16353_v24, 16 }
 0x20c   : > { %v1468_v37 = vsel %vm16047_vm11, %v1460_v47, %v1467_v54  ;;  %v1541_v47 = vshrl.u32 %v16347_v34, 16 }
 0x20d   : > { %13872 = vmatmul.mubr.msk.bf16.gmra.mrb[56].mxu1 %vm897_vm5, %v12661_v58  ;;  %v1423_v58 = vor.u32 %v1421_v57, %v1420_v48  ;;  %v16432_v48 = vrot.slane %v1514_v26, 11  ;;  %v1358_v26 = vld [vmem:[#allocation2 + $0xb8] sm:$0x8] }
 0x20e   : > { %13875 = vmatprep.mubr.msk.bf16.mxu1 %vm897_vm5, %v12662_v4  ;;  %v1445_v4 = vor.u32 %v1443_v7, %v1442_v19  ;;  %v1486_v19 = vrot.slane %v1484_v52, 7  ;;  %v1519_v7 = vshrl.u32 %v16337_v60, 16  ;;  %v1459_v52 = vsel %vm16047_vm11, %v12633_v62, %v1458_v33 }
 0x20f   : > { %v1424_v1 = vsel %vm16047_vm11, %v1416_v56, %v1423_v58  ;;  %v16447_v56 = vld [vmem:[%s19600_s3 + $0x18] sm:$0xff]   ;;  %v1580_v41 = vshrl.u32 %v1358_v26, 16  ;;  %v12684_v46 = vcombine.low %v1459_v52, %v1468_v37  ;;  %v1481_v62 = vsel %vm16047_vm11, %v16424_v17, %v1480_v9 }
 0x210   : > { %v1446_v57 = vsel %vm16047_vm11, %v1438_v43, %v1445_v4  ;;  %v1489_v43 = vor.u32 %v1487_v27, %v1486_v19  ;;  %v1528_v4 = vshrl.u32 %v16339_v18, 16  ;;  %v1531_v33 = vshll.u32 %v16339_v18, 16  ;;  %v1370_v27 = vld [vmem:[#allocation2 + $0x108] sm:$0x8] }
 0x211   : > { %v12683_v58 = vcombine.low %v1437_v49, %v1446_v57  ;;  %v1521_v49 = vrot.slane %v1519_v7, 7  ;;  %v1646_v57 = vshrl.u32 %v1367_v10, 16  ;;  %v1373_v7 = vld [vmem:[#allocation2 + $0x11c] sm:$0x8]  ;;  %v1543_v9 = vrot.slane %v1541_v47, 7 }
 0x212   : > { %v1490_v14 = vsel %vm16047_vm11, %v1482_v36, %v1489_v43  ;;  %v1530_v19 = vrot.slane %v1528_v4, 7  ;;  %v1668_v4 = vshrl.u32 %v1370_v27, 16  ;;  %v1565_v37 = vrot.slane %v1563_v22, 7 }
 0x213   : > { %v16484_v43 = vrot.slane %v1646_v57, 11  ;;  %v1376_v57 = vld [vmem:[#allocation2 + $0x130] sm:$0x8] }
 0x214   : > { %v1533_v18 = vor.u32 %v1531_v33, %v1530_v19  ;;  %v1616_v33 = vshrl.u32 %v16367_v28, 16 }
 0x215   : > { %13876 = vmatmul.mubr.msk.bf16.gmra.mrb[60].mxu1 %vm897_vm5, %v12663_v31  ;;  %v12682_v31 = vcombine.low %v1415_v30, %v1424_v1  ;;  %v1499_v30 = vrot.slane %v1497_v32, 7  ;;  %v1508_v1 = vrot.slane %v1506_v59, 7  ;;  %v12685_v32 = vcombine.low %v1481_v62, %v1490_v14 }
 0x216   : > { %13881 = vmatprep.mubr.msk.bf16.mxu1 %vm897_vm5, %v16082_v55  ;;  %v1536_v55 = vshrl.u32 %v1352_v15, 16  ;;  %v1364_v15 = vld [vmem:[#allocation2 + $0xe0] sm:$0x8]  ;;  %v16475_v59 = vrot.slane %v1580_v41, 11  ;;  %v1690_v41 = vshrl.u32 %v1373_v7, 16  ;;  %v1548_v14 = vrot.slane %v1543_v9, 4 }
 0x217   : > { %v1624_v42 = vshrl.u32 %v1364_v15, 16  ;;  %v1504_v54 = vrot.slane %v1499_v30, 4  ;;  %v1597_v7 = vshll.u32 %v16363_v29, 16 }
 0x218   : > { %v16450_v12 = vrot.slane %v1536_v55, 11  ;;  %v1500_v55 = vshll.u32 %v16333_v6, 16  ;;  %v1550_v6 = vshrl.u32 %v16349_v63, 16 }
 0x219   : > { %v16481_v15 = vrot.slane %v1624_v42, 11  ;;  %v1585_v42 = vshrl.u32 %v16361_v40, 16 }
 0x21a   : > { %v1552_v36 = vrot.slane %v1550_v6, 7 }
 0x21b   : > { %v1587_v6 = vrot.slane %v1585_v42, 7 }
 0x21d   : > { %13882 = vmatmul.mubr.msk.bf16.vlgmr.msra.gmra.mrb[32].mxu1 %vm897_vm5, %v12682_v31  ;;  %v1522_v31 = vshll.u32 %v16337_v60, 16  ;;  %v1526_v60 = vrot.slane %v1521_v49, 4 }
 0x21e   : > { %13914 = vmatpush3.bf16.msra.mxu1 %v16311_v8  ;;  %13885 = vmatprep.mubr.msk.bf16.mxu1 %vm897_vm5, %v12683_v58  ;;  %v1509_v8 = vshll.u32 %v16335_v16, 16  ;;  %v1502_v16 = vor.u32 %v1500_v55, %v1499_v30  ;;  %v16477_v58 = vrot.slane %v1602_v23, 11  ;;  %v1553_v23 = vshll.u32 %v16349_v63, 16 }
 0x21f   : > { %13947 = vmatprep.subr.bf16.mxu1 %v16447_v56  ;;  %v1524_v17 = vor.u32 %v1522_v31, %v1521_v49  ;;  %v1534_v55 = vsel %vm16047_vm11, %v1526_v60, %v1533_v18  ;;  %v1594_v49 = vshrl.u32 %v16363_v29, 16  ;;  %v1607_v63 = vshrl.u32 %v16365_v20, 16 }
 0x220   : > { %v1511_v26 = vor.u32 %v1509_v8, %v1508_v1  ;;  %v1503_v10 = vsel %vm16047_vm11, %v16430_v25, %v1502_v16  ;;  %v1544_v1 = vshll.u32 %v16347_v34, 16  ;;  %v1566_v25 = vshll.u32 %v16351_v11, 16 }
 0x221   : > { %v1525_v30 = vsel %vm16047_vm11, %v16432_v48, %v1524_v17  ;;  %v1574_v8 = vrot.slane %v1572_v21, 7  ;;  %v1555_v19 = vor.u32 %v1553_v23, %v1552_v36  ;;  %v2301_v48 = vld [vmem:[#allocation2 + $0x24] sm:$0x1]  ;;  %v1575_v34 = vshll.u32 %v16353_v24, 16 }
 0x222   : > { %v1512_v52 = vsel %vm16047_vm11, %v1504_v54, %v1511_v26  ;;  %v1546_v62 = vor.u32 %v1544_v1, %v1543_v9  ;;  %v1568_v31 = vor.u32 %v1566_v25, %v1565_v37  ;;  %v12687_v47 = vcombine.low %v1525_v30, %v1534_v55 }
 0x223   : > { %v16504_v16 = vrot.slane %v1668_v4, 11  ;;  %v1712_v11 = vshrl.u32 %v1376_v57, 16  ;;  %v1570_v54 = vrot.slane %v1565_v37, 4  ;;  %v1577_v26 = vor.u32 %v1575_v34, %v1574_v8 }
 0x224   : > { %v1596_v22 = vrot.slane %v1594_v49, 7  ;;  %v2391_v27 = vshll.u32 %v2301_v48, 16  ;;  %v1547_v24 = vsel %vm16047_vm11, %v16450_v12, %v1546_v62  ;;  %v1588_v17 = vshll.u32 %v16361_v40, 16 }
 0x225   : > { %13886 = vmatmul.mubr.msk.bf16.gmra.mrb[36].mxu1 %vm897_vm5, %v12684_v46  ;;  %v12686_v46 = vcombine.low %v1503_v10, %v1512_v52  ;;  %v1569_v60 = vsel %vm16047_vm11, %v16460_v51, %v1568_v31  ;;  %v1609_v18 = vrot.slane %v1607_v63, 7  ;;  %v1618_v21 = vrot.slane %v1616_v33, 7  ;;  %v2296_v33 = vld [vmem:[#allocation2 + $0x8] sm:$0xf] }
 0x226   : > { %13889 = vmatprep.mubr.msk.bf16.mxu1 %vm897_vm5, %v12685_v32  ;;  %v1556_v32 = vsel %vm16047_vm11, %v1548_v14, %v1555_v19  ;;  %v1629_v9 = vshrl.u32 %v16375_v35, 16  ;;  %v1590_v36 = vor.u32 %v1588_v17, %v1587_v6  ;;  %v1610_v4 = vshll.u32 %v16365_v20, 16  ;;  %v16540_v19 = vld [vmem:[#allocation2 + $0x38] sm:$0x1] }
 0x227   : > { %v1638_v12 = vshrl.u32 %v16377_v38, 16  ;;  %v1651_v10 = vshrl.u32 %v16379_v45, 16  ;;  %v1578_v40 = vsel %vm16047_vm11, %v1570_v54, %v1577_v26  ;;  %v1592_v52 = vrot.slane %v1587_v6, 4 }
 0x228   : > { %v1599_v29 = vor.u32 %v1597_v7, %v1596_v22  ;;  %v1619_v37 = vshll.u32 %v16367_v28, 16  ;;  %v12688_v30 = vcombine.low %v1547_v24, %v1556_v32  ;;  %v1660_v51 = vshrl.u32 %v16381_v2, 16 }
 0x229   : > { %v16526_v1 = vrot.slane %v1690_v41, 11  ;;  %v16528_v23 = vrot.slane %v1712_v11, 11  ;;  %v1612_v42 = vor.u32 %v1610_v4, %v1609_v18  ;;  %v1614_v20 = vrot.slane %v1609_v18, 4 }
 0x22a   : > { %v1621_v55 = vor.u32 %v1619_v37, %v1618_v21  ;;  %v1631_v25 = vrot.slane %v1629_v9, 7  ;;  %v12689_v8 = vcombine.low %v1569_v60, %v1578_v40  ;;  %v1640_v49 = vrot.slane %v1638_v12, 7  ;;  %v2297_v60 = vld [vmem:[#allocation2 + $0xc] sm:$0xf] }
 0x22b   : > { %v1653_v57 = vrot.slane %v1651_v10, 7  ;;  %v1591_v28 = vsel %vm16047_vm11, %v16475_v59, %v1590_v36  ;;  %v1600_v41 = vsel %vm16047_vm11, %v1592_v52, %v1599_v29  ;;  %v1632_v62 = vshll.u32 %v16375_v35, 16 }
 0x22c   : > { %v1673_v14 = vshrl.u32 %v16389_v44, 16  ;;  %v1641_v48 = vshll.u32 %v16377_v38, 16  ;;  %v1654_v31 = vshll.u32 %v16379_v45, 16  ;;  %v1662_v34 = vrot.slane %v1660_v51, 7 }
 0x22d   : > { %13890 = vmatmul.mubr.msk.bf16.gmra.mrb[40].mxu1 %vm897_vm5, %v12686_v46  ;;  %v16530_v46 = vrot.slane %v2391_v27, 5  ;;  %v1682_v63 = vshrl.u32 %v16391_v61, 16  ;;  %v1613_v59 = vsel %vm16047_vm11, %v16477_v58, %v1612_v42  ;;  %v1622_v35 = vsel %vm16047_vm11, %v1614_v20, %v1621_v55 }
 0x22e   : > { %13893 = vmatprep.mubr.msk.bf16.mxu1 %vm897_vm5, %v12687_v47  ;;  %v1634_v47 = vor.u32 %v1632_v62, %v1631_v25  ;;  %v1636_v6 = vrot.slane %v1631_v25, 4  ;;  %v1643_v11 = vor.u32 %v1641_v48, %v1640_v49  ;;  %v1656_v54 = vor.u32 %v1654_v31, %v1653_v57  ;;  %v2300_v48 = vld [vmem:[#allocation2 + $0x20] sm:$0xf] }
 0x22f   : > { %v1663_v26 = vshll.u32 %v16381_v2, 16  ;;  %v1695_v38 = vshrl.u32 %v16393_v3, 16  ;;  %v12690_v45 = vcombine.low %v1591_v28, %v1600_v41  ;;  %v1675_v22 = vrot.slane %v1673_v14, 7  ;;  %v2299_v14 = vld [vmem:[#allocation2 + $0x1c] sm:$0xf] }
 0x230   : > { %v2348_v27 = vshrl.u32 %v2296_v33, 16  ;;  %v2415_v24 = vshll.u32 %v16540_v19, 16  ;;  %v12691_v32 = vcombine.low %v1613_v59, %v1622_v35  ;;  %v1658_v17 = vrot.slane %v1653_v57, 4  ;;  %v2298_v57 = vld [vmem:[#allocation2 + $0x10] sm:$0x1] }
 0x231   : > { %v1665_v7 = vor.u32 %v1663_v26, %v1662_v34  ;;  %v1684_v58 = vrot.slane %v1682_v63, 7  ;;  %v1635_v18 = vsel %vm16047_vm11, %v16481_v15, %v1634_v47  ;;  %v1676_v21 = vshll.u32 %v16389_v44, 16  ;;  %v2302_v63 = vld [vmem:[#allocation2 + $0x30] sm:$0xf]  ;;  %v2308_v19 = vld [vmem:[#allocation2 + $0x58] sm:$0xf] }
 0x232   : > { %v1704_v2 = vshrl.u32 %v16395_v50, 16  ;;  %v2351_v9 = vshll.u32 %v2296_v33, 16  ;;  %v1644_v36 = vsel %vm16047_vm11, %v1636_v6, %v1643_v11  ;;  %v1657_v4 = vsel %vm16047_vm11, %v16484_v43, %v1656_v54 }
 0x233   : > { %v1685_v12 = vshll.u32 %v16391_v61, 16  ;;  %v1697_v10 = vrot.slane %v1695_v38, 7  ;;  %v16566_v40 = vor.u32 %v1676_v21, %v1675_v22  ;;  %v1680_v15 = vrot.slane %v1675_v22, 4 }
 0x234   : > { %v2357_v52 = vshll.u32 %v2297_v60, 16  ;;  %v2361_v44 = vshrl.u32 %v2297_v60, 16  ;;  %v1666_v29 = vsel %vm16047_vm11, %v1658_v17, %v1665_v7  ;;  %v1717_v43 = vshrl.u32 %v16407_v0, 16 }
 0x235   : > { %13894 = vmatmul.mubr.msk.bf16.gmra.mrb[44].mxu1 %vm897_vm5, %v12688_v30  ;;  %v1687_v37 = vor.u32 %v1685_v12, %v1684_v58  ;;  %v1698_v30 = vshll.u32 %v16393_v3, 16  ;;  %v1706_v51 = vrot.slane %v1704_v2, 7  ;;  %v1726_v61 = vshrl.u32 %v16409_v13, 16  ;;  %v2305_v2 = vld [vmem:[#allocation2 + $0x44] sm:$0xf] }
 0x236   : > { %13897 = vmatprep.mubr.msk.bf16.mxu1 %vm897_vm5, %v12689_v8  ;;  %v2350_v42 = vrot.slane %v2348_v27, 4  ;;  %v2353_v20 = vrot.slane %v2351_v9, 5  ;;  %v12692_v55 = vcombine.low %v1635_v18, %v1644_v36  ;;  %v1707_v8 = vshll.u32 %v16395_v50, 16  ;;  %v891_v27 = vld [vmem:[#allocation2 + $0x13c] sm:$0x1] }
 0x237   : > { %v1700_v25 = vor.u32 %v1698_v30, %v1697_v10  ;;  %v1729_v49 = vshll.u32 %v16409_v13, 16  ;;  %v12693_v28 = vcombine.low %v1657_v4, %v1666_v29  ;;  %v1679_v3 = vsel %vm16047_vm11, %v16504_v16, %v16566_v40  ;;  %v2303_v16 = vld [vmem:[#allocation2 + $0x34] sm:$0xf]  ;;  %v2306_v12 = vld [vmem:[#allocation2 + $0x48] sm:$0xf] }
 0x238   : > { %v16580_v41 = vrot.slane %v2357_v52, 5  ;;  %v2363_v62 = vrot.slane %v2361_v44, 4  ;;  %v1688_v31 = vsel %vm16047_vm11, %v1680_v15, %v1687_v37  ;;  %v1702_v50 = vrot.slane %v1697_v10, 4  ;;  %v2307_v29 = vld [vmem:[#allocation2 + $0x4c] sm:$0x1] }
 0x239   : > { %v1719_v34 = vrot.slane %v1717_v43, 7  ;;  %v1720_v13 = vshll.u32 %v16407_v0, 16  ;;  %v1709_v33 = vor.u32 %v1707_v8, %v1706_v51  ;;  %v1728_v59 = vrot.slane %v1726_v61, 7 }
 0x23a   : > { %v2354_v35 = vor.u32 %v2353_v20, %v2350_v42  ;;  %v2367_v47 = vshll.u32 %v2298_v57, 16  ;;  %v1701_v6 = vsel %vm16047_vm11, %v16526_v1, %v1700_v25  ;;  %v2372_v11 = vshrl.u32 %v2299_v14, 16 }
 0x23b   : > { %v2375_v54 = vshll.u32 %v2299_v14, 16  ;;  %v2381_v26 = vshll.u32 %v2300_v48, 16  ;;  %v2364_v38 = vor.u32 %v2363_v62, %v16580_v41  ;;  %v2396_v22 = vshrl.u32 %v2302_v63, 16  ;;  %v2309_v14 = vld [vmem:[#allocation2 + $0x5c] sm:$0xf] }
 0x23c   : > { %v2399_v0 = vshll.u32 %v2302_v63, 16  ;;  %v1724_v17 = vrot.slane %v1719_v34, 4  ;;  %v2405_v7 = vshll.u32 %v2303_v16, 16  ;;  %v2409_v58 = vshrl.u32 %v2303_v16, 16  ;;  %v2313_v63 = vld [vmem:[#allocation2 + $0x74] sm:$0x1] }
 0x23d   : > { %13898 = vmatmul.mubr.msk.bf16.gmra.mrb[48].mxu1 %vm897_vm5, %v12690_v45  ;;  %v2385_v45 = vshrl.u32 %v2300_v48, 16  ;;  %v1710_v1 = vsel %vm16047_vm11, %v1702_v50, %v1709_v33  ;;  %v1731_v60 = vor.u32 %v1729_v49, %v1728_v59  ;;  %v2355_v18 = vrot.slane %v2354_v35, 4  ;;  %v2310_v48 = vld [vmem:[#allocation2 + $0x60] sm:$0x1]  ;;  %v2316_v33 = vld [vmem:[#allocation2 + $0x88] sm:$0x1] }
 0x23e   : > { %13901 = vmatprep.mubr.msk.bf16.mxu1 %vm897_vm5, %v12691_v32  ;;  %v1722_v32 = vor.u32 %v1720_v13, %v1719_v34  ;;  %v2369_v21 = vrot.slane %v2367_v47, 5  ;;  %v2374_v9 = vrot.slane %v2372_v11, 4  ;;  %v2377_v36 = vrot.slane %v2375_v54, 5 }
 0x23f   : > { %v16593_v4 = vrot.slane %v2381_v26, 5  ;;  %v892_v10 = vsel %vm15981_vm9, 0, %v891_v27  ;;  %v2365_v40 = vrot.slane %v2364_v38, 4  ;;  %v2387_v15 = vrot.slane %v2385_v45, 4  ;;  %v2311_v45 = vld [vmem:[#allocation2 + $0x6c] sm:$0xf] }
 0x240   : > { %v2398_v52 = vrot.slane %v2396_v22, 4  ;;  %v2401_v44 = vrot.slane %v2399_v0, 5  ;;  %893 = vst [vmem:[#allocation2 + $0x13c] sm:$0x1] %v892_v10  ;;  %v16597_v37 = vrot.slane %v2405_v7, 5  ;;  %v2411_v30 = vrot.slane %v2409_v58, 4 }
 0x241   : > { %v2420_v43 = vshrl.u32 %v2305_v2, 16  ;;  %v2423_v51 = vshll.u32 %v2305_v2, 16  ;;  %v12694_v61 = vcombine.low %v1679_v3, %v1688_v31  ;;  %v16601_v42 = vrot.slane %v2415_v24, 5  ;;  %v2312_v22 = vld [vmem:[#allocation2 + $0x70] sm:$0xf] }
 0x242   : > { %v2429_v20 = vshll.u32 %v2306_v12, 16  ;;  %v12695_v25 = vcombine.low %v1701_v6, %v1710_v1  ;;  %v1723_v8 = vsel %vm16047_vm11, %v16528_v23, %v1722_v32  ;;  %v1732_v49 = vsel %vm16047_vm11, %v1724_v17, %v1731_v60  ;;  %v2314_v1 = vld [vmem:[#allocation2 + $0x80] sm:$0xf] }
 0x243   : > { %v2360_v24 = vsel %vm16610_vm14, %v2355_v18, %v16580_v41  ;;  %v2370_v23 = vsel %vm16610_vm14, %v2365_v40, %v2369_v21  ;;  %v2378_v3 = vor.u32 %v2377_v36, %v2374_v9  ;;  %v2388_v62 = vor.u32 %v2387_v15, %v16593_v4  ;;  %v2315_v9 = vld [vmem:[#allocation2 + $0x84] sm:$0xf] }
 0x244   : > { %v2402_v31 = vor.u32 %v2401_v44, %v2398_v52  ;;  %v2412_v50 = vor.u32 %v2411_v30, %v16597_v37  ;;  %v2422_v34 = vrot.slane %v2420_v43, 4  ;;  %v2425_v13 = vrot.slane %v2423_v51, 5 }
 0x245   : > { %13902 = vmatmul.mubr.msk.bf16.gmra.mrb[52].mxu1 %vm897_vm5, %v12692_v55  ;;  %v2433_v55 = vshrl.u32 %v2306_v12, 16  ;;  %v16623_v59 = vrot.slane %v2429_v20, 5  ;;  %v2444_v35 = vshrl.u32 %v2308_v19, 16  ;;  %v2447_v47 = vshll.u32 %v2308_v19, 16 }
 0x246   : > { %13905 = vmatprep.mubr.msk.bf16.mxu1 %vm897_vm5, %v12693_v28  ;;  %v2439_v28 = vshll.u32 %v2307_v29, 16  ;;  %v2453_v6 = vshll.u32 %v2309_v14, 16  ;;  %v2457_v11 = vshrl.u32 %v2309_v14, 16  ;;  %v2463_v54 = vshll.u32 %v2310_v48, 16 }
 0x247   : > { %v2435_v41 = vrot.slane %v2433_v55, 4  ;;  %v12696_v26 = vcombine.low %v1723_v8, %v1732_v49  ;;  %v12716_v38 = vcombine.low %v2360_v24, %v2370_v23  ;;  %v2487_v0 = vshll.u32 %v2313_v63, 16  ;;  %v16645_v24 = vld [vmem:[#allocation2 + $0x9c] sm:$0x1]  ;;  %v2318_v63 = vld [vmem:[#allocation2 + $0x98] sm:$0xf] }
 0x248   : > { %v16625_v16 = vrot.slane %v2439_v28, 5  ;;  %v2511_v27 = vshll.u32 %v2316_v33, 16  ;;  %v2379_v32 = vrot.slane %v2378_v3, 4  ;;  %v2389_v17 = vrot.slane %v2388_v62, 4 }
 0x249   : > { %v2403_v7 = vrot.slane %v2402_v31, 4  ;;  %v2426_v58 = vor.u32 %v2425_v13, %v2422_v34  ;;  %v2413_v60 = vrot.slane %v2412_v50, 4  ;;  %v2436_v18 = vor.u32 %v2435_v41, %v16623_v59  ;;  %v2317_v31 = vld [vmem:[#allocation2 + $0x94] sm:$0xf]  ;;  %v16662_v41 = vld [vmem:[%s19600_s3 + $0x20] sm:$0xff]  }
 0x24a   : > { %v2446_v21 = vrot.slane %v2444_v35, 4  ;;  %v2449_v2 = vrot.slane %v2447_v47, 5  ;;  %v16628_v36 = vrot.slane %v2453_v6, 5  ;;  %v2459_v12 = vrot.slane %v2457_v11, 4 }
 0x24b   : > { %v2468_v10 = vshrl.u32 %v2311_v45, 16  ;;  %v2471_v40 = vshll.u32 %v2311_v45, 16  ;;  %v2477_v15 = vshll.u32 %v2312_v22, 16  ;;  %v2481_v52 = vshrl.u32 %v2312_v22, 16 }
 0x24c   : > { %v2492_v44 = vshrl.u32 %v2314_v1, 16  ;;  %v2495_v29 = vshll.u32 %v2314_v1, 16  ;;  %v2384_v30 = vsel %vm16610_vm14, %v2379_v32, %v16593_v4  ;;  %v2394_v43 = vsel %vm16610_vm14, %v2389_v17, %v16530_v46 }
 0x24d   : > { %13906 = vmatmul.mubr.msk.bf16.gmra.mrb[56].mxu1 %vm897_vm5, %v12694_v61  ;;  %v2501_v51 = vshll.u32 %v2315_v9, 16  ;;  %v2505_v61 = vshrl.u32 %v2315_v9, 16  ;;  %v2408_v20 = vsel %vm16610_vm14, %v2403_v7, %v16597_v37  ;;  %v2418_v55 = vsel %vm16610_vm14, %v2413_v60, %v16601_v42  ;;  %v2323_v9 = vld [vmem:[#allocation2 + $0xbc] sm:$0xf] }
 0x24e   : > { %13909 = vmatprep.mubr.msk.bf16.mxu1 %vm897_vm5, %v12695_v25  ;;  %v2427_v25 = vrot.slane %v2426_v58, 4  ;;  %v2437_v8 = vrot.slane %v2436_v18, 4  ;;  %v2450_v49 = vor.u32 %v2449_v2, %v2446_v21  ;;  %v2460_v28 = vor.u32 %v2459_v12, %v16628_v36  ;;  %v2325_v12 = vld [vmem:[#allocation2 + $0xc4] sm:$0x1] }
 0x24f   : > { %v2470_v4 = vrot.slane %v2468_v10, 4  ;;  %v2473_v19 = vrot.slane %v2471_v40, 5  ;;  %v16647_v46 = vrot.slane %v2477_v15, 5  ;;  %v2483_v23 = vrot.slane %v2481_v52, 4 }
 0x250   : > { %v2494_v3 = vrot.slane %v2492_v44, 4  ;;  %v2497_v62 = vrot.slane %v2495_v29, 5  ;;  %v2465_v14 = vrot.slane %v2463_v54, 5  ;;  %v16649_v37 = vrot.slane %v2487_v0, 5  ;;  %v2320_v54 = vld [vmem:[#allocation2 + $0xa8] sm:$0xf] }
 0x251   : > { %v16651_v48 = vrot.slane %v2501_v51, 5  ;;  %v2507_v42 = vrot.slane %v2505_v61, 4  ;;  %v12717_v50 = vcombine.low %v2384_v30, %v2394_v43  ;;  %v2432_v34 = vsel %vm16610_vm14, %v2427_v25, %v16623_v59  ;;  %v2322_v0 = vld [vmem:[#allocation2 + $0xb0] sm:$0x1]  ;;  %v2324_v44 = vld [vmem:[#allocation2 + $0xc0] sm:$0xf] }
 0x252   : > { %v16656_v13 = vrot.slane %v2511_v27, 5  ;;  %v2535_v33 = vshll.u32 %v16645_v24, 16  ;;  %v12718_v35 = vcombine.low %v2408_v20, %v2418_v55  ;;  %v2442_v47 = vsel %vm16610_vm14, %v2437_v8, %v16625_v16  ;;  %v2326_v61 = vld [vmem:[#allocation2 + $0xd0] sm:$0xf] }
 0x253   : > { %v2451_v6 = vrot.slane %v2450_v49, 4  ;;  %v2461_v11 = vrot.slane %v2460_v28, 4  ;;  %v2474_v59 = vor.u32 %v2473_v19, %v2470_v4  ;;  %v2498_v45 = vor.u32 %v2497_v62, %v2494_v3  ;;  %v2327_v3 = vld [vmem:[#allocation2 + $0xd4] sm:$0xf] }
 0x254   : > { %v2516_v22 = vshrl.u32 %v2317_v31, 16  ;;  %v2508_v27 = vor.u32 %v2507_v42, %v16651_v48  ;;  %v2519_v32 = vshll.u32 %v2317_v31, 16  ;;  %v2525_v16 = vshll.u32 %v2318_v63, 16 }
 0x255   : > { %13910 = vmatmul.mubr.msk.bf16.gmra.mrb[60].mxu1 %vm897_vm5, %v12696_v26  ;;  %v2321_v26 = vld [vmem:[#allocation2 + $0xac] sm:$0xf]  ;;  %v2529_v17 = vshrl.u32 %v2318_v63, 16  ;;  %v2540_v7 = vshrl.u32 %v2320_v54, 16  ;;  %v2543_v58 = vshll.u32 %v2320_v54, 16  ;;  %v12719_v18 = vcombine.low %v2432_v34, %v2442_v47 }
 0x256   : > { %13915 = vmatprep.mubr.msk.bf16.mxu1 %vm897_vm5, %v12716_v38  ;;  %v2484_v38 = vor.u32 %v2483_v23, %v16647_v46  ;;  %v2549_v1 = vshll.u32 %v2321_v26, 16  ;;  %v2553_v60 = vshrl.u32 %v2321_v26, 16  ;;  %v2456_v21 = vsel %vm16610_vm14, %v2451_v6, %v16628_v36 }
 0x257   : > { %v2559_v2 = vshll.u32 %v2322_v0, 16  ;;  %v2475_v10 = vrot.slane %v2474_v59, 4  ;;  %v2499_v15 = vrot.slane %v2498_v45, 4  ;;  %v2518_v52 = vrot.slane %v2516_v22, 4 }
 0x258   : > { %v2485_v40 = vrot.slane %v2484_v38, 4  ;;  %v2509_v29 = vrot.slane %v2508_v27, 4  ;;  %v2521_v30 = vrot.slane %v2519_v32, 5  ;;  %v16678_v43 = vrot.slane %v2525_v16, 5  ;;  %v2329_v27 = vld [vmem:[#allocation2 + $0xe4] sm:$0xf] }
 0x259   : > { %v2531_v51 = vrot.slane %v2529_v17, 4  ;;  %v2542_v20 = vrot.slane %v2540_v7, 4  ;;  %v2545_v55 = vrot.slane %v2543_v58, 5  ;;  %v16680_v36 = vrot.slane %v2549_v1, 5  ;;  %v2330_v58 = vld [vmem:[#allocation2 + $0xe8] sm:$0xf] }
 0x25a   : > { %v2555_v25 = vrot.slane %v2553_v60, 4  ;;  %v2564_v49 = vshrl.u32 %v2323_v9, 16  ;;  %v2567_v28 = vshll.u32 %v2323_v9, 16  ;;  %v2583_v4 = vshll.u32 %v2325_v12, 16 }
 0x25b   : > { %v2573_v19 = vshll.u32 %v2324_v44, 16  ;;  %v2577_v23 = vshrl.u32 %v2324_v44, 16  ;;  %v2588_v62 = vshrl.u32 %v2326_v61, 16  ;;  %v2480_v42 = vsel %vm16610_vm14, %v2475_v10, %v16647_v46 }
 0x25c   : > { %v2490_v31 = vsel %vm16610_vm14, %v2485_v40, %v16649_v37  ;;  %v2522_v34 = vor.u32 %v2521_v30, %v2518_v52  ;;  %v2514_v63 = vsel %vm16610_vm14, %v2509_v29, %v16656_v13  ;;  %v2546_v47 = vor.u32 %v2545_v55, %v2542_v20  ;;  %v2328_v13 = vld [vmem:[#allocation2 + $0xd8] sm:$0x1]  ;;  %v2333_v52 = vld [vmem:[#allocation2 + $0xfc] sm:$0xf] }
 0x25d   : > { %13916 = vmatmul.mubr.msk.bf16.vlgmr.msra.gmra.mrb[32].mxu1 %vm897_vm5, %v12717_v50  ;;  %v2504_v50 = vsel %vm16610_vm14, %v2499_v15, %v16651_v48  ;;  %v2556_v6 = vor.u32 %v2555_v25, %v16680_v36  ;;  %v2569_v46 = vrot.slane %v2567_v28, 5  ;;  %v2597_v54 = vshll.u32 %v2327_v3, 16 }
 0x25e   : > { %13948 = vmatpush3.bf16.msra.mxu1 %v16447_v56  ;;  %13919 = vmatprep.mubr.msk.bf16.mxu1 %vm897_vm5, %v12718_v35  ;;  %v2466_v56 = vsel %vm16610_vm14, %v2461_v11, %v2465_v14  ;;  %v2591_v14 = vshll.u32 %v2326_v61, 16  ;;  %v2532_v35 = vor.u32 %v2531_v51, %v16678_v43  ;;  %v2566_v11 = vrot.slane %v2564_v49, 4 }
 0x25f   : > { %13981 = vmatprep.subr.bf16.mxu1 %v16662_v41  ;;  %v12720_v8 = vcombine.low %v2456_v21, %v2466_v56  ;;  %v2601_v26 = vshrl.u32 %v2327_v3, 16  ;;  %v16698_v59 = vrot.slane %v2573_v19, 5  ;;  %v2579_v37 = vrot.slane %v2577_v23, 4 }
 0x260   : > { %v2590_v38 = vrot.slane %v2588_v62, 4  ;;  %v2593_v45 = vrot.slane %v2591_v14, 5  ;;  %v12721_v48 = vcombine.low %v2480_v42, %v2490_v31  ;;  %v2537_v22 = vrot.slane %v2535_v33, 5  ;;  %v2335_v42 = vld [vmem:[#allocation2 + $0x10c] sm:$0xf] }
 0x261   : > { %v2561_v0 = vrot.slane %v2559_v2, 5  ;;  %v2523_v32 = vrot.slane %v2522_v34, 4  ;;  %v2533_v16 = vrot.slane %v2532_v35, 4  ;;  %v2547_v17 = vrot.slane %v2546_v47, 4  ;;  %v2332_v2 = vld [vmem:[#allocation2 + $0xf8] sm:$0xf] }
 0x262   : > { %v2557_v7 = vrot.slane %v2556_v6, 4  ;;  %v12722_v1 = vcombine.low %v2504_v50, %v2514_v63  ;;  %v2570_v60 = vor.u32 %v2569_v46, %v2566_v11  ;;  %v2603_v21 = vrot.slane %v2601_v26, 4  ;;  %v2336_v35 = vld [vmem:[#allocation2 + $0x110] sm:$0xf] }
 0x263   : > { %v2580_v56 = vor.u32 %v2579_v37, %v16698_v59  ;;  %v2585_v9 = vrot.slane %v2583_v4, 5  ;;  %v2594_v24 = vor.u32 %v2593_v45, %v2590_v38  ;;  %v2607_v33 = vshll.u32 %v2328_v13, 16 }
 0x264   : > { %v2612_v12 = vshrl.u32 %v2329_v27, 16  ;;  %v2615_v10 = vshll.u32 %v2329_v27, 16  ;;  %v2621_v40 = vshll.u32 %v2330_v58, 16  ;;  %v2625_v15 = vshrl.u32 %v2330_v58, 16 }
 0x265   : > { %13920 = vmatmul.mubr.msk.bf16.gmra.mrb[36].mxu1 %vm897_vm5, %v12719_v18  ;;  %v16702_v18 = vrot.slane %v2597_v54, 5  ;;  %v2528_v44 = vsel %vm16610_vm14, %v2523_v32, %v16678_v43  ;;  %v2538_v29 = vsel %vm16610_vm14, %v2533_v16, %v2537_v22  ;;  %v2552_v30 = vsel %vm16610_vm14, %v2547_v17, %v16680_v36  ;;  %v2331_v36 = vld [vmem:[#allocation2 + $0xec] sm:$0x1]  ;;  %v2338_v54 = vld [vmem:[#allocation2 + $0x120] sm:$0xf] }
 0x266   : > { %13923 = vmatprep.mubr.msk.bf16.mxu1 %vm897_vm5, %v12720_v8  ;;  %v2562_v51 = vsel %vm16610_vm14, %v2557_v7, %v2561_v0  ;;  %v2571_v61 = vrot.slane %v2570_v60, 4  ;;  %v2636_v55 = vshrl.u32 %v2332_v2, 16  ;;  %v2639_v25 = vshll.u32 %v2332_v2, 16  ;;  %v2339_v22 = vld [vmem:[#allocation2 + $0x124] sm:$0xf] }
 0x267   : > { %v2604_v20 = vor.u32 %v2603_v21, %v16702_v18  ;;  %v2581_v8 = vrot.slane %v2580_v56, 4  ;;  %v2595_v49 = vrot.slane %v2594_v24, 4  ;;  %v2645_v28 = vshll.u32 %v2333_v52, 16 }
 0x268   : > { %v2649_v4 = vshrl.u32 %v2333_v52, 16  ;;  %v2614_v43 = vrot.slane %v2612_v12, 4  ;;  %v2617_v19 = vrot.slane %v2615_v10, 5  ;;  %v16718_v23 = vrot.slane %v2621_v40, 5  ;;  %v2341_v40 = vld [vmem:[#allocation2 + $0x134] sm:$0xf] }
 0x269   : > { %v2627_v3 = vrot.slane %v2625_v15, 4  ;;  %v12723_v62 = vcombine.low %v2528_v44, %v2538_v29  ;;  %v2609_v14 = vrot.slane %v2607_v33, 5  ;;  %v12724_v31 = vcombine.low %v2552_v30, %v2562_v51  ;;  %v2337_v44 = vld [vmem:[#allocation2 + $0x114] sm:$0x1] }
 0x26a   : > { %v2605_v50 = vrot.slane %v2604_v20, 4  ;;  %v2638_v34 = vrot.slane %v2636_v55, 4  ;;  %v2641_v63 = vrot.slane %v2639_v25, 5  ;;  %v2576_v47 = vsel %vm16610_vm14, %v2571_v61, %v16698_v59  ;;  %v2342_v25 = vld [vmem:[#allocation2 + $0x138] sm:$0xf] }
 0x26b   : > { %v2586_v6 = vsel %vm16610_vm14, %v2581_v8, %v2585_v9  ;;  %v16726_v11 = vrot.slane %v2645_v28, 5  ;;  %v2651_v46 = vrot.slane %v2649_v4, 4  ;;  %v2600_v26 = vsel %vm16610_vm14, %v2595_v49, %v16702_v18  ;;  %v2340_v49 = vld [vmem:[#allocation2 + $0x128] sm:$0x1] }
 0x26c   : > { %v2618_v37 = vor.u32 %v2617_v19, %v2614_v43  ;;  %v2628_v38 = vor.u32 %v2627_v3, %v16718_v23  ;;  %v2631_v45 = vshll.u32 %v2331_v36, 16  ;;  %v2660_v59 = vshrl.u32 %v2335_v42, 16  ;;  %v846_v43 = vld [vmem:[#allocation2 + $0x144] sm:$0x8] }
 0x26d   : > { %13924 = vmatmul.mubr.msk.bf16.gmra.mrb[40].mxu1 %vm897_vm5, %v12721_v48  ;;  %v2334_v48 = vld [vmem:[#allocation2 + $0x100] sm:$0x1]  ;;  %v2663_v0 = vshll.u32 %v2335_v42, 16  ;;  %v2669_v13 = vshll.u32 %v2336_v35, 16  ;;  %v2673_v27 = vshrl.u32 %v2336_v35, 16  ;;  %v2610_v32 = vsel %vm16610_vm14, %v2605_v50, %v2609_v14 }
 0x26e   : > { %13927 = vmatprep.mubr.msk.bf16.mxu1 %vm897_vm5, %v12722_v1  ;;  %v2642_v16 = vor.u32 %v2641_v63, %v2638_v34  ;;  %v2684_v17 = vshrl.u32 %v2338_v54, 16  ;;  %v2687_v7 = vshll.u32 %v2338_v54, 16  ;;  %v2652_v58 = vor.u32 %v2651_v46, %v16726_v11  ;;  %v16751_v34 = vld [vmem:[#allocation2 + $0x1c] sm:$0xf] }
 0x26f   : > { %v2655_v1 = vshll.u32 %v2334_v48, 16  ;;  %v2693_v60 = vshll.u32 %v2339_v22, 16  ;;  %v2697_v18 = vshrl.u32 %v2339_v22, 16  ;;  %v12725_v21 = vcombine.low %v2576_v47, %v2586_v6 }
 0x270   : > { %v2619_v56 = vrot.slane %v2618_v37, 4  ;;  %v2629_v9 = vrot.slane %v2628_v38, 4  ;;  %v2633_v24 = vrot.slane %v2631_v45, 5  ;;  %v2662_v33 = vrot.slane %v2660_v59, 4 }
 0x271   : > { %v2665_v2 = vrot.slane %v2663_v0, 5  ;;  %v16736_v12 = vrot.slane %v2669_v13, 5  ;;  %v2675_v10 = vrot.slane %v2673_v27, 4  ;;  %v12726_v15 = vcombine.low %v2600_v26, %v2610_v32  ;;  %v16758_v26 = vld [vmem:[#allocation2 + $0x20] sm:$0xf] }
 0x272   : > { %v2643_v52 = vrot.slane %v2642_v16, 4  ;;  %v2686_v29 = vrot.slane %v2684_v17, 4  ;;  %v2689_v30 = vrot.slane %v2687_v7, 5  ;;  %v2653_v51 = vrot.slane %v2652_v58, 4  ;;  %v3029_v13 = vld [vmem:[#allocation2 + $0x18] sm:$0x8] }
 0x273   : > { %v2657_v61 = vrot.slane %v2655_v1, 5  ;;  %v16739_v20 = vrot.slane %v2693_v60, 5  ;;  %v2699_v55 = vrot.slane %v2697_v18, 4  ;;  %v2624_v8 = vsel %vm16610_vm14, %v2619_v56, %v16718_v23  ;;  %v2343_v32 = vld [vmem:[#allocation2 + $0x13c] sm:$0x1] }
 0x274   : > { %v2708_v28 = vshrl.u32 %v2341_v40, 16  ;;  %v2711_v4 = vshll.u32 %v2341_v40, 16  ;;  %v2634_v19 = vsel %vm16610_vm14, %v2629_v9, %v2633_v24  ;;  %v2666_v3 = vor.u32 %v2665_v2, %v2662_v33  ;;  %v16766_v7 = vld [vmem:[#allocation2 + $0x30] sm:$0xf]  ;;  %v16777_v33 = vld [vmem:[#allocation2 + $0x34] sm:$0xf] }
 0x275   : > { %13928 = vmatmul.mubr.msk.bf16.gmra.mrb[44].mxu1 %vm897_vm5, %v12723_v62  ;;  %v2676_v62 = vor.u32 %v2675_v10, %v16736_v12  ;;  %v2679_v14 = vshll.u32 %v2337_v44, 16  ;;  %v2648_v36 = vsel %vm16610_vm14, %v2643_v52, %v16726_v11  ;;  %v2690_v42 = vor.u32 %v2689_v30, %v2686_v29  ;;  %v16785_v30 = vld [vmem:[#allocation2 + $0x48] sm:$0xf] }
 0x276   : > { %13931 = vmatprep.mubr.msk.bf16.mxu1 %vm897_vm5, %v12724_v31  ;;  %v2717_v31 = vshll.u32 %v2342_v25, 16  ;;  %v2721_v50 = vshrl.u32 %v2342_v25, 16  ;;  %v2658_v23 = vsel %vm16610_vm14, %v2653_v51, %v2657_v61  ;;  %v2700_v63 = vor.u32 %v2699_v55, %v16739_v20 }
 0x277   : > { %v2703_v35 = vshll.u32 %v2340_v49, 16  ;;  %v847_v47 = vsel %vm15797_vm6, 0, %v846_v43  ;;  %v12727_v6 = vcombine.low %v2624_v8, %v2634_v19  ;;  %v2710_v46 = vrot.slane %v2708_v28, 4  ;;  %v3035_v28 = vld [vmem:[#allocation2 + $0x40] sm:$0x8] }
 0x278   : > { %v2713_v54 = vrot.slane %v2711_v4, 5  ;;  %848 = vst [vmem:[#allocation2 + $0x144] sm:$0x8] %v847_v47  ;;  %v2667_v11 = vrot.slane %v2666_v3, 4  ;;  %v2677_v37 = vrot.slane %v2676_v62, 4  ;;  %v2681_v38 = vrot.slane %v2679_v14, 5 }
 0x279   : > { %v3083_v45 = vshrl.u32 %v16751_v34, 16  ;;  %v12728_v48 = vcombine.low %v2648_v36, %v2658_v23  ;;  %v2691_v22 = vrot.slane %v2690_v42, 4  ;;  %v16761_v59 = vrot.slane %v2717_v31, 5  ;;  %v16792_v14 = vld [vmem:[#allocation2 + $0x58] sm:$0xf] }
 0x27a   : > { %v2723_v0 = vrot.slane %v2721_v50, 4  ;;  %v2701_v5 = vrot.slane %v2700_v63, 4  ;;  %v2705_v27 = vrot.slane %v2703_v35, 5  ;;  %v3092_v16 = vshrl.u32 %v16758_v26, 16  ;;  %v16798_v31 = vld [vmem:[#allocation2 + $0x5c] sm:$0xf] }
 0x27b   : > { %v2714_v17 = vor.u32 %v2713_v54, %v2710_v46  ;;  %v2672_v58 = vsel %vm16610_vm14, %v2667_v11, %v16736_v12  ;;  %v2682_v1 = vsel %vm16610_vm14, %v2677_v37, %v2681_v38  ;;  %v3078_v60 = vshrl.u32 %v3029_v13, 16  ;;  %v16800_v50 = vld [vmem:[#allocation2 + $0x6c] sm:$0xf]  ;;  %v3038_v37 = vld [vmem:[#allocation2 + $0x54] sm:$0x8] }
 0x27c   : > { %v3085_v18 = vrot.slane %v3083_v45, 7  ;;  %v2696_v56 = vsel %vm16610_vm14, %v2691_v22, %v16739_v20  ;;  %v2724_v9 = vor.u32 %v2723_v0, %v16761_v59  ;;  %v2727_v24 = vshll.u32 %v2343_v32, 16 }
 0x27d   : > { %13932 = vmatmul.mubr.msk.bf16.gmra.mrb[48].mxu1 %vm897_vm5, %v12725_v21  ;;  %v3032_v21 = vld [vmem:[#allocation2 + $0x2c] sm:$0x8]  ;;  %v2706_v2 = vsel %vm16610_vm14, %v2701_v5, %v2705_v27  ;;  %v3086_v12 = vshll.u32 %v16751_v34, 16  ;;  %v3094_v10 = vrot.slane %v3092_v16, 7  ;;  %v3105_v40 = vshrl.u32 %v16766_v7, 16 }
 0x27e   : > { %13935 = vmatprep.mubr.msk.bf16.mxu1 %vm897_vm5, %v12726_v15  ;;  %v16783_v15 = vld [vmem:[#allocation2 + $0x44] sm:$0xf]  ;;  %v12729_v52 = vcombine.low %v2672_v58, %v2682_v1  ;;  %v2715_v44 = vrot.slane %v2714_v17, 4  ;;  %v3100_v29 = vshrl.u32 %v3032_v21, 16  ;;  %v12749_v51 = vrot.slane %v3078_v60, 11 }
 0x27f   : > { %v3088_v61 = vor.u32 %v3086_v12, %v3085_v18  ;;  %v3095_v20 = vshll.u32 %v16758_v26, 16  ;;  %v3114_v55 = vshrl.u32 %v16777_v33, 16  ;;  %v12730_v25 = vcombine.low %v2696_v56, %v2706_v2  ;;  %v3041_v5 = vld [vmem:[#allocation2 + $0x68] sm:$0x8] }
 0x280   : > { %v2725_v8 = vrot.slane %v2724_v9, 4  ;;  %v2729_v49 = vrot.slane %v2727_v24, 5  ;;  %v3127_v4 = vshrl.u32 %v16783_v15, 16  ;;  %v3090_v43 = vrot.slane %v3085_v18, 4 }
 0x281   : > { %v3097_v19 = vor.u32 %v3095_v20, %v3094_v10  ;;  %v3107_v3 = vrot.slane %v3105_v40, 7  ;;  %v3136_v62 = vshrl.u32 %v16785_v30, 16  ;;  %v2720_v36 = vsel %vm16610_vm14, %v2715_v44, %v16761_v59  ;;  %v16826_v20 = vld [vmem:[#allocation2 + $0x80] sm:$0xf] }
 0x282   : > { %v12750_v42 = vrot.slane %v3100_v29, 11  ;;  %v3089_v23 = vsel %vm16047_vm11, %v12749_v51, %v3088_v61  ;;  %v3108_v63 = vshll.u32 %v16766_v7, 16  ;;  %v3116_v35 = vrot.slane %v3114_v55, 7 }
 0x283   : > { %v3117_v47 = vshll.u32 %v16777_v33, 16  ;;  %v2730_v46 = vsel %vm16610_vm14, %v2725_v8, %v2729_v49  ;;  %v3122_v54 = vshrl.u32 %v3035_v28, 16  ;;  %v3129_v11 = vrot.slane %v3127_v4, 7  ;;  %v16832_v28 = vld [vmem:[#allocation2 + $0x84] sm:$0xf] }
 0x284   : > { %v3149_v38 = vshrl.u32 %v16792_v14, 16  ;;  %v3098_v45 = vsel %vm16047_vm11, %v3090_v43, %v3097_v19  ;;  %v3138_v22 = vrot.slane %v3136_v62, 7  ;;  %v3158_v59 = vshrl.u32 %v16798_v31, 16  ;;  %v16836_v62 = vld [vmem:[#allocation2 + $0x94] sm:$0xf] }
 0x285   : > { %13936 = vmatmul.mubr.msk.bf16.gmra.mrb[52].mxu1 %vm897_vm5, %v12727_v6  ;;  %v16806_v6 = vld [vmem:[#allocation2 + $0x70] sm:$0xf]  ;;  %v3112_v0 = vrot.slane %v3107_v3, 4  ;;  %v3130_v13 = vshll.u32 %v16783_v15, 16  ;;  %v3171_v27 = vshrl.u32 %v16800_v50, 16  ;;  %v12731_v16 = vcombine.low %v2720_v36, %v2730_v46 }
 0x286   : > { %13939 = vmatprep.mubr.msk.bf16.mxu1 %vm897_vm5, %v12728_v48  ;;  %v3110_v48 = vor.u32 %v3108_v63, %v3107_v3  ;;  %v3180_v32 = vshrl.u32 %v16806_v6, 16  ;;  %v3119_v17 = vor.u32 %v3117_v47, %v3116_v35  ;;  %v3139_v58 = vshll.u32 %v16785_v30, 16  ;;  %v16838_v36 = vld [vmem:[#allocation2 + $0x98] sm:$0xf]  ;;  %v3044_v35 = vld [vmem:[#allocation2 + $0x7c] sm:$0x8] }
 0x287   : > { %v3144_v1 = vshrl.u32 %v3038_v37, 16  ;;  %v12767_v60 = vcombine.low %v3089_v23, %v3098_v45  ;;  %v12751_v18 = vrot.slane %v3122_v54, 11  ;;  %v3132_v21 = vor.u32 %v3130_v13, %v3129_v11 }
 0x288   : > { %v3151_v56 = vrot.slane %v3149_v38, 7  ;;  %v3134_v9 = vrot.slane %v3129_v11, 4  ;;  %v3141_v24 = vor.u32 %v3139_v58, %v3138_v22  ;;  %v3160_v2 = vrot.slane %v3158_v59, 7  ;;  %v16845_v11 = vld [vmem:[%s19600_s3 + $0x28] sm:$0xff]   ;;  %v3047_v38 = vld [vmem:[#allocation2 + $0x90] sm:$0x8] }
 0x289   : > { %v3166_v12 = vshrl.u32 %v3041_v5, 16  ;;  %v3152_v10 = vshll.u32 %v16792_v14, 16  ;;  %v3173_v40 = vrot.slane %v3171_v27, 7  ;;  %v3111_v44 = vsel %vm16047_vm11, %v12750_v42, %v3110_v48  ;;  %v16862_v58 = vld [vmem:[#allocation2 + $0xac] sm:$0xf] }
 0x28a   : > { %v3120_v29 = vsel %vm16047_vm11, %v3112_v0, %v3119_v17  ;;  %v12752_v51 = vrot.slane %v3144_v1, 11  ;;  %v3161_v61 = vshll.u32 %v16798_v31, 16  ;;  %v3133_v55 = vsel %vm16047_vm11, %v12751_v18, %v3132_v21  ;;  %v16866_v21 = vld [vmem:[#allocation2 + $0xbc] sm:$0xf] }
 0x28b   : > { %v3174_v8 = vshll.u32 %v16800_v50, 16  ;;  %v3183_v49 = vshll.u32 %v16806_v6, 16  ;;  %v3142_v4 = vsel %vm16047_vm11, %v3134_v9, %v3141_v24  ;;  %v3156_v43 = vrot.slane %v3151_v56, 4 }
 0x28c   : > { %v3163_v19 = vor.u32 %v3161_v61, %v3160_v2  ;;  %v12753_v3 = vrot.slane %v3166_v12, 11  ;;  %v3178_v23 = vrot.slane %v3173_v40, 4  ;;  %v3193_v47 = vshrl.u32 %v16826_v20, 16  ;;  %v16870_v12 = vld [vmem:[#allocation2 + $0xc0] sm:$0xf] }
 0x28d   : > { %13940 = vmatmul.mubr.msk.bf16.gmra.mrb[56].mxu1 %vm897_vm5, %v12729_v52  ;;  %v3182_v52 = vrot.slane %v3180_v32, 7  ;;  %v3176_v42 = vor.u32 %v3174_v8, %v3173_v40  ;;  %v12768_v46 = vcombine.low %v3111_v44, %v3120_v29  ;;  %v3202_v54 = vshrl.u32 %v16832_v28, 16  ;;  %v16860_v32 = vld [vmem:[#allocation2 + $0xa8] sm:$0xf]  ;;  %v3050_v44 = vld [vmem:[#allocation2 + $0xa4] sm:$0x8] }
 0x28e   : > { %13943 = vmatprep.mubr.msk.bf16.mxu1 %vm897_vm5, %v12730_v25  ;;  %v3154_v25 = vor.u32 %v3152_v10, %v3151_v56  ;;  %v12769_v37 = vcombine.low %v3133_v55, %v3142_v4  ;;  %v3215_v45 = vshrl.u32 %v16836_v62, 16  ;;  %v3224_v48 = vshrl.u32 %v16838_v36, 16 }
 0x28f   : > { %v3185_v63 = vor.u32 %v3183_v49, %v3182_v52  ;;  %v3164_v59 = vsel %vm16047_vm11, %v3156_v43, %v3163_v19  ;;  %v3188_v0 = vshrl.u32 %v3044_v35, 16  ;;  %v3177_v13 = vsel %vm16047_vm11, %v12753_v3, %v3176_v42  ;;  %v3053_v43 = vld [vmem:[#allocation2 + $0xb8] sm:$0x8]  ;;  %v16881_v35 = vld [vmem:[#allocation2 + $0xd0] sm:$0xf] }
 0x290   : > { %v3155_v22 = vsel %vm16047_vm11, %v12752_v51, %v3154_v25  ;;  %v3195_v27 = vrot.slane %v3193_v47, 7  ;;  %v3210_v17 = vshrl.u32 %v3047_v38, 16  ;;  %v3226_v18 = vrot.slane %v3224_v48, 7  ;;  %v16886_v38 = vld [vmem:[#allocation2 + $0xd4] sm:$0xf] }
 0x291   : > { %v3186_v5 = vsel %vm16047_vm11, %v3178_v23, %v3185_v63  ;;  %v12770_v1 = vcombine.low %v3155_v22, %v3164_v59  ;;  %v12754_v9 = vrot.slane %v3188_v0, 11  ;;  %v3205_v24 = vshll.u32 %v16832_v28, 16  ;;  %v16893_v0 = vld [vmem:[#allocation2 + $0xe4] sm:$0xf] }
 0x292   : > { %v12771_v56 = vcombine.low %v3177_v13, %v3186_v5  ;;  %v3237_v2 = vshrl.u32 %v16860_v32, 16  ;;  %v3218_v40 = vshll.u32 %v16836_v62, 16  ;;  %v3227_v52 = vshll.u32 %v16838_v36, 16 }
 0x293   : > { %v3246_v29 = vshrl.u32 %v16862_v58, 16  ;;  %v3200_v51 = vrot.slane %v3195_v27, 4  ;;  %v12755_v55 = vrot.slane %v3210_v17, 11  ;;  %v3259_v25 = vshrl.u32 %v16866_v21, 16  ;;  %v16897_v17 = vld [vmem:[#allocation2 + $0xe8] sm:$0xf] }
 0x294   : > { %v3229_v4 = vor.u32 %v3227_v52, %v3226_v18  ;;  %v3268_v19 = vshrl.u32 %v16870_v12, 16  ;;  %v3232_v3 = vshrl.u32 %v3050_v44, 16  ;;  %v3239_v42 = vrot.slane %v3237_v2, 7  ;;  %v3056_v18 = vld [vmem:[#allocation2 + $0xcc] sm:$0x8] }
 0x295   : > { %13944 = vmatmul.mubr.msk.bf16.gmra.mrb[60].mxu1 %vm897_vm5, %v12731_v16  ;;  %v3204_v16 = vrot.slane %v3202_v54, 7  ;;  %v3248_v63 = vrot.slane %v3246_v29, 7  ;;  %v3254_v54 = vshrl.u32 %v3053_v43, 16  ;;  %v3249_v22 = vshll.u32 %v16862_v58, 16  ;;  %v3059_v44 = vld [vmem:[#allocation2 + $0xe0] sm:$0x8] }
 0x296   : > { %13949 = vmatprep.mubr.msk.bf16.mxu1 %vm897_vm5, %v12767_v60  ;;  %v3217_v60 = vrot.slane %v3215_v45, 7  ;;  %v3270_v59 = vrot.slane %v3268_v19, 7  ;;  %v12756_v13 = vrot.slane %v3232_v3, 11  ;;  %v3303_v29 = vshrl.u32 %v16893_v0, 16  ;;  %v16912_v3 = vld [vmem:[#allocation2 + $0xf8] sm:$0xf] }
 0x297   : > { %v3207_v61 = vor.u32 %v3205_v24, %v3204_v16  ;;  %v3281_v16 = vshrl.u32 %v16881_v35, 16  ;;  %v12757_v2 = vrot.slane %v3254_v54, 11  ;;  %v3284_v43 = vshll.u32 %v16881_v35, 16  ;;  %v16919_v54 = vld [vmem:[#allocation2 + $0x10c] sm:$0xf] }
 0x298   : > { %v3220_v8 = vor.u32 %v3218_v40, %v3217_v60  ;;  %v3222_v49 = vrot.slane %v3217_v60, 4  ;;  %v3271_v60 = vshll.u32 %v16870_v12, 16  ;;  %v3298_v19 = vshrl.u32 %v3059_v44, 16 }
 0x299   : > { %v3208_v47 = vsel %vm16047_vm11, %v3200_v51, %v3207_v61  ;;  %v3312_v51 = vshrl.u32 %v16897_v17, 16  ;;  %v3276_v61 = vshrl.u32 %v3056_v18, 16 }
 0x29a   : > { %v3221_v45 = vsel %vm16047_vm11, %v12755_v55, %v3220_v8  ;;  %v3230_v48 = vsel %vm16047_vm11, %v3222_v49, %v3229_v4  ;;  %v3273_v52 = vor.u32 %v3271_v60, %v3270_v59  ;;  %v3283_v55 = vrot.slane %v3281_v16, 7  ;;  %v16921_v59 = vld [vmem:[#allocation2 + $0x110] sm:$0xf]  ;;  %v3062_v60 = vld [vmem:[#allocation2 + $0xf4] sm:$0x8] }
 0x29b   : > { %v12773_v24 = vcombine.low %v3221_v45, %v3230_v48  ;;  %v12758_v45 = vrot.slane %v3276_v61, 11  ;;  %v3325_v16 = vshrl.u32 %v16912_v3, 16 }
 0x29c   : > { %v3286_v48 = vor.u32 %v3284_v43, %v3283_v55 }
 0x29d   : > { %13950 = vmatmul.mubr.msk.bf16.vlgmr.msra.gmra.mrb[32].mxu1 %vm897_vm5, %v12768_v46  ;;  %v3240_v46 = vshll.u32 %v16860_v32, 16 }
 0x29e   : > { %13982 = vmatpush3.bf16.msra.mxu1 %v16662_v41  ;;  %13953 = vmatprep.mubr.msk.bf16.mxu1 %vm897_vm5, %v12769_v37  ;;  %v3196_v41 = vshll.u32 %v16826_v20, 16  ;;  %v3261_v37 = vrot.slane %v3259_v25, 7 }
 0x29f   : > { %14015 = vmatprep.subr.bf16.mxu1 %v16845_v11  ;;  %v3242_v5 = vor.u32 %v3240_v46, %v3239_v42  ;;  %v3314_v46 = vrot.slane %v3312_v51, 7  ;;  %v3327_v51 = vrot.slane %v3325_v16, 7 }
 0x2a0   : > { %v3198_v10 = vor.u32 %v3196_v41, %v3195_v27  ;;  %v3262_v27 = vshll.u32 %v16866_v21, 16  ;;  %v3251_v41 = vor.u32 %v3249_v22, %v3248_v63  ;;  %v3266_v40 = vrot.slane %v3261_v37, 4 }
 0x2a1   : > { %v3243_v25 = vsel %vm16047_vm11, %v12756_v13, %v3242_v5  ;;  %v3293_v63 = vshll.u32 %v16886_v38, 16  ;;  %v3288_v22 = vrot.slane %v3283_v55, 4  ;;  %v3306_v5 = vshll.u32 %v16893_v0, 16 }
 0x2a2   : > { %v3199_v23 = vsel %vm16047_vm11, %v12754_v9, %v3198_v10  ;;  %v3264_v10 = vor.u32 %v3262_v27, %v3261_v37  ;;  %v3315_v27 = vshll.u32 %v16897_v17, 16 }
 0x2a3   : > { %v12772_v9 = vcombine.low %v3199_v23, %v3208_v47  ;;  %v3274_v23 = vsel %vm16047_vm11, %v3266_v40, %v3273_v52  ;;  %v3305_v47 = vrot.slane %v3303_v29, 7  ;;  %v3356_v40 = vshrl.u32 %v16921_v59, 16 }
 0x2a4   : > { %v3265_v4 = vsel %vm16047_vm11, %v12757_v2, %v3264_v10  ;;  %v3317_v2 = vor.u32 %v3315_v27, %v3314_v46  ;;  %v3065_v10 = vld [vmem:[#allocation2 + $0x108] sm:$0x8]  ;;  %v3287_v52 = vsel %vm16047_vm11, %v12758_v45, %v3286_v48  ;;  %v3320_v29 = vshrl.u32 %v3062_v60, 16  ;;  %v16944_v46 = vld [vmem:[#allocation2 + $0x124] sm:$0xf] }
 0x2a5   : > { %13954 = vmatmul.mubr.msk.bf16.gmra.mrb[36].mxu1 %vm897_vm5, %v12770_v1  ;;  %v3244_v1 = vrot.slane %v3239_v42, 4  ;;  %v16914_v42 = vld [vmem:[#allocation2 + $0xfc] sm:$0xf]  ;;  %v3342_v55 = vshrl.u32 %v3065_v10, 16  ;;  %v3358_v43 = vrot.slane %v3356_v40, 7 }
 0x2a6   : > { %13957 = vmatprep.mubr.msk.bf16.mxu1 %vm897_vm5, %v12771_v56  ;;  %v3290_v56 = vshrl.u32 %v16886_v38, 16  ;;  %v3334_v18 = vshrl.u32 %v16914_v42, 16  ;;  %v12760_v45 = vrot.slane %v3320_v29, 11  ;;  %v3068_v60 = vld [vmem:[#allocation2 + $0x11c] sm:$0x8] }
 0x2a7   : > { %v3252_v8 = vsel %vm16047_vm11, %v3244_v1, %v3251_v41  ;;  %v12775_v1 = vcombine.low %v3265_v4, %v3274_v23  ;;  %v12759_v41 = vrot.slane %v3298_v19, 11  ;;  %v3328_v4 = vshll.u32 %v16912_v3, 16  ;;  %v16940_v19 = vld [vmem:[#allocation2 + $0x120] sm:$0xf] }
 0x2a8   : > { %v3292_v49 = vrot.slane %v3290_v56, 7  ;;  %v12774_v37 = vcombine.low %v3243_v25, %v3252_v8  ;;  %v3347_v56 = vshrl.u32 %v16919_v54, 16  ;;  %v3336_v61 = vrot.slane %v3334_v18, 7 }
 0x2a9   : > { %v3330_v48 = vor.u32 %v3328_v4, %v3327_v51  ;;  %v3364_v40 = vshrl.u32 %v3068_v60, 16 }
 0x2aa   : > { %v3295_v13 = vor.u32 %v3293_v63, %v3292_v49  ;;  %v3349_v25 = vrot.slane %v3347_v56, 7  ;;  %v3337_v63 = vshll.u32 %v16914_v42, 16 }
 0x2ac   : > { %v3296_v44 = vsel %vm16047_vm11, %v3288_v22, %v3295_v13  ;;  %v3332_v22 = vrot.slane %v3327_v51, 4  ;;  %v3359_v13 = vshll.u32 %v16921_v59, 16  ;;  %v3339_v16 = vor.u32 %v3337_v63, %v3336_v61 }
 0x2ad   : > { %13958 = vmatmul.mubr.msk.bf16.gmra.mrb[40].mxu1 %vm897_vm5, %v12772_v9  ;;  %v3308_v9 = vor.u32 %v3306_v5, %v3305_v47  ;;  %v12776_v23 = vcombine.low %v3287_v52, %v3296_v44  ;;  %v16949_v5 = vld [vmem:[#allocation2 + $0x138] sm:$0xf]  ;;  %v3354_v18 = vrot.slane %v3349_v25, 4  ;;  %v3071_v52 = vld [vmem:[#allocation2 + $0x130] sm:$0x8]  ;;  %v3331_v44 = vsel %vm16047_vm11, %v12760_v45, %v3330_v48 }
 0x2ae   : > { %13961 = vmatprep.mubr.msk.bf16.mxu1 %vm897_vm5, %v12773_v24  ;;  %v3310_v24 = vrot.slane %v3305_v47, 4  ;;  %v3350_v47 = vshll.u32 %v16919_v54, 16  ;;  %v3361_v56 = vor.u32 %v3359_v13, %v3358_v43  ;;  %v3400_v10 = vshrl.u32 %v16949_v5, 16 }
 0x2af   : > { %v3309_v8 = vsel %vm16047_vm11, %v12759_v41, %v3308_v9  ;;  %v3369_v9 = vshrl.u32 %v16940_v19, 16  ;;  %v3340_v29 = vsel %vm16047_vm11, %v3332_v22, %v3339_v16  ;;  %v3372_v45 = vshll.u32 %v16940_v19, 16 }
 0x2b0   : > { %v3318_v49 = vsel %vm16047_vm11, %v3310_v24, %v3317_v2  ;;  %v3352_v41 = vor.u32 %v3350_v47, %v3349_v25  ;;  %v3378_v24 = vshrl.u32 %v16944_v46, 16  ;;  %v3362_v61 = vsel %vm16047_vm11, %v3354_v18, %v3361_v56 }
 0x2b1   : > { %v12777_v27 = vcombine.low %v3309_v8, %v3318_v49  ;;  %v16965_v8 = vld [vmem:[#allocation2 + $0x148] sm:$0xf]  ;;  %v3386_v49 = vshrl.u32 %v3071_v52, 16  ;;  %v3402_v43 = vrot.slane %v3400_v10, 7  ;;  %v12778_v63 = vcombine.low %v3331_v44, %v3340_v29  ;;  %v3074_v10 = vld [vmem:[#allocation2 + $0x144] sm:$0x8] }
 0x2b2   : > { %v3380_v25 = vrot.slane %v3378_v24, 7  ;;  %v12762_v47 = vrot.slane %v3364_v40, 11  ;;  %v3381_v48 = vshll.u32 %v16944_v46, 16  ;;  %v3413_v16 = vshrl.u32 %v16965_v8, 16  ;;  %v894_v40 = vld [vmem:[#allocation2 + $0x150] sm:$0x1] }
 0x2b3   : > { %v12763_v56 = vrot.slane %v3386_v49, 11  ;;  %v3416_v49 = vshll.u32 %v16965_v8, 16 }
 0x2b4   : > { %v3383_v60 = vor.u32 %v3381_v48, %v3380_v25  ;;  %v3415_v52 = vrot.slane %v3413_v16, 7 }
 0x2b5   : > { %13962 = vmatmul.mubr.msk.bf16.gmra.mrb[44].mxu1 %vm897_vm5, %v12774_v37  ;;  %v16946_v37 = vld [vmem:[#allocation2 + $0x134] sm:$0xf] }
 0x2b6   : > { %13965 = vmatprep.mubr.msk.bf16.mxu1 %vm897_vm5, %v12775_v1  ;;  %v12761_v1 = vrot.slane %v3342_v55, 11  ;;  %v3391_v2 = vshrl.u32 %v16946_v37, 16  ;;  %v3371_v55 = vrot.slane %v3369_v9, 7  ;;  %v3394_v13 = vshll.u32 %v16946_v37, 16 }
 0x2b8   : > { %v3353_v51 = vsel %vm16047_vm11, %v12761_v1, %v3352_v41  ;;  %v3393_v4 = vrot.slane %v3391_v2, 7  ;;  %v3374_v1 = vor.u32 %v3372_v45, %v3371_v55  ;;  %v3376_v41 = vrot.slane %v3371_v55, 4 }
 0x2b9   : > { %v12779_v22 = vcombine.low %v3353_v51, %v3362_v61  ;;  %v3408_v51 = vshrl.u32 %v3074_v10, 16 }
 0x2ba   : > { %v3396_v9 = vor.u32 %v3394_v13, %v3393_v4  ;;  %v3398_v24 = vrot.slane %v3393_v4, 4  ;;  %v3375_v44 = vsel %vm16047_vm11, %v12762_v47, %v3374_v1  ;;  %v3384_v29 = vsel %vm16047_vm11, %v3376_v41, %v3383_v60 }
 0x2bb   : > { %v895_v4 = vsel %vm15981_vm9, 0, %v894_v40  ;;  %v3418_v47 = vor.u32 %v3416_v49, %v3415_v52  ;;  %v12764_v48 = vrot.slane %v3408_v51, 11  ;;  %v12802_v41 = vcombine.low %v16751_v34, %v16758_v26  ;;  %v4063_v40 = vld [vmem:[#allocation2 + $0x44] sm:$0xf] }
 0x2bc   : > { %v3397_v55 = vsel %vm16047_vm11, %v12763_v56, %v3396_v9  ;;  %896 = vst [vmem:[#allocation2 + $0x150] sm:$0x1] %v895_v4  ;;  %v12803_v60 = vcombine.low %v16766_v7, %v16777_v33  ;;  %v12804_v56 = vcombine.low %v16783_v15, %v16785_v30  ;;  %v12805_v34 = vcombine.low %v16792_v14, %v16798_v31  ;;  %v4057_v14 = vld [vmem:[#allocation2 + $0x1c] sm:$0xf]  ;;  %v4058_v31 = vld [vmem:[#allocation2 + $0x20] sm:$0xf] }
 0x2bd   : > { %13966 = vmatmul.mubr.msk.bf16.gmra.mrb[48].mxu1 %vm897_vm5, %v12776_v23  ;;  %v16967_v23 = vld [vmem:[#allocation2 + $0x14c] sm:$0xf]  ;;  %v12806_v26 = vcombine.low %v16800_v50, %v16806_v6  ;;  %v12807_v7 = vcombine.low %v16826_v20, %v16832_v28  ;;  %v12808_v33 = vcombine.low %v16836_v62, %v16838_v36  ;;  %v12809_v15 = vcombine.low %v16860_v32, %v16862_v58  ;;  %v4060_v36 = vld [vmem:[#allocation2 + $0x30] sm:$0xf]  ;;  %v4061_v32 = vld [vmem:[#allocation2 + $0x34] sm:$0xf] }
 0x2be   : > { %13969 = vmatprep.mubr.msk.bf16.mxu1 %vm897_vm5, %v12777_v27  ;;  %v3403_v27 = vshll.u32 %v16949_v5, 16  ;;  %v3422_v18 = vshrl.u32 %v16967_v23, 16  ;;  %v12810_v30 = vcombine.low %v16866_v21, %v16870_v12  ;;  %v12811_v50 = vcombine.low %v16881_v35, %v16886_v38  ;;  %v4059_v12 = vld [vmem:[#allocation2 + $0x24] sm:$0x1] }
 0x2bf   : > { %v4106_v6 = vshrl.u32 %v4057_v14, 16  ;;  %v4109_v20 = vshll.u32 %v4057_v14, 16  ;;  %v4115_v28 = vshll.u32 %v4058_v31, 16  ;;  %v4119_v62 = vshrl.u32 %v4058_v31, 16 }
 0x2c0   : > { %v3405_v2 = vor.u32 %v3403_v27, %v3402_v43  ;;  %v3424_v61 = vrot.slane %v3422_v18, 7  ;;  %v3425_v43 = vshll.u32 %v16967_v23, 16  ;;  %v3419_v27 = vsel %vm16047_vm11, %v12764_v48, %v3418_v47  ;;  %v17004_v18 = vld [vmem:[%s19600_s3 + $0x30] sm:$0xff]  }
 0x2c1   : > { %v4130_v58 = vshrl.u32 %v4060_v36, 16  ;;  %v4133_v21 = vshll.u32 %v4060_v36, 16  ;;  %v4108_v9 = vrot.slane %v4106_v6, 4  ;;  %v4121_v35 = vrot.slane %v4119_v62, 4 }
 0x2c2   : > { %v3406_v25 = vsel %vm16047_vm11, %v3398_v24, %v3405_v2  ;;  %v3427_v13 = vor.u32 %v3425_v43, %v3424_v61  ;;  %v4111_v24 = vrot.slane %v4109_v20, 5  ;;  %v17036_v2 = vrot.slane %v4115_v28, 5 }
 0x2c3   : > { %v12781_v45 = vcombine.low %v3397_v55, %v3406_v25  ;;  %v4139_v38 = vshll.u32 %v4061_v32, 16  ;;  %v4143_v10 = vshrl.u32 %v4061_v32, 16  ;;  %v4132_v61 = vrot.slane %v4130_v58, 4  ;;  %v4062_v25 = vld [vmem:[#allocation2 + $0x38] sm:$0x1] }
 0x2c4   : > { %v4122_v51 = vor.u32 %v4121_v35, %v17036_v2  ;;  %v4135_v55 = vrot.slane %v4133_v21, 5  ;;  %v4154_v43 = vshrl.u32 %v4063_v40, 16 }
 0x2c5   : > { %13970 = vmatmul.mubr.msk.bf16.gmra.mrb[52].mxu1 %vm897_vm5, %v12778_v63  ;;  %v12780_v63 = vcombine.low %v3375_v44, %v3384_v29  ;;  %v4064_v44 = vld [vmem:[#allocation2 + $0x48] sm:$0xf]  ;;  %v4112_v29 = vor.u32 %v4111_v24, %v4108_v9  ;;  %v17043_v49 = vrot.slane %v4139_v38, 5  ;;  %v4145_v4 = vrot.slane %v4143_v10, 4  ;;  %v4071_v38 = vld [vmem:[#allocation2 + $0x74] sm:$0x1] }
 0x2c6   : > { %13973 = vmatprep.mubr.msk.bf16.mxu1 %vm897_vm5, %v12779_v22  ;;  %v3420_v22 = vrot.slane %v3415_v52, 4  ;;  %v12813_v52 = vcombine.low %v16912_v3, %v16914_v42  ;;  %v4163_v47 = vshll.u32 %v4064_v44, 16  ;;  %v4167_v3 = vshrl.u32 %v4064_v44, 16  ;;  %v4072_v44 = vld [vmem:[#allocation2 + $0x80] sm:$0xf] }
 0x2c7   : > { %v12815_v42 = vcombine.low %v16940_v19, %v16944_v46  ;;  %v4113_v48 = vrot.slane %v4112_v29, 4  ;;  %v4073_v29 = vld [vmem:[#allocation2 + $0x84] sm:$0xf] }
 0x2c8   : > { %v3428_v16 = vsel %vm16047_vm11, %v3420_v22, %v3427_v13  ;;  %v4136_v13 = vor.u32 %v4135_v55, %v4132_v61  ;;  %v4169_v19 = vrot.slane %v4167_v3, 4  ;;  %v4221_v3 = vshll.u32 %v4071_v38, 16  ;;  %v4082_v38 = vld [vmem:[#allocation2 + $0xc0] sm:$0xf] }
 0x2c9   : > { %v12782_v1 = vcombine.low %v3419_v27, %v3428_v16  ;;  %v4149_v27 = vshll.u32 %v4062_v25, 16  ;;  %v4069_v16 = vld [vmem:[#allocation2 + $0x6c] sm:$0xf]  ;;  %v4118_v20 = vsel %vm16610_vm14, %v4113_v48, %v17036_v2  ;;  %v4239_v48 = vshrl.u32 %v4073_v29, 16 }
 0x2ca   : > { %v17054_v14 = vrot.slane %v4136_v13, 4 }
 0x2cb   : > { %v17056_v31 = vrot.slane %v4149_v27, 5 }
 0x2cd   : > { %13974 = vmatmul.mubr.msk.bf16.gmra.mrb[56].mxu1 %vm897_vm5, %v12780_v63  ;;  %v4157_v63 = vshll.u32 %v4063_v40, 16 }
 0x2ce   : > { %13977 = vmatprep.mubr.msk.bf16.mxu1 %vm897_vm5, %v12781_v45  ;;  %v4067_v45 = vld [vmem:[#allocation2 + $0x5c] sm:$0xf] }
 0x2d5   : > { %13978 = vmatmul.mubr.msk.bf16.gmra.mrb[60].mxu1 %vm897_vm5, %v12782_v1  ;;  %v4123_v1 = vrot.slane %v4122_v51, 4 }
 0x2d6   : > { %13983 = vmatprep.mubr.msk.bf16.mxu1 %vm897_vm5, %v12802_v41  ;;  %v4146_v41 = vor.u32 %v4145_v4, %v17043_v49  ;;  %v4075_v4 = vld [vmem:[#allocation2 + $0x94] sm:$0xf] }
 0x2d7   : > { %v4253_v13 = vshll.u32 %v4075_v4, 16 }
 0x2dd   : > { %13984 = vmatmul.mubr.msk.bf16.vlgmr.msra.gmra.mrb[32].mxu1 %vm897_vm5, %v12803_v60  ;;  %v4156_v60 = vrot.slane %v4154_v43, 4  ;;  %v4142_v43 = vsel %vm16610_vm14, %v17054_v14, %v17043_v49 }
 0x2de   : > { %14016 = vmatpush3.bf16.msra.mxu1 %v16845_v11  ;;  %13987 = vmatprep.mubr.msk.bf16.mxu1 %vm897_vm5, %v12804_v56  ;;  %v12812_v11 = vcombine.low %v16893_v0, %v16897_v17  ;;  %v12814_v0 = vcombine.low %v16919_v54, %v16921_v59  ;;  %v4125_v17 = vshll.u32 %v4059_v12, 16  ;;  %v12816_v54 = vcombine.low %v16946_v37, %v16949_v5  ;;  %v4066_v59 = vld [vmem:[#allocation2 + $0x58] sm:$0xf]  ;;  %v4068_v12 = vld [vmem:[#allocation2 + $0x60] sm:$0x1] }
 0x2df   : > { %14049 = vmatprep.subr.bf16.mxu1 %v17004_v18  ;;  %v4159_v56 = vrot.slane %v4157_v63, 5  ;;  %v4178_v46 = vshrl.u32 %v4066_v59, 16  ;;  %v4187_v37 = vshll.u32 %v4067_v45, 16  ;;  %v4191_v5 = vshrl.u32 %v4067_v45, 16 }
 0x2e0   : > { %v4127_v22 = vrot.slane %v4125_v17, 5  ;;  %v4197_v25 = vshll.u32 %v4068_v12, 16  ;;  %v4235_v45 = vshll.u32 %v4073_v29, 16  ;;  %v17103_v12 = vld [vmem:[%s19600_s3 + $0x38] sm:$0xff]  }
 0x2e1   : > { %v4160_v62 = vor.u32 %v4159_v56, %v4156_v60  ;;  %v4180_v58 = vrot.slane %v4178_v46, 4  ;;  %v17066_v9 = vrot.slane %v4187_v37, 5  ;;  %v4193_v24 = vrot.slane %v4191_v5, 4  ;;  %v4074_v37 = vld [vmem:[#allocation2 + $0x88] sm:$0x1] }
 0x2e2   : > { %v4128_v28 = vsel %vm16610_vm14, %v4123_v1, %v4127_v22  ;;  %v4250_v22 = vshrl.u32 %v4075_v4, 16  ;;  %v4199_v1 = vrot.slane %v4197_v25, 5  ;;  %v17088_v5 = vrot.slane %v4235_v45, 5 }
 0x2e3   : > { %v4161_v17 = vrot.slane %v4160_v62, 4  ;;  %v4307_v25 = vshll.u32 %v4082_v38, 16  ;;  %v4311_v4 = vshrl.u32 %v4082_v38, 16  ;;  %v4090_v38 = vld [vmem:[#allocation2 + $0xf8] sm:$0xf] }
 0x2e5   : > { %13988 = vmatmul.mubr.msk.bf16.gmra.mrb[36].mxu1 %vm897_vm5, %v12805_v34  ;;  %v4070_v34 = vld [vmem:[#allocation2 + $0x70] sm:$0xf] }
 0x2e6   : > { %13991 = vmatprep.mubr.msk.bf16.mxu1 %vm897_vm5, %v12806_v26  ;;  %v4065_v26 = vld [vmem:[#allocation2 + $0x4c] sm:$0x1]  ;;  %v4215_v6 = vshrl.u32 %v4070_v34, 16 }
 0x2e7   : > { %v4173_v36 = vshll.u32 %v4065_v26, 16 }
 0x2e8   : > { %v4217_v40 = vrot.slane %v4215_v6, 4 }
 0x2e9   : > { %v4175_v61 = vrot.slane %v4173_v36, 5 }
 0x2ed   : > { %13992 = vmatmul.mubr.msk.bf16.gmra.mrb[40].mxu1 %vm897_vm5, %v12807_v7  ;;  %v17052_v7 = vrot.slane %v4163_v47, 5 }
 0x2ee   : > { %13995 = vmatprep.mubr.msk.bf16.mxu1 %vm897_vm5, %v12808_v33  ;;  %v4181_v33 = vshll.u32 %v4066_v59, 16  ;;  %v4076_v59 = vld [vmem:[#allocation2 + $0x98] sm:$0xf] }
 0x2ef   : > { %v4170_v32 = vor.u32 %v4169_v19, %v17052_v7  ;;  %v4166_v49 = vsel %vm16610_vm14, %v4161_v17, %v17052_v7  ;;  %v4259_v56 = vshll.u32 %v4076_v59, 16  ;;  %v4223_v19 = vrot.slane %v4221_v3, 5 }
 0x2f0   : > { %v4183_v21 = vrot.slane %v4181_v33, 5  ;;  %v4252_v7 = vrot.slane %v4250_v22, 4  ;;  %v4080_v22 = vld [vmem:[#allocation2 + $0xb0] sm:$0x1] }
 0x2f1   : > { %v4171_v51 = vrot.slane %v4170_v32, 4  ;;  %v4245_v32 = vshll.u32 %v4074_v37, 16 }
 0x2f2   : > { %v4184_v55 = vor.u32 %v4183_v21, %v4180_v58  ;;  %v4077_v58 = vld [vmem:[#allocation2 + $0x9c] sm:$0x1] }
 0x2f3   : > { %v4176_v27 = vsel %vm16610_vm14, %v4171_v51, %v4175_v61  ;;  %v4081_v21 = vld [vmem:[#allocation2 + $0xbc] sm:$0xf] }
 0x2f4   : > { %v4298_v29 = vshrl.u32 %v4081_v21, 16  ;;  %v4301_v51 = vshll.u32 %v4081_v21, 16 }
 0x2f5   : > { %13996 = vmatmul.mubr.msk.bf16.gmra.mrb[44].mxu1 %vm897_vm5, %v12809_v15  ;;  %v4202_v15 = vshrl.u32 %v4069_v16, 16 }
 0x2f6   : > { %13999 = vmatprep.mubr.msk.bf16.mxu1 %vm897_vm5, %v12810_v30  ;;  %v4205_v30 = vshll.u32 %v4069_v16, 16  ;;  %v4185_v16 = vrot.slane %v4184_v55, 4 }
 0x2f7   : > { %v4204_v35 = vrot.slane %v4202_v15, 4  ;;  %v4241_v15 = vrot.slane %v4239_v48, 4 }
 0x2f8   : > { %v4207_v2 = vrot.slane %v4205_v30, 5  ;;  %v4255_v30 = vrot.slane %v4253_v13, 5  ;;  %v4190_v62 = vsel %vm16610_vm14, %v4185_v16, %v17066_v9  ;;  %v4300_v13 = vrot.slane %v4298_v29, 4 }
 0x2f9   : > { %v4313_v16 = vrot.slane %v4311_v4, 4 }
 0x2fd   : > { %14000 = vmatmul.mubr.msk.bf16.gmra.mrb[48].mxu1 %vm897_vm5, %v12811_v50  ;;  %v4211_v50 = vshll.u32 %v4070_v34, 16  ;;  %v4263_v34 = vshrl.u32 %v4076_v59, 16  ;;  %v4085_v59 = vld [vmem:[#allocation2 + $0xd4] sm:$0xf] }
 0x2fe   : > { %14003 = vmatprep.mubr.msk.bf16.mxu1 %vm897_vm5, %v12812_v11  ;;  %v4147_v11 = vrot.slane %v4146_v41, 4 }
 0x2ff   : > { %v17068_v10 = vrot.slane %v4211_v50, 5  ;;  %v17090_v50 = vrot.slane %v4259_v56, 5  ;;  %v4265_v6 = vrot.slane %v4263_v34, 4 }
 0x300   : > { %v4152_v63 = vsel %vm16610_vm14, %v4147_v11, %v17056_v31  ;;  %v12839_v31 = vcombine.low %v4166_v49, %v4176_v27  ;;  %v4303_v49 = vrot.slane %v4301_v51, 5  ;;  %v17115_v27 = vrot.slane %v4307_v25, 5 }
 0x301   : > { %v4218_v47 = vor.u32 %v4217_v40, %v17068_v10  ;;  %v12838_v14 = vcombine.low %v4142_v43, %v4152_v63  ;;  %v4266_v17 = vor.u32 %v4265_v6, %v17090_v50 }
 0x303   : > { %v4219_v26 = vrot.slane %v4218_v47, 4  ;;  %v4084_v47 = vld [vmem:[#allocation2 + $0xd0] sm:$0xf]  ;;  %v4267_v45 = vrot.slane %v4266_v17, 4 }
 0x305   : > { %14004 = vmatmul.mubr.msk.bf16.gmra.mrb[52].mxu1 %vm897_vm5, %v12813_v52  ;;  %v12817_v52 = vcombine.low %v16965_v8, %v16967_v23  ;;  %v4194_v8 = vor.u32 %v4193_v24, %v17066_v9  ;;  %v4208_v23 = vor.u32 %v4207_v2, %v4204_v35  ;;  %v4224_v24 = vsel %vm16610_vm14, %v4219_v26, %v4223_v19  ;;  %v4083_v26 = vld [vmem:[#allocation2 + $0xc4] sm:$0x1] }
 0x306   : > { %14007 = vmatprep.mubr.msk.bf16.mxu1 %vm897_vm5, %v12814_v0  ;;  %v12837_v0 = vcombine.low %v4118_v20, %v4128_v28  ;;  %v4078_v20 = vld [vmem:[#allocation2 + $0xa8] sm:$0xf]  ;;  %v4079_v28 = vld [vmem:[#allocation2 + $0xac] sm:$0xf]  ;;  %v4242_v9 = vor.u32 %v4241_v15, %v17088_v5  ;;  %v4256_v2 = vor.u32 %v4255_v30, %v4252_v7  ;;  %v4331_v19 = vshll.u32 %v4085_v59, 16 }
 0x307   : > { %v4195_v41 = vrot.slane %v4194_v8, 4  ;;  %v4209_v60 = vrot.slane %v4208_v23, 4  ;;  %v4274_v40 = vshrl.u32 %v4078_v20, 16  ;;  %v4247_v8 = vrot.slane %v4245_v32, 5  ;;  %v4088_v30 = vld [vmem:[#allocation2 + $0xe8] sm:$0xf] }
 0x308   : > { %v4243_v63 = vrot.slane %v4242_v9, 4  ;;  %v4257_v23 = vrot.slane %v4256_v2, 4  ;;  %v4293_v7 = vshll.u32 %v4080_v22, 16  ;;  %v4359_v21 = vshrl.u32 %v4088_v30, 16 }
 0x309   : > { %v4200_v36 = vsel %vm16610_vm14, %v4195_v41, %v4199_v1  ;;  %v4214_v11 = vsel %vm16610_vm14, %v4209_v60, %v17068_v10  ;;  %v4277_v10 = vshll.u32 %v4078_v20, 16  ;;  %v4276_v3 = vrot.slane %v4274_v40, 4  ;;  %v4087_v60 = vld [vmem:[#allocation2 + $0xe4] sm:$0xf] }
 0x30a   : > { %v12840_v61 = vcombine.low %v4190_v62, %v4200_v36  ;;  %v12841_v55 = vcombine.low %v4214_v11, %v4224_v24  ;;  %v4322_v1 = vshrl.u32 %v4084_v47, 16  ;;  %v4325_v41 = vshll.u32 %v4084_v47, 16  ;;  %v4086_v11 = vld [vmem:[#allocation2 + $0xd8] sm:$0x1]  ;;  %v4093_v47 = vld [vmem:[#allocation2 + $0x10c] sm:$0xf] }
 0x30b   : > { %v4248_v34 = vsel %vm16610_vm14, %v4243_v63, %v4247_v8  ;;  %v4349_v6 = vshll.u32 %v4087_v60, 16  ;;  %v4314_v20 = vor.u32 %v4313_v16, %v17115_v27  ;;  %v4295_v2 = vrot.slane %v4293_v7, 5  ;;  %v4092_v7 = vld [vmem:[#allocation2 + $0x100] sm:$0x1] }
 0x30c   : > { %v4324_v62 = vrot.slane %v4322_v1, 4  ;;  %v4327_v36 = vrot.slane %v4325_v41, 5  ;;  %v4341_v51 = vshll.u32 %v4086_v11, 16  ;;  %v4361_v4 = vrot.slane %v4359_v21, 4 }
 0x30d   : > { %14008 = vmatmul.mubr.msk.bf16.gmra.mrb[56].mxu1 %vm897_vm5, %v12815_v42  ;;  %v4226_v42 = vshrl.u32 %v4072_v44, 16  ;;  %v4315_v17 = vrot.slane %v4314_v20, 4  ;;  %v4095_v20 = vld [vmem:[#allocation2 + $0x114] sm:$0x1] }
 0x30e   : > { %14011 = vmatprep.mubr.msk.bf16.mxu1 %vm897_vm5, %v12816_v54  ;;  %v4229_v54 = vshll.u32 %v4072_v44, 16  ;;  %v4269_v44 = vshll.u32 %v4077_v58, 16  ;;  %v4355_v58 = vshll.u32 %v4088_v30, 16  ;;  %v4328_v29 = vor.u32 %v4327_v36, %v4324_v62  ;;  %v4096_v30 = vld [vmem:[#allocation2 + $0x120] sm:$0xf] }
 0x30f   : > { %v4228_v46 = vrot.slane %v4226_v42, 4 }
 0x310   : > { %v4231_v33 = vrot.slane %v4229_v54, 5  ;;  %v4271_v48 = vrot.slane %v4269_v44, 5  ;;  %v17134_v25 = vrot.slane %v4355_v58, 5  ;;  %v4099_v58 = vld [vmem:[#allocation2 + $0x134] sm:$0xf] }
 0x312   : > { %v4232_v35 = vor.u32 %v4231_v33, %v4228_v46  ;;  %v4335_v46 = vshrl.u32 %v4085_v59, 16  ;;  %v4262_v33 = vsel %vm16610_vm14, %v4257_v23, %v17090_v50  ;;  %v17131_v50 = vrot.slane %v4331_v19, 5  ;;  %v4089_v23 = vld [vmem:[#allocation2 + $0xec] sm:$0x1] }
 0x313   : > { %v4362_v16 = vor.u32 %v4361_v4, %v17134_v25  ;;  %v4365_v1 = vshll.u32 %v4089_v23, 16 }
 0x314   : > { %v4233_v43 = vrot.slane %v4232_v35, 4  ;;  %v4337_v32 = vrot.slane %v4335_v46, 4 }
 0x315   : > { %14012 = vmatmul.mubr.msk.bf16.gmra.mrb[60].mxu1 %vm897_vm5, %v12817_v52  ;;  %v4283_v52 = vshll.u32 %v4079_v28, 16 }
 0x316   : > { %14017 = vmatprep.mubr.msk.bf16.mxu1 %vm897_vm5, %v12837_v0  ;;  %v4287_v0 = vshrl.u32 %v4079_v28, 16  ;;  %v4238_v56 = vsel %vm16610_vm14, %v4233_v43, %v17088_v5  ;;  %v4272_v5 = vsel %vm16610_vm14, %v4267_v45, %v4271_v48  ;;  %v4317_v28 = vshll.u32 %v4083_v26, 16  ;;  %v4094_v45 = vld [vmem:[#allocation2 + $0x110] sm:$0xf] }
 0x317   : > { %v17113_v42 = vrot.slane %v4283_v52, 5  ;;  %v12842_v24 = vcombine.low %v4238_v56, %v4248_v34  ;;  %v12843_v40 = vcombine.low %v4262_v33, %v4272_v5  ;;  %v4370_v43 = vshrl.u32 %v4090_v38, 16 }
 0x318   : > { %v4289_v54 = vrot.slane %v4287_v0, 4  ;;  %v4351_v0 = vrot.slane %v4349_v6, 5  ;;  %v4319_v44 = vrot.slane %v4317_v28, 5  ;;  %v4397_v56 = vshll.u32 %v4093_v47, 16  ;;  %v4097_v28 = vld [vmem:[#allocation2 + $0x124] sm:$0xf] }
 0x319   : > { %v4372_v41 = vrot.slane %v4370_v43, 4  ;;  %v4403_v34 = vshll.u32 %v4094_v45, 16  ;;  %v4407_v26 = vshrl.u32 %v4094_v45, 16  ;;  %v4367_v6 = vrot.slane %v4365_v1, 5  ;;  %v4098_v45 = vld [vmem:[#allocation2 + $0x128] sm:$0x1] }
 0x31a   : > { %v4290_v15 = vor.u32 %v4289_v54, %v17113_v42  ;;  %v4320_v22 = vsel %vm16610_vm14, %v4315_v17, %v4319_v44  ;;  %v4399_v36 = vrot.slane %v4397_v56, 5  ;;  %v4442_v17 = vshrl.u32 %v4099_v58, 16  ;;  %v4103_v1 = vld [vmem:[#allocation2 + $0x14c] sm:$0xf] }
 0x31b   : > { %v17157_v11 = vrot.slane %v4403_v34, 5  ;;  %v4445_v44 = vshll.u32 %v4099_v58, 16 }
 0x31c   : > { %v4291_v9 = vrot.slane %v4290_v15, 4 }
 0x31d   : > { %14018 = vmatmul.mubr.msk.bf16.vlgmr.msra.gmra.mrb[32].mxu1 %vm897_vm5, %v12838_v14  ;;  %v4304_v14 = vor.u32 %v4303_v49, %v4300_v13  ;;  %v4343_v13 = vrot.slane %v4341_v51, 5 }
 0x31e   : > { %14050 = vmatpush3.bf16.msra.mxu1 %v17004_v18  ;;  %14021 = vmatprep.mubr.msk.bf16.mxu1 %vm897_vm5, %v12839_v31  ;;  %v4279_v18 = vrot.slane %v4277_v10, 5  ;;  %v4346_v31 = vshrl.u32 %v4087_v60, 16  ;;  %v4296_v8 = vsel %vm16610_vm14, %v4291_v9, %v4295_v2  ;;  %v4394_v60 = vshrl.u32 %v4093_v47, 16  ;;  %v4100_v9 = vld [vmem:[#allocation2 + $0x138] sm:$0xf] }
 0x31f   : > { %14083 = vmatprep.subr.bf16.mxu1 %v17103_v12  ;;  %v4305_v10 = vrot.slane %v4304_v14, 4  ;;  %v4418_v2 = vshrl.u32 %v4096_v30, 16 }
 0x320   : > { %v4280_v37 = vor.u32 %v4279_v18, %v4276_v3  ;;  %v4348_v52 = vrot.slane %v4346_v31, 4  ;;  %v4373_v18 = vshll.u32 %v4090_v38, 16  ;;  %v4363_v31 = vrot.slane %v4362_v16, 4 }
 0x321   : > { %v4310_v48 = vsel %vm16610_vm14, %v4305_v10, %v17115_v27  ;;  %v4396_v62 = vrot.slane %v4394_v60, 4  ;;  %v4421_v38 = vshll.u32 %v4096_v30, 16  ;;  %v4431_v10 = vshrl.u32 %v4097_v28, 16  ;;  %v4101_v60 = vld [vmem:[#allocation2 + $0x13c] sm:$0x1] }
 0x322   : > { %v4281_v35 = vrot.slane %v4280_v37, 4  ;;  %v4352_v3 = vor.u32 %v4351_v0, %v4348_v52  ;;  %v4375_v46 = vrot.slane %v4373_v18, 5  ;;  %v12845_v15 = vcombine.low %v4310_v48, %v4320_v22  ;;  %v4102_v18 = vld [vmem:[#allocation2 + $0x148] sm:$0xf]  ;;  %v17179_v30 = vld [vmem:[#allocation2 + $0x30] sm:$0xf] }
 0x323   : > { %v4368_v52 = vsel %vm16610_vm14, %v4363_v31, %v4367_v6  ;;  %v4413_v0 = vshll.u32 %v4095_v20, 16  ;;  %v4423_v23 = vrot.slane %v4421_v38, 5  ;;  %v4444_v48 = vrot.slane %v4442_v17, 4  ;;  %v17195_v17 = vld [vmem:[#allocation2 + $0x44] sm:$0xf] }
 0x324   : > { %v4286_v63 = vsel %vm16610_vm14, %v4281_v35, %v17113_v42  ;;  %v4329_v42 = vrot.slane %v4328_v29, 4  ;;  %v4353_v19 = vrot.slane %v4352_v3, 4  ;;  %v4376_v21 = vor.u32 %v4375_v46, %v4372_v41 }
 0x325   : > { %14022 = vmatmul.mubr.msk.bf16.gmra.mrb[36].mxu1 %vm897_vm5, %v12840_v61  ;;  %v4091_v61 = vld [vmem:[#allocation2 + $0xfc] sm:$0xf]  ;;  %v12844_v27 = vcombine.low %v4286_v63, %v4296_v8  ;;  %v4389_v35 = vshll.u32 %v4092_v7, 16  ;;  %v4400_v29 = vor.u32 %v4399_v36, %v4396_v62  ;;  %v4420_v8 = vrot.slane %v4418_v2, 4  ;;  %v17187_v62 = vld [vmem:[#allocation2 + $0x34] sm:$0xf] }
 0x326   : > { %14025 = vmatprep.mubr.msk.bf16.mxu1 %vm897_vm5, %v12841_v55  ;;  %v4338_v55 = vor.u32 %v4337_v32, %v17131_v50  ;;  %v4379_v54 = vshll.u32 %v4091_v61, 16  ;;  %v4383_v59 = vshrl.u32 %v4091_v61, 16  ;;  %v4334_v5 = vsel %vm16610_vm14, %v4329_v42, %v17131_v50 }
 0x327   : > { %v4409_v32 = vrot.slane %v4407_v26, 4  ;;  %v4358_v50 = vsel %vm16610_vm14, %v4353_v19, %v17134_v25  ;;  %v4451_v61 = vshll.u32 %v4100_v9, 16  ;;  %v4377_v4 = vrot.slane %v4376_v21, 4 }
 0x328   : > { %v4339_v49 = vrot.slane %v4338_v55, 4  ;;  %v17149_v33 = vrot.slane %v4379_v54, 5  ;;  %v4385_v37 = vrot.slane %v4383_v59, 4  ;;  %v4455_v55 = vshrl.u32 %v4100_v9, 16 }
 0x329   : > { %v4410_v51 = vor.u32 %v4409_v32, %v17157_v11  ;;  %v4391_v63 = vrot.slane %v4389_v35, 5  ;;  %v4433_v3 = vrot.slane %v4431_v10, 4  ;;  %v12847_v54 = vcombine.low %v4358_v50, %v4368_v52  ;;  %v4788_v50 = vld [vmem:[#allocation2 + $0x2c] sm:$0x8] }
 0x32a   : > { %v4344_v14 = vsel %vm16610_vm14, %v4339_v49, %v4343_v13  ;;  %v4415_v59 = vrot.slane %v4413_v0, 5  ;;  %v4447_v22 = vrot.slane %v4445_v44, 5  ;;  %v4401_v42 = vrot.slane %v4400_v29, 4 }
 0x32b   : > { %v12846_v25 = vcombine.low %v4334_v5, %v4344_v14  ;;  %v4411_v13 = vrot.slane %v4410_v51, 4  ;;  %v17170_v49 = vrot.slane %v4451_v61, 5  ;;  %v4457_v16 = vrot.slane %v4455_v55, 4  ;;  %v4791_v61 = vld [vmem:[#allocation2 + $0x40] sm:$0x8] }
 0x32c   : > { %v4382_v41 = vsel %vm16610_vm14, %v4377_v4, %v17149_v33  ;;  %v4466_v56 = vshrl.u32 %v4102_v18, 16  ;;  %v4469_v34 = vshll.u32 %v4102_v18, 16  ;;  %v4424_v19 = vor.u32 %v4423_v23, %v4420_v8  ;;  %v17214_v18 = vld [vmem:[#allocation2 + $0x5c] sm:$0xf] }
 0x32d   : > { %14026 = vmatmul.mubr.msk.bf16.gmra.mrb[40].mxu1 %vm897_vm5, %v12842_v24  ;;  %v4386_v24 = vor.u32 %v4385_v37, %v17149_v33  ;;  %v4437_v37 = vshll.u32 %v4098_v45, 16  ;;  %v4479_v7 = vshrl.u32 %v4103_v1, 16  ;;  %v4406_v5 = vsel %vm16610_vm14, %v4401_v42, %v17157_v11 }
 0x32e   : > { %14029 = vmatprep.mubr.msk.bf16.mxu1 %vm897_vm5, %v12843_v40  ;;  %v4427_v40 = vshll.u32 %v4097_v28, 16  ;;  %v4416_v33 = vsel %vm16610_vm14, %v4411_v13, %v4415_v59  ;;  %v4458_v14 = vor.u32 %v4457_v16, %v17170_v49  ;;  %v4461_v31 = vshll.u32 %v4101_v60, 16 }
 0x32f   : > { %v4387_v43 = vrot.slane %v4386_v24, 4  ;;  %v4468_v20 = vrot.slane %v4466_v56, 4  ;;  %v4471_v28 = vrot.slane %v4469_v34, 5  ;;  %v4425_v36 = vrot.slane %v4424_v19, 4 }
 0x330   : > { %v17167_v47 = vrot.slane %v4427_v40, 5  ;;  %v4439_v58 = vrot.slane %v4437_v37, 5  ;;  %v4842_v21 = vshrl.u32 %v17179_v30, 16  ;;  %v12849_v24 = vcombine.low %v4406_v5, %v4416_v33  ;;  %v4104_v40 = vld [vmem:[#allocation2 + $0x150] sm:$0x1] }
 0x331   : > { %v4392_v26 = vsel %vm16610_vm14, %v4387_v43, %v4391_v63  ;;  %v4481_v9 = vrot.slane %v4479_v7, 4  ;;  %v4459_v2 = vrot.slane %v4458_v14, 4  ;;  %v4463_v38 = vrot.slane %v4461_v31, 5  ;;  %v17206_v43 = vld [vmem:[#allocation2 + $0x48] sm:$0xf] }
 0x332   : > { %v4434_v46 = vor.u32 %v4433_v3, %v17167_v47  ;;  %v12848_v6 = vcombine.low %v4382_v41, %v4392_v26  ;;  %v4851_v10 = vshrl.u32 %v17187_v62, 16  ;;  %v4472_v52 = vor.u32 %v4471_v28, %v4468_v20  ;;  %v17208_v63 = vld [vmem:[#allocation2 + $0x58] sm:$0xf]  ;;  %v17223_v37 = vld [vmem:[#allocation2 + $0x160] sm:$0xf] }
 0x333   : > { %v4837_v0 = vshrl.u32 %v4788_v50, 16  ;;  %v4430_v44 = vsel %vm16610_vm14, %v4425_v36, %v17167_v47  ;;  %v4844_v51 = vrot.slane %v4842_v21, 7  ;;  %v4485_v4 = vshll.u32 %v4104_v40, 16  ;;  %v17230_v5 = vld [vmem:[#allocation2 + $0x6c] sm:$0xf] }
 0x334   : > { %v4435_v32 = vrot.slane %v4434_v46, 4  ;;  %v4464_v8 = vsel %vm16610_vm14, %v4459_v2, %v4463_v38  ;;  %v4845_v23 = vshll.u32 %v17179_v30, 16  ;;  %v4853_v47 = vrot.slane %v4851_v10, 7  ;;  %v17221_v46 = vld [vmem:[#allocation2 + $0x15c] sm:$0xf] }
 0x335   : > { %14030 = vmatmul.mubr.msk.bf16.gmra.mrb[44].mxu1 %vm897_vm5, %v12844_v27  ;;  %v4448_v27 = vor.u32 %v4447_v22, %v4444_v48  ;;  %v4864_v3 = vshrl.u32 %v17195_v17, 16  ;;  %v4473_v59 = vrot.slane %v4472_v52, 4  ;;  %v12870_v45 = vrot.slane %v4837_v0, 11  ;;  %v17232_v33 = vld [vmem:[#allocation2 + $0x70] sm:$0xf] }
 0x336   : > { %14033 = vmatprep.mubr.msk.bf16.mxu1 %vm897_vm5, %v12845_v15  ;;  %v4475_v15 = vshll.u32 %v4103_v1, 16  ;;  %v4440_v29 = vsel %vm16610_vm14, %v4435_v32, %v4439_v58  ;;  %v4854_v48 = vshll.u32 %v17187_v62, 16  ;;  %v4847_v22 = vor.u32 %v4845_v23, %v4844_v51  ;;  %v17238_v36 = vld [vmem:[#allocation2 + $0x80] sm:$0xf]  ;;  %v4797_v2 = vld [vmem:[#allocation2 + $0x68] sm:$0x8] }
 0x337   : > { %v4449_v35 = vrot.slane %v4448_v27, 4  ;;  %v4859_v42 = vshrl.u32 %v4791_v61, 16  ;;  %v4873_v13 = vshrl.u32 %v17206_v43, 16  ;;  %v4886_v16 = vshrl.u32 %v17208_v63, 16  ;;  %v4800_v61 = vld [vmem:[#allocation2 + $0x7c] sm:$0x8] }
 0x338   : > { %v17190_v11 = vrot.slane %v4475_v15, 5  ;;  %v4487_v60 = vrot.slane %v4485_v4, 5  ;;  %v4895_v56 = vshrl.u32 %v17214_v18, 16  ;;  %v4849_v34 = vrot.slane %v4844_v51, 4 }
 0x339   : > { %v4454_v55 = vsel %vm16610_vm14, %v4449_v35, %v17170_v49  ;;  %v4794_v49 = vld [vmem:[#allocation2 + $0x54] sm:$0x8]  ;;  %v4856_v26 = vor.u32 %v4854_v48, %v4853_v47  ;;  %v4866_v19 = vrot.slane %v4864_v3, 7  ;;  %v4867_v15 = vshll.u32 %v17195_v17, 16 }
 0x33a   : > { %v12851_v1 = vcombine.low %v4454_v55, %v4464_v8  ;;  %v4478_v27 = vsel %vm16610_vm14, %v4473_v59, %v17190_v11  ;;  %v4881_v7 = vshrl.u32 %v4794_v49, 16  ;;  %v4848_v31 = vsel %vm16047_vm11, %v12870_v45, %v4847_v22  ;;  %v17257_v48 = vld [vmem:[#allocation2 + $0x94] sm:$0xf] }
 0x33b   : > { %v4875_v20 = vrot.slane %v4873_v13, 7  ;;  %v4888_v28 = vrot.slane %v4886_v16, 7  ;;  %v4876_v58 = vshll.u32 %v17206_v43, 16  ;;  %v4889_v50 = vshll.u32 %v17208_v63, 16  ;;  %v17264_v16 = vld [vmem:[#allocation2 + $0x98] sm:$0xf] }
 0x33c   : > { %v4897_v21 = vrot.slane %v4895_v56, 7  ;;  %v4857_v35 = vsel %vm16047_vm11, %v4849_v34, %v4856_v26  ;;  %v4908_v38 = vshrl.u32 %v17230_v5, 16  ;;  %v12872_v40 = vrot.slane %v4881_v7, 11  ;;  %v17270_v34 = vld [vmem:[#allocation2 + $0xa8] sm:$0xf] }
 0x33d   : > { %14034 = vmatmul.mubr.msk.bf16.gmra.mrb[48].mxu1 %vm897_vm5, %v12846_v25  ;;  %v4482_v25 = vor.u32 %v4481_v9, %v17190_v11  ;;  %v4869_v11 = vor.u32 %v4867_v15, %v4866_v19  ;;  %v4871_v9 = vrot.slane %v4866_v19, 4  ;;  %v4898_v10 = vshll.u32 %v17214_v18, 16  ;;  %v17274_v7 = vld [vmem:[#allocation2 + $0xac] sm:$0xf] }
 0x33e   : > { %14037 = vmatprep.mubr.msk.bf16.mxu1 %vm897_vm5, %v12847_v54  ;;  %v12850_v54 = vcombine.low %v4430_v44, %v4440_v29  ;;  %v4917_v52 = vshrl.u32 %v17232_v33, 16  ;;  %v4930_v0 = vshrl.u32 %v17238_v36, 16  ;;  %v4878_v29 = vor.u32 %v4876_v58, %v4875_v20 }
 0x33f   : > { %v4483_v41 = vrot.slane %v4482_v25, 4  ;;  %v4891_v51 = vor.u32 %v4889_v50, %v4888_v28  ;;  %v12888_v25 = vcombine.low %v4848_v31, %v4857_v35  ;;  %v4893_v4 = vrot.slane %v4888_v28, 4  ;;  %v4803_v28 = vld [vmem:[#allocation2 + $0x90] sm:$0x8] }
 0x340   : > { %v4900_v8 = vor.u32 %v4898_v10, %v4897_v21  ;;  %v4903_v23 = vshrl.u32 %v4797_v2, 16  ;;  %v4910_v47 = vrot.slane %v4908_v38, 7  ;;  %v4925_v59 = vshrl.u32 %v4800_v61, 16  ;;  %v4806_v2 = vld [vmem:[#allocation2 + $0xa4] sm:$0x8] }
 0x341   : > { %v4488_v32 = vsel %vm16610_vm14, %v4483_v41, %v4487_v60  ;;  %v4932_v45 = vrot.slane %v4930_v0, 7  ;;  %v4879_v22 = vsel %vm16047_vm11, %v4871_v9, %v4878_v29  ;;  %v4911_v13 = vshll.u32 %v17230_v5, 16 }
 0x342   : > { %v12852_v44 = vcombine.low %v4478_v27, %v4488_v32  ;;  %v12873_v41 = vrot.slane %v4903_v23, 11  ;;  %v4920_v60 = vshll.u32 %v17232_v33, 16  ;;  %v4933_v56 = vshll.u32 %v17238_v36, 16 }
 0x343   : > { %v4913_v26 = vor.u32 %v4911_v13, %v4910_v47  ;;  %v4915_v19 = vrot.slane %v4910_v47, 4  ;;  %v4952_v15 = vshrl.u32 %v17257_v48, 16  ;;  %v4961_v32 = vshrl.u32 %v17264_v16, 16  ;;  %v17305_v13 = vld [vmem:[#allocation2 + $0xd0] sm:$0xf] }
 0x344   : > { %v4935_v20 = vor.u32 %v4933_v56, %v4932_v45  ;;  %v4937_v50 = vrot.slane %v4932_v45, 4  ;;  %v4974_v35 = vshrl.u32 %v17270_v34, 16  ;;  %v4983_v38 = vshrl.u32 %v17274_v7, 16  ;;  %v17308_v56 = vld [vmem:[#allocation2 + $0xd4] sm:$0xf] }
 0x345   : > { %14038 = vmatmul.mubr.msk.bf16.gmra.mrb[52].mxu1 %vm897_vm5, %v12848_v6  ;;  %v12871_v6 = vrot.slane %v4859_v42, 11  ;;  %v4892_v42 = vsel %vm16047_vm11, %v12872_v40, %v4891_v51  ;;  %v17284_v40 = vld [vmem:[#allocation2 + $0xbc] sm:$0xf]  ;;  %v4914_v10 = vsel %vm16047_vm11, %v12873_v41, %v4913_v26  ;;  %v4954_v0 = vrot.slane %v4952_v15, 7 }
 0x346   : > { %14041 = vmatprep.mubr.msk.bf16.mxu1 %vm897_vm5, %v12849_v24  ;;  %v17244_v24 = vld [vmem:[#allocation2 + $0x84] sm:$0xf]  ;;  %v4955_v61 = vshll.u32 %v17257_v48, 16  ;;  %v4996_v23 = vshrl.u32 %v17284_v40, 16  ;;  %v4985_v47 = vrot.slane %v4983_v38, 7  ;;  %v5184_v14 = vshll.u32 %v17223_v37, 16 }
 0x347   : > { %v4939_v55 = vshrl.u32 %v17244_v24, 16  ;;  %v4870_v3 = vsel %vm16047_vm11, %v12871_v6, %v4869_v11  ;;  %v4942_v27 = vshll.u32 %v17244_v24, 16  ;;  %v12874_v6 = vrot.slane %v4925_v59, 11  ;;  %v17281_v11 = vld [vmem:[%s19600_s3 + $0x40] sm:$0xff]  }
 0x348   : > { %v12889_v58 = vcombine.low %v4870_v3, %v4879_v22  ;;  %v4809_v3 = vld [vmem:[#allocation2 + $0xb8] sm:$0x8]  ;;  %v4957_v22 = vor.u32 %v4955_v61, %v4954_v0  ;;  %v4998_v15 = vrot.slane %v4996_v23, 7  ;;  %v12926_v39 = vcombine.low %v17230_v5, %v17232_v33  ;;  %v5817_v5 = vld [vmem:[#allocation2 + $0x34] sm:$0xf] }
 0x349   : > { %v4941_v49 = vrot.slane %v4939_v55, 7  ;;  %v4936_v51 = vsel %vm16047_vm11, %v12874_v6, %v4935_v20  ;;  %v4963_v55 = vrot.slane %v4961_v32, 7  ;;  %v4999_v32 = vshll.u32 %v17284_v40, 16 }
 0x34b   : > { %v4944_v21 = vor.u32 %v4942_v27, %v4941_v49  ;;  %v4991_v27 = vshrl.u32 %v4809_v3, 16 }
 0x34d   : > { %14042 = vmatmul.mubr.msk.bf16.gmra.mrb[56].mxu1 %vm897_vm5, %v12850_v54  ;;  %v4919_v54 = vrot.slane %v4917_v52, 7  ;;  %v4947_v52 = vshrl.u32 %v4803_v28, 16  ;;  %v5018_v28 = vshrl.u32 %v17305_v13, 16  ;;  %v12877_v38 = vrot.slane %v4991_v27, 11 }
 0x34e   : > { %14045 = vmatprep.mubr.msk.bf16.mxu1 %vm897_vm5, %v12851_v1  ;;  %v4901_v1 = vsel %vm16047_vm11, %v4893_v4, %v4900_v8  ;;  %v4969_v4 = vshrl.u32 %v4806_v2, 16  ;;  %v4976_v8 = vrot.slane %v4974_v35, 7 }
 0x34f   : > { %v4922_v31 = vor.u32 %v4920_v60, %v4919_v54  ;;  %v12890_v9 = vcombine.low %v4892_v42, %v4901_v1  ;;  %v12875_v45 = vrot.slane %v4947_v52, 11  ;;  %v4977_v42 = vshll.u32 %v17270_v34, 16 }
 0x350   : > { %v4959_v1 = vrot.slane %v4954_v0, 4  ;;  %v4986_v60 = vshll.u32 %v17274_v7, 16  ;;  %v12876_v26 = vrot.slane %v4969_v4, 11  ;;  %v5003_v52 = vrot.slane %v4998_v15, 4  ;;  %v17322_v0 = vld [vmem:[#allocation2 + $0xe4] sm:$0xf] }
 0x351   : > { %v4923_v29 = vsel %vm16047_vm11, %v4915_v19, %v4922_v31  ;;  %v4979_v19 = vor.u32 %v4977_v42, %v4976_v8  ;;  %v4981_v31 = vrot.slane %v4976_v8, 4  ;;  %v5021_v8 = vshll.u32 %v17305_v13, 16 }
 0x352   : > { %v12891_v59 = vcombine.low %v4914_v10, %v4923_v29  ;;  %v4988_v6 = vor.u32 %v4986_v60, %v4985_v47  ;;  %v5001_v10 = vor.u32 %v4999_v32, %v4998_v15  ;;  %v5040_v23 = vshrl.u32 %v17322_v0, 16  ;;  %v17332_v47 = vld [vmem:[#allocation2 + $0xfc] sm:$0xf] }
 0x353   : > { %v4980_v2 = vsel %vm16047_vm11, %v12876_v26, %v4979_v19  ;;  %v4818_v19 = vld [vmem:[#allocation2 + $0xf4] sm:$0x8]  ;;  %v5071_v15 = vshrl.u32 %v17332_v47, 16 }
 0x354   : > { %v4989_v29 = vsel %vm16047_vm11, %v4981_v31, %v4988_v6  ;;  %v5002_v42 = vsel %vm16047_vm11, %v12877_v38, %v5001_v10  ;;  %v5042_v6 = vrot.slane %v5040_v23, 7 }
 0x355   : > { %14046 = vmatmul.mubr.msk.bf16.gmra.mrb[60].mxu1 %vm897_vm5, %v12852_v44  ;;  %v17289_v44 = vld [vmem:[#allocation2 + $0xc0] sm:$0xf]  ;;  %v5073_v10 = vrot.slane %v5071_v15, 7 }
 0x356   : > { %14051 = vmatprep.mubr.msk.bf16.mxu1 %vm897_vm5, %v12888_v25  ;;  %v4945_v25 = vsel %vm16047_vm11, %v4937_v50, %v4944_v21  ;;  %v5005_v54 = vshrl.u32 %v17289_v44, 16  ;;  %v5027_v50 = vshrl.u32 %v17308_v56, 16  ;;  %v4958_v21 = vsel %vm16047_vm11, %v12875_v45, %v4957_v22  ;;  %v4815_v45 = vld [vmem:[#allocation2 + $0xe0] sm:$0x8] }
 0x357   : > { %v12892_v49 = vcombine.low %v4936_v51, %v4945_v25  ;;  %v17326_v25 = vld [vmem:[#allocation2 + $0xe8] sm:$0xf]  ;;  %v5035_v31 = vshrl.u32 %v4815_v45, 16 }
 0x358   : > { %v5007_v20 = vrot.slane %v5005_v54, 7  ;;  %v5029_v4 = vrot.slane %v5027_v50, 7  ;;  %v12894_v54 = vcombine.low %v4980_v2, %v4989_v29  ;;  %v5049_v22 = vshrl.u32 %v17326_v25, 16 }
 0x359   : > { %v5043_v50 = vshll.u32 %v17322_v0, 16  ;;  %v5052_v2 = vshll.u32 %v17326_v25, 16  ;;  %v12879_v29 = vrot.slane %v5035_v31, 11  ;;  %v12932_v33 = vcombine.low %v17322_v0, %v17326_v25 }
 0x35d   : > { %14052 = vmatmul.mubr.msk.bf16.vlgmr.msra.gmra.mrb[32].mxu1 %vm897_vm5, %v12889_v58  ;;  %v4812_v58 = vld [vmem:[#allocation2 + $0xcc] sm:$0x8] }
 0x35e   : > { %14084 = vmatpush3.bf16.msra.mxu1 %v17103_v12  ;;  %14055 = vmatprep.mubr.msk.bf16.mxu1 %vm897_vm5, %v12890_v9  ;;  %v4964_v12 = vshll.u32 %v17264_v16, 16  ;;  %v5008_v9 = vshll.u32 %v17289_v44, 16  ;;  %v5013_v61 = vshrl.u32 %v4812_v58, 16 }
 0x35f   : > { %14117 = vmatprep.subr.bf16.mxu1 %v17281_v11 }
 0x360   : > { %v4966_v41 = vor.u32 %v4964_v12, %v4963_v55  ;;  %v5010_v51 = vor.u32 %v5008_v9, %v5007_v20  ;;  %v5020_v55 = vrot.slane %v5018_v28, 7  ;;  %v17330_v12 = vld [vmem:[#allocation2 + $0xf8] sm:$0xf]  ;;  %v5051_v20 = vrot.slane %v5049_v22, 7  ;;  %v17344_v28 = vld [vmem:[#allocation2 + $0x10c] sm:$0xf] }
 0x361   : > { %v5062_v27 = vshrl.u32 %v17330_v12, 16 }
 0x362   : > { %v4967_v35 = vsel %vm16047_vm11, %v4959_v1, %v4966_v41  ;;  %v12878_v1 = vrot.slane %v5013_v61, 11  ;;  %v5023_v41 = vor.u32 %v5021_v8, %v5020_v55  ;;  %v5025_v60 = vrot.slane %v5020_v55, 4 }
 0x363   : > { %v12893_v3 = vcombine.low %v4958_v21, %v4967_v35  ;;  %v5057_v21 = vshrl.u32 %v4818_v19, 16  ;;  %v17349_v35 = vld [vmem:[#allocation2 + $0x110] sm:$0xf]  ;;  %v5064_v38 = vrot.slane %v5062_v27, 7  ;;  %v5065_v61 = vshll.u32 %v17330_v12, 16 }
 0x364   : > { %v5024_v58 = vsel %vm16047_vm11, %v12878_v1, %v5023_v41  ;;  %v5084_v55 = vshrl.u32 %v17344_v28, 16  ;;  %v5047_v8 = vrot.slane %v5042_v6, 4  ;;  %v5054_v23 = vor.u32 %v5052_v2, %v5051_v20 }
 0x365   : > { %14056 = vmatmul.mubr.msk.bf16.gmra.mrb[36].mxu1 %vm897_vm5, %v12891_v59  ;;  %v5030_v59 = vshll.u32 %v17308_v56, 16  ;;  %v12880_v22 = vrot.slane %v5057_v21, 11  ;;  %v5069_v1 = vrot.slane %v5064_v38, 4  ;;  %v5087_v20 = vshll.u32 %v17344_v28, 16 }
 0x366   : > { %14059 = vmatprep.mubr.msk.bf16.mxu1 %vm897_vm5, %v12892_v49  ;;  %v5011_v49 = vsel %vm16047_vm11, %v5003_v52, %v5010_v51  ;;  %v17354_v52 = vld [vmem:[#allocation2 + $0x120] sm:$0xf]  ;;  %v5045_v51 = vor.u32 %v5043_v50, %v5042_v6  ;;  %v5086_v27 = vrot.slane %v5084_v55, 7  ;;  %v5055_v31 = vsel %vm16047_vm11, %v5047_v8, %v5054_v23  ;;  %v17371_v50 = vld [vmem:[#allocation2 + $0x134] sm:$0xf] }
 0x367   : > { %v5032_v26 = vor.u32 %v5030_v59, %v5029_v4  ;;  %v12895_v32 = vcombine.low %v5002_v42, %v5011_v49  ;;  %v17358_v4 = vld [vmem:[#allocation2 + $0x124] sm:$0xf]  ;;  %v5093_v59 = vshrl.u32 %v17349_v35, 16  ;;  %v5106_v42 = vshrl.u32 %v17354_v52, 16  ;;  %v17381_v8 = vld [vmem:[#allocation2 + $0x148] sm:$0xf] }
 0x368   : > { %v5067_v49 = vor.u32 %v5065_v61, %v5064_v38  ;;  %v5046_v15 = vsel %vm16047_vm11, %v12879_v29, %v5045_v51  ;;  %v5096_v2 = vshll.u32 %v17349_v35, 16  ;;  %v5089_v61 = vor.u32 %v5087_v20, %v5086_v27  ;;  %v17383_v23 = vld [vmem:[#allocation2 + $0x14c] sm:$0xf] }
 0x369   : > { %v5033_v9 = vsel %vm16047_vm11, %v5025_v60, %v5032_v26  ;;  %v4824_v60 = vld [vmem:[#allocation2 + $0x11c] sm:$0x8]  ;;  %v5115_v26 = vshrl.u32 %v17358_v4, 16  ;;  %v5095_v6 = vrot.slane %v5093_v59, 7  ;;  %v12897_v29 = vcombine.low %v5046_v15, %v5055_v31 }
 0x36a   : > { %v12896_v45 = vcombine.low %v5024_v58, %v5033_v9  ;;  %v5108_v58 = vrot.slane %v5106_v42, 7  ;;  %v5068_v21 = vsel %vm16047_vm11, %v12880_v22, %v5067_v49  ;;  %v5109_v55 = vshll.u32 %v17354_v52, 16 }
 0x36b   : > { %v5117_v38 = vrot.slane %v5115_v26, 7  ;;  %v5118_v59 = vshll.u32 %v17358_v4, 16  ;;  %v5150_v15 = vshrl.u32 %v17381_v8, 16 }
 0x36c   : > { %v5111_v49 = vor.u32 %v5109_v55, %v5108_v58 }
 0x36d   : > { %14060 = vmatmul.mubr.msk.bf16.gmra.mrb[40].mxu1 %vm897_vm5, %v12893_v3  ;;  %v5074_v3 = vshll.u32 %v17332_v47, 16  ;;  %v5120_v26 = vor.u32 %v5118_v59, %v5117_v38 }
 0x36e   : > { %14063 = vmatprep.mubr.msk.bf16.mxu1 %vm897_vm5, %v12894_v54  ;;  %v4821_v54 = vld [vmem:[#allocation2 + $0x108] sm:$0x8] }
 0x36f   : > { %v5076_v41 = vor.u32 %v5074_v3, %v5073_v10  ;;  %v5079_v19 = vshrl.u32 %v4821_v54, 16  ;;  %v17378_v10 = vld [vmem:[#allocation2 + $0x138] sm:$0xf]  ;;  %v5091_v3 = vrot.slane %v5086_v27, 4  ;;  %v5098_v54 = vor.u32 %v5096_v2, %v5095_v6 }
 0x370   : > { %v5159_v27 = vshrl.u32 %v17383_v23, 16 }
 0x371   : > { %v5077_v9 = vsel %vm16047_vm11, %v5069_v1, %v5076_v41  ;;  %v12881_v51 = vrot.slane %v5079_v19, 11  ;;  %v4827_v1 = vld [vmem:[#allocation2 + $0x130] sm:$0x8]  ;;  %v5137_v41 = vshrl.u32 %v17378_v10, 16  ;;  %v4830_v19 = vld [vmem:[#allocation2 + $0x144] sm:$0x8]  ;;  %v5099_v6 = vsel %vm16047_vm11, %v5091_v3, %v5098_v54 }
 0x372   : > { %v12898_v22 = vcombine.low %v5068_v21, %v5077_v9  ;;  %v5123_v20 = vshrl.u32 %v4827_v1, 16  ;;  %v5131_v21 = vshll.u32 %v17371_v50, 16  ;;  %v5161_v55 = vrot.slane %v5159_v27, 7 }
 0x373   : > { %v5090_v31 = vsel %vm16047_vm11, %v12881_v51, %v5089_v61  ;;  %v5139_v9 = vrot.slane %v5137_v41, 7  ;;  %v5140_v51 = vshll.u32 %v17378_v10, 16  ;;  %v4833_v61 = vld [vmem:[#allocation2 + $0x158] sm:$0x8]  ;;  %v5172_v3 = vshrl.u32 %v17221_v46, 16 }
 0x374   : > { %v12899_v59 = vcombine.low %v5090_v31, %v5099_v6  ;;  %v5181_v54 = vshrl.u32 %v17223_v37, 16  ;;  %v5153_v1 = vshll.u32 %v17381_v8, 16  ;;  %v5162_v41 = vshll.u32 %v17383_v23, 16 }
 0x375   : > { %14064 = vmatmul.mubr.msk.bf16.gmra.mrb[44].mxu1 %vm897_vm5, %v12895_v32  ;;  %v5101_v32 = vshrl.u32 %v4824_v60, 16  ;;  %v5113_v60 = vrot.slane %v5108_v58, 4  ;;  %v5145_v58 = vshrl.u32 %v4830_v19, 16  ;;  %v5142_v19 = vor.u32 %v5140_v51, %v5139_v9 }
 0x376   : > { %14067 = vmatprep.mubr.msk.bf16.mxu1 %vm897_vm5, %v12896_v45  ;;  %v5128_v45 = vshrl.u32 %v17371_v50, 16  ;;  %v5164_v27 = vor.u32 %v5162_v41, %v5161_v55  ;;  %v5167_v31 = vshrl.u32 %v4833_v61, 16  ;;  %v5174_v6 = vrot.slane %v5172_v3, 7 }
 0x377   : > { %v12882_v42 = vrot.slane %v5101_v32, 11  ;;  %v5121_v38 = vsel %vm16047_vm11, %v5113_v60, %v5120_v26  ;;  %v12884_v60 = vrot.slane %v5145_v58, 11  ;;  %v12924_v41 = vcombine.low %v17195_v17, %v17206_v43 }
 0x378   : > { %v5130_v32 = vrot.slane %v5128_v45, 7  ;;  %v12883_v45 = vrot.slane %v5123_v20, 11  ;;  %v5175_v20 = vshll.u32 %v17221_v46, 16  ;;  %v5179_v55 = vrot.slane %v5174_v6, 4 }
 0x379   : > { %v5112_v2 = vsel %vm16047_vm11, %v12882_v42, %v5111_v49  ;;  %v12929_v17 = vcombine.low %v17270_v34, %v17274_v7  ;;  %v12930_v43 = vcombine.low %v17284_v40, %v17289_v44  ;;  %v5878_v34 = vshrl.u32 %v5817_v5, 16  ;;  %v5819_v7 = vld [vmem:[#allocation2 + $0x44] sm:$0xf]  ;;  %v5822_v40 = vld [vmem:[#allocation2 + $0x58] sm:$0xf] }
 0x37a   : > { %v12900_v42 = vcombine.low %v5112_v2, %v5121_v38  ;;  %v5135_v49 = vrot.slane %v5130_v32, 4  ;;  %v12885_v38 = vrot.slane %v5167_v31, 11  ;;  %v5889_v44 = vshrl.u32 %v5819_v7, 16 }
 0x37d   : > { %14068 = vmatmul.mubr.msk.bf16.gmra.mrb[48].mxu1 %vm897_vm5, %v12897_v29  ;;  %v5152_v29 = vrot.slane %v5150_v15, 7 }
 0x37e   : > { %14071 = vmatprep.mubr.msk.bf16.mxu1 %vm897_vm5, %v12898_v22  ;;  %v5133_v22 = vor.u32 %v5131_v21, %v5130_v32  ;;  %v5183_v21 = vrot.slane %v5181_v54, 7  ;;  %v5143_v32 = vsel %vm16047_vm11, %v5135_v49, %v5142_v19  ;;  %v5818_v49 = vld [vmem:[#allocation2 + $0x38] sm:$0x1] }
 0x37f   : > { %v5155_v26 = vor.u32 %v5153_v1, %v5152_v29  ;;  %v5157_v15 = vrot.slane %v5152_v29, 4  ;;  %v5177_v29 = vor.u32 %v5175_v20, %v5174_v6  ;;  %v12935_v20 = vcombine.low %v17354_v52, %v17358_v4  ;;  %v5826_v4 = vld [vmem:[#allocation2 + $0x70] sm:$0xf] }
 0x380   : > { %v5134_v2 = vsel %vm16047_vm11, %v12883_v45, %v5133_v22  ;;  %v794_v45 = vld [vmem:[#allocation2 + $0x164] sm:$0x1] }
 0x381   : > { %v5156_v9 = vsel %vm16047_vm11, %v12884_v60, %v5155_v26  ;;  %v5165_v58 = vsel %vm16047_vm11, %v5157_v15, %v5164_v27  ;;  %v12901_v51 = vcombine.low %v5134_v2, %v5143_v32  ;;  %v5178_v3 = vsel %vm16047_vm11, %v12885_v38, %v5177_v29  ;;  %v5825_v38 = vld [vmem:[#allocation2 + $0x6c] sm:$0xf] }
 0x382   : > { %v12902_v61 = vcombine.low %v5156_v9, %v5165_v58  ;;  %v795_v22 = vsel %vm15981_vm9, 0, %v794_v45  ;;  %v5913_v26 = vshrl.u32 %v5822_v40, 16  ;;  %v5916_v15 = vshll.u32 %v5822_v40, 16  ;;  %v5821_v29 = vld [vmem:[#allocation2 + $0x4c] sm:$0x1] }
 0x383   : > { %796 = vst [vmem:[#allocation2 + $0x164] sm:$0x1] %v795_v22  ;;  %v12934_v27 = vcombine.low %v17344_v28, %v17349_v35  ;;  %v5891_v9 = vrot.slane %v5889_v44, 4  ;;  %v5940_v45 = vshll.u32 %v5825_v38, 16 }
 0x384   : > { %v5915_v35 = vrot.slane %v5913_v26, 4 }
 0x385   : > { %14072 = vmatmul.mubr.msk.bf16.gmra.mrb[52].mxu1 %vm897_vm5, %v12899_v59  ;;  %v5186_v59 = vor.u32 %v5184_v14, %v5183_v21  ;;  %v12923_v14 = vcombine.low %v17179_v30, %v17187_v62  ;;  %v12927_v30 = vcombine.low %v17238_v36, %v17244_v24  ;;  %v12928_v62 = vcombine.low %v17257_v48, %v17264_v16 }
 0x386   : > { %14075 = vmatprep.mubr.msk.bf16.mxu1 %vm897_vm5, %v12900_v42  ;;  %v12925_v42 = vcombine.low %v17208_v63, %v17214_v18  ;;  %v12931_v63 = vcombine.low %v17305_v13, %v17308_v56  ;;  %v5816_v18 = vld [vmem:[#allocation2 + $0x30] sm:$0xf]  ;;  %v12933_v36 = vcombine.low %v17330_v12, %v17332_v47  ;;  %v5874_v16 = vshll.u32 %v5817_v5, 16  ;;  %v5823_v56 = vld [vmem:[#allocation2 + $0x5c] sm:$0xf] }
 0x387   : > { %v5187_v54 = vsel %vm16047_vm11, %v5179_v55, %v5186_v59  ;;  %v5865_v24 = vshrl.u32 %v5816_v18, 16  ;;  %v5868_v48 = vshll.u32 %v5816_v18, 16  ;;  %v5892_v13 = vshll.u32 %v5819_v7, 16 }
 0x388   : > { %v12903_v1 = vcombine.low %v5178_v3, %v5187_v54  ;;  %v17461_v25 = vrot.slane %v5874_v16, 5  ;;  %v5880_v12 = vrot.slane %v5878_v34, 4  ;;  %v5922_v31 = vshll.u32 %v5823_v56, 16  ;;  %v5824_v3 = vld [vmem:[#allocation2 + $0x60] sm:$0x1] }
 0x389   : > { %v5867_v19 = vrot.slane %v5865_v24, 4  ;;  %v5870_v0 = vrot.slane %v5868_v48, 5  ;;  %v5926_v6 = vshrl.u32 %v5823_v56, 16  ;;  %v5884_v21 = vshll.u32 %v5818_v49, 16  ;;  %v5829_v48 = vld [vmem:[#allocation2 + $0x84] sm:$0xf] }
 0x38a   : > { %v5881_v32 = vor.u32 %v5880_v12, %v17461_v25  ;;  %v5894_v58 = vrot.slane %v5892_v13, 5  ;;  %v5918_v59 = vrot.slane %v5916_v15, 5  ;;  %v5937_v54 = vshrl.u32 %v5825_v38, 16 }
 0x38b   : > { %v5871_v2 = vor.u32 %v5870_v0, %v5867_v19  ;;  %v5928_v52 = vrot.slane %v5926_v6, 4  ;;  %v5932_v5 = vshll.u32 %v5824_v3, 16  ;;  %v5942_v24 = vrot.slane %v5940_v45, 5  ;;  %v5838_v45 = vld [vmem:[#allocation2 + $0xc0] sm:$0xf] }
 0x38c   : > { %v5970_v49 = vshll.u32 %v5829_v48, 16  ;;  %v5974_v19 = vshrl.u32 %v5829_v48, 16 }
 0x38d   : > { %14076 = vmatmul.mubr.msk.bf16.gmra.mrb[56].mxu1 %vm897_vm5, %v12901_v51  ;;  %v17472_v51 = vrot.slane %v5922_v31, 5  ;;  %v5872_v22 = vrot.slane %v5871_v2, 4  ;;  %v5934_v13 = vrot.slane %v5932_v5, 5  ;;  %v5835_v2 = vld [vmem:[#allocation2 + $0xac] sm:$0xf] }
 0x38e   : > { %14079 = vmatprep.mubr.msk.bf16.mxu1 %vm897_vm5, %v12902_v61  ;;  %v5886_v61 = vrot.slane %v5884_v21, 5  ;;  %v5834_v21 = vld [vmem:[#allocation2 + $0xa8] sm:$0xf] }
 0x38f   : > { %v5929_v18 = vor.u32 %v5928_v52, %v17472_v51  ;;  %v5877_v7 = vsel %vm16610_vm14, %v5872_v22, %v17461_v25  ;;  %v6009_v3 = vshrl.u32 %v5834_v21, 16  ;;  %v6018_v22 = vshll.u32 %v5835_v2, 16 }
 0x391   : > { %v5930_v0 = vrot.slane %v5929_v18, 4  ;;  %v6011_v5 = vrot.slane %v6009_v3, 4 }
 0x395   : > { %14080 = vmatmul.mubr.msk.bf16.gmra.mrb[60].mxu1 %vm897_vm5, %v12903_v1  ;;  %v5882_v1 = vrot.slane %v5881_v32, 4  ;;  %v17504_v32 = vrot.slane %v5970_v49, 5 }
 0x396   : > { %14085 = vmatprep.mubr.msk.bf16.mxu1 %vm897_vm5, %v12923_v14  ;;  %v5895_v14 = vor.u32 %v5894_v58, %v5891_v9  ;;  %v5976_v9 = vrot.slane %v5974_v19, 4  ;;  %v5840_v19 = vld [vmem:[#allocation2 + $0xd0] sm:$0xf] }
 0x39d   : > { %14086 = vmatmul.mubr.msk.bf16.vlgmr.msra.gmra.mrb[32].mxu1 %vm897_vm5, %v12924_v41  ;;  %v5908_v41 = vshll.u32 %v5821_v29, 16  ;;  %v5837_v29 = vld [vmem:[#allocation2 + $0xbc] sm:$0xf] }
 0x39e   : > { %14118 = vmatpush3.bf16.msra.mxu1 %v17281_v11  ;;  %14089 = vmatprep.mubr.msk.bf16.mxu1 %vm897_vm5, %v12925_v42  ;;  %v5820_v11 = vld [vmem:[#allocation2 + $0x48] sm:$0xf]  ;;  %v5828_v42 = vld [vmem:[#allocation2 + $0x80] sm:$0xf] }
 0x39f   : > { %v5898_v47 = vshll.u32 %v5820_v11, 16  ;;  %v5902_v60 = vshrl.u32 %v5820_v11, 16  ;;  %v5961_v16 = vshrl.u32 %v5828_v42, 16  ;;  %v5964_v34 = vshll.u32 %v5828_v42, 16 }
 0x3a0   : > { %v5977_v42 = vor.u32 %v5976_v9, %v17504_v32 }
 0x3a1   : > { %v17470_v55 = vrot.slane %v5898_v47, 5  ;;  %v5904_v28 = vrot.slane %v5902_v60, 4  ;;  %v5963_v12 = vrot.slane %v5961_v16, 4  ;;  %v5966_v47 = vrot.slane %v5964_v34, 5  ;;  %v5831_v60 = vld [vmem:[#allocation2 + $0x94] sm:$0xf] }
 0x3a2   : > { %v5985_v58 = vshrl.u32 %v5831_v60, 16  ;;  %v5988_v38 = vshll.u32 %v5831_v60, 16  ;;  %v5841_v60 = vld [vmem:[#allocation2 + $0xd4] sm:$0xf] }
 0x3a3   : > { %v5967_v52 = vor.u32 %v5966_v47, %v5963_v12  ;;  %v6066_v9 = vshll.u32 %v5841_v60, 16 }
 0x3a5   : > { %14090 = vmatmul.mubr.msk.bf16.gmra.mrb[36].mxu1 %vm897_vm5, %v12926_v39  ;;  %v5905_v39 = vor.u32 %v5904_v28, %v17470_v55 }
 0x3a6   : > { %14093 = vmatprep.mubr.msk.bf16.mxu1 %vm897_vm5, %v12927_v30  ;;  %v5919_v30 = vor.u32 %v5918_v59, %v5915_v35  ;;  %v5830_v59 = vld [vmem:[#allocation2 + $0x88] sm:$0x1] }
 0x3a8   : > { %v17489_v11 = vrot.slane %v5919_v30, 4  ;;  %v5987_v30 = vrot.slane %v5985_v58, 4  ;;  %v6070_v58 = vshrl.u32 %v5841_v60, 16  ;;  %v5850_v60 = vld [vmem:[#allocation2 + $0x110] sm:$0xf] }
 0x3aa   : > { %v5925_v31 = vsel %vm16610_vm14, %v17489_v11, %v17472_v51  ;;  %v19640_v51 = vcombine.low %v17221_v46, %v17223_v37  ;;  %v5968_v46 = vrot.slane %v5967_v52, 4  ;;  %v6042_v37 = vshll.u32 %v5838_v45, 16 }
 0x3ad   : > { %14094 = vmatmul.mubr.msk.bf16.gmra.mrb[40].mxu1 %vm897_vm5, %v12928_v62  ;;  %v5946_v62 = vshll.u32 %v5826_v4, 16 }
 0x3ae   : > { %14097 = vmatprep.mubr.msk.bf16.mxu1 %vm897_vm5, %v12929_v17  ;;  %v5950_v17 = vshrl.u32 %v5826_v4, 16 }
 0x3af   : > { %v17491_v40 = vrot.slane %v5946_v62, 5  ;;  %v5990_v62 = vrot.slane %v5988_v38, 5 }
 0x3b0   : > { %v5952_v44 = vrot.slane %v5950_v17, 4 }
 0x3b2   : > { %v5953_v6 = vor.u32 %v5952_v44, %v17491_v40 }
 0x3b4   : > { %v5954_v17 = vrot.slane %v5953_v6, 4 }
 0x3b5   : > { %14098 = vmatmul.mubr.msk.bf16.gmra.mrb[44].mxu1 %vm897_vm5, %v12930_v43  ;;  %v12936_v43 = vcombine.low %v17371_v50, %v17378_v10  ;;  %v5887_v50 = vsel %vm16610_vm14, %v5882_v1, %v5886_v61  ;;  %v17486_v10 = vrot.slane %v5895_v14, 4  ;;  %v6022_v1 = vshrl.u32 %v5835_v2, 16 }
 0x3b6   : > { %14101 = vmatprep.mubr.msk.bf16.mxu1 %vm897_vm5, %v12931_v63  ;;  %v12937_v63 = vcombine.low %v17381_v8, %v17383_v23  ;;  %v5910_v8 = vrot.slane %v5908_v41, 5  ;;  %v5906_v23 = vrot.slane %v5905_v39, 4  ;;  %v12958_v15 = vcombine.low %v5877_v7, %v5887_v50 }
 0x3b7   : > { %v5901_v26 = vsel %vm16610_vm14, %v17486_v10, %v17470_v55  ;;  %v5935_v55 = vsel %vm16610_vm14, %v5930_v0, %v5934_v13  ;;  %v6033_v14 = vshrl.u32 %v5837_v29, 16  ;;  %v6036_v41 = vshll.u32 %v5837_v29, 16  ;;  %v5839_v13 = vld [vmem:[#allocation2 + $0xc4] sm:$0x1] }
 0x3b8   : > { %v5980_v39 = vshll.u32 %v5830_v59, 16  ;;  %v6024_v48 = vrot.slane %v6022_v1, 4  ;;  %v5978_v50 = vrot.slane %v5977_v42, 4  ;;  %v12960_v11 = vcombine.low %v5925_v31, %v5935_v55 }
 0x3b9   : > { %v6035_v16 = vrot.slane %v6033_v14, 4  ;;  %v6038_v34 = vrot.slane %v6036_v41, 5  ;;  %v17541_v41 = vrot.slane %v6066_v9, 5  ;;  %v6072_v42 = vrot.slane %v6070_v58, 4 }
 0x3ba   : > { %v5982_v10 = vrot.slane %v5980_v39, 5  ;;  %v5847_v39 = vld [vmem:[#allocation2 + $0xfc] sm:$0xf] }
 0x3bc   : > { %v5983_v31 = vsel %vm16610_vm14, %v5978_v50, %v5982_v10  ;;  %v6073_v50 = vor.u32 %v6072_v42, %v17541_v41 }
 0x3bd   : > { %14102 = vmatmul.mubr.msk.bf16.gmra.mrb[48].mxu1 %vm897_vm5, %v12932_v33  ;;  %v5827_v33 = vld [vmem:[#allocation2 + $0x74] sm:$0x1] }
 0x3be   : > { %14105 = vmatprep.mubr.msk.bf16.mxu1 %vm897_vm5, %v12933_v36  ;;  %v5939_v36 = vrot.slane %v5937_v54, 4  ;;  %v5956_v56 = vshll.u32 %v5827_v33, 16  ;;  %v6012_v54 = vshll.u32 %v5834_v21, 16  ;;  %v6057_v21 = vshrl.u32 %v5840_v19, 16 }
 0x3c0   : > { %v5943_v25 = vor.u32 %v5942_v24, %v5939_v36  ;;  %v5958_v35 = vrot.slane %v5956_v56, 5  ;;  %v6014_v33 = vrot.slane %v6012_v54, 5  ;;  %v5833_v36 = vld [vmem:[#allocation2 + $0x9c] sm:$0x1]  ;;  %v17518_v24 = vrot.slane %v6018_v22, 5 }
 0x3c1   : > { %v17524_v56 = vrot.slane %v6042_v37, 5  ;;  %v6004_v47 = vshll.u32 %v5833_v36, 16  ;;  %v5846_v22 = vld [vmem:[#allocation2 + $0xf8] sm:$0xf] }
 0x3c2   : > { %v17508_v28 = vrot.slane %v5943_v25, 4  ;;  %v5959_v0 = vsel %vm16610_vm14, %v5954_v17, %v5958_v35  ;;  %v5973_v25 = vsel %vm16610_vm14, %v5968_v46, %v17504_v32  ;;  %v6060_v32 = vshll.u32 %v5840_v19, 16  ;;  %v5849_v19 = vld [vmem:[#allocation2 + $0x10c] sm:$0xf] }
 0x3c3   : > { %v6006_v55 = vrot.slane %v6004_v47, 5  ;;  %v6108_v36 = vshll.u32 %v5846_v22, 16  ;;  %v6129_v9 = vshrl.u32 %v5849_v19, 16  ;;  %v6132_v58 = vshll.u32 %v5849_v19, 16 }
 0x3c4   : > { %v5949_v44 = vsel %vm16610_vm14, %v17508_v28, %v17491_v40  ;;  %v6015_v40 = vor.u32 %v6014_v33, %v6011_v5  ;;  %v5843_v28 = vld [vmem:[#allocation2 + $0xe4] sm:$0xf]  ;;  %v6062_v14 = vrot.slane %v6060_v32, 5  ;;  %v6105_v33 = vshrl.u32 %v5846_v22, 16 }
 0x3c5   : > { %14106 = vmatmul.mubr.msk.bf16.gmra.mrb[52].mxu1 %vm897_vm5, %v12934_v27  ;;  %v5911_v27 = vsel %vm16610_vm14, %v5906_v23, %v5910_v8  ;;  %v5991_v8 = vor.u32 %v5990_v62, %v5987_v30  ;;  %v5836_v23 = vld [vmem:[#allocation2 + $0xb0] sm:$0x1]  ;;  %v12961_v38 = vcombine.low %v5949_v44, %v5959_v0  ;;  %v5842_v30 = vld [vmem:[#allocation2 + $0xd8] sm:$0x1]  ;;  %v6081_v62 = vshrl.u32 %v5843_v28, 16 }
 0x3c6   : > { %14109 = vmatprep.mubr.msk.bf16.mxu1 %vm897_vm5, %v12935_v20  ;;  %v5832_v20 = vld [vmem:[#allocation2 + $0x98] sm:$0xf]  ;;  %v12959_v7 = vcombine.low %v5901_v26, %v5911_v27  ;;  %v6025_v26 = vor.u32 %v6024_v48, %v17518_v24  ;;  %v6039_v27 = vor.u32 %v6038_v34, %v6035_v16  ;;  %v6016_v35 = vrot.slane %v6015_v40, 4  ;;  %v5853_v32 = vld [vmem:[#allocation2 + $0x124] sm:$0xf] }
 0x3c7   : > { %v5994_v4 = vshll.u32 %v5832_v20, 16  ;;  %v5998_v61 = vshrl.u32 %v5832_v20, 16  ;;  %v5992_v6 = vrot.slane %v5991_v8, 4  ;;  %v6052_v20 = vshll.u32 %v5839_v13, 16 }
 0x3c8   : > { %v6026_v59 = vrot.slane %v6025_v26, 4  ;;  %v6084_v17 = vshll.u32 %v5843_v28, 16  ;;  %v6114_v48 = vshll.u32 %v5847_v39, 16  ;;  %v6118_v16 = vshrl.u32 %v5847_v39, 16 }
 0x3c9   : > { %v6000_v18 = vrot.slane %v5998_v61, 4  ;;  %v12962_v61 = vcombine.low %v5973_v25, %v5983_v31  ;;  %v6054_v54 = vrot.slane %v6052_v20, 5  ;;  %v6076_v10 = vshll.u32 %v5842_v30, 16  ;;  %v5852_v31 = vld [vmem:[#allocation2 + $0x120] sm:$0xf] }
 0x3ca   : > { %v6083_v8 = vrot.slane %v6081_v62, 4  ;;  %v6107_v0 = vrot.slane %v6105_v33, 4  ;;  %v6110_v25 = vrot.slane %v6108_v36, 5  ;;  %v6120_v47 = vrot.slane %v6118_v16, 4 }
 0x3cb   : > { %v6134_v42 = vrot.slane %v6132_v58, 5 }
 0x3cd   : > { %14110 = vmatmul.mubr.msk.bf16.gmra.mrb[56].mxu1 %vm897_vm5, %v12936_v43  ;;  %v6046_v43 = vshrl.u32 %v5838_v45, 16  ;;  %v6059_v45 = vrot.slane %v6057_v21, 4 }
 0x3ce   : > { %14113 = vmatprep.mubr.msk.bf16.mxu1 %vm897_vm5, %v12937_v63  ;;  %v17516_v63 = vrot.slane %v5994_v4, 5  ;;  %v5844_v4 = vld [vmem:[#allocation2 + $0xe8] sm:$0xf] }
 0x3cf   : > { %v6048_v49 = vrot.slane %v6046_v43, 4  ;;  %v6090_v46 = vshll.u32 %v5844_v4, 16  ;;  %v6094_v37 = vshrl.u32 %v5844_v4, 16  ;;  %v6162_v4 = vshll.u32 %v5853_v32, 16 }
 0x3d0   : > { %v6001_v12 = vor.u32 %v6000_v18, %v17516_v63  ;;  %v5997_v3 = vsel %vm16610_vm14, %v5992_v6, %v17516_v63  ;;  %v6021_v63 = vsel %vm16610_vm14, %v6016_v35, %v17518_v24  ;;  %v6086_v24 = vrot.slane %v6084_v17, 5 }
 0x3d1   : > { %v6049_v2 = vor.u32 %v6048_v49, %v17524_v56  ;;  %v5845_v49 = vld [vmem:[#allocation2 + $0xec] sm:$0x1]  ;;  %v6153_v35 = vshrl.u32 %v5852_v31, 16 }
 0x3d2   : > { %v6002_v29 = vrot.slane %v6001_v12, 4  ;;  %v17560_v12 = vrot.slane %v6114_v48, 5  ;;  %v6087_v6 = vor.u32 %v6086_v24, %v6083_v8  ;;  %v6100_v21 = vshll.u32 %v5845_v49, 16  ;;  %v5856_v48 = vld [vmem:[#allocation2 + $0x138] sm:$0xf] }
 0x3d3   : > { %v6050_v1 = vrot.slane %v6049_v2, 4  ;;  %v5859_v8 = vld [vmem:[#allocation2 + $0x14c] sm:$0xf]  ;;  %v6190_v19 = vshrl.u32 %v5856_v48, 16 }
 0x3d4   : > { %v6007_v43 = vsel %vm16610_vm14, %v6002_v29, %v6006_v55  ;;  %v6142_v29 = vshrl.u32 %v5850_v60, 16  ;;  %v6111_v55 = vor.u32 %v6110_v25, %v6107_v0  ;;  %v6121_v28 = vor.u32 %v6120_v47, %v17560_v12 }
 0x3d5   : > { %14114 = vmatmul.mubr.msk.bf16.gmra.mrb[60].mxu1 %vm897_vm5, %v19640_v51  ;;  %v6040_v51 = vrot.slane %v6039_v27, 4  ;;  %v6055_v34 = vsel %vm16610_vm14, %v6050_v1, %v6054_v54  ;;  %v12963_v44 = vcombine.low %v5997_v3, %v6007_v43  ;;  %v6078_v27 = vrot.slane %v6076_v10, 5  ;;  %v5851_v1 = vld [vmem:[#allocation2 + $0x114] sm:$0x1]  ;;  %v5858_v10 = vld [vmem:[#allocation2 + $0x148] sm:$0xf] }
 0x3d6   : > { %14119 = vmatprep.mubr.msk.bf16.mxu1 %vm897_vm5, %v12958_v15  ;;  %v6028_v15 = vshll.u32 %v5836_v23, 16  ;;  %v17558_v23 = vrot.slane %v6090_v46, 5  ;;  %v6088_v3 = vrot.slane %v6087_v6, 4  ;;  %v6144_v30 = vrot.slane %v6142_v29, 4  ;;  %v5854_v46 = vld [vmem:[#allocation2 + $0x128] sm:$0x1] }
 0x3d7   : > { %v6045_v5 = vsel %vm16610_vm14, %v6040_v51, %v17524_v56  ;;  %v5848_v56 = vld [vmem:[#allocation2 + $0x100] sm:$0x1]  ;;  %v6112_v62 = vrot.slane %v6111_v55, 4  ;;  %v6122_v17 = vrot.slane %v6121_v28, 4  ;;  %v6201_v0 = vshrl.u32 %v5858_v10, 16 }
 0x3d8   : > { %v6030_v52 = vrot.slane %v6028_v15, 5  ;;  %v12965_v40 = vcombine.low %v6045_v5, %v6055_v34  ;;  %v6074_v15 = vrot.slane %v6073_v50, 4  ;;  %v6124_v2 = vshll.u32 %v5848_v56, 16  ;;  %v5855_v5 = vld [vmem:[#allocation2 + $0x134] sm:$0xf] }
 0x3d9   : > { %v6093_v33 = vsel %vm16610_vm14, %v6088_v3, %v17558_v23  ;;  %v6172_v50 = vshll.u32 %v5854_v46, 16  ;;  %v6117_v24 = vsel %vm16610_vm14, %v6112_v62, %v17560_v12  ;;  %v6180_v49 = vshll.u32 %v5855_v5, 16  ;;  %v5857_v29 = vld [vmem:[#allocation2 + $0x13c] sm:$0x1] }
 0x3da   : > { %v6031_v18 = vsel %vm16610_vm14, %v6026_v59, %v6030_v52  ;;  %v6156_v59 = vshll.u32 %v5852_v31, 16  ;;  %v6079_v51 = vsel %vm16610_vm14, %v6074_v15, %v6078_v27  ;;  %v6126_v22 = vrot.slane %v6124_v2, 5  ;;  %v5862_v2 = vld [vmem:[#allocation2 + $0x160] sm:$0xf] }
 0x3db   : > { %v12964_v13 = vcombine.low %v6021_v63, %v6031_v18  ;;  %v17573_v63 = vrot.slane %v6162_v4, 5  ;;  %v6186_v56 = vshll.u32 %v5856_v48, 16  ;;  %v6204_v25 = vshll.u32 %v5858_v10, 16 }
 0x3dc   : > { %v6210_v47 = vshll.u32 %v5859_v8, 16  ;;  %v6174_v27 = vrot.slane %v6172_v50, 5  ;;  %v6203_v55 = vrot.slane %v6201_v0, 4  ;;  %v6238_v3 = vshrl.u32 %v5862_v2, 16 }
 0x3dd   : > { %14120 = vmatmul.mubr.msk.bf16.vlgmr.msra.gmra.mrb[32].mxu1 %vm897_vm5, %v12959_v7  ;;  %v6063_v7 = vor.u32 %v6062_v14, %v6059_v45  ;;  %v6102_v45 = vrot.slane %v6100_v21, 5  ;;  %v6131_v14 = vrot.slane %v6129_v9, 4  ;;  %v5861_v21 = vld [vmem:[#allocation2 + $0x15c] sm:$0xf]  ;;  %v6182_v9 = vrot.slane %v6180_v49, 5 }
 0x3de   : > { %14123 = vmatprep.mubr.msk.bf16.mxu1 %vm897_vm5, %v12960_v11  ;;  %v6096_v11 = vrot.slane %v6094_v37, 4  ;;  %v6155_v37 = vrot.slane %v6153_v35, 4  ;;  %v6188_v58 = vrot.slane %v6186_v56, 5  ;;  %v6206_v28 = vrot.slane %v6204_v25, 5 }
 0x3df   : > { %v6064_v26 = vrot.slane %v6063_v7, 4  ;;  %v6135_v16 = vor.u32 %v6134_v42, %v6131_v14  ;;  %v6148_v7 = vshll.u32 %v5851_v1, 16  ;;  %v6212_v35 = vrot.slane %v6210_v47, 5 }
 0x3e0   : > { %v6097_v20 = vor.u32 %v6096_v11, %v17558_v23  ;;  %v6127_v23 = vsel %vm16610_vm14, %v6122_v17, %v6126_v22  ;;  %v6228_v4 = vshll.u32 %v5861_v21, 16  ;;  %v6196_v42 = vshll.u32 %v5857_v29, 16 }
 0x3e1   : > { %v6069_v52 = vsel %vm16610_vm14, %v6064_v26, %v17541_v41  ;;  %v6158_v41 = vrot.slane %v6156_v59, 5  ;;  %v6150_v15 = vrot.slane %v6148_v7, 5  ;;  %v12968_v12 = vcombine.low %v6117_v24, %v6127_v23 }
 0x3e2   : > { %v6098_v54 = vrot.slane %v6097_v20, 4  ;;  %v12966_v43 = vcombine.low %v6069_v52, %v6079_v51  ;;  %v5860_v52 = vld [vmem:[#allocation2 + $0x150] sm:$0x1]  ;;  %v6225_v51 = vshrl.u32 %v5861_v21, 16  ;;  %v6207_v62 = vor.u32 %v6206_v28, %v6203_v55 }
 0x3e3   : > { %v6159_v11 = vor.u32 %v6158_v41, %v6155_v37  ;;  %v6220_v46 = vshll.u32 %v5860_v52, 16  ;;  %v6230_v41 = vrot.slane %v6228_v4, 5 }
 0x3e4   : > { %v6103_v36 = vsel %vm16610_vm14, %v6098_v54, %v6102_v45  ;;  %v6227_v37 = vrot.slane %v6225_v51, 4 }
 0x3e5   : > { %14124 = vmatmul.mubr.msk.bf16.gmra.mrb[36].mxu1 %vm897_vm5, %v12961_v38  ;;  %v6138_v38 = vshll.u32 %v5850_v60, 16  ;;  %v6214_v60 = vshrl.u32 %v5859_v8, 16  ;;  %v12967_v31 = vcombine.low %v6093_v33, %v6103_v36  ;;  %v6160_v6 = vrot.slane %v6159_v11, 4 }
 0x3e6   : > { %14127 = vmatprep.mubr.msk.bf16.mxu1 %vm897_vm5, %v12962_v61  ;;  %v6166_v61 = vshrl.u32 %v5853_v32, 16  ;;  %v6222_v7 = vrot.slane %v6220_v46, 5  ;;  %v6231_v50 = vor.u32 %v6230_v41, %v6227_v37 }
 0x3e7   : > { %v17571_v39 = vrot.slane %v6138_v38, 5  ;;  %v6192_v38 = vrot.slane %v6190_v19, 4  ;;  %v6216_v59 = vrot.slane %v6214_v60, 4  ;;  %v6165_v22 = vsel %vm16610_vm14, %v6160_v6, %v17573_v63 }
 0x3e8   : > { %v6168_v18 = vrot.slane %v6166_v61, 4  ;;  %v6234_v61 = vshll.u32 %v5862_v2, 16  ;;  %v17624_v2 = vld [vmem:[%s19599_s2] sm:$0x3] }
 0x3e9   : > { %v6145_v34 = vor.u32 %v6144_v30, %v17571_v39  ;;  %v6193_v14 = vor.u32 %v6192_v38, %v6188_v58  ;;  %v6217_v17 = vor.u32 %v6216_v59, %v6212_v35 }
 0x3eb   : > { %v6146_v26 = vrot.slane %v6145_v34, 4  ;;  %v6194_v48 = vrot.slane %v6193_v14, 4  ;;  %v6218_v34 = vrot.slane %v6217_v17, 4 }
 0x3ed   : > { %14128 = vmatmul.mubr.msk.bf16.gmra.mrb[40].mxu1 %vm897_vm5, %v12963_v44  ;;  %v6177_v44 = vshrl.u32 %v5855_v5, 16  ;;  %v6151_v45 = vsel %vm16610_vm14, %v6146_v26, %v6150_v15  ;;  %v5863_v5 = vld [vmem:[#allocation2 + $0x164] sm:$0x1]  ;;  %v6979_v26 = vld [vmem:[#allocation2 + $0x4] sm:$0x8] }
 0x3ee   : > { %14131 = vmatprep.mubr.msk.bf16.mxu1 %vm897_vm5, %v12964_v13  ;;  %v6169_v13 = vor.u32 %v6168_v18, %v17573_v63  ;;  %v6208_v63 = vrot.slane %v6207_v62, 4  ;;  %v6244_v8 = vshll.u32 %v5863_v5, 16  ;;  %v6980_v15 = vld [vmem:[#allocation2 + $0x8] sm:$0xf] }
 0x3ef   : > { %v6179_v20 = vrot.slane %v6177_v44, 4  ;;  %v6223_v44 = vsel %vm16610_vm14, %v6218_v34, %v6222_v7  ;;  %v7036_v6 = vshll.u32 %v6980_v15, 16 }
 0x3f0   : > { %v6170_v32 = vrot.slane %v6169_v13, 4  ;;  %v6213_v11 = vsel %vm16610_vm14, %v6208_v63, %v6212_v35  ;;  %v6232_v13 = vrot.slane %v6231_v50, 4  ;;  %v6246_v56 = vrot.slane %v6244_v8, 5 }
 0x3f1   : > { %v6183_v1 = vor.u32 %v6182_v9, %v6179_v20  ;;  %v12972_v0 = vcombine.low %v6213_v11, %v6223_v44 }
 0x3f2   : > { %v6175_v30 = vsel %vm16610_vm14, %v6170_v32, %v6174_v27  ;;  %v6981_v27 = vld [vmem:[#allocation2 + $0xc] sm:$0xf] }
 0x3f3   : > { %v12970_v33 = vcombine.low %v6165_v22, %v6175_v30  ;;  %v6184_v36 = vrot.slane %v6183_v1, 4  ;;  %v7042_v20 = vshrl.u32 %v6981_v27, 16  ;;  %v7045_v21 = vshll.u32 %v6981_v27, 16 }
 0x3f5   : > { %14132 = vmatmul.mubr.msk.bf16.gmra.mrb[44].mxu1 %vm897_vm5, %v12965_v40  ;;  %v6136_v40 = vrot.slane %v6135_v16, 4  ;;  %v6198_v16 = vrot.slane %v6196_v42, 5  ;;  %v6189_v24 = vsel %vm16610_vm14, %v6184_v36, %v6188_v58  ;;  %v7044_v29 = vrot.slane %v7042_v20, 7 }
 0x3f6   : > { %14135 = vmatprep.mubr.msk.bf16.mxu1 %vm897_vm5, %v12966_v43  ;;  %v6236_v43 = vrot.slane %v6234_v61, 5 }
 0x3f7   : > { %v6141_v54 = vsel %vm16610_vm14, %v6136_v40, %v17571_v39  ;;  %v6240_v39 = vrot.slane %v6238_v3, 4  ;;  %v6199_v23 = vsel %vm16610_vm14, %v6194_v48, %v6198_v16  ;;  %v15134_v40 = vld [vmem:[%s19601_s4] sm:$0xff]   ;;  %v7047_v4 = vor.u32 %v7045_v21, %v7044_v29 }
 0x3f8   : > { %v12969_v18 = vcombine.low %v6141_v54, %v6151_v45  ;;  %v12971_v19 = vcombine.low %v6189_v24, %v6199_v23  ;;  %v6237_v25 = vsel %vm16610_vm14, %v6232_v13, %v6236_v43  ;;  %14151 = vmatprep.subr.bf16.mxu0 %v15134_v40 }
 0x3f9   : > { %v6241_v10 = vor.u32 %v6240_v39, %v6236_v43  ;;  %14152 = vmatpush3.bf16.msra.mxu0 %v15134_v40 }
 0x3fa   : > { %15036 = vmatprep.subr.msk.bf16.mxu0 %vm613_vm0, %v17624_v2 }
 0x3fb   : > { %v6242_v49 = vrot.slane %v6241_v10, 4 }
 0x3fd   : > { %14136 = vmatmul.mubr.msk.bf16.gmra.mrb[48].mxu1 %vm897_vm5, %v12967_v31  ;;  %v6247_v47 = vsel %vm16610_vm14, %v6242_v49, %v6246_v56  ;;  %v7028_v31 = vshrl.u32 %v6979_v26, 16 }
 0x3fe   : > { %14139 = vmatprep.mubr.msk.bf16.mxu1 %vm897_vm5, %v12968_v12  ;;  %v12973_v60 = vcombine.low %v6237_v25, %v6247_v47  ;;  %v7033_v12 = vshrl.u32 %v6980_v15, 16 }
 0x3ff   : > { %v13023_v9 = vrot.slane %v7028_v31, 11 }
 0x400   : > { %v7035_v58 = vrot.slane %v7033_v12, 7 }
 0x402   : > { %v7038_v35 = vor.u32 %v7036_v6, %v7035_v58  ;;  %v7040_v59 = vrot.slane %v7035_v58, 4 }
 0x404   : > { %v7039_v45 = vsel %vm16047_vm11, %v13023_v9, %v7038_v35  ;;  %v7048_v14 = vsel %vm16047_vm11, %v7040_v59, %v7047_v4 }
 0x405   : > { %14140 = vmatmul.mubr.msk.bf16.gmra.mrb[52].mxu1 %vm897_vm5, %v12969_v18  ;;  %v13039_v17 = vcombine.low %v7039_v45, %v7048_v14 }
 0x406   : > { %14143 = vmatprep.mubr.msk.bf16.mxu1 %vm897_vm5, %v12970_v33 }
 0x407   : > { %14153 = vmatprep.mubr.msk.bf16.mxu0 %vm897_vm5, %v13039_v17 }
 0x40d   : > { %14144 = vmatmul.mubr.msk.bf16.gmra.mrb[56].mxu1 %vm897_vm5, %v12971_v19 }
 0x40e   : > { %14147 = vmatprep.mubr.msk.bf16.mxu1 %vm897_vm5, %v12972_v0 }
 0x415   : > { %14148 = vmatmul.mubr.msk.bf16.gmra.mrb[60].mxu1 %vm897_vm5, %v12973_v60 }
 0x4b0   : > { %v17626_v32 = vpop.f32.mrb[32].mxu1 }
 0x4b1   : > { %v17628_v38 = vpop.f32.mrb[33].mxu1  ;;  %v6618_v52 = vmul.f32 %v17626_v32, %v17626_v32  ;;  %v6549_v22 = vsel %vm897_vm5, %v17626_v32, 0.0 }
 0x4b2   : > { %v6616_v55 = vmul.f32 %v17628_v38, %v17628_v38  ;;  %v17634_v28 = vpop.f32.mrb[34].mxu1  ;;  %v6546_v61 = vsel %vm897_vm5, %v17628_v38, 0.0 }
 0x4b3   : > { %v17638_v51 = vpop.f32.mrb[35].mxu1  ;;  %v6619_v30 = vmul.f32 %v17634_v28, %v17634_v28  ;;  %v6651_v41 = vsel %vm897_vm5, %v6618_v52, 0.0  ;;  %v6551_v43 = vsel %vm897_vm5, %v17634_v28, 0.0 }
 0x4b4   : > { %v6547_v3 = vsel %vm897_vm5, %v17638_v51, 0.0  ;;  %v6617_v54 = vmul.f32 %v17638_v51, %v17638_v51  ;;  %v6648_v42 = vsel %vm897_vm5, %v6616_v55, 0.0 }
 0x4b5   : > { %v6548_v1 = vadd.f32 %v6547_v3, %v6546_v61  ;;  %v6653_v36 = vsel %vm897_vm5, %v6619_v30, 0.0 }
 0x4b6   : > { %v6649_v62 = vsel %vm897_vm5, %v6617_v54, 0.0 }
 0x4b7   : > { %v6550_v46 = vadd.f32 %v6549_v22, %v6548_v1  ;;  %v6650_v37 = vadd.f32 %v6649_v62, %v6648_v42 }
 0x4b8   : > { %v17659_v39 = vpop.f32.mrb[36].mxu1 }
 0x4b9   : > { %v6652_v18 = vadd.f32 %v6651_v41, %v6650_v37  ;;  %v17662_v5 = vpop.f32.mrb[37].mxu1  ;;  %v6552_v33 = vadd.f32 %v6551_v43, %v6550_v46  ;;  %v6622_v10 = vmul.f32 %v17659_v39, %v17659_v39  ;;  %v6557_v13 = vsel %vm897_vm5, %v17659_v39, 0.0 }
 0x4ba   : > { %v6553_v48 = vsel %vm897_vm5, %v17662_v5, 0.0  ;;  %v6620_v16 = vmul.f32 %v17662_v5, %v17662_v5  ;;  %v17669_v63 = vpop.f32.mrb[38].mxu1 }
 0x4bb   : > { %v6554_v34 = vadd.f32 %v6553_v48, %v6552_v33  ;;  %v6654_v7 = vadd.f32 %v6653_v36, %v6652_v18  ;;  %v17671_v50 = vpop.f32.mrb[39].mxu1  ;;  %v6623_v49 = vmul.f32 %v17669_v63, %v17669_v63  ;;  %v6659_v25 = vsel %vm897_vm5, %v6622_v10, 0.0 }
 0x4bc   : > { %v6655_v8 = vsel %vm897_vm5, %v6620_v16, 0.0  ;;  %v6555_v24 = vsel %vm897_vm5, %v17671_v50, 0.0  ;;  %v6621_v23 = vmul.f32 %v17671_v50, %v17671_v50  ;;  %v6559_v47 = vsel %vm897_vm5, %v17669_v63, 0.0 }
 0x4bd   : > { %v6656_v11 = vadd.f32 %v6655_v8, %v6654_v7  ;;  %v6556_v44 = vadd.f32 %v6555_v24, %v6554_v34  ;;  %v6661_v27 = vsel %vm897_vm5, %v6623_v49, 0.0 }
 0x4be   : > { %v6657_v56 = vsel %vm897_vm5, %v6621_v23, 0.0 }
 0x4bf   : > { %v6558_v19 = vadd.f32 %v6557_v13, %v6556_v44  ;;  %v6658_v0 = vadd.f32 %v6657_v56, %v6656_v11 }
 0x4c0   : > { %v17688_v60 = vpop.f32.mrb[40].mxu1 }
 0x4c1   : > { %v6660_v40 = vadd.f32 %v6659_v25, %v6658_v0  ;;  %v17690_v26 = vpop.f32.mrb[41].mxu1  ;;  %v6560_v15 = vadd.f32 %v6559_v47, %v6558_v19  ;;  %v6626_v58 = vmul.f32 %v17688_v60, %v17688_v60  ;;  %v6565_v4 = vsel %vm897_vm5, %v17688_v60, 0.0 }
 0x4c2   : > { %v6561_v31 = vsel %vm897_vm5, %v17690_v26, 0.0  ;;  %v6624_v12 = vmul.f32 %v17690_v26, %v17690_v26  ;;  %v17697_v6 = vpop.f32.mrb[42].mxu1 }
 0x4c3   : > { %v6562_v20 = vadd.f32 %v6561_v31, %v6560_v15  ;;  %v6662_v21 = vadd.f32 %v6661_v27, %v6660_v40  ;;  %v17699_v9 = vpop.f32.mrb[43].mxu1  ;;  %v6627_v61 = vmul.f32 %v17697_v6, %v17697_v6  ;;  %v6667_v22 = vsel %vm897_vm5, %v6626_v58, 0.0 }
 0x4c4   : > { %v6663_v29 = vsel %vm897_vm5, %v6624_v12, 0.0  ;;  %v6563_v55 = vsel %vm897_vm5, %v17699_v9, 0.0  ;;  %v6625_v35 = vmul.f32 %v17699_v9, %v17699_v9  ;;  %v6567_v1 = vsel %vm897_vm5, %v17697_v6, 0.0 }
 0x4c5   : > { %v6664_v59 = vadd.f32 %v6663_v29, %v6662_v21  ;;  %v6564_v52 = vadd.f32 %v6563_v55, %v6562_v20  ;;  %v6669_v17 = vsel %vm897_vm5, %v6627_v61, 0.0 }
 0x4c6   : > { %v6665_v3 = vsel %vm897_vm5, %v6625_v35, 0.0 }
 0x4c7   : > { %v6566_v54 = vadd.f32 %v6565_v4, %v6564_v52  ;;  %v6666_v45 = vadd.f32 %v6665_v3, %v6664_v59 }
 0x4c8   : > { %v17716_v14 = vpop.f32.mrb[44].mxu1 }
 0x4c9   : > { %v6668_v42 = vadd.f32 %v6667_v22, %v6666_v45  ;;  %v17718_v30 = vpop.f32.mrb[45].mxu1  ;;  %v6568_v62 = vadd.f32 %v6567_v1, %v6566_v54  ;;  %v6630_v36 = vmul.f32 %v17716_v14, %v17716_v14  ;;  %v6573_v8 = vsel %vm897_vm5, %v17716_v14, 0.0 }
 0x4ca   : > { %v6569_v46 = vsel %vm897_vm5, %v17718_v30, 0.0  ;;  %v6628_v37 = vmul.f32 %v17718_v30, %v17718_v30  ;;  %v17725_v41 = vpop.f32.mrb[46].mxu1 }
 0x4cb   : > { %v6570_v43 = vadd.f32 %v6569_v46, %v6568_v62  ;;  %v6670_v18 = vadd.f32 %v6669_v17, %v6668_v42  ;;  %v17727_v33 = vpop.f32.mrb[47].mxu1  ;;  %v6631_v24 = vmul.f32 %v17725_v41, %v17725_v41  ;;  %v6675_v13 = vsel %vm897_vm5, %v6630_v36, 0.0 }
 0x4cc   : > { %v6671_v48 = vsel %vm897_vm5, %v6628_v37, 0.0  ;;  %v6571_v16 = vsel %vm897_vm5, %v17727_v33, 0.0  ;;  %v6629_v34 = vmul.f32 %v17727_v33, %v17727_v33  ;;  %v6575_v49 = vsel %vm897_vm5, %v17725_v41, 0.0 }
 0x4cd   : > { %v6672_v7 = vadd.f32 %v6671_v48, %v6670_v18  ;;  %v6572_v10 = vadd.f32 %v6571_v16, %v6570_v43  ;;  %v6677_v47 = vsel %vm897_vm5, %v6631_v24, 0.0 }
 0x4ce   : > { %v6673_v23 = vsel %vm897_vm5, %v6629_v34, 0.0 }
 0x4cf   : > { %v6574_v11 = vadd.f32 %v6573_v8, %v6572_v10  ;;  %v6674_v44 = vadd.f32 %v6673_v23, %v6672_v7 }
 0x4d0   : > { %v17744_v56 = vpop.f32.mrb[48].mxu1 }
 0x4d1   : > { %v6676_v19 = vadd.f32 %v6675_v13, %v6674_v44  ;;  %v17746_v0 = vpop.f32.mrb[49].mxu1  ;;  %v6576_v25 = vadd.f32 %v6575_v49, %v6574_v11  ;;  %v6634_v21 = vmul.f32 %v17744_v56, %v17744_v56  ;;  %v6581_v52 = vsel %vm897_vm5, %v17744_v56, 0.0 }
 0x4d2   : > { %v6577_v40 = vsel %vm897_vm5, %v17746_v0, 0.0  ;;  %v6632_v15 = vmul.f32 %v17746_v0, %v17746_v0  ;;  %v17753_v27 = vpop.f32.mrb[50].mxu1 }
 0x4d3   : > { %v6578_v31 = vadd.f32 %v6577_v40, %v6576_v25  ;;  %v6678_v12 = vadd.f32 %v6677_v47, %v6676_v19  ;;  %v17755_v20 = vpop.f32.mrb[51].mxu1  ;;  %v6635_v4 = vmul.f32 %v17753_v27, %v17753_v27  ;;  %v6683_v45 = vsel %vm897_vm5, %v6634_v21, 0.0 }
 0x4d4   : > { %v6679_v58 = vsel %vm897_vm5, %v6632_v15, 0.0  ;;  %v6579_v29 = vsel %vm897_vm5, %v17755_v20, 0.0  ;;  %v6633_v55 = vmul.f32 %v17755_v20, %v17755_v20  ;;  %v6583_v22 = vsel %vm897_vm5, %v17753_v27, 0.0 }
 0x4d5   : > { %v6680_v35 = vadd.f32 %v6679_v58, %v6678_v12  ;;  %v6580_v59 = vadd.f32 %v6579_v29, %v6578_v31  ;;  %v6685_v46 = vsel %vm897_vm5, %v6635_v4, 0.0 }
 0x4d6   : > { %v6681_v61 = vsel %vm897_vm5, %v6633_v55, 0.0 }
 0x4d7   : > { %v6582_v3 = vadd.f32 %v6581_v52, %v6580_v59  ;;  %v6682_v54 = vadd.f32 %v6681_v61, %v6680_v35 }
 0x4d8   : > { %v17772_v1 = vpop.f32.mrb[52].mxu1 }
 0x4d9   : > { %v6684_v42 = vadd.f32 %v6683_v45, %v6682_v54  ;;  %v17774_v62 = vpop.f32.mrb[53].mxu1  ;;  %v6584_v17 = vadd.f32 %v6583_v22, %v6582_v3  ;;  %v6638_v34 = vmul.f32 %v17772_v1, %v17772_v1  ;;  %v6589_v11 = vsel %vm897_vm5, %v17772_v1, 0.0 }
 0x4da   : > { %v6585_v37 = vsel %vm897_vm5, %v17774_v62, 0.0  ;;  %v6636_v43 = vmul.f32 %v17774_v62, %v17774_v62  ;;  %v17781_v18 = vpop.f32.mrb[54].mxu1 }
 0x4db   : > { %v6586_v36 = vadd.f32 %v6585_v37, %v6584_v17  ;;  %v6686_v48 = vadd.f32 %v6685_v46, %v6684_v42  ;;  %v17783_v16 = vpop.f32.mrb[55].mxu1  ;;  %v6639_v44 = vmul.f32 %v17781_v18, %v17781_v18  ;;  %v6691_v25 = vsel %vm897_vm5, %v6638_v34, 0.0 }
 0x4dc   : > { %v6687_v7 = vsel %vm897_vm5, %v6636_v43, 0.0  ;;  %v6587_v10 = vsel %vm897_vm5, %v17783_v16, 0.0  ;;  %v6637_v8 = vmul.f32 %v17783_v16, %v17783_v16  ;;  %v6591_v47 = vsel %vm897_vm5, %v17781_v18, 0.0 }
 0x4dd   : > { %v6688_v24 = vadd.f32 %v6687_v7, %v6686_v48  ;;  %v6588_v23 = vadd.f32 %v6587_v10, %v6586_v36  ;;  %v6693_v21 = vsel %vm897_vm5, %v6639_v44, 0.0 }
 0x4de   : > { %v6689_v13 = vsel %vm897_vm5, %v6637_v8, 0.0 }
 0x4df   : > { %v6590_v49 = vadd.f32 %v6589_v11, %v6588_v23  ;;  %v6690_v19 = vadd.f32 %v6689_v13, %v6688_v24 }
 0x4e0   : > { %v17800_v40 = vpop.f32.mrb[56].mxu1 }
 0x4e1   : > { %v6692_v15 = vadd.f32 %v6691_v25, %v6690_v19  ;;  %v17802_v31 = vpop.f32.mrb[57].mxu1  ;;  %v6592_v12 = vadd.f32 %v6591_v47, %v6590_v49  ;;  %v6642_v4 = vmul.f32 %v17800_v40, %v17800_v40  ;;  %v6597_v42 = vsel %vm897_vm5, %v17800_v40, 0.0 }
 0x4e2   : > { %v6593_v58 = vsel %vm897_vm5, %v17802_v31, 0.0  ;;  %v6640_v29 = vmul.f32 %v17802_v31, %v17802_v31  ;;  %v17809_v55 = vpop.f32.mrb[58].mxu1 }
 0x4e3   : > { %v6594_v35 = vadd.f32 %v6593_v58, %v6592_v12  ;;  %v6694_v59 = vadd.f32 %v6693_v21, %v6692_v15  ;;  %v17811_v52 = vpop.f32.mrb[59].mxu1  ;;  %v6643_v17 = vmul.f32 %v17809_v55, %v17809_v55  ;;  %v6699_v36 = vsel %vm897_vm5, %v6642_v4, 0.0 }
 0x4e4   : > { %v6695_v61 = vsel %vm897_vm5, %v6640_v29, 0.0  ;;  %v6595_v3 = vsel %vm897_vm5, %v17811_v52, 0.0  ;;  %v6641_v54 = vmul.f32 %v17811_v52, %v17811_v52  ;;  %v6599_v48 = vsel %vm897_vm5, %v17809_v55, 0.0 }
 0x4e5   : > { %v6696_v45 = vadd.f32 %v6695_v61, %v6694_v59  ;;  %v6596_v22 = vadd.f32 %v6595_v3, %v6594_v35  ;;  %v6701_v24 = vsel %vm897_vm5, %v6643_v17, 0.0 }
 0x4e6   : > { %v6697_v46 = vsel %vm897_vm5, %v6641_v54, 0.0 }
 0x4e7   : > { %v6598_v37 = vadd.f32 %v6597_v42, %v6596_v22  ;;  %v6698_v43 = vadd.f32 %v6697_v46, %v6696_v45 }
 0x4e8   : > { %v17828_v34 = vpop.f32.mrb[60].mxu1 }
 0x4e9   : > { %v6700_v7 = vadd.f32 %v6699_v36, %v6698_v43  ;;  %v17830_v10 = vpop.f32.mrb[61].mxu1  ;;  %v6600_v8 = vadd.f32 %v6599_v48, %v6598_v37  ;;  %v6646_v25 = vmul.f32 %v17828_v34, %v17828_v34  ;;  %v6605_v29 = vsel %vm897_vm5, %v17828_v34, 0.0 }
 0x4ea   : > { %v6601_v23 = vsel %vm897_vm5, %v17830_v10, 0.0  ;;  %v6644_v11 = vmul.f32 %v17830_v10, %v17830_v10  ;;  %v17837_v44 = vpop.f32.mrb[62].mxu1 }
 0x4eb   : > { %v6602_v13 = vadd.f32 %v6601_v23, %v6600_v8  ;;  %v6702_v49 = vadd.f32 %v6701_v24, %v6700_v7  ;;  %v17839_v19 = vpop.f32.mrb[63].mxu1  ;;  %v6647_v35 = vmul.f32 %v17837_v44, %v17837_v44  ;;  %v6707_v3 = vsel %vm897_vm5, %v6646_v25, 0.0 }
 0x4ec   : > { %v6703_v47 = vsel %vm897_vm5, %v6644_v11, 0.0  ;;  %v6603_v15 = vsel %vm897_vm5, %v17839_v19, 0.0  ;;  %v6645_v12 = vmul.f32 %v17839_v19, %v17839_v19  ;;  %v6607_v54 = vsel %vm897_vm5, %v17837_v44, 0.0 }
 0x4ed   : > { %v6704_v21 = vadd.f32 %v6703_v47, %v6702_v49  ;;  %v6604_v58 = vadd.f32 %v6603_v15, %v6602_v13  ;;  %v6709_v42 = vsel %vm897_vm5, %v6647_v35, 0.0 }
 0x4ee   : > { %v6705_v59 = vsel %vm897_vm5, %v6645_v12, 0.0 }
 0x4ef   : > { %v6606_v4 = vadd.f32 %v6605_v29, %v6604_v58  ;;  %v6706_v61 = vadd.f32 %v6705_v59, %v6704_v21 }
 0x4f1   : > { %v6608_v45 = vadd.f32 %v6607_v54, %v6606_v4  ;;  %v6708_v22 = vadd.f32 %v6707_v3, %v6706_v61 }
 0x4f3   : > { %v6609_v17 = vrot.slane %v6608_v45, 4  ;;  %v6710_v46 = vadd.f32 %v6709_v42, %v6708_v22  ;;  %v17925_v42 = vld [vmem:[#allocation2 + $0x40] sm:$0x8] }
 0x4f5   : > { %v6610_v37 = vadd.f32 %v6609_v17, %v6608_v45  ;;  %v6711_v43 = vrot.slane %v6710_v46, 4  ;;  %v6985_v45 = vld [vmem:[#allocation2 + $0x2c] sm:$0x8]  ;;  %v17927_v17 = vld [vmem:[#allocation2 + $0x54] sm:$0x8] }
 0x4f7   : > { %v6611_v36 = vrot.slane %v6610_v37, 2  ;;  %v6712_v48 = vadd.f32 %v6711_v43, %v6710_v46 }
 0x4f9   : > { %v6612_v7 = vadd.f32 %v6611_v36, %v6610_v37  ;;  %v6713_v8 = vrot.slane %v6712_v48, 2 }
 0x4fb   : > { %v6613_v24 = vrot.slane %v6612_v7, 1  ;;  %v6714_v23 = vadd.f32 %v6713_v8, %v6712_v48 }
 0x4fd   : > { %v6614_v11 = vadd.f32 %v6613_v24, %v6612_v7  ;;  %v6715_v13 = vrot.slane %v6714_v23, 1 }
 0x4ff   : > { %v17857_v49 = vmul.f32 0.00390625, %v6614_v11  ;;  %v6716_v25 = vadd.f32 %v6715_v13, %v6714_v23 }
 0x501   : > { %v6717_v47 = vmul.f32 0.00390625, %v6716_v25  ;;  %v6718_v15 = vmul.f32 %v17857_v49, %v17857_v49  ;;  %v6750_v12 = vsub.f32 %v17839_v19, %v17857_v49  ;;  %v6721_v21 = vsub.f32 %v17628_v38, %v17857_v49 }
 0x502   : > { %v6722_v58 = vsub.f32 %v17638_v51, %v17857_v49  ;;  %v6723_v29 = vsub.f32 %v17626_v32, %v17857_v49  ;;  %v6724_v35 = vsub.f32 %v17634_v28, %v17857_v49  ;;  %v6725_v59 = vsub.f32 %v17662_v5, %v17857_v49 }
 0x503   : > { %v6719_v4 = vsub.f32 %v6717_v47, %v6718_v15  ;;  %v6726_v61 = vsub.f32 %v17671_v50, %v17857_v49  ;;  %v6727_v19 = vsub.f32 %v17659_v39, %v17857_v49  ;;  %v6728_v38 = vsub.f32 %v17669_v63, %v17857_v49 }
 0x504   : > { %v6729_v51 = vsub.f32 %v17690_v26, %v17857_v49  ;;  %v6730_v32 = vsub.f32 %v17699_v9, %v17857_v49  ;;  %v6731_v28 = vsub.f32 %v17688_v60, %v17857_v49  ;;  %v6732_v5 = vsub.f32 %v17697_v6, %v17857_v49 }
 0x505   : > { %v6720_v3 = vmax.f32 %v6719_v4, 0.0  ;;  %v6733_v50 = vsub.f32 %v17718_v30, %v17857_v49  ;;  %v6734_v39 = vsub.f32 %v17727_v33, %v17857_v49  ;;  %v6735_v63 = vsub.f32 %v17716_v14, %v17857_v49 }
 0x506   : > { %v6736_v26 = vsub.f32 %v17725_v41, %v17857_v49  ;;  %v6737_v9 = vsub.f32 %v17746_v0, %v17857_v49  ;;  %v6738_v60 = vsub.f32 %v17755_v20, %v17857_v49  ;;  %v6739_v6 = vsub.f32 %v17744_v56, %v17857_v49 }
 0x507   : > { %v6753_v54 = vadd.f32 1e-05, %v6720_v3  ;;  %v6740_v30 = vsub.f32 %v17753_v27, %v17857_v49  ;;  %v6741_v33 = vsub.f32 %v17774_v62, %v17857_v49  ;;  %v6742_v14 = vsub.f32 %v17783_v16, %v17857_v49 }
 0x508   : > { %v6743_v41 = vsub.f32 %v17772_v1, %v17857_v49  ;;  %v6744_v0 = vsub.f32 %v17781_v18, %v17857_v49  ;;  %v6745_v20 = vsub.f32 %v17802_v31, %v17857_v49  ;;  %v6746_v56 = vsub.f32 %v17811_v52, %v17857_v49  ;;  %v6982_v31 = vld [vmem:[#allocation2 + $0x18] sm:$0x8] }
 0x509   : > { %15195 = vrsqrt.f32 %v6753_v54  ;;  %v6747_v27 = vsub.f32 %v17800_v40, %v17857_v49  ;;  %v6748_v62 = vsub.f32 %v17809_v55, %v17857_v49  ;;  %v6749_v16 = vsub.f32 %v17830_v10, %v17857_v49 }
 0x50a   : > { %v6751_v1 = vsub.f32 %v17828_v34, %v17857_v49  ;;  %v6752_v18 = vsub.f32 %v17837_v44, %v17857_v49  ;;  %v7050_v22 = vshrl.u32 %v6982_v31, 16  ;;  %v7072_v52 = vshrl.u32 %v6985_v45, 16 }
 0x50b   : > { %v17933_v10 = vsel %vm613_vm0, %v17624_v2, 0  ;;  %v7094_v34 = vshrl.u32 %v17925_v42, 16  ;;  %v7116_v44 = vshrl.u32 %v17927_v17, 16 }
 0x50c   : > { %v17929_v40 = vrot.slane %v7050_v22, 11  ;;  %v17935_v46 = vrot.slane %v7072_v52, 11 }
 0x513   : > { %v15196_v55 = vpop.eup %15195 }
 0x514   : > { %v6784_v37 = vmul.f32 %v15196_v55, %v6750_v12  ;;  %v17939_v43 = vmul.f32 %v15196_v55, %v6721_v21  ;;  %v17941_v36 = vmul.f32 %v15196_v55, %v6722_v58  ;;  %v17943_v48 = vmul.f32 %v15196_v55, %v6723_v29 }
 0x515   : > { %v17945_v7 = vmul.f32 %v15196_v55, %v6724_v35  ;;  %v17947_v8 = vmul.f32 %v15196_v55, %v6725_v59  ;;  %v17949_v24 = vmul.f32 %v15196_v55, %v6726_v61  ;;  %v17951_v2 = vmul.f32 %v15196_v55, %v6727_v19 }
 0x516   : > { %v6816_v23 = vmax.f32 %v6784_v37, 0.0  ;;  %v17953_v11 = vmul.f32 %v15196_v55, %v6728_v38  ;;  %v17955_v13 = vmul.f32 %v15196_v55, %v6729_v51  ;;  %v17957_v49 = vmul.f32 %v15196_v55, %v6730_v32 }
 0x517   : > { %v17959_v25 = vmul.f32 %v15196_v55, %v6731_v28  ;;  %v17961_v47 = vmul.f32 %v15196_v55, %v6732_v5  ;;  %v17963_v15 = vmul.f32 %v15196_v55, %v6733_v50  ;;  %v17965_v12 = vmul.f32 %v15196_v55, %v6734_v39 }
 0x518   : > { %v13467_v21 = vpack.c.bf16 %v6816_v23, %v6816_v23  ;;  %v17967_v58 = vmul.f32 %v15196_v55, %v6735_v63  ;;  %v17969_v29 = vmul.f32 %v15196_v55, %v6736_v26  ;;  %v17971_v35 = vmul.f32 %v15196_v55, %v6737_v9 }
 0x519   : > { %v17973_v59 = vmul.f32 %v15196_v55, %v6738_v60  ;;  %v17975_v4 = vmul.f32 %v15196_v55, %v6739_v6  ;;  %v17977_v61 = vmul.f32 %v15196_v55, %v6740_v30  ;;  %v17979_v19 = vmul.f32 %v15196_v55, %v6741_v33 }
 0x51a   : > { %6976 = vst.msk [vmem:[#allocation2 + $0x138] sm:$0xf] %vm778_vm2, %v13467_v21  ;;  %v17982_v38 = vmul.f32 %v15196_v55, %v6742_v14  ;;  %v17984_v51 = vmul.f32 %v15196_v55, %v6743_v41  ;;  %v17986_v32 = vmul.f32 %v15196_v55, %v6744_v0  ;;  %v17988_v28 = vmul.f32 %v15196_v55, %v6745_v20 }
 0x51b   : > { %v17990_v5 = vmul.f32 %v15196_v55, %v6746_v56  ;;  %v17992_v3 = vmul.f32 %v15196_v55, %v6747_v27  ;;  %v17994_v50 = vmul.f32 %v15196_v55, %v6748_v62  ;;  %v17996_v39 = vmul.f32 %v15196_v55, %v6749_v16 }
 0x51c   : > { %v17998_v63 = vmul.f32 %v15196_v55, %v6751_v1  ;;  %v18000_v26 = vmul.f32 %v15196_v55, %v6752_v18  ;;  %v6787_v9 = vmax.f32 %v17939_v43, 0.0  ;;  %v6788_v60 = vmax.f32 %v17941_v36, 0.0 }
 0x51d   : > { %v6789_v6 = vmax.f32 %v17943_v48, 0.0  ;;  %v6790_v54 = vmax.f32 %v17945_v7, 0.0  ;;  %v6791_v30 = vmax.f32 %v17947_v8, 0.0  ;;  %v6792_v33 = vmax.f32 %v17949_v24, 0.0 }
 0x51e   : > { %v6793_v14 = vmax.f32 %v17951_v2, 0.0  ;;  %v6794_v41 = vmax.f32 %v17953_v11, 0.0  ;;  %v6795_v0 = vmax.f32 %v17955_v13, 0.0  ;;  %v6796_v20 = vmax.f32 %v17957_v49, 0.0 }
 0x51f   : > { %v6797_v56 = vmax.f32 %v17959_v25, 0.0  ;;  %v6798_v27 = vmax.f32 %v17961_v47, 0.0  ;;  %v6799_v62 = vmax.f32 %v17963_v15, 0.0  ;;  %v6800_v16 = vmax.f32 %v17965_v12, 0.0 }
 0x520   : > { %v6801_v1 = vmax.f32 %v17967_v58, 0.0  ;;  %v6802_v18 = vmax.f32 %v17969_v29, 0.0  ;;  %v6803_v31 = vmax.f32 %v17971_v35, 0.0  ;;  %v6804_v45 = vmax.f32 %v17973_v59, 0.0 }
 0x521   : > { %v6805_v22 = vmax.f32 %v17975_v4, 0.0  ;;  %v6806_v52 = vmax.f32 %v17977_v61, 0.0  ;;  %v6807_v55 = vmax.f32 %v17979_v19, 0.0  ;;  %v6808_v37 = vmax.f32 %v17982_v38, 0.0 }
 0x522   : > { %v6809_v43 = vmax.f32 %v17984_v51, 0.0  ;;  %v6810_v36 = vmax.f32 %v17986_v32, 0.0  ;;  %v6811_v48 = vmax.f32 %v17988_v28, 0.0  ;;  %v6812_v7 = vmax.f32 %v17990_v5, 0.0 }
 0x523   : > { %v6813_v8 = vmax.f32 %v17992_v3, 0.0  ;;  %v6814_v24 = vmax.f32 %v17994_v50, 0.0  ;;  %v6815_v2 = vmax.f32 %v17996_v39, 0.0  ;;  %v6817_v23 = vmax.f32 %v17998_v63, 0.0 }
 0x524   : > { %v6818_v11 = vmax.f32 %v18000_v26, 0.0  ;;  %v13438_v13 = vpack.c.bf16 %v6787_v9, %v6787_v9  ;;  %v13439_v49 = vpack.c.bf16 %v6788_v60, %v6788_v60  ;;  %v13440_v25 = vpack.c.bf16 %v6789_v6, %v6789_v6  ;;  %v18048_v26 = vld [vmem:[#allocation2 + $0x68] sm:$0x8]  ;;  %v18050_v9 = vld [vmem:[#allocation2 + $0x7c] sm:$0x8] }
 0x525   : > { %v13441_v47 = vpack.c.bf16 %v6790_v54, %v6790_v54  ;;  %v13442_v15 = vpack.c.bf16 %v6791_v30, %v6791_v30  ;;  %v13443_v12 = vpack.c.bf16 %v6792_v33, %v6792_v33  ;;  %v13444_v21 = vpack.c.bf16 %v6793_v14, %v6793_v14 }
 0x526   : > { %v13445_v58 = vpack.c.bf16 %v6794_v41, %v6794_v41  ;;  %v13446_v29 = vpack.c.bf16 %v6795_v0, %v6795_v0  ;;  %v13447_v35 = vpack.c.bf16 %v6796_v20, %v6796_v20  ;;  %v13448_v59 = vpack.c.bf16 %v6797_v56, %v6797_v56  ;;  %6947 = vst.msk [vmem:[#allocation2 + $0x1c] sm:$0xf] %vm778_vm2, %v13438_v13 }
 0x527   : > { %6948 = vst.msk [vmem:[#allocation2 + $0x20] sm:$0xf] %vm778_vm2, %v13439_v49  ;;  %6949 = vst.msk [vmem:[#allocation2 + $0x30] sm:$0xf] %vm778_vm2, %v13440_v25  ;;  %v13449_v4 = vpack.c.bf16 %v6798_v27, %v6798_v27  ;;  %v13450_v61 = vpack.c.bf16 %v6799_v62, %v6799_v62  ;;  %v13451_v19 = vpack.c.bf16 %v6800_v16, %v6800_v16  ;;  %v18066_v20 = vrot.slane %v7094_v34, 11 }
 0x528   : > { %v13452_v38 = vpack.c.bf16 %v6801_v1, %v6801_v1  ;;  %6950 = vst.msk [vmem:[#allocation2 + $0x34] sm:$0xf] %vm778_vm2, %v13441_v47  ;;  %6951 = vst.msk [vmem:[#allocation2 + $0x44] sm:$0xf] %vm778_vm2, %v13442_v15  ;;  %v13453_v51 = vpack.c.bf16 %v6802_v18, %v6802_v18  ;;  %v13454_v32 = vpack.c.bf16 %v6803_v31, %v6803_v31  ;;  %v18070_v56 = vrot.slane %v7116_v44, 11 }
 0x529   : > { %6952 = vst.msk [vmem:[#allocation2 + $0x48] sm:$0xf] %vm778_vm2, %v13443_v12  ;;  %6953 = vst.msk [vmem:[#allocation2 + $0x58] sm:$0xf] %vm778_vm2, %v13444_v21  ;;  %v13455_v28 = vpack.c.bf16 %v6804_v45, %v6804_v45  ;;  %v13456_v5 = vpack.c.bf16 %v6805_v22, %v6805_v22  ;;  %v13457_v3 = vpack.c.bf16 %v6806_v52, %v6806_v52  ;;  %v7138_v27 = vshrl.u32 %v18048_v26, 16 }
 0x52a   : > { %6954 = vst.msk [vmem:[#allocation2 + $0x5c] sm:$0xf] %vm778_vm2, %v13445_v58  ;;  %6955 = vst.msk [vmem:[#allocation2 + $0x6c] sm:$0xf] %vm778_vm2, %v13446_v29  ;;  %v13458_v50 = vpack.c.bf16 %v6807_v55, %v6807_v55  ;;  %v13459_v39 = vpack.c.bf16 %v6808_v37, %v6808_v37  ;;  %v13460_v63 = vpack.c.bf16 %v6809_v43, %v6809_v43  ;;  %v7160_v62 = vshrl.u32 %v18050_v9, 16 }
 0x52b   : > { %6956 = vst.msk [vmem:[#allocation2 + $0x70] sm:$0xf] %vm778_vm2, %v13447_v35  ;;  %6957 = vst.msk [vmem:[#allocation2 + $0x80] sm:$0xf] %vm778_vm2, %v13448_v59  ;;  %v13461_v60 = vpack.c.bf16 %v6810_v36, %v6810_v36  ;;  %v13462_v6 = vpack.c.bf16 %v6811_v48, %v6811_v48  ;;  %v13463_v54 = vpack.c.bf16 %v6812_v7, %v6812_v7  ;;  %v18104_v35 = vld [vmem:[#allocation2 + $0x90] sm:$0x8] }
 0x52c   : > { %6958 = vst.msk [vmem:[#allocation2 + $0x84] sm:$0xf] %vm778_vm2, %v13449_v4  ;;  %6959 = vst.msk [vmem:[#allocation2 + $0x94] sm:$0xf] %vm778_vm2, %v13450_v61  ;;  %v13464_v30 = vpack.c.bf16 %v6813_v8, %v6813_v8  ;;  %v13465_v33 = vpack.c.bf16 %v6814_v24, %v6814_v24  ;;  %v13466_v14 = vpack.c.bf16 %v6815_v2, %v6815_v2  ;;  %v18128_v26 = vrot.slane %v7138_v27, 11 }
 0x52d   : > { %6960 = vst.msk [vmem:[#allocation2 + $0x98] sm:$0xf] %vm778_vm2, %v13451_v19  ;;  %6961 = vst.msk [vmem:[#allocation2 + $0xa8] sm:$0xf] %vm778_vm2, %v13452_v38  ;;  %v13468_v41 = vpack.c.bf16 %v6817_v23, %v6817_v23  ;;  %v13469_v0 = vpack.c.bf16 %v6818_v11, %v6818_v11  ;;  %v18078_v16 = vld [vmem:[#allocation2 + $0x1c] sm:$0xf] }
 0x52e   : > { %6962 = vst.msk [vmem:[#allocation2 + $0xac] sm:$0xf] %vm778_vm2, %v13453_v51  ;;  %6963 = vst.msk [vmem:[#allocation2 + $0xbc] sm:$0xf] %vm778_vm2, %v13454_v32  ;;  %v18080_v42 = vld [vmem:[#allocation2 + $0x20] sm:$0xf] }
 0x52f   : > { %6964 = vst.msk [vmem:[#allocation2 + $0xc0] sm:$0xf] %vm778_vm2, %v13455_v28  ;;  %6965 = vst.msk [vmem:[#allocation2 + $0xd0] sm:$0xf] %vm778_vm2, %v13456_v5  ;;  %v18082_v34 = vld [vmem:[#allocation2 + $0x30] sm:$0xf] }
 0x530   : > { %6966 = vst.msk [vmem:[#allocation2 + $0xd4] sm:$0xf] %vm778_vm2, %v13457_v3  ;;  %6967 = vst.msk [vmem:[#allocation2 + $0xe4] sm:$0xf] %vm778_vm2, %v13458_v50  ;;  %v7055_v17 = vshrl.u32 %v18078_v16, 16  ;;  %v7058_v44 = vshll.u32 %v18078_v16, 16 }
 0x531   : > { %6968 = vst.msk [vmem:[#allocation2 + $0xe8] sm:$0xf] %vm778_vm2, %v13459_v39  ;;  %6969 = vst.msk [vmem:[#allocation2 + $0xf8] sm:$0xf] %vm778_vm2, %v13460_v63  ;;  %v7064_v1 = vshrl.u32 %v18080_v42, 16  ;;  %v7067_v18 = vshll.u32 %v18080_v42, 16 }
 0x532   : > { %6970 = vst.msk [vmem:[#allocation2 + $0xfc] sm:$0xf] %vm778_vm2, %v13461_v60  ;;  %6971 = vst.msk [vmem:[#allocation2 + $0x10c] sm:$0xf] %vm778_vm2, %v13462_v6  ;;  %v18088_v31 = vld [vmem:[#allocation2 + $0x34] sm:$0xf] }
 0x533   : > { %6972 = vst.msk [vmem:[#allocation2 + $0x110] sm:$0xf] %vm778_vm2, %v13463_v54  ;;  %6973 = vst.msk [vmem:[#allocation2 + $0x120] sm:$0xf] %vm778_vm2, %v13464_v30  ;;  %v7077_v45 = vshrl.u32 %v18082_v34, 16  ;;  %v7080_v22 = vshll.u32 %v18082_v34, 16 }
 0x534   : > { %6974 = vst.msk [vmem:[#allocation2 + $0x124] sm:$0xf] %vm778_vm2, %v13465_v33  ;;  %6975 = vst.msk [vmem:[#allocation2 + $0x134] sm:$0xf] %vm778_vm2, %v13466_v14  ;;  %v7086_v52 = vshrl.u32 %v18088_v31, 16  ;;  %v7089_v55 = vshll.u32 %v18088_v31, 16 }
 0x535   : > { %6977 = vst.msk [vmem:[#allocation2 + $0x148] sm:$0xf] %vm778_vm2, %v13468_v41  ;;  %6978 = vst.msk [vmem:[#allocation2 + $0x14c] sm:$0xf] %vm778_vm2, %v13469_v0  ;;  %v18094_v37 = vld [vmem:[#allocation2 + $0x44] sm:$0xf] }
 0x536   : > { %v7057_v43 = vrot.slane %v7055_v17, 7  ;;  %v7066_v36 = vrot.slane %v7064_v1, 7  ;;  %v18096_v48 = vld [vmem:[#allocation2 + $0x48] sm:$0xf]  ;;  %v7099_v7 = vshrl.u32 %v18094_v37, 16  ;;  %v7102_v8 = vshll.u32 %v18094_v37, 16 }
 0x537   : > { %v7079_v24 = vrot.slane %v7077_v45, 7  ;;  %v7088_v2 = vrot.slane %v7086_v52, 7  ;;  %v7108_v23 = vshrl.u32 %v18096_v48, 16  ;;  %v7111_v11 = vshll.u32 %v18096_v48, 16  ;;  %v18102_v29 = vld [vmem:[#allocation2 + $0x58] sm:$0xf] }
 0x538   : > { %v7060_v13 = vor.u32 %v7058_v44, %v7057_v43  ;;  %v7062_v49 = vrot.slane %v7057_v43, 4  ;;  %v7069_v25 = vor.u32 %v7067_v18, %v7066_v36  ;;  %v7101_v47 = vrot.slane %v7099_v7, 7  ;;  %v18111_v38 = vld [vmem:[#allocation2 + $0x5c] sm:$0xf]  ;;  %v18113_v51 = vld [vmem:[#allocation2 + $0x6c] sm:$0xf] }
 0x539   : > { %v7082_v15 = vor.u32 %v7080_v22, %v7079_v24  ;;  %v7084_v12 = vrot.slane %v7079_v24, 4  ;;  %v7091_v21 = vor.u32 %v7089_v55, %v7088_v2  ;;  %v7110_v58 = vrot.slane %v7108_v23, 7  ;;  %v18120_v50 = vld [vmem:[#allocation2 + $0x70] sm:$0xf]  ;;  %v18130_v9 = vld [vmem:[#allocation2 + $0x80] sm:$0xf] }
 0x53a   : > { %v7061_v59 = vsel %vm16047_vm11, %v17929_v40, %v7060_v13  ;;  %v7070_v4 = vsel %vm16047_vm11, %v7062_v49, %v7069_v25  ;;  %v7104_v61 = vor.u32 %v7102_v8, %v7101_v47  ;;  %v7106_v19 = vrot.slane %v7101_v47, 4  ;;  %v18125_v40 = vld [vmem:[%s19601_s4 + $0x8] sm:$0xff]   ;;  %v18148_v17 = vld [vmem:[#allocation2 + $0x84] sm:$0xf]  ;;  %v18154_v36 = vld [vmem:[#allocation2 + $0x94] sm:$0xf] }
 0x53b   : > { %v13040_v32 = vcombine.low %v7061_v59, %v7070_v4  ;;  %v7083_v28 = vsel %vm16047_vm11, %v17935_v46, %v7082_v15  ;;  %v7092_v5 = vsel %vm16047_vm11, %v7084_v12, %v7091_v21  ;;  %v7113_v3 = vor.u32 %v7111_v11, %v7110_v58  ;;  %v18161_v23 = vld [vmem:[#allocation2 + $0x98] sm:$0xf]  ;;  %v18166_v47 = vld [vmem:[#allocation2 + $0xa8] sm:$0xf]  ;;  %v18169_v58 = vld [vmem:[#allocation2 + $0xac] sm:$0xf] }
 0x53c   : > { %v13041_v39 = vcombine.low %v7083_v28, %v7092_v5  ;;  %v7121_v63 = vshrl.u32 %v18102_v29, 16  ;;  %v18132_v60 = vrot.slane %v7160_v62, 11  ;;  %v7105_v46 = vsel %vm16047_vm11, %v18066_v20, %v7104_v61  ;;  %v7003_v4 = vld [vmem:[#allocation2 + $0xa4] sm:$0x8]  ;;  %v7006_v61 = vld [vmem:[#allocation2 + $0xb8] sm:$0x8] }
 0x53d   : > { %14154 = vmatmul.mubr.msk.bf16.vlgmr.msra.gmra.mrb[0].mxu0 %vm897_vm5, %v13040_v32  ;;  %v7130_v6 = vshrl.u32 %v18111_v38, 16  ;;  %v7143_v54 = vshrl.u32 %v18113_v51, 16  ;;  %v7182_v30 = vshrl.u32 %v18104_v35, 16  ;;  %v7114_v33 = vsel %vm16047_vm11, %v7106_v19, %v7113_v3  ;;  %v7009_v3 = vld [vmem:[#allocation2 + $0xcc] sm:$0x8] }
 0x53e   : > { %14186 = vmatpush3.bf16.msra.mxu0 %v17933_v10  ;;  %14157 = vmatprep.mubr.msk.bf16.mxu0 %vm897_vm5, %v13041_v39  ;;  %v7123_v14 = vrot.slane %v7121_v63, 7  ;;  %v7124_v41 = vshll.u32 %v18102_v29, 16  ;;  %v7152_v0 = vshrl.u32 %v18120_v50, 16  ;;  %v7133_v20 = vshll.u32 %v18111_v38, 16 }
 0x53f   : > { %v7132_v27 = vrot.slane %v7130_v6, 7  ;;  %v7145_v62 = vrot.slane %v7143_v54, 7  ;;  %v7165_v44 = vshrl.u32 %v18130_v9, 16  ;;  %14219 = vmatprep.subr.bf16.mxu0 %v18125_v40  ;;  %v7146_v18 = vshll.u32 %v18113_v51, 16  ;;  %v18181_v54 = vld [vmem:[#allocation2 + $0xbc] sm:$0xf] }
 0x540   : > { %v7126_v10 = vor.u32 %v7124_v41, %v7123_v14  ;;  %v7128_v1 = vrot.slane %v7123_v14, 4  ;;  %v7154_v45 = vrot.slane %v7152_v0, 7  ;;  %v13042_v22 = vcombine.low %v7105_v46, %v7114_v33 }
 0x541   : > { %v7135_v52 = vor.u32 %v7133_v20, %v7132_v27  ;;  %v7155_v55 = vshll.u32 %v18120_v50, 16  ;;  %v7167_v43 = vrot.slane %v7165_v44, 7  ;;  %v7148_v8 = vor.u32 %v7146_v18, %v7145_v62  ;;  %v18194_v18 = vld [vmem:[#allocation2 + $0xd0] sm:$0xf] }
 0x542   : > { %v7127_v7 = vsel %vm16047_vm11, %v18070_v56, %v7126_v10  ;;  %v7168_v24 = vshll.u32 %v18130_v9, 16  ;;  %v7174_v2 = vshrl.u32 %v18148_v17, 16  ;;  %v7150_v13 = vrot.slane %v7145_v62, 4  ;;  %v18190_v62 = vld [vmem:[#allocation2 + $0xc0] sm:$0xf] }
 0x543   : > { %v7136_v11 = vsel %vm16047_vm11, %v7128_v1, %v7135_v52  ;;  %v7157_v49 = vor.u32 %v7155_v55, %v7154_v45  ;;  %v7177_v25 = vshll.u32 %v18148_v17, 16  ;;  %v7187_v56 = vshrl.u32 %v18154_v36, 16 }
 0x544   : > { %v13043_v15 = vcombine.low %v7127_v7, %v7136_v11  ;;  %v7170_v12 = vor.u32 %v7168_v24, %v7167_v43  ;;  %v7176_v21 = vrot.slane %v7174_v2, 7  ;;  %v7172_v35 = vrot.slane %v7167_v43, 4  ;;  %v18197_v43 = vld [vmem:[#allocation2 + $0xd4] sm:$0xf]  ;;  %v7012_v11 = vld [vmem:[#allocation2 + $0xe0] sm:$0x8] }
 0x545   : > { %14158 = vmatmul.mubr.msk.bf16.gmra.mrb[4].mxu0 %vm897_vm5, %v13042_v22  ;;  %v7196_v59 = vshrl.u32 %v18161_v23, 16  ;;  %v7149_v19 = vsel %vm16047_vm11, %v18128_v26, %v7148_v8  ;;  %v13030_v28 = vrot.slane %v7182_v30, 11  ;;  %v7209_v5 = vshrl.u32 %v18166_v47, 16 }
 0x546   : > { %14161 = vmatprep.mubr.msk.bf16.mxu0 %vm897_vm5, %v13043_v15  ;;  %v7179_v32 = vor.u32 %v7177_v25, %v7176_v21  ;;  %v7158_v39 = vsel %vm16047_vm11, %v7150_v13, %v7157_v49  ;;  %v7189_v63 = vrot.slane %v7187_v56, 7  ;;  %v7218_v6 = vshrl.u32 %v18169_v58, 16  ;;  %v18202_v15 = vld [vmem:[#allocation2 + $0xe4] sm:$0xf] }
 0x547   : > { %v7198_v46 = vrot.slane %v7196_v59, 7  ;;  %v7171_v33 = vsel %vm16047_vm11, %v18132_v60, %v7170_v12  ;;  %v7204_v14 = vshrl.u32 %v7003_v4, 16  ;;  %v7211_v26 = vrot.slane %v7209_v5, 7 }
 0x548   : > { %v7226_v41 = vshrl.u32 %v7006_v61, 16  ;;  %v7180_v30 = vsel %vm16047_vm11, %v7172_v35, %v7179_v32  ;;  %v7190_v0 = vshll.u32 %v18154_v36, 16  ;;  %v7199_v27 = vshll.u32 %v18161_v23, 16  ;;  %v18206_v35 = vld [vmem:[#allocation2 + $0xe8] sm:$0xf] }
 0x549   : > { %v7220_v20 = vrot.slane %v7218_v6, 7  ;;  %v13044_v44 = vcombine.low %v7149_v19, %v7158_v39  ;;  %v7212_v10 = vshll.u32 %v18166_v47, 16  ;;  %v7231_v1 = vshrl.u32 %v18181_v54, 16  ;;  %v7015_v32 = vld [vmem:[#allocation2 + $0xf4] sm:$0x8] }
 0x54a   : > { %v7248_v60 = vshrl.u32 %v7009_v3, 16  ;;  %v7192_v45 = vor.u32 %v7190_v0, %v7189_v63  ;;  %v7194_v22 = vrot.slane %v7189_v63, 4  ;;  %v7201_v52 = vor.u32 %v7199_v27, %v7198_v46  ;;  %v18216_v46 = vld [vmem:[#allocation2 + $0xf8] sm:$0xf]  ;;  %v18222_v0 = vld [vmem:[#allocation2 + $0xfc] sm:$0xf] }
 0x54b   : > { %v7221_v55 = vshll.u32 %v18169_v58, 16  ;;  %v13045_v7 = vcombine.low %v7171_v33, %v7180_v30  ;;  %v13031_v8 = vrot.slane %v7204_v14, 11  ;;  %v7214_v24 = vor.u32 %v7212_v10, %v7211_v26 }
 0x54c   : > { %v7240_v2 = vshrl.u32 %v18190_v62, 16  ;;  %v7216_v13 = vrot.slane %v7211_v26, 4  ;;  %v7253_v25 = vshrl.u32 %v18194_v18, 16  ;;  %v13032_v12 = vrot.slane %v7226_v41, 11 }
 0x54d   : > { %14162 = vmatmul.mubr.msk.bf16.gmra.mrb[8].mxu0 %vm897_vm5, %v13044_v44  ;;  %v7223_v49 = vor.u32 %v7221_v55, %v7220_v20  ;;  %v7233_v21 = vrot.slane %v7231_v1, 7  ;;  %v7262_v56 = vshrl.u32 %v18197_v43, 16  ;;  %v7193_v59 = vsel %vm16047_vm11, %v13030_v28, %v7192_v45 }
 0x54e   : > { %14165 = vmatprep.mubr.msk.bf16.mxu0 %vm897_vm5, %v13045_v7  ;;  %v7202_v4 = vsel %vm16047_vm11, %v7194_v22, %v7201_v52  ;;  %v13033_v61 = vrot.slane %v7248_v60, 11  ;;  %v7270_v19 = vshrl.u32 %v7012_v11, 16  ;;  %v7215_v5 = vsel %vm16047_vm11, %v13031_v8, %v7214_v24  ;;  %v7018_v60 = vld [vmem:[#allocation2 + $0x108] sm:$0x8]  ;;  %v7021_v7 = vld [vmem:[#allocation2 + $0x11c] sm:$0x8] }
 0x54f   : > { %v7234_v3 = vshll.u32 %v18181_v54, 16  ;;  %v7242_v39 = vrot.slane %v7240_v2, 7  ;;  %v7275_v63 = vshrl.u32 %v18202_v15, 16  ;;  %v7224_v6 = vsel %vm16047_vm11, %v7216_v13, %v7223_v49 }
 0x550   : > { %v7255_v28 = vrot.slane %v7253_v25, 7  ;;  %v7264_v33 = vrot.slane %v7262_v56, 7  ;;  %v7284_v14 = vshrl.u32 %v18206_v35, 16  ;;  %v13046_v26 = vcombine.low %v7193_v59, %v7202_v4 }
 0x551   : > { %v7236_v41 = vor.u32 %v7234_v3, %v7233_v21  ;;  %v7243_v30 = vshll.u32 %v18190_v62, 16  ;;  %v7292_v27 = vshrl.u32 %v7015_v32, 16  ;;  %v7238_v20 = vrot.slane %v7233_v21, 4  ;;  %v18234_v32 = vld [vmem:[#allocation2 + $0x10c] sm:$0xf] }
 0x552   : > { %v7256_v44 = vshll.u32 %v18194_v18, 16  ;;  %v7265_v10 = vshll.u32 %v18197_v43, 16  ;;  %v7297_v1 = vshrl.u32 %v18216_v46, 16  ;;  %v13047_v45 = vcombine.low %v7215_v5, %v7224_v6 }
 0x553   : > { %v7245_v22 = vor.u32 %v7243_v30, %v7242_v39  ;;  %v7277_v52 = vrot.slane %v7275_v63, 7  ;;  %v7286_v55 = vrot.slane %v7284_v14, 7  ;;  %v7260_v24 = vrot.slane %v7255_v28, 4  ;;  %v18243_v14 = vld [vmem:[#allocation2 + $0x110] sm:$0xf] }
 0x554   : > { %v7258_v8 = vor.u32 %v7256_v44, %v7255_v28  ;;  %v7267_v2 = vor.u32 %v7265_v10, %v7264_v33  ;;  %v7306_v11 = vshrl.u32 %v18222_v0, 16  ;;  %v13034_v13 = vrot.slane %v7270_v19, 11  ;;  %v18248_v30 = vld [vmem:[#allocation2 + $0x120] sm:$0xf] }
 0x555   : > { %14166 = vmatmul.mubr.msk.bf16.gmra.mrb[12].mxu0 %vm897_vm5, %v13046_v26  ;;  %v7278_v49 = vshll.u32 %v18202_v15, 16  ;;  %v7287_v25 = vshll.u32 %v18206_v35, 16  ;;  %v7314_v21 = vshrl.u32 %v7018_v60, 16  ;;  %v7237_v56 = vsel %vm16047_vm11, %v13032_v12, %v7236_v41 }
 0x556   : > { %14169 = vmatprep.mubr.msk.bf16.mxu0 %vm897_vm5, %v13047_v45  ;;  %v13035_v59 = vrot.slane %v7292_v27, 11  ;;  %v7299_v4 = vrot.slane %v7297_v1, 7  ;;  %v7336_v5 = vshrl.u32 %v7021_v7, 16  ;;  %v7246_v3 = vsel %vm16047_vm11, %v7238_v20, %v7245_v22  ;;  %v18250_v27 = vld [vmem:[#allocation2 + $0x124] sm:$0xf] }
 0x557   : > { %v7280_v39 = vor.u32 %v7278_v49, %v7277_v52  ;;  %v7282_v63 = vrot.slane %v7277_v52, 4  ;;  %v7289_v6 = vor.u32 %v7287_v25, %v7286_v55  ;;  %v7259_v19 = vsel %vm16047_vm11, %v13033_v61, %v7258_v8  ;;  %v18253_v1 = vld [vmem:[#allocation2 + $0x138] sm:$0xf] }
 0x558   : > { %v7268_v28 = vsel %vm16047_vm11, %v7260_v24, %v7267_v2  ;;  %v7300_v33 = vshll.u32 %v18216_v46, 16  ;;  %v7308_v12 = vrot.slane %v7306_v11, 7  ;;  %v18245_v26 = vrot.slane %v7314_v21, 11 }
 0x559   : > { %v7319_v41 = vshrl.u32 %v18234_v32, 16  ;;  %v13048_v20 = vcombine.low %v7237_v56, %v7246_v3  ;;  %v7309_v61 = vshll.u32 %v18222_v0, 16  ;;  %v13037_v10 = vrot.slane %v7336_v5, 11 }
 0x55a   : > { %v7302_v44 = vor.u32 %v7300_v33, %v7299_v4  ;;  %v13049_v60 = vcombine.low %v7259_v19, %v7268_v28  ;;  %v7281_v45 = vsel %vm16047_vm11, %v13034_v13, %v7280_v39  ;;  %v7290_v22 = vsel %vm16047_vm11, %v7282_v63, %v7289_v6  ;;  %v18281_v28 = vld [vmem:[#allocation2 + $0x134] sm:$0xf] }
 0x55b   : > { %v7328_v52 = vshrl.u32 %v18243_v14, 16  ;;  %v7304_v55 = vrot.slane %v7299_v4, 4  ;;  %v7311_v7 = vor.u32 %v7309_v61, %v7308_v12  ;;  %v7341_v8 = vshrl.u32 %v18248_v30, 16 }
 0x55c   : > { %v7350_v24 = vshrl.u32 %v18250_v27, 16  ;;  %v7321_v2 = vrot.slane %v7319_v41, 7  ;;  %v7322_v11 = vshll.u32 %v18234_v32, 16  ;;  %v7372_v13 = vshrl.u32 %v18253_v1, 16 }
 0x55d   : > { %14170 = vmatmul.mubr.msk.bf16.gmra.mrb[16].mxu0 %vm897_vm5, %v13048_v20  ;;  %v13091_v49 = vcombine.low %v18078_v16, %v18080_v42  ;;  %v13050_v25 = vcombine.low %v7281_v45, %v7290_v22  ;;  %v7303_v21 = vsel %vm16047_vm11, %v13035_v59, %v7302_v44  ;;  %v7331_v56 = vshll.u32 %v18243_v14, 16  ;;  %v8186_v16 = vld [vmem:[#allocation2 + $0x8] sm:$0xf]  ;;  %v8187_v42 = vld [vmem:[#allocation2 + $0xc] sm:$0xf] }
 0x55e   : > { %14173 = vmatprep.mubr.msk.bf16.mxu0 %vm897_vm5, %v13049_v60  ;;  %v13092_v4 = vcombine.low %v18082_v34, %v18088_v31  ;;  %v7330_v5 = vrot.slane %v7328_v52, 7  ;;  %v13093_v3 = vcombine.low %v18094_v37, %v18096_v48  ;;  %v13094_v39 = vcombine.low %v18102_v29, %v18111_v38 }
 0x55f   : > { %v13095_v63 = vcombine.low %v18113_v51, %v18120_v50  ;;  %v7312_v6 = vsel %vm16047_vm11, %v7304_v55, %v7311_v7  ;;  %v7343_v19 = vrot.slane %v7341_v8, 7  ;;  %v7352_v59 = vrot.slane %v7350_v24, 7  ;;  %v7024_v8 = vld [vmem:[#allocation2 + $0x130] sm:$0x8]  ;;  %v8189_v51 = vld [vmem:[#allocation2 + $0x1c] sm:$0xf] }
 0x560   : > { %v13096_v33 = vcombine.low %v18130_v9, %v18148_v17  ;;  %v7324_v12 = vor.u32 %v7322_v11, %v7321_v2  ;;  %v7344_v61 = vshll.u32 %v18248_v30, 16  ;;  %v7353_v60 = vshll.u32 %v18250_v27, 16  ;;  %v8188_v50 = vld [vmem:[#allocation2 + $0x10] sm:$0x1] }
 0x561   : > { %v13051_v52 = vcombine.low %v7303_v21, %v7312_v6  ;;  %v7326_v55 = vrot.slane %v7321_v2, 4  ;;  %v7333_v7 = vor.u32 %v7331_v56, %v7330_v5  ;;  %v7363_v24 = vshrl.u32 %v18281_v28, 16 }
 0x562   : > { %v7346_v11 = vor.u32 %v7344_v61, %v7343_v19  ;;  %v7348_v44 = vrot.slane %v7343_v19, 4  ;;  %v7355_v20 = vor.u32 %v7353_v60, %v7352_v59  ;;  %v13102_v41 = vcombine.low %v18216_v46, %v18222_v0 }
 0x563   : > { %v13103_v45 = vcombine.low %v18234_v32, %v18243_v14  ;;  %v7358_v22 = vshrl.u32 %v7024_v8, 16  ;;  %v7325_v2 = vsel %vm16047_vm11, %v18245_v26, %v7324_v12  ;;  %v7334_v21 = vsel %vm16047_vm11, %v7326_v55, %v7333_v7  ;;  %v15197_v55 = vld [vmem:[%s15398_s11] sm:$0xff]  ;;  %v15198_v7 = vld [vmem:[%s15398_s11 + $0x8] sm:$0xff] }
 0x564   : > { %v7374_v56 = vrot.slane %v7372_v13, 7  ;;  %v7347_v5 = vsel %vm16047_vm11, %v13037_v10, %v7346_v11  ;;  %v7356_v6 = vsel %vm16047_vm11, %v7348_v44, %v7355_v20  ;;  %v7366_v19 = vshll.u32 %v18281_v28, 16  ;;  %v15199_v11 = vld [vmem:[%s15398_s11 + $0x10] sm:$0xff] }
 0x565   : > { %14174 = vmatmul.mubr.msk.bf16.gmra.mrb[20].mxu0 %vm897_vm5, %v13050_v25  ;;  %v7365_v25 = vrot.slane %v7363_v24, 7  ;;  %v7375_v59 = vshll.u32 %v18253_v1, 16  ;;  %v13052_v61 = vcombine.low %v7325_v2, %v7334_v21  ;;  %v13038_v60 = vrot.slane %v7358_v22, 11  ;;  %v15200_v2 = vld [vmem:[%s15398_s11 + $0x18] sm:$0xff] }
 0x566   : > { %14177 = vmatprep.mubr.msk.bf16.mxu0 %vm897_vm5, %v13051_v52  ;;  %v13053_v26 = vcombine.low %v7347_v5, %v7356_v6  ;;  %v13104_v10 = vcombine.low %v18248_v30, %v18250_v27  ;;  %v13105_v20 = vcombine.low %v18281_v28, %v18253_v1  ;;  %v256_v8 = vpack.c.bf16 %v15198_v7, %v15197_v55  ;;  %v18336_v6 = vld [vmem:[%s19601_s4 + $0x10] sm:$0xff]   ;;  %v8210_v28 = vld [vmem:[#allocation2 + $0xa8] sm:$0xf] }
 0x567   : > { %v7368_v12 = vor.u32 %v7366_v19, %v7365_v25  ;;  %v7370_v52 = vrot.slane %v7365_v25, 4  ;;  %v7377_v13 = vor.u32 %v7375_v59, %v7374_v56  ;;  %v257_v21 = vpack.c.bf16 %v15200_v2, %v15199_v11  ;;  %v15201_v25 = vld [vmem:[%s15398_s11 + $0x20] sm:$0xff]  ;;  %v15202_v56 = vld [vmem:[%s15398_s11 + $0x28] sm:$0xff]  ;;  %v15203_v19 = vld [vmem:[%s15398_s11 + $0x30] sm:$0xff] }
 0x568   : > { %v258_v5 = vpack.c.bf16 %v15202_v56, %v15201_v25  ;;  %v15204_v59 = vld [vmem:[%s15398_s11 + $0x38] sm:$0xff]  ;;  %v15211_v7 = vld [vmem:[%s15398_s11 + $0x70] sm:$0xff]  ;;  %v15213_v11 = vld [vmem:[%s15398_s11 + $0x80] sm:$0xff]  ;;  %v19641_v34 = vcombine.low %v18154_v36, %v18161_v23  ;;  %v8235_v31 = vshrl.u32 %v8186_v16, 16  ;;  %v8238_v37 = vshll.u32 %v8186_v16, 16 }
 0x569   : > { %v7369_v44 = vsel %vm16047_vm11, %v13038_v60, %v7368_v12  ;;  %v7378_v22 = vsel %vm16047_vm11, %v7370_v52, %v7377_v13  ;;  %v15205_v60 = vld [vmem:[%s15398_s11 + $0x40] sm:$0xff]  ;;  %v15207_v52 = vld [vmem:[%s15398_s11 + $0x50] sm:$0xff]  ;;  %v15214_v2 = vld [vmem:[%s15398_s11 + $0x88] sm:$0xff]  ;;  %v8244_v48 = vshll.u32 %v8187_v42, 16  ;;  %v8248_v29 = vshrl.u32 %v8187_v42, 16 }
 0x56a   : > { %v13054_v24 = vcombine.low %v7369_v44, %v7378_v22  ;;  %v15209_v44 = vld [vmem:[%s15398_s11 + $0x60] sm:$0xff]  ;;  %v15210_v22 = vld [vmem:[%s15398_s11 + $0x68] sm:$0xff]  ;;  %v15215_v25 = vld [vmem:[%s15398_s11 + $0x90] sm:$0xff]  ;;  %v19642_v38 = vcombine.low %v18166_v47, %v18169_v58  ;;  %v8237_v9 = vrot.slane %v8235_v31, 4  ;;  %v8240_v17 = vrot.slane %v8238_v37, 5 }
 0x56b   : > { %v262_v55 = vpack.c.bf16 %v15210_v22, %v15209_v44  ;;  %v15216_v56 = vld [vmem:[%s15398_s11 + $0x98] sm:$0xff]  ;;  %v15223_v44 = vld [vmem:[%s15398_s11 + $0xd0] sm:$0xff]  ;;  %v8259_v36 = vshrl.u32 %v8189_v51, 16  ;;  %v8262_v23 = vshll.u32 %v8189_v51, 16 }
 0x56c   : > { %v15224_v22 = vld [vmem:[%s15398_s11 + $0xd8] sm:$0xff]  ;;  %v8241_v47 = vor.u32 %v8240_v17, %v8237_v9 }
 0x56d   : > { %14178 = vmatmul.mubr.msk.bf16.gmra.mrb[24].mxu0 %vm897_vm5, %v13052_v61  ;;  %v259_v61 = vpack.c.bf16 %v15204_v59, %v15203_v19  ;;  %v15217_v19 = vld [vmem:[%s15398_s11 + $0xa0] sm:$0xff]  ;;  %v15218_v59 = vld [vmem:[%s15398_s11 + $0xa8] sm:$0xff] }
 0x56e   : > { %14181 = vmatprep.mubr.msk.bf16.mxu0 %vm897_vm5, %v13053_v26  ;;  %v15206_v26 = vld [vmem:[%s15398_s11 + $0x48] sm:$0xff] }
 0x56f   : > { %v260_v12 = vpack.c.bf16 %v15206_v26, %v15205_v60  ;;  %v15219_v60 = vld [vmem:[%s15398_s11 + $0xb0] sm:$0xff]  ;;  %v15220_v26 = vld [vmem:[%s15398_s11 + $0xb8] sm:$0xff] }
 0x575   : > { %14182 = vmatmul.mubr.msk.bf16.gmra.mrb[28].mxu0 %vm897_vm5, %v13054_v24 }
 0x576   : > { %14187 = vmatprep.mubr.msk.bf16.mxu0 %vm273_vm1, %v256_v8  ;;  %v15212_v8 = vld [vmem:[%s15398_s11 + $0x78] sm:$0xff] }
 0x577   : > { %v263_v24 = vpack.c.bf16 %v15212_v8, %v15211_v7  ;;  %v15225_v7 = vld [vmem:[%s15398_s11 + $0xe0] sm:$0xff]  ;;  %v15226_v8 = vld [vmem:[%s15398_s11 + $0xe8] sm:$0xff] }
 0x57d   : > { %14188 = vmatmul.mubr.msk.bf16.vlgmr.msra.gmra.mrb[0].mxu0 %vm273_vm1, %v257_v21  ;;  %v264_v21 = vpack.c.bf16 %v15214_v2, %v15213_v11  ;;  %v15227_v11 = vld [vmem:[%s15398_s11 + $0xf0] sm:$0xff]  ;;  %v15228_v2 = vld [vmem:[%s15398_s11 + $0xf8] sm:$0xff] }
 0x57e   : > { %14220 = vmatpush3.bf16.msra.mxu0 %v18125_v40  ;;  %14191 = vmatprep.mubr.msk.bf16.mxu0 %vm273_vm1, %v258_v5  ;;  %v15208_v40 = vld [vmem:[%s15398_s11 + $0x58] sm:$0xff]  ;;  %v265_v5 = vpack.c.bf16 %v15216_v56, %v15215_v25  ;;  %v15229_v25 = vld [vmem:[#allocation2 + $0x8] sm:$0xf]  ;;  %v15230_v56 = vld [vmem:[#allocation2 + $0xc] sm:$0xf] }
 0x57f   : > { %14253 = vmatprep.subr.bf16.mxu0 %v18336_v6  ;;  %v261_v13 = vpack.c.bf16 %v15208_v40, %v15207_v52  ;;  %v15221_v52 = vld [vmem:[%s15398_s11 + $0xc0] sm:$0xff]  ;;  %v15222_v40 = vld [vmem:[%s15398_s11 + $0xc8] sm:$0xff] }
 0x585   : > { %14192 = vmatmul.mubr.msk.bf16.gmra.mrb[4].mxu0 %vm273_vm1, %v259_v61  ;;  %v266_v61 = vpack.c.bf16 %v15218_v59, %v15217_v19  ;;  %v18385_v19 = vld [vmem:[%s19601_s4 + $0x18] sm:$0xff]   ;;  %v19644_v59 = vcombine.low %v18194_v18, %v18197_v43 }
 0x586   : > { %14195 = vmatprep.mubr.msk.bf16.mxu0 %vm273_vm1, %v260_v12  ;;  %v267_v12 = vpack.c.bf16 %v15220_v26, %v15219_v60  ;;  %v8264_v60 = vrot.slane %v8262_v23, 5 }
 0x58d   : > { %14196 = vmatmul.mubr.msk.bf16.gmra.mrb[8].mxu0 %vm273_vm1, %v261_v13  ;;  %v268_v13 = vpack.c.bf16 %v15222_v40, %v15221_v52  ;;  %v8192_v52 = vld [vmem:[#allocation2 + $0x30] sm:$0xf] }
 0x58e   : > { %14199 = vmatprep.mubr.msk.bf16.mxu0 %vm273_vm1, %v262_v55  ;;  %v269_v55 = vpack.c.bf16 %v15224_v22, %v15223_v44  ;;  %v8195_v22 = vld [vmem:[#allocation2 + $0x44] sm:$0xf]  ;;  %v8283_v18 = vshrl.u32 %v8192_v52, 16  ;;  %v8286_v43 = vshll.u32 %v8192_v52, 16 }
 0x595   : > { %14200 = vmatmul.mubr.msk.bf16.gmra.mrb[12].mxu0 %vm273_vm1, %v263_v24  ;;  %v270_v24 = vpack.c.bf16 %v15226_v8, %v15225_v7  ;;  %v8198_v8 = vld [vmem:[#allocation2 + $0x58] sm:$0xf] }
 0x596   : > { %14203 = vmatprep.mubr.msk.bf16.mxu0 %vm273_vm1, %v264_v21  ;;  %v271_v21 = vpack.c.bf16 %v15228_v2, %v15227_v11  ;;  %v8331_v31 = vshrl.u32 %v8198_v8, 16  ;;  %v8334_v37 = vshll.u32 %v8198_v8, 16 }
 0x59d   : > { %14204 = vmatmul.mubr.msk.bf16.gmra.mrb[16].mxu0 %vm273_vm1, %v265_v5  ;;  %v13090_v5 = vcombine.low %v15229_v25, %v15230_v56  ;;  %v8307_v56 = vshrl.u32 %v8195_v22, 16 }
 0x59e   : > { %14207 = vmatprep.mubr.msk.bf16.mxu0 %vm273_vm1, %v266_v61  ;;  %v8261_v61 = vrot.slane %v8259_v36, 4 }
 0x5a0   : > { %v8265_v7 = vor.u32 %v8264_v60, %v8261_v61  ;;  %v8200_v60 = vld [vmem:[#allocation2 + $0x60] sm:$0x1] }
 0x5a2   : > { %v18454_v51 = vrot.slane %v8265_v7, 4 }
 0x5a5   : > { %14208 = vmatmul.mubr.msk.bf16.gmra.mrb[20].mxu0 %vm273_vm1, %v267_v12 }
 0x5a6   : > { %14211 = vmatprep.mubr.msk.bf16.mxu0 %vm273_vm1, %v268_v13 }
 0x5ad   : > { %14212 = vmatmul.mubr.msk.bf16.gmra.mrb[24].mxu0 %vm273_vm1, %v269_v55  ;;  %v8196_v55 = vld [vmem:[#allocation2 + $0x48] sm:$0xf] }
 0x5ae   : > { %14215 = vmatprep.mubr.msk.bf16.mxu0 %vm273_vm1, %v270_v24  ;;  %v8199_v24 = vld [vmem:[#allocation2 + $0x5c] sm:$0xf]  ;;  %v8316_v16 = vshll.u32 %v8196_v55, 16  ;;  %v8320_v42 = vshrl.u32 %v8196_v55, 16 }
 0x5b0   : > { %v8322_v23 = vrot.slane %v8320_v42, 4  ;;  %v8205_v42 = vld [vmem:[#allocation2 + $0x84] sm:$0xf] }
 0x5b5   : > { %14216 = vmatmul.mubr.msk.bf16.gmra.mrb[28].mxu0 %vm273_vm1, %v271_v21 }
 0x5b6   : > { %14221 = vmatprep.mubr.msk.bf16.mxu0 %vm897_vm5, %v13090_v5  ;;  %v8310_v5 = vshll.u32 %v8195_v22, 16 }
 0x5b8   : > { %v8312_v36 = vrot.slane %v8310_v5, 5 }
 0x5bd   : > { %14222 = vmatmul.mubr.msk.bf16.vlgmr.msra.gmra.mrb[0].mxu0 %vm897_vm5, %v13091_v49  ;;  %v18421_v49 = vrot.slane %v8244_v48, 5  ;;  %v8340_v48 = vshll.u32 %v8199_v24, 16 }
 0x5be   : > { %14254 = vmatpush3.bf16.msra.mxu0 %v18336_v6  ;;  %14225 = vmatprep.mubr.msk.bf16.mxu0 %vm897_vm5, %v13092_v4  ;;  %v8250_v4 = vrot.slane %v8248_v29, 4  ;;  %v19643_v6 = vcombine.low %v18181_v54, %v18190_v62  ;;  %v8193_v54 = vld [vmem:[#allocation2 + $0x34] sm:$0xf]  ;;  %v18436_v62 = vrot.slane %v8241_v47, 4  ;;  %v8344_v29 = vshrl.u32 %v8199_v24, 16 }
 0x5bf   : > { %14287 = vmatprep.subr.bf16.mxu0 %v18385_v19  ;;  %v8292_v21 = vshll.u32 %v8193_v54, 16  ;;  %v8296_v25 = vshrl.u32 %v8193_v54, 16  ;;  %v8350_v24 = vshll.u32 %v8200_v60, 16 }
 0x5c0   : > { %v8251_v58 = vor.u32 %v8250_v4, %v18421_v49  ;;  %v8201_v4 = vld [vmem:[#allocation2 + $0x6c] sm:$0xf]  ;;  %v8346_v47 = vrot.slane %v8344_v29, 4 }
 0x5c1   : > { %v18461_v46 = vrot.slane %v8292_v21, 5  ;;  %v8298_v0 = vrot.slane %v8296_v25, 4  ;;  %v8203_v25 = vld [vmem:[#allocation2 + $0x74] sm:$0x1] }
 0x5c2   : > { %v18438_v44 = vrot.slane %v8251_v58, 4  ;;  %v8204_v58 = vld [vmem:[#allocation2 + $0x80] sm:$0xf]  ;;  %v8374_v29 = vshll.u32 %v8203_v25, 16 }
 0x5c3   : > { %v8299_v52 = vor.u32 %v8298_v0, %v18461_v46  ;;  %v8379_v55 = vshrl.u32 %v8204_v58, 16  ;;  %v8382_v7 = vshll.u32 %v8204_v58, 16  ;;  %v8392_v0 = vshrl.u32 %v8205_v42, 16  ;;  %v18550_v25 = vld [vmem:[%s19601_s4 + $0x20] sm:$0xff]  }
 0x5c5   : > { %14226 = vmatmul.mubr.msk.bf16.gmra.mrb[4].mxu0 %vm897_vm5, %v13093_v3  ;;  %v8190_v3 = vld [vmem:[#allocation2 + $0x20] sm:$0xf]  ;;  %v18484_v14 = vrot.slane %v8299_v52, 4  ;;  %v8381_v30 = vrot.slane %v8379_v55, 4  ;;  %v8384_v27 = vrot.slane %v8382_v7, 5  ;;  %v8427_v55 = vshrl.u32 %v8210_v28, 16 }
 0x5c6   : > { %14229 = vmatprep.mubr.msk.bf16.mxu0 %vm897_vm5, %v13094_v39  ;;  %v8254_v39 = vshll.u32 %v8188_v50, 16  ;;  %v8272_v26 = vshrl.u32 %v8190_v3, 16  ;;  %v8194_v50 = vld [vmem:[#allocation2 + $0x38] sm:$0x1]  ;;  %v8430_v7 = vshll.u32 %v8210_v28, 16 }
 0x5c7   : > { %v8302_v61 = vshll.u32 %v8194_v50, 16  ;;  %v8206_v50 = vld [vmem:[#allocation2 + $0x88] sm:$0x1] }
 0x5c8   : > { %v18432_v40 = vrot.slane %v8254_v39, 5  ;;  %v8274_v11 = vrot.slane %v8272_v26, 4  ;;  %v8202_v39 = vld [vmem:[#allocation2 + $0x70] sm:$0xf]  ;;  %v8355_v26 = vshrl.u32 %v8201_v4, 16 }
 0x5c9   : > { %v8364_v54 = vshll.u32 %v8202_v39, 16  ;;  %v18482_v21 = vrot.slane %v8302_v61, 5 }
 0x5ca   : > { %v8257_v9 = vsel %vm16610_vm14, %v18438_v44, %v18432_v40 }
 0x5cb   : > { %v18488_v5 = vrot.slane %v8364_v54, 5 }
 0x5cd   : > { %14230 = vmatmul.mubr.msk.bf16.gmra.mrb[8].mxu0 %vm897_vm5, %v13095_v63  ;;  %v8191_v63 = vld [vmem:[#allocation2 + $0x24] sm:$0x1] }
 0x5ce   : > { %14233 = vmatprep.mubr.msk.bf16.mxu0 %vm897_vm5, %v13096_v33  ;;  %v8268_v33 = vshll.u32 %v8190_v3, 16  ;;  %v8278_v12 = vshll.u32 %v8191_v63, 16  ;;  %v8309_v3 = vrot.slane %v8307_v56, 4  ;;  %v8333_v63 = vrot.slane %v8331_v31, 4 }
 0x5cf   : > { %v8357_v56 = vrot.slane %v8355_v26, 4 }
 0x5d0   : > { %v18434_v13 = vrot.slane %v8268_v33, 5  ;;  %v18440_v2 = vrot.slane %v8278_v12, 5  ;;  %v8336_v33 = vrot.slane %v8334_v37, 5  ;;  %v8358_v12 = vshll.u32 %v8201_v4, 16  ;;  %v18490_v4 = vld [vmem:[#allocation2 + $0x1c] sm:$0xf] }
 0x5d1   : > { %v8313_v44 = vor.u32 %v8312_v36, %v8309_v3 }
 0x5d2   : > { %v8275_v17 = vor.u32 %v8274_v11, %v18434_v13  ;;  %v8360_v32 = vrot.slane %v8358_v12, 5  ;;  %v8271_v3 = vsel %vm16610_vm14, %v18454_v51, %v18434_v13  ;;  %v8305_v13 = vsel %vm16610_vm14, %v18484_v14, %v18482_v21 }
 0x5d3   : > { %v8385_v51 = vor.u32 %v8384_v27, %v8381_v30  ;;  %v8394_v12 = vrot.slane %v8392_v0, 4  ;;  %v18562_v30 = vld [vmem:[#allocation2 + $0x5c] sm:$0xf] }
 0x5d5   : > { %14234 = vmatmul.mubr.msk.bf16.gmra.mrb[12].mxu0 %vm897_vm5, %v19641_v34  ;;  %v19645_v34 = vcombine.low %v18202_v15, %v18206_v35  ;;  %v8285_v15 = vrot.slane %v8283_v18, 4  ;;  %v8288_v35 = vrot.slane %v8286_v43, 5  ;;  %v18473_v18 = vrot.slane %v8275_v17, 4 }
 0x5d6   : > { %14237 = vmatprep.mubr.msk.bf16.mxu0 %vm897_vm5, %v19642_v38  ;;  %v8247_v38 = vsel %vm16610_vm14, %v18436_v62, %v18421_v49  ;;  %v18463_v49 = vrot.slane %v8316_v16, 5  ;;  %v8368_v62 = vshrl.u32 %v8202_v39, 16  ;;  %v8337_v43 = vor.u32 %v8336_v33, %v8333_v63  ;;  %v18507_v39 = vld [vmem:[#allocation2 + $0x30] sm:$0xf]  ;;  %v18509_v63 = vld [vmem:[#allocation2 + $0x34] sm:$0xf] }
 0x5d7   : > { %v8388_v17 = vshll.u32 %v8205_v42, 16  ;;  %v8281_v36 = vsel %vm16610_vm14, %v18473_v18, %v18440_v2  ;;  %v8398_v33 = vshll.u32 %v8206_v50, 16  ;;  %v18543_v54 = vrot.slane %v8385_v51, 4  ;;  %v8213_v18 = vld [vmem:[#allocation2 + $0xbc] sm:$0xf] }
 0x5d8   : > { %v8323_v22 = vor.u32 %v8322_v23, %v18463_v49  ;;  %v8370_v16 = vrot.slane %v8368_v62, 4  ;;  %v18505_v23 = vld [vmem:[#allocation2 + $0x20] sm:$0xf]  ;;  %v8209_v42 = vld [vmem:[#allocation2 + $0x9c] sm:$0x1]  ;;  %v8454_v0 = vshll.u32 %v8213_v18, 16 }
 0x5d9   : > { %v18545_v62 = vrot.slane %v8398_v33, 5  ;;  %v8212_v50 = vld [vmem:[#allocation2 + $0xb0] sm:$0x1] }
 0x5da   : > { %v8324_v31 = vrot.slane %v8323_v22, 4  ;;  %v8456_v28 = vrot.slane %v8454_v0, 5 }
 0x5dd   : > { %14238 = vmatmul.mubr.msk.bf16.gmra.mrb[16].mxu0 %vm897_vm5, %v19643_v6  ;;  %v18465_v6 = vrot.slane %v8340_v48, 5  ;;  %v8352_v48 = vrot.slane %v8350_v24, 5 }
 0x5de   : > { %14241 = vmatprep.mubr.msk.bf16.mxu0 %vm897_vm5, %v19644_v59  ;;  %v8289_v59 = vor.u32 %v8288_v35, %v8285_v15  ;;  %v13125_v15 = vcombine.low %v8247_v38, %v8257_v9  ;;  %v8361_v35 = vor.u32 %v8360_v32, %v8357_v56  ;;  %v8371_v9 = vor.u32 %v8370_v16, %v18488_v5  ;;  %v18552_v56 = vld [vmem:[#allocation2 + $0x44] sm:$0xf] }
 0x5df   : > { %v8347_v8 = vor.u32 %v8346_v47, %v18465_v6 }
 0x5e0   : > { %v18480_v11 = vrot.slane %v8289_v59, 4  ;;  %v18530_v59 = vrot.slane %v8374_v29, 5  ;;  %v18533_v61 = vrot.slane %v8361_v35, 4  ;;  %v18539_v26 = vrot.slane %v8371_v9, 4  ;;  %v8216_v29 = vld [vmem:[#allocation2 + $0xd0] sm:$0xf] }
 0x5e1   : > { %v8348_v37 = vrot.slane %v8347_v8, 4  ;;  %v13126_v8 = vcombine.low %v8271_v3, %v8281_v36  ;;  %v8432_v35 = vrot.slane %v8430_v7, 5  ;;  %v8217_v36 = vld [vmem:[#allocation2 + $0xd4] sm:$0xf]  ;;  %v8475_v51 = vshrl.u32 %v8216_v29, 16 }
 0x5e2   : > { %v8295_v38 = vsel %vm16610_vm14, %v18480_v11, %v18461_v46  ;;  %v8367_v16 = vsel %vm16610_vm14, %v18533_v61, %v18488_v5  ;;  %v8478_v33 = vshll.u32 %v8216_v29, 16  ;;  %v18584_v7 = vld [vmem:[#allocation2 + $0x6c] sm:$0xf] }
 0x5e3   : > { %v8353_v58 = vsel %vm16610_vm14, %v8348_v37, %v8352_v48  ;;  %v13127_v32 = vcombine.low %v8295_v38, %v8305_v13 }
 0x5e5   : > { %14242 = vmatmul.mubr.msk.bf16.gmra.mrb[20].mxu0 %vm897_vm5, %v19645_v34  ;;  %v8314_v34 = vrot.slane %v8313_v44, 4 }
 0x5e6   : > { %14245 = vmatprep.mubr.msk.bf16.mxu0 %vm897_vm5, %v13102_v41  ;;  %v8197_v41 = vld [vmem:[#allocation2 + $0x4c] sm:$0x1] }
 0x5e7   : > { %v8326_v40 = vshll.u32 %v8197_v41, 16  ;;  %v8207_v41 = vld [vmem:[#allocation2 + $0x94] sm:$0xf]  ;;  %v8319_v2 = vsel %vm16610_vm14, %v8314_v34, %v18463_v49  ;;  %v8208_v49 = vld [vmem:[#allocation2 + $0x98] sm:$0xf] }
 0x5e8   : > { %v8403_v1 = vshrl.u32 %v8207_v41, 16  ;;  %v8406_v52 = vshll.u32 %v8207_v41, 16  ;;  %v8412_v44 = vshll.u32 %v8208_v49, 16  ;;  %v8416_v22 = vshrl.u32 %v8208_v49, 16  ;;  %v18558_v34 = vld [vmem:[#allocation2 + $0x48] sm:$0xf] }
 0x5e9   : > { %v8215_v49 = vld [vmem:[#allocation2 + $0xc4] sm:$0x1] }
 0x5ea   : > { %v8405_v24 = vrot.slane %v8403_v1, 4  ;;  %v18565_v37 = vrot.slane %v8412_v44, 5  ;;  %v8418_v48 = vrot.slane %v8416_v22, 4 }
 0x5ec   : > { %v8419_v44 = vor.u32 %v8418_v48, %v18565_v37 }
 0x5ed   : > { %14246 = vmatmul.mubr.msk.bf16.gmra.mrb[24].mxu0 %vm897_vm5, %v13103_v45  ;;  %v18486_v45 = vrot.slane %v8326_v40, 5  ;;  %v8211_v40 = vld [vmem:[#allocation2 + $0xac] sm:$0xf] }
 0x5ee   : > { %14249 = vmatprep.mubr.msk.bf16.mxu0 %vm897_vm5, %v13104_v10  ;;  %v8338_v10 = vrot.slane %v8337_v43, 4  ;;  %v8214_v43 = vld [vmem:[#allocation2 + $0xc0] sm:$0xf]  ;;  %v8436_v11 = vshll.u32 %v8211_v40, 16  ;;  %v8440_v21 = vshrl.u32 %v8211_v40, 16  ;;  %v8377_v40 = vsel %vm16610_vm14, %v18539_v26, %v18530_v59 }
 0x5ef   : > { %v8329_v46 = vsel %vm16610_vm14, %v8324_v31, %v18486_v45  ;;  %v18560_v31 = vld [vmem:[#allocation2 + $0x58] sm:$0xf]  ;;  %v8460_v41 = vshll.u32 %v8214_v43, 16  ;;  %v8464_v3 = vshrl.u32 %v8214_v43, 16 }
 0x5f0   : > { %v8343_v47 = vsel %vm16610_vm14, %v8338_v10, %v18465_v6  ;;  %v18541_v6 = vrot.slane %v8388_v17, 5  ;;  %v13128_v14 = vcombine.low %v8319_v2, %v8329_v46  ;;  %v8408_v10 = vrot.slane %v8406_v52, 5 }
 0x5f1   : > { %v13129_v45 = vcombine.low %v8343_v47, %v8353_v58  ;;  %v8451_v17 = vshrl.u32 %v8213_v18, 16  ;;  %v18574_v13 = vrot.slane %v8436_v11, 5  ;;  %v8442_v2 = vrot.slane %v8440_v21, 4  ;;  %v18586_v18 = vld [vmem:[#allocation2 + $0x70] sm:$0xf] }
 0x5f2   : > { %v8395_v27 = vor.u32 %v8394_v12, %v18541_v6  ;;  %v8422_v47 = vshll.u32 %v8209_v42, 16  ;;  %v8446_v58 = vshll.u32 %v8212_v50, 16  ;;  %v8484_v12 = vshll.u32 %v8217_v36, 16  ;;  %v18589_v21 = vld [vmem:[#allocation2 + $0x80] sm:$0xf] }
 0x5f3   : > { %v8453_v1 = vrot.slane %v8451_v17, 4  ;;  %v8488_v52 = vshrl.u32 %v8217_v36, 16  ;;  %v18582_v22 = vrot.slane %v8460_v41, 5  ;;  %v8480_v11 = vrot.slane %v8478_v33, 5  ;;  %v18704_v17 = vld [vmem:[#allocation2 + $0x14c] sm:$0xf] }
 0x5f4   : > { %v8396_v46 = vrot.slane %v8395_v27, 4  ;;  %v8391_v59 = vsel %vm16610_vm14, %v18543_v54, %v18541_v6  ;;  %v18599_v42 = vrot.slane %v8422_v47, 5  ;;  %v8470_v27 = vshll.u32 %v8215_v49, 16  ;;  %19654 = vst [vmem:[#allocation14_spill] sm:$0xff] %v18704_v17 }
 0x5f5   : > { %14250 = vmatmul.mubr.msk.bf16.gmra.mrb[28].mxu0 %vm897_vm5, %v13105_v20  ;;  %v8457_v48 = vor.u32 %v8456_v28, %v8453_v1  ;;  %v18602_v29 = vrot.slane %v8484_v12, 5  ;;  %v8490_v50 = vrot.slane %v8488_v52, 4  ;;  %v8420_v54 = vrot.slane %v8419_v44, 4  ;;  %v18618_v52 = vld [vmem:[#allocation2 + $0x94] sm:$0xf] }
 0x5f6   : > { %14255 = vmatprep.mubr.msk.bf16.mxu0 %vm897_vm5, %v13125_v15  ;;  %v8429_v15 = vrot.slane %v8427_v55, 4  ;;  %v8466_v55 = vrot.slane %v8464_v3, 4  ;;  %v8401_v6 = vsel %vm16610_vm14, %v8396_v46, %v18545_v62  ;;  %v8448_v0 = vrot.slane %v8446_v58, 5  ;;  %v8223_v58 = vld [vmem:[#allocation2 + $0xfc] sm:$0xf] }
 0x5f7   : > { %v18615_v1 = vrot.slane %v8470_v27, 5  ;;  %v8491_v62 = vor.u32 %v8490_v50, %v18602_v29  ;;  %v18620_v44 = vld [vmem:[#allocation2 + $0x98] sm:$0xf]  ;;  %v18631_v27 = vld [vmem:[#allocation2 + $0xac] sm:$0xf] }
 0x5f8   : > { %v8433_v43 = vor.u32 %v8432_v35, %v8429_v15  ;;  %v8219_v15 = vld [vmem:[#allocation2 + $0xe4] sm:$0xf]  ;;  %v8220_v35 = vld [vmem:[#allocation2 + $0xe8] sm:$0xf]  ;;  %v8467_v36 = vor.u32 %v8466_v55, %v18582_v22  ;;  %v13130_v55 = vcombine.low %v8367_v16, %v8377_v40  ;;  %v8532_v16 = vshll.u32 %v8223_v58, 16 }
 0x5f9   : > { %v8502_v47 = vshll.u32 %v8219_v15, 16  ;;  %v8508_v49 = vshll.u32 %v8220_v35, 16  ;;  %v8512_v46 = vshrl.u32 %v8220_v35, 16  ;;  %v18642_v5 = vrot.slane %v8491_v62, 4  ;;  %v18669_v62 = vld [vmem:[#allocation2 + $0xc0] sm:$0xf] }
 0x5fa   : > { %v8434_v41 = vrot.slane %v8433_v43, 4  ;;  %v13131_v43 = vcombine.low %v8391_v59, %v8401_v6  ;;  %v8536_v6 = vshrl.u32 %v8223_v58, 16  ;;  %v18673_v58 = vld [vmem:[#allocation2 + $0xd4] sm:$0xf]  ;;  %v18700_v40 = vld [vmem:[#allocation2 + $0x138] sm:$0xf] }
 0x5fb   : > { %v18637_v50 = vrot.slane %v8502_v47, 5  ;;  %v18644_v61 = vrot.slane %v8512_v46, 4  ;;  %v18671_v46 = vld [vmem:[#allocation2 + $0xd0] sm:$0xf]  ;;  %19652 = vst [vmem:[#allocation12_spill] sm:$0xff] %v18700_v40  ;;  %v18706_v9 = vrot.slane %v8532_v16, 5 }
 0x5fc   : > { %v8538_v38 = vrot.slane %v8536_v6, 4  ;;  %v8224_v16 = vld [vmem:[#allocation2 + $0x100] sm:$0x1] }
 0x5fd   : > { %14256 = vmatmul.mubr.msk.bf16.vlgmr.msra.gmra.mrb[0].mxu0 %vm897_vm5, %v13126_v8  ;;  %v8443_v8 = vor.u32 %v8442_v2, %v18574_v13  ;;  %v8228_v20 = vld [vmem:[#allocation2 + $0x120] sm:$0xf] }
 0x5fe   : > { %14288 = vmatpush3.bf16.msra.mxu0 %v18385_v19  ;;  %14259 = vmatprep.mubr.msk.bf16.mxu0 %vm897_vm5, %v13127_v32  ;;  %v8409_v19 = vor.u32 %v8408_v10, %v8405_v24  ;;  %v8477_v24 = vrot.slane %v8475_v51, 4  ;;  %v18591_v32 = vld [vmem:[#allocation2 + $0x84] sm:$0xf]  ;;  %v8218_v10 = vld [vmem:[#allocation2 + $0xd8] sm:$0x1] }
 0x5ff   : > { %14321 = vmatprep.subr.bf16.mxu0 %v18550_v25  ;;  %v8444_v3 = vrot.slane %v8443_v8, 4  ;;  %v8222_v51 = vld [vmem:[#allocation2 + $0xf8] sm:$0xf]  ;;  %v8494_v33 = vshll.u32 %v8218_v10, 16  ;;  %v8468_v8 = vrot.slane %v8467_v36, 4 }
 0x600   : > { %v18597_v26 = vrot.slane %v8409_v19, 4  ;;  %v8481_v2 = vor.u32 %v8480_v11, %v8477_v24  ;;  %v8499_v19 = vshrl.u32 %v8219_v15, 16  ;;  %v8523_v28 = vshrl.u32 %v8222_v51, 16  ;;  %v18629_v11 = vld [vmem:[#allocation2 + $0xa8] sm:$0xf] }
 0x601   : > { %v8526_v12 = vshll.u32 %v8222_v51, 16  ;;  %v18633_v10 = vrot.slane %v8494_v33, 5  ;;  %v18639_v15 = vrot.slane %v8508_v49, 5  ;;  %v8225_v36 = vld [vmem:[#allocation2 + $0x10c] sm:$0xf]  ;;  %v8425_v33 = vsel %vm16610_vm14, %v8420_v54, %v18599_v42 }
 0x602   : > { %v18627_v24 = vrot.slane %v8481_v2, 4  ;;  %v18649_v59 = vrot.slane %v8523_v28, 4  ;;  %v8415_v51 = vsel %vm16610_vm14, %v18597_v26, %v18565_v37  ;;  %v8449_v47 = vsel %vm16610_vm14, %v8444_v3, %v8448_v0  ;;  %v18667_v49 = vld [vmem:[#allocation2 + $0xbc] sm:$0xf]  ;;  %v18675_v37 = vld [vmem:[#allocation2 + $0xe4] sm:$0xf] }
 0x603   : > { %v18651_v35 = vrot.slane %v8526_v12, 5  ;;  %v18677_v26 = vld [vmem:[#allocation2 + $0xe8] sm:$0xf]  ;;  %v18679_v42 = vld [vmem:[#allocation2 + $0xf8] sm:$0xf]  ;;  %v13132_v12 = vcombine.low %v8415_v51, %v8425_v33  ;;  %v8473_v2 = vsel %vm16610_vm14, %v8468_v8, %v18615_v1  ;;  %v8547_v33 = vshrl.u32 %v8225_v36, 16 }
 0x604   : > { %v18681_v54 = vld [vmem:[#allocation2 + $0xfc] sm:$0xf]  ;;  %v18687_v0 = vld [vmem:[#allocation2 + $0x120] sm:$0xf]  ;;  %v18689_v3 = vld [vmem:[#allocation2 + $0x124] sm:$0xf]  ;;  %v8487_v6 = vsel %vm16610_vm14, %v18627_v24, %v18602_v29 }
 0x605   : > { %14260 = vmatmul.mubr.msk.bf16.gmra.mrb[4].mxu0 %vm897_vm5, %v13128_v14  ;;  %19646 = vst [vmem:[#allocation6_spill] sm:$0xff] %v18681_v54  ;;  %19649 = vst [vmem:[#allocation9_spill] sm:$0xff] %v18687_v0  ;;  %v18691_v28 = vld [vmem:[#allocation2 + $0x134] sm:$0xf]  ;;  %v18702_v14 = vld [vmem:[#allocation2 + $0x148] sm:$0xf] }
 0x606   : > { %14263 = vmatprep.mubr.msk.bf16.mxu0 %vm897_vm5, %v13129_v45  ;;  %v18613_v45 = vrot.slane %v8457_v48, 4  ;;  %v18635_v48 = vrot.slane %v8499_v19, 4  ;;  %v8439_v19 = vsel %vm16610_vm14, %v8434_v41, %v18574_v13  ;;  %v18683_v13 = vld [vmem:[#allocation2 + $0x10c] sm:$0xf]  ;;  %v18685_v41 = vld [vmem:[#allocation2 + $0x110] sm:$0xf] }
 0x607   : > { %19647 = vst [vmem:[#allocation7_spill] sm:$0xff] %v18683_v13  ;;  %19648 = vst [vmem:[#allocation8_spill] sm:$0xff] %v18685_v41  ;;  %v8226_v51 = vld [vmem:[#allocation2 + $0x110] sm:$0xf]  ;;  %v8571_v29 = vshrl.u32 %v8228_v20, 16  ;;  %v8574_v24 = vshll.u32 %v8228_v20, 16 }
 0x608   : > { %19650 = vst [vmem:[#allocation10_spill] sm:$0xff] %v18689_v3  ;;  %19651 = vst [vmem:[#allocation11_spill] sm:$0xff] %v18691_v28  ;;  %v8556_v60 = vshll.u32 %v8226_v51, 16  ;;  %v8560_v8 = vshrl.u32 %v8226_v51, 16  ;;  %v8542_v51 = vshll.u32 %v8224_v16, 16 }
 0x609   : > { %19653 = vst [vmem:[#allocation13_spill] sm:$0xff] %v18702_v14  ;;  %v8573_v16 = vrot.slane %v8571_v29, 4  ;;  %v8576_v20 = vrot.slane %v8574_v24, 5 }
 0x60d   : > { %14264 = vmatmul.mubr.msk.bf16.gmra.mrb[8].mxu0 %vm897_vm5, %v13130_v55  ;;  %v13133_v55 = vcombine.low %v8439_v19, %v8449_v47  ;;  %v8550_v19 = vshll.u32 %v8225_v36, 16  ;;  %v8221_v47 = vld [vmem:[#allocation2 + $0xec] sm:$0x1]  ;;  %v8505_v36 = vor.u32 %v18637_v50, %v18635_v48  ;;  %v8549_v50 = vrot.slane %v8547_v33, 4 }
 0x60e   : > { %14267 = vmatprep.mubr.msk.bf16.mxu0 %vm897_vm5, %v13131_v43  ;;  %v8463_v43 = vsel %vm16610_vm14, %v18613_v45, %v18582_v22  ;;  %v8515_v22 = vor.u32 %v18644_v61, %v18639_v15  ;;  %v8518_v40 = vshll.u32 %v8221_v47, 16  ;;  %v8227_v45 = vld [vmem:[#allocation2 + $0x114] sm:$0x1]  ;;  %v8558_v61 = vrot.slane %v8556_v60, 5 }
 0x60f   : > { %v13134_v1 = vcombine.low %v8463_v43, %v8473_v2  ;;  %v8497_v2 = vsel %vm16610_vm14, %v18642_v5, %v18633_v10  ;;  %v8539_v43 = vor.u32 %v8538_v38, %v18706_v9  ;;  %v8552_v14 = vrot.slane %v8550_v19, 5  ;;  %v8231_v10 = vld [vmem:[#allocation2 + $0x134] sm:$0xf]  ;;  %v8232_v38 = vld [vmem:[#allocation2 + $0x138] sm:$0xf] }
 0x610   : > { %v8562_v47 = vrot.slane %v8560_v8, 4  ;;  %v13135_v28 = vcombine.low %v8487_v6, %v8497_v2  ;;  %v8506_v3 = vrot.slane %v8505_v36, 4  ;;  %v8516_v0 = vrot.slane %v8515_v22, 4  ;;  %v8230_v19 = vld [vmem:[#allocation2 + $0x128] sm:$0x1] }
 0x611   : > { %v8520_v41 = vrot.slane %v8518_v40, 5  ;;  %v8540_v13 = vrot.slane %v8539_v43, 4  ;;  %v8553_v60 = vor.u32 %v8552_v14, %v8549_v50  ;;  %v8595_v8 = vshrl.u32 %v8231_v10, 16 }
 0x612   : > { %v8563_v33 = vor.u32 %v8562_v47, %v8558_v61  ;;  %v8598_v22 = vshll.u32 %v8231_v10, 16  ;;  %v8604_v40 = vshll.u32 %v8232_v38, 16  ;;  %v8608_v6 = vshrl.u32 %v8232_v38, 16  ;;  %v8916_v47 = vld [vmem:[#allocation2 + $0x18] sm:$0x8] }
 0x613   : > { %v8577_v36 = vor.u32 %v8576_v20, %v8573_v16  ;;  %v8554_v43 = vrot.slane %v8553_v60, 4  ;;  %v8597_v29 = vrot.slane %v8595_v8, 4 }
 0x614   : > { %v8600_v24 = vrot.slane %v8598_v22, 5  ;;  %v8610_v50 = vrot.slane %v8608_v6, 4 }
 0x615   : > { %14268 = vmatmul.mubr.msk.bf16.gmra.mrb[12].mxu0 %vm897_vm5, %v13132_v12  ;;  %v8229_v12 = vld [vmem:[#allocation2 + $0x124] sm:$0xf] }
 0x616   : > { %14271 = vmatprep.mubr.msk.bf16.mxu0 %vm897_vm5, %v13133_v55  ;;  %v8529_v55 = vor.u32 %v18651_v35, %v18649_v59  ;;  %v8580_v17 = vshll.u32 %v8229_v12, 16  ;;  %v8584_v48 = vshrl.u32 %v8229_v12, 16  ;;  %v8544_v59 = vrot.slane %v8542_v51, 5 }
 0x617   : > { %v8566_v35 = vshll.u32 %v8227_v45, 16  ;;  %v8511_v45 = vsel %vm16610_vm14, %v8506_v3, %v18639_v15  ;;  %v8564_v51 = vrot.slane %v8563_v33, 4  ;;  %v8233_v15 = vld [vmem:[#allocation2 + $0x13c] sm:$0x1]  ;;  %v8606_v3 = vrot.slane %v8604_v40, 5 }
 0x618   : > { %v8530_v5 = vrot.slane %v8529_v55, 4  ;;  %v8582_v54 = vrot.slane %v8580_v17, 5  ;;  %v8586_v12 = vrot.slane %v8584_v48, 4  ;;  %v8545_v14 = vsel %vm16610_vm14, %v8540_v13, %v8544_v59 }
 0x619   : > { %v8590_v55 = vshll.u32 %v8230_v19, 16  ;;  %v8578_v13 = vrot.slane %v8577_v36, 4  ;;  %v8559_v59 = vsel %vm16610_vm14, %v8554_v43, %v8558_v61  ;;  %v8601_v38 = vor.u32 %v8600_v24, %v8597_v29  ;;  %v8922_v29 = vld [vmem:[#allocation2 + $0x40] sm:$0x8] }
 0x61a   : > { %v8535_v17 = vsel %vm16610_vm14, %v8530_v5, %v18706_v9  ;;  %v8587_v2 = vor.u32 %v8586_v12, %v8582_v54  ;;  %v8979_v9 = vshrl.u32 %v18505_v23, 16  ;;  %v8614_v16 = vshll.u32 %v8233_v15, 16 }
 0x61b   : > { %v8592_v5 = vrot.slane %v8590_v55, 5  ;;  %v8611_v20 = vor.u32 %v8610_v50, %v8606_v3  ;;  %v8965_v12 = vshrl.u32 %v8916_v47, 16  ;;  %v8583_v8 = vsel %vm16610_vm14, %v8578_v13, %v8582_v54 }
 0x61c   : > { %v8588_v10 = vrot.slane %v8587_v2, 4  ;;  %v8981_v33 = vrot.slane %v8979_v9, 7  ;;  %v8973_v40 = vshll.u32 %v18490_v4, 16  ;;  %v8602_v6 = vrot.slane %v8601_v38, 4 }
 0x61d   : > { %14272 = vmatmul.mubr.msk.bf16.gmra.mrb[16].mxu0 %vm897_vm5, %v13134_v1  ;;  %v8521_v1 = vsel %vm16610_vm14, %v8516_v0, %v8520_v41  ;;  %v8970_v41 = vshrl.u32 %v18490_v4, 16  ;;  %v13137_v0 = vcombine.low %v8535_v17, %v8545_v14  ;;  %v8616_v61 = vrot.slane %v8614_v16, 5 }
 0x61e   : > { %14275 = vmatprep.mubr.msk.bf16.mxu0 %vm897_vm5, %v13135_v28  ;;  %v8568_v28 = vrot.slane %v8566_v35, 5  ;;  %v13136_v48 = vcombine.low %v8511_v45, %v8521_v1  ;;  %v8593_v22 = vsel %vm16610_vm14, %v8588_v10, %v8592_v5  ;;  %v8982_v45 = vshll.u32 %v18505_v23, 16  ;;  %v8919_v1 = vld [vmem:[#allocation2 + $0x2c] sm:$0x8]  ;;  %v8925_v5 = vld [vmem:[#allocation2 + $0x54] sm:$0x8] }
 0x61f   : > { %v8972_v60 = vrot.slane %v8970_v41, 7  ;;  %v8992_v17 = vshrl.u32 %v18507_v39, 16  ;;  %v8612_v14 = vrot.slane %v8611_v20, 4  ;;  %v9001_v2 = vshrl.u32 %v18509_v63, 16 }
 0x620   : > { %v8569_v35 = vsel %vm16610_vm14, %v8564_v51, %v8568_v28  ;;  %v13158_v28 = vrot.slane %v8965_v12, 11  ;;  %v13139_v55 = vcombine.low %v8583_v8, %v8593_v22  ;;  %v8984_v54 = vor.u32 %v8982_v45, %v8981_v33 }
 0x621   : > { %v13138_v19 = vcombine.low %v8559_v59, %v8569_v35  ;;  %v8975_v36 = vor.u32 %v8973_v40, %v8972_v60  ;;  %v8977_v43 = vrot.slane %v8972_v60, 4  ;;  %v8987_v51 = vshrl.u32 %v8919_v1, 16 }
 0x622   : > { %v9014_v24 = vshrl.u32 %v18552_v56, 16  ;;  %v8607_v15 = vsel %vm16610_vm14, %v8602_v6, %v8606_v3  ;;  %v8994_v50 = vrot.slane %v8992_v17, 7  ;;  %v8617_v41 = vsel %vm16610_vm14, %v8612_v14, %v8616_v61  ;;  %v8928_v61 = vld [vmem:[#allocation2 + $0x68] sm:$0x8] }
 0x623   : > { %v8995_v47 = vshll.u32 %v18507_v39, 16  ;;  %v9003_v9 = vrot.slane %v9001_v2, 7  ;;  %v8985_v13 = vsel %vm16047_vm11, %v8977_v43, %v8984_v54  ;;  %v9009_v10 = vshrl.u32 %v8922_v29, 16 }
 0x624   : > { %v9036_v59 = vshrl.u32 %v18560_v31, 16  ;;  %v9045_v35 = vshrl.u32 %v18562_v30, 16  ;;  %v13159_v3 = vrot.slane %v8987_v51, 11  ;;  %v9004_v38 = vshll.u32 %v18509_v63, 16 }
 0x625   : > { %14276 = vmatmul.mubr.msk.bf16.gmra.mrb[20].mxu0 %vm897_vm5, %v13136_v48  ;;  %v9023_v48 = vshrl.u32 %v18558_v34, 16  ;;  %v9016_v16 = vrot.slane %v9014_v24, 7  ;;  %v13140_v12 = vcombine.low %v8607_v15, %v8617_v41  ;;  %v8997_v60 = vor.u32 %v8995_v47, %v8994_v50 }
 0x626   : > { %14279 = vmatprep.mubr.msk.bf16.mxu0 %vm897_vm5, %v13137_v0  ;;  %v8976_v0 = vsel %vm16047_vm11, %v13158_v28, %v8975_v36  ;;  %v8999_v33 = vrot.slane %v8994_v50, 4  ;;  %v9006_v22 = vor.u32 %v9004_v38, %v9003_v9  ;;  %v9026_v40 = vshll.u32 %v18558_v34, 16 }
 0x627   : > { %v9025_v20 = vrot.slane %v9023_v48, 7  ;;  %v13176_v8 = vcombine.low %v8976_v0, %v8985_v13  ;;  %v9031_v6 = vshrl.u32 %v8925_v5, 16  ;;  %v13160_v45 = vrot.slane %v9009_v10, 11 }
 0x628   : > { %v9038_v1 = vrot.slane %v9036_v59, 7  ;;  %v9047_v17 = vrot.slane %v9045_v35, 7  ;;  %v9058_v14 = vshrl.u32 %v18584_v7, 16  ;;  %v9021_v36 = vrot.slane %v9016_v16, 4  ;;  %v8931_v59 = vld [vmem:[#allocation2 + $0x7c] sm:$0x8] }
 0x629   : > { %v9028_v2 = vor.u32 %v9026_v40, %v9025_v20  ;;  %v9039_v43 = vshll.u32 %v18560_v31, 16  ;;  %v9048_v54 = vshll.u32 %v18562_v30, 16  ;;  %v9053_v51 = vshrl.u32 %v8928_v61, 16  ;;  %v8934_v20 = vld [vmem:[#allocation2 + $0x90] sm:$0x8] }
 0x62a   : > { %v8998_v29 = vsel %vm16047_vm11, %v13159_v3, %v8997_v60  ;;  %v9007_v24 = vsel %vm16047_vm11, %v8999_v33, %v9006_v22  ;;  %v13161_v48 = vrot.slane %v9031_v6, 11  ;;  %v9043_v50 = vrot.slane %v9038_v1, 4  ;;  %v18810_v33 = vld [vmem:[%s19601_s4 + $0x28] sm:$0xff]  }
 0x62b   : > { %v9041_v15 = vor.u32 %v9039_v43, %v9038_v1  ;;  %v9050_v41 = vor.u32 %v9048_v54, %v9047_v17  ;;  %v9060_v0 = vrot.slane %v9058_v14, 7  ;;  %v9029_v9 = vsel %vm16047_vm11, %v9021_v36, %v9028_v2 }
 0x62c   : > { %v13162_v10 = vrot.slane %v9053_v51, 11  ;;  %v9061_v5 = vshll.u32 %v18584_v7, 16  ;;  %v9080_v35 = vshrl.u32 %v18589_v21, 16  ;;  %v9089_v3 = vshrl.u32 %v18591_v32, 16  ;;  %v8937_v51 = vld [vmem:[#allocation2 + $0xa4] sm:$0x8] }
 0x62d   : > { %14280 = vmatmul.mubr.msk.bf16.gmra.mrb[24].mxu0 %vm897_vm5, %v13138_v19  ;;  %v9017_v19 = vshll.u32 %v18552_v56, 16  ;;  %v13177_v38 = vcombine.low %v8998_v29, %v9007_v24  ;;  %v9111_v60 = vshrl.u32 %v18620_v44, 16  ;;  %v9051_v22 = vsel %vm16047_vm11, %v9043_v50, %v9050_v41 }
 0x62e   : > { %14283 = vmatprep.mubr.msk.bf16.mxu0 %vm897_vm5, %v13139_v55  ;;  %v9067_v55 = vshrl.u32 %v18586_v18, 16  ;;  %v9063_v40 = vor.u32 %v9061_v5, %v9060_v0  ;;  %v9065_v6 = vrot.slane %v9060_v0, 4  ;;  %v9082_v1 = vrot.slane %v9080_v35, 7 }
 0x62f   : > { %v9019_v28 = vor.u32 %v9017_v19, %v9016_v16  ;;  %v9070_v16 = vshll.u32 %v18586_v18, 16  ;;  %v9091_v17 = vrot.slane %v9089_v3, 7  ;;  %v9097_v14 = vshrl.u32 %v8934_v20, 16 }
 0x630   : > { %v9069_v13 = vrot.slane %v9067_v55, 7  ;;  %v9083_v36 = vshll.u32 %v18589_v21, 16  ;;  %v9113_v55 = vrot.slane %v9111_v60, 7  ;;  %v9064_v43 = vsel %vm16047_vm11, %v13162_v10, %v9063_v40 }
 0x631   : > { %v9020_v47 = vsel %vm16047_vm11, %v13160_v45, %v9019_v28  ;;  %v9075_v45 = vshrl.u32 %v8931_v59, 16  ;;  %v9092_v54 = vshll.u32 %v18591_v32, 16  ;;  %v9133_v29 = vshrl.u32 %v18631_v27, 16 }
 0x632   : > { %v13178_v19 = vcombine.low %v9020_v47, %v9029_v9  ;;  %v9072_v61 = vor.u32 %v9070_v16, %v9069_v13  ;;  %v9114_v50 = vshll.u32 %v18620_v44, 16  ;;  %v9085_v41 = vor.u32 %v9083_v36, %v9082_v1  ;;  %v8940_v16 = vld [vmem:[#allocation2 + $0xb8] sm:$0x8] }
 0x633   : > { %v9087_v0 = vrot.slane %v9082_v1, 4  ;;  %v9094_v47 = vor.u32 %v9092_v54, %v9091_v17  ;;  %v13164_v9 = vrot.slane %v9097_v14, 11  ;;  %v9119_v59 = vshrl.u32 %v8937_v51, 16 }
 0x634   : > { %v9073_v24 = vsel %vm16047_vm11, %v9065_v6, %v9072_v61  ;;  %v9116_v5 = vor.u32 %v9114_v50, %v9113_v55  ;;  %v9146_v20 = vshrl.u32 %v18667_v49, 16  ;;  %v9168_v55 = vshrl.u32 %v18671_v46, 16 }
 0x635   : > { %14284 = vmatmul.mubr.msk.bf16.gmra.mrb[28].mxu0 %vm897_vm5, %v13140_v12  ;;  %v9102_v12 = vshrl.u32 %v18618_v52, 16  ;;  %v13180_v35 = vcombine.low %v9064_v43, %v9073_v24  ;;  %v13165_v61 = vrot.slane %v9119_v59, 11  ;;  %v9158_v51 = vshll.u32 %v18669_v62, 16 }
 0x636   : > { %14289 = vmatprep.mubr.msk.bf16.mxu0 %vm897_vm5, %v13176_v8  ;;  %v9042_v8 = vsel %vm16047_vm11, %v13161_v48, %v9041_v15  ;;  %v13163_v48 = vrot.slane %v9075_v45, 11  ;;  %v9105_v15 = vshll.u32 %v18618_v52, 16  ;;  %v9141_v45 = vshrl.u32 %v8940_v16, 16 }
 0x637   : > { %v13179_v28 = vcombine.low %v9042_v8, %v9051_v22  ;;  %v9104_v2 = vrot.slane %v9102_v12, 7  ;;  %v9155_v12 = vshrl.u32 %v18669_v62, 16  ;;  %v9127_v8 = vshll.u32 %v18629_v11, 16 }
 0x638   : > { %v9086_v60 = vsel %vm16047_vm11, %v13163_v48, %v9085_v41  ;;  %v9136_v22 = vshll.u32 %v18631_v27, 16 }
 0x639   : > { %v9107_v13 = vor.u32 %v9105_v15, %v9104_v2  ;;  %v9109_v10 = vrot.slane %v9104_v2, 4  ;;  %v9157_v36 = vrot.slane %v9155_v12, 7  ;;  %v9149_v2 = vshll.u32 %v18667_v49, 16 }
 0x63a   : > { %v13166_v15 = vrot.slane %v9141_v45, 11 }
 0x63b   : > { %v9108_v40 = vsel %vm16047_vm11, %v13164_v9, %v9107_v13  ;;  %v9117_v6 = vsel %vm16047_vm11, %v9109_v10, %v9116_v5  ;;  %v9190_v9 = vshrl.u32 %v18675_v37, 16  ;;  %v9199_v13 = vshrl.u32 %v18677_v26, 16 }
 0x63c   : > { %v13182_v54 = vcombine.low %v9108_v40, %v9117_v6  ;;  %v9170_v5 = vrot.slane %v9168_v55, 7  ;;  %v9193_v40 = vshll.u32 %v18675_v37, 16  ;;  %v9212_v6 = vshrl.u32 %v18679_v42, 16  ;;  %v19656_v55 = vld [vmem:[#allocation7_spill] sm:$0xff] }
 0x63d   : > { %14290 = vmatmul.mubr.msk.bf16.vlgmr.msra.gmra.mrb[0].mxu0 %vm897_vm5, %v13177_v38  ;;  %v9135_v38 = vrot.slane %v9133_v29, 7  ;;  %v9177_v29 = vshrl.u32 %v18673_v58, 16 }
 0x63e   : > { %14322 = vmatpush3.bf16.msra.mxu0 %v18550_v25  ;;  %14293 = vmatprep.mubr.msk.bf16.mxu0 %vm897_vm5, %v13178_v19  ;;  %v9124_v25 = vshrl.u32 %v18629_v11, 16  ;;  %v9095_v19 = vsel %vm16047_vm11, %v9087_v0, %v9094_v47  ;;  %v9160_v0 = vor.u32 %v9158_v51, %v9157_v36  ;;  %v8946_v47 = vld [vmem:[#allocation2 + $0xe0] sm:$0x8] }
 0x63f   : > { %14355 = vmatprep.subr.bf16.mxu0 %v18810_v33  ;;  %v9138_v14 = vor.u32 %v9136_v22, %v9135_v38  ;;  %v13181_v43 = vcombine.low %v9086_v60, %v9095_v19  ;;  %v9179_v59 = vrot.slane %v9177_v29, 7  ;;  %v9180_v38 = vshll.u32 %v18673_v58, 16  ;;  %v8952_v29 = vld [vmem:[#allocation2 + $0x108] sm:$0x8] }
 0x640   : > { %v9126_v3 = vrot.slane %v9124_v25, 7  ;;  %v8943_v25 = vld [vmem:[#allocation2 + $0xcc] sm:$0x8]  ;;  %v9185_v16 = vshrl.u32 %v8946_v47, 16  ;;  %v9192_v60 = vrot.slane %v9190_v9, 7  ;;  %v9201_v19 = vrot.slane %v9199_v13, 7 }
 0x641   : > { %v9163_v10 = vshrl.u32 %v8943_v25, 16  ;;  %v9182_v45 = vor.u32 %v9180_v38, %v9179_v59  ;;  %v9215_v9 = vshll.u32 %v18679_v42, 16  ;;  %v9229_v13 = vshrl.u32 %v8952_v29, 16 }
 0x642   : > { %v9129_v1 = vor.u32 %v9127_v8, %v9126_v3  ;;  %v9131_v17 = vrot.slane %v9126_v3, 4  ;;  %v9171_v3 = vshll.u32 %v18671_v46, 16  ;;  %v9197_v51 = vrot.slane %v9192_v60, 4 }
 0x643   : > { %v13167_v8 = vrot.slane %v9163_v10, 11 }
 0x644   : > { %v9130_v24 = vsel %vm16047_vm11, %v13165_v61, %v9129_v1  ;;  %v9139_v48 = vsel %vm16047_vm11, %v9131_v17, %v9138_v14  ;;  %v9173_v22 = vor.u32 %v9171_v3, %v9170_v5  ;;  %v9175_v61 = vrot.slane %v9170_v5, 4  ;;  %v8949_v17 = vld [vmem:[#allocation2 + $0xf4] sm:$0x8]  ;;  %v19655_v14 = vld [vmem:[#allocation6_spill] sm:$0xff] }
 0x645   : > { %14294 = vmatmul.mubr.msk.bf16.gmra.mrb[4].mxu0 %vm897_vm5, %v13179_v28  ;;  %v9148_v28 = vrot.slane %v9146_v20, 7  ;;  %v9202_v1 = vshll.u32 %v18677_v26, 16 }
 0x646   : > { %14297 = vmatprep.mubr.msk.bf16.mxu0 %vm897_vm5, %v13180_v35  ;;  %v13183_v35 = vcombine.low %v9130_v24, %v9139_v48  ;;  %v19657_v24 = vld [vmem:[#allocation8_spill] sm:$0xff] }
 0x647   : > { %v9151_v50 = vor.u32 %v9149_v2, %v9148_v28  ;;  %v9153_v41 = vrot.slane %v9148_v28, 4  ;;  %v9221_v28 = vshrl.u32 %v19655_v14, 16  ;;  %v13168_v2 = vrot.slane %v9185_v16, 11 }
 0x648   : > { %v9204_v25 = vor.u32 %v9202_v1, %v9201_v19  ;;  %v9243_v48 = vshrl.u32 %v19657_v24, 16 }
 0x649   : > { %v9152_v20 = vsel %vm16047_vm11, %v13166_v15, %v9151_v50  ;;  %v9161_v12 = vsel %vm16047_vm11, %v9153_v41, %v9160_v0  ;;  %v9207_v15 = vshrl.u32 %v8949_v17, 16  ;;  %v9214_v50 = vrot.slane %v9212_v6, 7  ;;  %v19659_v17 = vld [vmem:[#allocation10_spill] sm:$0xff] }
 0x64a   : > { %v13184_v36 = vcombine.low %v9152_v20, %v9161_v12  ;;  %v9174_v41 = vsel %vm16047_vm11, %v13167_v8, %v9173_v22  ;;  %v9183_v0 = vsel %vm16047_vm11, %v9175_v61, %v9182_v45  ;;  %v9223_v47 = vrot.slane %v9221_v28, 7  ;;  %v8955_v22 = vld [vmem:[#allocation2 + $0x11c] sm:$0x8] }
 0x64b   : > { %v9205_v59 = vsel %vm16047_vm11, %v9197_v51, %v9204_v25  ;;  %v9245_v3 = vrot.slane %v9243_v48, 7  ;;  %v13185_v38 = vcombine.low %v9174_v41, %v9183_v0  ;;  %v13169_v16 = vrot.slane %v9207_v15, 11  ;;  %v19661_v51 = vld [vmem:[#allocation12_spill] sm:$0xff]  ;;  %v8958_v48 = vld [vmem:[#allocation2 + $0x130] sm:$0x8] }
 0x64c   : > { %v9217_v20 = vor.u32 %v9215_v9, %v9214_v50  ;;  %v9237_v12 = vshll.u32 %v19656_v55, 16  ;;  %v9246_v8 = vshll.u32 %v19657_v24, 16  ;;  %v13170_v45 = vrot.slane %v9229_v13, 11 }
 0x64d   : > { %14298 = vmatmul.mubr.msk.bf16.gmra.mrb[8].mxu0 %vm897_vm5, %v13181_v43  ;;  %v9234_v43 = vshrl.u32 %v19656_v55, 16  ;;  %v9265_v28 = vshrl.u32 %v19659_v17, 16  ;;  %v9287_v25 = vshrl.u32 %v19661_v51, 16  ;;  %v9251_v29 = vshrl.u32 %v8955_v22, 16  ;;  %v8961_v22 = vld [vmem:[#allocation2 + $0x144] sm:$0x8] }
 0x64e   : > { %14301 = vmatprep.mubr.msk.bf16.mxu0 %vm897_vm5, %v13182_v54  ;;  %v9195_v54 = vor.u32 %v9193_v40, %v9192_v60  ;;  %v9219_v60 = vrot.slane %v9214_v50, 4  ;;  %v19658_v40 = vld [vmem:[#allocation9_spill] sm:$0xff]  ;;  %v9218_v15 = vsel %vm16047_vm11, %v13169_v16, %v9217_v20 }
 0x64f   : > { %v9236_v10 = vrot.slane %v9234_v43, 7  ;;  %v9256_v6 = vshrl.u32 %v19658_v40, 16  ;;  %v19660_v43 = vld [vmem:[#allocation11_spill] sm:$0xff]  ;;  %v9267_v9 = vrot.slane %v9265_v28, 7 }
 0x650   : > { %v9196_v5 = vsel %vm16047_vm11, %v13168_v2, %v9195_v54  ;;  %v9248_v2 = vor.u32 %v9246_v8, %v9245_v3  ;;  %v9278_v54 = vshrl.u32 %v19660_v43, 16  ;;  %v13171_v3 = vrot.slane %v9251_v29, 11 }
 0x651   : > { %v13186_v61 = vcombine.low %v9196_v5, %v9205_v59  ;;  %v9239_v1 = vor.u32 %v9237_v12, %v9236_v10  ;;  %v9258_v41 = vrot.slane %v9256_v6, 7  ;;  %v9289_v59 = vrot.slane %v9287_v25, 7  ;;  %v19662_v6 = vld [vmem:[#allocation13_spill] sm:$0xff] }
 0x652   : > { %v9280_v5 = vrot.slane %v9278_v54, 7  ;;  %v9281_v12 = vshll.u32 %v19660_v43, 16  ;;  %v9295_v25 = vshrl.u32 %v8961_v22, 16  ;;  %v18958_v22 = vld [vmem:[#allocation2 + $0x5c] sm:$0xf] }
 0x653   : > { %v9240_v0 = vsel %vm16047_vm11, %v13170_v45, %v9239_v1  ;;  %v9263_v20 = vrot.slane %v9258_v41, 4  ;;  %v19663_v45 = vld [vmem:[#allocation14_spill] sm:$0xff] }
 0x654   : > { %v9309_v1 = vshrl.u32 %v19663_v45, 16 }
 0x655   : > { %14302 = vmatmul.mubr.msk.bf16.gmra.mrb[12].mxu0 %vm897_vm5, %v13183_v35  ;;  %v9224_v35 = vshll.u32 %v19655_v14, 16 }
 0x656   : > { %14305 = vmatprep.mubr.msk.bf16.mxu0 %vm897_vm5, %v13184_v36  ;;  %v9241_v36 = vrot.slane %v9236_v10, 4  ;;  %v9273_v10 = vshrl.u32 %v8958_v48, 16 }
 0x657   : > { %v9226_v19 = vor.u32 %v9224_v35, %v9223_v47  ;;  %v9259_v47 = vshll.u32 %v19658_v40, 16 }
 0x658   : > { %v9249_v13 = vsel %vm16047_vm11, %v9241_v36, %v9248_v2  ;;  %v13172_v28 = vrot.slane %v9273_v10, 11  ;;  %v9283_v36 = vor.u32 %v9281_v12, %v9280_v5  ;;  %v9285_v2 = vrot.slane %v9280_v5, 4 }
 0x659   : > { %v9227_v50 = vsel %vm16047_vm11, %v9219_v60, %v9226_v19  ;;  %v9261_v16 = vor.u32 %v9259_v47, %v9258_v41  ;;  %v9290_v60 = vshll.u32 %v19661_v51, 16  ;;  %v13188_v19 = vcombine.low %v9240_v0, %v9249_v13 }
 0x65a   : > { %v13187_v35 = vcombine.low %v9218_v15, %v9227_v50  ;;  %v9311_v50 = vrot.slane %v9309_v1, 7  ;;  %v9284_v41 = vsel %vm16047_vm11, %v13172_v28, %v9283_v36  ;;  %v9303_v47 = vshll.u32 %v19662_v6, 16  ;;  %v18970_v1 = vld [vmem:[#allocation2 + $0x98] sm:$0xf]  ;;  %v18972_v28 = vld [vmem:[#allocation2 + $0xa8] sm:$0xf] }
 0x65b   : > { %v9292_v54 = vor.u32 %v9290_v60, %v9289_v59  ;;  %v9262_v29 = vsel %vm16047_vm11, %v13171_v3, %v9261_v16  ;;  %v13173_v10 = vrot.slane %v9295_v25, 11  ;;  %v19664_v12 = vcombine.low %v18490_v4, %v18505_v23  ;;  %v18928_v60 = vld [vmem:[%s19601_s4 + $0x30] sm:$0xff]   ;;  %v18974_v36 = vld [vmem:[#allocation2 + $0xac] sm:$0xf] }
 0x65c   : > { %v19667_v4 = vcombine.low %v18560_v31, %v18562_v30  ;;  %v19668_v23 = vcombine.low %v18584_v7, %v18586_v18  ;;  %v18960_v31 = vld [vmem:[#allocation2 + $0x6c] sm:$0xf]  ;;  %v18962_v30 = vld [vmem:[#allocation2 + $0x70] sm:$0xf]  ;;  %v18966_v7 = vld [vmem:[#allocation2 + $0x84] sm:$0xf] }
 0x65d   : > { %14306 = vmatmul.mubr.msk.bf16.gmra.mrb[16].mxu0 %vm897_vm5, %v13185_v38  ;;  %v9268_v38 = vshll.u32 %v19659_v17, 16  ;;  %v9293_v0 = vsel %vm16047_vm11, %v9285_v2, %v9292_v54  ;;  %v18968_v18 = vld [vmem:[#allocation2 + $0x94] sm:$0xf]  ;;  %v18976_v2 = vld [vmem:[#allocation2 + $0xbc] sm:$0xf]  ;;  %v19692_v53 = vcombine.low %v18960_v31, %v18962_v30 }
 0x65e   : > { %14309 = vmatprep.mubr.msk.bf16.mxu0 %vm897_vm5, %v13186_v61  ;;  %v9300_v61 = vshrl.u32 %v19662_v6, 16  ;;  %v13190_v5 = vcombine.low %v9284_v41, %v9293_v0  ;;  %v18978_v54 = vld [vmem:[#allocation2 + $0xc0] sm:$0xf]  ;;  %v18980_v25 = vld [vmem:[#allocation2 + $0xd0] sm:$0xf]  ;;  %v19669_v41 = vcombine.low %v18589_v21, %v18591_v32 }
 0x65f   : > { %v9270_v8 = vor.u32 %v9268_v38, %v9267_v9  ;;  %v9312_v9 = vshll.u32 %v19663_v45, 16  ;;  %v18994_v0 = vld [vmem:[#allocation2 + $0xfc] sm:$0xf]  ;;  %v19008_v21 = vld [vmem:[#allocation2 + $0x120] sm:$0xf] }
 0x660   : > { %v9302_v15 = vrot.slane %v9300_v61, 7  ;;  %v18964_v61 = vld [vmem:[#allocation2 + $0x80] sm:$0xf]  ;;  %19670 = vst [vmem:[#allocation6_spill] sm:$0xff] %v18994_v0  ;;  %19674 = vst [vmem:[#allocation9_spill] sm:$0xff] %v19008_v21 }
 0x661   : > { %v9271_v48 = vsel %vm16047_vm11, %v9263_v20, %v9270_v8  ;;  %v9314_v3 = vor.u32 %v9312_v9, %v9311_v50  ;;  %v19666_v8 = vcombine.low %v18552_v56, %v18558_v34  ;;  %v18954_v56 = vld [vmem:[#allocation2 + $0x48] sm:$0xf]  ;;  %v18956_v34 = vld [vmem:[#allocation2 + $0x58] sm:$0xf]  ;;  %v18998_v9 = vld [vmem:[#allocation2 + $0x110] sm:$0xf] }
 0x662   : > { %v13189_v13 = vcombine.low %v9262_v29, %v9271_v48  ;;  %v9305_v59 = vor.u32 %v9303_v47, %v9302_v15  ;;  %v18982_v29 = vld [vmem:[#allocation2 + $0xd4] sm:$0xf]  ;;  %v18984_v48 = vld [vmem:[#allocation2 + $0xe4] sm:$0xf]  ;;  %v18988_v50 = vld [vmem:[#allocation2 + $0xf8] sm:$0xf] }
 0x663   : > { %v18996_v47 = vld [vmem:[#allocation2 + $0x10c] sm:$0xf]  ;;  %19672 = vst [vmem:[#allocation8_spill] sm:$0xff] %v18998_v9  ;;  %v19010_v32 = vld [vmem:[#allocation2 + $0x124] sm:$0xf] }
 0x664   : > { %v9306_v38 = vsel %vm16047_vm11, %v13173_v10, %v9305_v59  ;;  %19671 = vst [vmem:[#allocation7_spill] sm:$0xff] %v18996_v47  ;;  %19675 = vst [vmem:[#allocation10_spill] sm:$0xff] %v19010_v32  ;;  %v19012_v59 = vld [vmem:[#allocation2 + $0x134] sm:$0xf]  ;;  %v9956_v32 = vld [vmem:[#allocation2 + $0x6c] sm:$0xf] }
 0x665   : > { %14310 = vmatmul.mubr.msk.bf16.gmra.mrb[20].mxu0 %vm897_vm5, %v13187_v35  ;;  %v9307_v35 = vrot.slane %v9302_v15, 4  ;;  %v18986_v15 = vld [vmem:[#allocation2 + $0xe8] sm:$0xf]  ;;  %19676 = vst [vmem:[#allocation11_spill] sm:$0xff] %v19012_v59  ;;  %v10092_v9 = vshll.u32 %v9956_v32, 16 }
 0x666   : > { %14313 = vmatprep.mubr.msk.bf16.mxu0 %vm897_vm5, %v13188_v19  ;;  %v19665_v19 = vcombine.low %v18507_v39, %v18509_v63  ;;  %v18948_v39 = vld [vmem:[#allocation2 + $0x30] sm:$0xf]  ;;  %v18950_v63 = vld [vmem:[#allocation2 + $0x34] sm:$0xf]  ;;  %v9960_v0 = vld [vmem:[#allocation2 + $0x84] sm:$0xf] }
 0x667   : > { %v9315_v16 = vsel %vm16047_vm11, %v9307_v35, %v9314_v3  ;;  %v9950_v35 = vld [vmem:[#allocation2 + $0x44] sm:$0xf] }
 0x668   : > { %v13191_v20 = vcombine.low %v9306_v38, %v9315_v16  ;;  %v19018_v38 = vld [vmem:[#allocation2 + $0x138] sm:$0xf]  ;;  %v19020_v16 = vld [vmem:[#allocation2 + $0x148] sm:$0xf] }
 0x669   : > { %19677 = vst [vmem:[#allocation12_spill] sm:$0xff] %v19018_v38  ;;  %19678 = vst [vmem:[#allocation13_spill] sm:$0xff] %v19020_v16 }
 0x66d   : > { %14314 = vmatmul.mubr.msk.bf16.gmra.mrb[24].mxu0 %vm897_vm5, %v13189_v13  ;;  %v9946_v13 = vld [vmem:[#allocation2 + $0x24] sm:$0x1] }
 0x66e   : > { %14317 = vmatprep.mubr.msk.bf16.mxu0 %vm897_vm5, %v13190_v5  ;;  %v19673_v5 = vcombine.low %v18618_v52, %v18620_v44 }
 0x675   : > { %14318 = vmatmul.mubr.msk.bf16.gmra.mrb[28].mxu0 %vm897_vm5, %v13191_v20  ;;  %v19022_v20 = vld [vmem:[#allocation2 + $0x14c] sm:$0xf] }
 0x676   : > { %14323 = vmatprep.mubr.msk.bf16.mxu0 %vm897_vm5, %v19664_v12  ;;  %19679 = vst [vmem:[#allocation14_spill] sm:$0xff] %v19022_v20  ;;  %v19682_v12 = vcombine.low %v18671_v46, %v18673_v58 }
 0x67d   : > { %14324 = vmatmul.mubr.msk.bf16.vlgmr.msra.gmra.mrb[0].mxu0 %vm897_vm5, %v19665_v19  ;;  %v9947_v19 = vld [vmem:[#allocation2 + $0x30] sm:$0xf] }
 0x67e   : > { %14356 = vmatpush3.bf16.msra.mxu0 %v18810_v33  ;;  %14327 = vmatprep.mubr.msk.bf16.mxu0 %vm897_vm5, %v19666_v8  ;;  %v18952_v33 = vld [vmem:[#allocation2 + $0x44] sm:$0xf]  ;;  %v19680_v8 = vcombine.low %v18629_v11, %v18631_v27  ;;  %v19683_v11 = vcombine.low %v18675_v37, %v18677_v26  ;;  %v10017_v52 = vshrl.u32 %v9947_v19, 16  ;;  %v10020_v3 = vshll.u32 %v9947_v19, 16 }
 0x67f   : > { %14389 = vmatprep.subr.bf16.mxu0 %v18928_v60  ;;  %v19684_v26 = vcombine.low %v18679_v42, %v19655_v14 }
 0x680   : > { %v10019_v16 = vrot.slane %v10017_v52, 4  ;;  %v10022_v37 = vrot.slane %v10020_v3, 5 }
 0x682   : > { %v10023_v42 = vor.u32 %v10022_v37, %v10019_v16 }
 0x684   : > { %v10024_v16 = vrot.slane %v10023_v42, 4 }
 0x685   : > { %14328 = vmatmul.mubr.msk.bf16.gmra.mrb[4].mxu0 %vm897_vm5, %v19667_v4  ;;  %v9945_v4 = vld [vmem:[#allocation2 + $0x20] sm:$0xf] }
 0x686   : > { %14331 = vmatprep.mubr.msk.bf16.mxu0 %vm897_vm5, %v19668_v23  ;;  %v19681_v23 = vcombine.low %v18667_v49, %v18669_v62  ;;  %v10002_v27 = vshll.u32 %v9945_v4, 16  ;;  %v9948_v49 = vld [vmem:[#allocation2 + $0x34] sm:$0xf] }
 0x687   : > { %v10026_v46 = vshll.u32 %v9948_v49, 16  ;;  %v10030_v58 = vshrl.u32 %v9948_v49, 16  ;;  %v10012_v49 = vshll.u32 %v9946_v13, 16 }
 0x689   : > { %v19073_v52 = vrot.slane %v10026_v46, 5  ;;  %v10032_v3 = vrot.slane %v10030_v58, 4 }
 0x68d   : > { %14332 = vmatmul.mubr.msk.bf16.gmra.mrb[8].mxu0 %vm897_vm5, %v19669_v41  ;;  %v9944_v41 = vld [vmem:[#allocation2 + $0x1c] sm:$0xf] }
 0x68e   : > { %14335 = vmatprep.mubr.msk.bf16.mxu0 %vm897_vm5, %v19673_v5  ;;  %v9993_v44 = vshrl.u32 %v9944_v41, 16  ;;  %v9996_v5 = vshll.u32 %v9944_v41, 16  ;;  %v19062_v41 = vrot.slane %v10002_v27, 5  ;;  %v19685_v27 = vcombine.low %v19656_v55, %v19657_v24 }
 0x68f   : > { %v10014_v24 = vrot.slane %v10012_v49, 5  ;;  %v9959_v49 = vld [vmem:[#allocation2 + $0x80] sm:$0xf] }
 0x690   : > { %v9995_v62 = vrot.slane %v9993_v44, 4  ;;  %v9949_v44 = vld [vmem:[#allocation2 + $0x38] sm:$0x1] }
 0x691   : > { %v10036_v14 = vshll.u32 %v9949_v44, 16  ;;  %v10089_v44 = vshrl.u32 %v9956_v32, 16 }
 0x693   : > { %v10038_v37 = vrot.slane %v10036_v14, 5 }
 0x695   : > { %14336 = vmatmul.mubr.msk.bf16.gmra.mrb[12].mxu0 %vm897_vm5, %v19680_v8  ;;  %v10006_v8 = vshrl.u32 %v9945_v4, 16  ;;  %v10041_v4 = vshrl.u32 %v9950_v35, 16 }
 0x696   : > { %14339 = vmatprep.mubr.msk.bf16.mxu0 %vm897_vm5, %v19681_v23  ;;  %v9998_v23 = vrot.slane %v9996_v5, 5  ;;  %v10044_v5 = vshll.u32 %v9950_v35, 16 }
 0x697   : > { %v10008_v10 = vrot.slane %v10006_v8, 4  ;;  %v10043_v38 = vrot.slane %v10041_v4, 4  ;;  %v19686_v4 = vcombine.low %v19658_v40, %v19659_v17  ;;  %v9955_v17 = vld [vmem:[#allocation2 + $0x60] sm:$0x1] }
 0x698   : > { %v9999_v20 = vor.u32 %v9998_v23, %v9995_v62  ;;  %v9953_v23 = vld [vmem:[#allocation2 + $0x58] sm:$0xf]  ;;  %v10046_v35 = vrot.slane %v10044_v5, 5  ;;  %v10084_v47 = vshll.u32 %v9955_v17, 16 }
 0x699   : > { %v10009_v8 = vor.u32 %v10008_v10, %v19062_v41  ;;  %v9952_v10 = vld [vmem:[#allocation2 + $0x4c] sm:$0x1]  ;;  %v10065_v13 = vshrl.u32 %v9953_v23, 16  ;;  %v10068_v46 = vshll.u32 %v9953_v23, 16 }
 0x69a   : > { %v10000_v62 = vrot.slane %v9999_v20, 4  ;;  %v9957_v20 = vld [vmem:[#allocation2 + $0x70] sm:$0xf] }
 0x69b   : > { %v10010_v55 = vrot.slane %v10009_v8, 4  ;;  %v10060_v8 = vshll.u32 %v9952_v10, 16  ;;  %v10098_v42 = vshll.u32 %v9957_v20, 16  ;;  %v10102_v14 = vshrl.u32 %v9957_v20, 16  ;;  %v9962_v20 = vld [vmem:[#allocation2 + $0x94] sm:$0xf] }
 0x69c   : > { %v10005_v5 = vsel %vm16610_vm14, %v10000_v62, %v19062_v41  ;;  %v10067_v23 = vrot.slane %v10065_v13, 4  ;;  %v9958_v62 = vld [vmem:[#allocation2 + $0x74] sm:$0x1]  ;;  %v10113_v10 = vshrl.u32 %v9959_v49, 16 }
 0x69d   : > { %14340 = vmatmul.mubr.msk.bf16.gmra.mrb[16].mxu0 %vm897_vm5, %v19682_v12  ;;  %v9951_v12 = vld [vmem:[#allocation2 + $0x48] sm:$0xf]  ;;  %v10015_v32 = vsel %vm16610_vm14, %v10010_v55, %v10014_v24  ;;  %v10029_v55 = vsel %vm16610_vm14, %v10024_v16, %v19073_v52 }
 0x69e   : > { %14343 = vmatprep.mubr.msk.bf16.mxu0 %vm897_vm5, %v19683_v11  ;;  %v10050_v19 = vshll.u32 %v9951_v12, 16  ;;  %v10054_v11 = vshrl.u32 %v9951_v12, 16  ;;  %v13246_v13 = vcombine.low %v10005_v5, %v10015_v32  ;;  %v10086_v32 = vrot.slane %v10084_v47, 5 }
 0x6a0   : > { %v19075_v59 = vrot.slane %v10050_v19, 5  ;;  %v10056_v12 = vrot.slane %v10054_v11, 4  ;;  %v10047_v19 = vor.u32 %v10046_v35, %v10043_v38  ;;  %v10091_v35 = vrot.slane %v10089_v44, 4 }
 0x6a2   : > { %v10057_v11 = vor.u32 %v10056_v12, %v19075_v59  ;;  %v10094_v12 = vrot.slane %v10092_v9, 5 }
 0x6a4   : > { %v10095_v44 = vor.u32 %v10094_v12, %v10091_v35 }
 0x6a5   : > { %14344 = vmatmul.mubr.msk.bf16.gmra.mrb[20].mxu0 %vm897_vm5, %v19684_v26  ;;  %v9954_v26 = vld [vmem:[#allocation2 + $0x5c] sm:$0xf] }
 0x6a6   : > { %14347 = vmatprep.mubr.msk.bf16.mxu0 %vm897_vm5, %v19685_v27  ;;  %v10033_v27 = vor.u32 %v10032_v3, %v19073_v52  ;;  %v10074_v21 = vshll.u32 %v9954_v26, 16  ;;  %v10078_v58 = vshrl.u32 %v9954_v26, 16  ;;  %v19687_v3 = vcombine.low %v19660_v43, %v19661_v51 }
 0x6a7   : > { %v10070_v26 = vrot.slane %v10068_v46, 5  ;;  %v10048_v43 = vrot.slane %v10047_v19, 4  ;;  %v10058_v51 = vrot.slane %v10057_v11, 4  ;;  %v10115_v19 = vrot.slane %v10113_v10, 4 }
 0x6a8   : > { %v10034_v40 = vrot.slane %v10033_v27, 4  ;;  %v19092_v41 = vrot.slane %v10074_v21, 5  ;;  %v10080_v38 = vrot.slane %v10078_v58, 4  ;;  %v19099_v21 = vrot.slane %v10098_v42, 5 }
 0x6a9   : > { %v10104_v27 = vrot.slane %v10102_v14, 4  ;;  %v10071_v46 = vor.u32 %v10070_v26, %v10067_v23  ;;  %v10108_v58 = vshll.u32 %v9958_v62, 16  ;;  %v19688_v52 = vcombine.low %v19662_v6, %v19663_v45  ;;  %v9966_v6 = vld [vmem:[#allocation2 + $0xac] sm:$0xf] }
 0x6aa   : > { %v10039_v24 = vsel %vm16610_vm14, %v10034_v40, %v10038_v37  ;;  %v10081_v9 = vor.u32 %v10080_v38, %v19092_v41  ;;  %v10053_v37 = vsel %vm16610_vm14, %v10048_v43, %v19075_v59  ;;  %v9965_v40 = vld [vmem:[#allocation2 + $0xa8] sm:$0xf]  ;;  %v10126_v42 = vshrl.u32 %v9960_v0, 16 }
 0x6ab   : > { %v13247_v16 = vcombine.low %v10029_v55, %v10039_v24  ;;  %v10105_v17 = vor.u32 %v10104_v27, %v19099_v21  ;;  %v10137_v14 = vshrl.u32 %v9962_v20, 16  ;;  %v10140_v23 = vshll.u32 %v9962_v20, 16 }
 0x6ac   : > { %v10072_v45 = vrot.slane %v10071_v46, 4  ;;  %v10082_v26 = vrot.slane %v10081_v9, 4  ;;  %v10096_v35 = vrot.slane %v10095_v44, 4  ;;  %v10110_v12 = vrot.slane %v10108_v58, 5  ;;  %v9964_v9 = vld [vmem:[#allocation2 + $0x9c] sm:$0x1] }
 0x6ad   : > { %14348 = vmatmul.mubr.msk.bf16.gmra.mrb[24].mxu0 %vm897_vm5, %v19686_v4  ;;  %v10116_v4 = vshll.u32 %v9959_v49, 16  ;;  %v9963_v49 = vld [vmem:[#allocation2 + $0x98] sm:$0xf]  ;;  %v10161_v47 = vshrl.u32 %v9965_v40, 16  ;;  %v10164_v43 = vshll.u32 %v9965_v40, 16  ;;  %v10106_v55 = vrot.slane %v10105_v17, 4 }
 0x6ae   : > { %14351 = vmatprep.mubr.msk.bf16.mxu0 %vm897_vm5, %v19687_v3  ;;  %v10062_v3 = vrot.slane %v10060_v8, 5  ;;  %v10122_v8 = vshll.u32 %v9960_v0, 16  ;;  %v10146_v38 = vshll.u32 %v9963_v49, 16  ;;  %v10150_v62 = vshrl.u32 %v9963_v49, 16  ;;  %v19123_v44 = vld [vmem:[%s19601_s4 + $0x38] sm:$0xff]  }
 0x6af   : > { %v10118_v11 = vrot.slane %v10116_v4, 5  ;;  %v9961_v4 = vld [vmem:[#allocation2 + $0x88] sm:$0x1]  ;;  %v10128_v24 = vrot.slane %v10126_v42, 4  ;;  %v10139_v0 = vrot.slane %v10137_v14, 4  ;;  %v10142_v27 = vrot.slane %v10140_v23, 5 }
 0x6b0   : > { %v10063_v5 = vsel %vm16610_vm14, %v10058_v51, %v10062_v3  ;;  %v19113_v10 = vrot.slane %v10122_v8, 5  ;;  %v10170_v51 = vshll.u32 %v9966_v6, 16  ;;  %v10174_v3 = vshrl.u32 %v9966_v6, 16  ;;  %v9969_v42 = vld [vmem:[#allocation2 + $0xc0] sm:$0xf] }
 0x6b1   : > { %v10119_v59 = vor.u32 %v10118_v11, %v10115_v19  ;;  %v10077_v46 = vsel %vm16610_vm14, %v10072_v45, %v19092_v41  ;;  %v19118_v20 = vrot.slane %v10146_v38, 5  ;;  %v10152_v58 = vrot.slane %v10150_v62, 4  ;;  %v9967_v41 = vld [vmem:[#allocation2 + $0xb0] sm:$0x1] }
 0x6b2   : > { %v10087_v19 = vsel %vm16610_vm14, %v10082_v26, %v10086_v32  ;;  %v10101_v11 = vsel %vm16610_vm14, %v10096_v35, %v19099_v21  ;;  %v10132_v49 = vshll.u32 %v9961_v4, 16  ;;  %v19133_v40 = vrot.slane %v10170_v51, 5 }
 0x6b3   : > { %v19130_v8 = vrot.slane %v10119_v59, 4  ;;  %v10176_v17 = vrot.slane %v10174_v3, 4  ;;  %v10111_v21 = vsel %vm16610_vm14, %v10106_v55, %v10110_v12  ;;  %v10129_v32 = vor.u32 %v10128_v24, %v19113_v10  ;;  %v9971_v12 = vld [vmem:[#allocation2 + $0xd0] sm:$0xf] }
 0x6b4   : > { %v10143_v14 = vor.u32 %v10142_v27, %v10139_v0  ;;  %v10156_v23 = vshll.u32 %v9964_v9, 16  ;;  %v10153_v6 = vor.u32 %v10152_v58, %v19118_v20  ;;  %v13249_v38 = vcombine.low %v10077_v46, %v10087_v19  ;;  %v9974_v0 = vld [vmem:[#allocation2 + $0xe4] sm:$0xf]  ;;  %v9975_v58 = vld [vmem:[#allocation2 + $0xe8] sm:$0xf] }
 0x6b5   : > { %14352 = vmatmul.mubr.msk.bf16.gmra.mrb[28].mxu0 %vm897_vm5, %v19688_v52  ;;  %v9968_v52 = vld [vmem:[#allocation2 + $0xbc] sm:$0xf]  ;;  %v10194_v62 = vshll.u32 %v9969_v42, 16  ;;  %v10198_v35 = vshrl.u32 %v9969_v42, 16  ;;  %v10134_v59 = vrot.slane %v10132_v49, 5  ;;  %v10125_v51 = vsel %vm16610_vm14, %v19130_v8, %v19113_v10 }
 0x6b6   : > { %14357 = vmatprep.mubr.msk.bf16.mxu0 %vm897_vm5, %v13246_v13  ;;  %v13248_v13 = vcombine.low %v10053_v37, %v10063_v5  ;;  %v10163_v37 = vrot.slane %v10161_v47, 4  ;;  %v10166_v5 = vrot.slane %v10164_v43, 5  ;;  %v10185_v45 = vshrl.u32 %v9968_v52, 16  ;;  %v9972_v43 = vld [vmem:[#allocation2 + $0xd4] sm:$0xf] }
 0x6b7   : > { %v10188_v26 = vshll.u32 %v9968_v52, 16  ;;  %v10177_v47 = vor.u32 %v10176_v17, %v19133_v40  ;;  %v10130_v3 = vrot.slane %v10129_v32, 4  ;;  %v10144_v55 = vrot.slane %v10143_v14, 4  ;;  %v9970_v19 = vld [vmem:[#allocation2 + $0xc4] sm:$0x1] }
 0x6b8   : > { %v10167_v4 = vor.u32 %v10166_v5, %v10163_v37  ;;  %v10158_v24 = vrot.slane %v10156_v23, 5  ;;  %v10154_v27 = vrot.slane %v10153_v6, 4  ;;  %v10187_v46 = vrot.slane %v10185_v45, 4 }
 0x6b9   : > { %v10190_v9 = vrot.slane %v10188_v26, 5  ;;  %v10200_v49 = vrot.slane %v10198_v35, 4  ;;  %v10212_v52 = vshll.u32 %v9971_v12, 16  ;;  %v10178_v5 = vrot.slane %v10177_v47, 4  ;;  %v9976_v47 = vld [vmem:[#allocation2 + $0xec] sm:$0x1] }
 0x6ba   : > { %v10168_v37 = vrot.slane %v10167_v4, 4  ;;  %v10218_v10 = vshll.u32 %v9972_v43, 16  ;;  %v10222_v8 = vshrl.u32 %v9972_v43, 16  ;;  %v10233_v17 = vshrl.u32 %v9974_v0, 16 }
 0x6bb   : > { %v10236_v42 = vshll.u32 %v9974_v0, 16  ;;  %v10246_v32 = vshrl.u32 %v9975_v58, 16  ;;  %v10135_v14 = vsel %vm16610_vm14, %v10130_v3, %v10134_v59  ;;  %v10149_v23 = vsel %vm16610_vm14, %v10144_v55, %v19118_v20 }
 0x6bc   : > { %v10159_v6 = vsel %vm16610_vm14, %v10154_v27, %v10158_v24  ;;  %v10191_v45 = vor.u32 %v10190_v9, %v10187_v46  ;;  %v10214_v35 = vrot.slane %v10212_v52, 5  ;;  %v19164_v4 = vrot.slane %v10218_v10, 5  ;;  %v9977_v24 = vld [vmem:[#allocation2 + $0xf8] sm:$0xf]  ;;  %v9981_v52 = vld [vmem:[#allocation2 + $0x110] sm:$0xf] }
 0x6bd   : > { %14358 = vmatmul.mubr.msk.bf16.vlgmr.msra.gmra.mrb[0].mxu0 %vm897_vm5, %v13247_v16  ;;  %v10180_v16 = vshll.u32 %v9967_v41, 16  ;;  %v10209_v41 = vshrl.u32 %v9971_v12, 16  ;;  %v10224_v20 = vrot.slane %v10222_v8, 4  ;;  %v10235_v12 = vrot.slane %v10233_v17, 4 }
 0x6be   : > { %14390 = vmatpush3.bf16.msra.mxu0 %v18928_v60  ;;  %14361 = vmatprep.mubr.msk.bf16.mxu0 %vm897_vm5, %v13248_v13  ;;  %v13250_v60 = vcombine.low %v10101_v11, %v10111_v21  ;;  %v19147_v11 = vrot.slane %v10194_v62, 5  ;;  %v10242_v21 = vshll.u32 %v9975_v58, 16  ;;  %v10238_v43 = vrot.slane %v10236_v42, 5  ;;  %v9978_v58 = vld [vmem:[#allocation2 + $0xfc] sm:$0xf] }
 0x6bf   : > { %14423 = vmatprep.subr.bf16.mxu0 %v19123_v44  ;;  %v10182_v13 = vrot.slane %v10180_v16, 5  ;;  %v10204_v16 = vshll.u32 %v9970_v19, 16  ;;  %v10211_v62 = vrot.slane %v10209_v41, 4  ;;  %v10248_v55 = vrot.slane %v10246_v32, 4 }
 0x6c0   : > { %v10201_v26 = vor.u32 %v10200_v49, %v19147_v11  ;;  %v19166_v3 = vrot.slane %v10242_v21, 5  ;;  %v13251_v0 = vcombine.low %v10125_v51, %v10135_v14  ;;  %v13252_v27 = vcombine.low %v10149_v23, %v10159_v6 }
 0x6c1   : > { %v10183_v59 = vsel %vm16610_vm14, %v10178_v5, %v10182_v13  ;;  %v10206_v46 = vrot.slane %v10204_v16, 5  ;;  %v10215_v41 = vor.u32 %v10214_v35, %v10211_v62  ;;  %v9980_v13 = vld [vmem:[#allocation2 + $0x10c] sm:$0xf]  ;;  %v10252_v5 = vshll.u32 %v9976_v47, 16 }
 0x6c2   : > { %v10202_v49 = vrot.slane %v10201_v26, 4  ;;  %v10257_v10 = vshrl.u32 %v9977_v24, 16  ;;  %v10260_v8 = vshll.u32 %v9977_v24, 16  ;;  %v10239_v51 = vor.u32 %v10238_v43, %v10235_v12  ;;  %v9984_v24 = vld [vmem:[#allocation2 + $0x124] sm:$0xf] }
 0x6c3   : > { %v10249_v17 = vor.u32 %v10248_v55, %v19166_v3  ;;  %v10266_v42 = vshll.u32 %v9978_v58, 16  ;;  %v10270_v21 = vshrl.u32 %v9978_v58, 16  ;;  %v10281_v32 = vshrl.u32 %v9980_v13, 16 }
 0x6c4   : > { %v10284_v14 = vshll.u32 %v9980_v13, 16  ;;  %v10290_v23 = vshll.u32 %v9981_v52, 16  ;;  %v10294_v6 = vshrl.u32 %v9981_v52, 16  ;;  %v10216_v26 = vrot.slane %v10215_v41, 4 }
 0x6c5   : > { %14362 = vmatmul.mubr.msk.bf16.gmra.mrb[4].mxu0 %vm897_vm5, %v13249_v38  ;;  %v9973_v38 = vld [vmem:[#allocation2 + $0xd8] sm:$0x1]  ;;  %v10254_v35 = vrot.slane %v10252_v5, 5  ;;  %v10240_v47 = vrot.slane %v10239_v51, 4  ;;  %v10250_v12 = vrot.slane %v10249_v17, 4  ;;  %v19177_v43 = vrot.slane %v10266_v42, 5 }
 0x6c6   : > { %14365 = vmatprep.mubr.msk.bf16.mxu0 %vm897_vm5, %v13250_v60  ;;  %v10173_v60 = vsel %vm16610_vm14, %v10168_v37, %v19133_v40  ;;  %v10228_v9 = vshll.u32 %v9973_v38, 16  ;;  %v10192_v40 = vrot.slane %v10191_v45, 4  ;;  %v10225_v37 = vor.u32 %v10224_v20, %v19164_v4  ;;  %v9983_v20 = vld [vmem:[#allocation2 + $0x120] sm:$0xf]  ;;  %v9987_v42 = vld [vmem:[#allocation2 + $0x138] sm:$0xf] }
 0x6c7   : > { %v13253_v19 = vcombine.low %v10173_v60, %v10183_v59  ;;  %v10207_v45 = vsel %vm16610_vm14, %v10202_v49, %v10206_v46  ;;  %v10259_v60 = vrot.slane %v10257_v10, 4  ;;  %v10262_v59 = vrot.slane %v10260_v8, 5  ;;  %v9982_v49 = vld [vmem:[#allocation2 + $0x114] sm:$0x1] }
 0x6c8   : > { %v10197_v16 = vsel %vm16610_vm14, %v10192_v40, %v19147_v11  ;;  %v10230_v38 = vrot.slane %v10228_v9, 5  ;;  %v10226_v62 = vrot.slane %v10225_v37, 4  ;;  %v10272_v55 = vrot.slane %v10270_v21, 4  ;;  %v9986_v10 = vld [vmem:[#allocation2 + $0x134] sm:$0xf] }
 0x6c9   : > { %v10286_v58 = vrot.slane %v10284_v14, 5  ;;  %v19179_v11 = vrot.slane %v10290_v23, 5  ;;  %v10296_v40 = vrot.slane %v10294_v6, 4  ;;  %v13254_v46 = vcombine.low %v10197_v16, %v10207_v45 }
 0x6ca   : > { %v10305_v9 = vshrl.u32 %v9983_v20, 16  ;;  %v10308_v41 = vshll.u32 %v9983_v20, 16  ;;  %v10221_v13 = vsel %vm16610_vm14, %v10216_v26, %v19164_v4  ;;  %v10231_v52 = vsel %vm16610_vm14, %v10226_v62, %v10230_v38  ;;  %v9985_v26 = vld [vmem:[#allocation2 + $0x128] sm:$0x1] }
 0x6cb   : > { %v10314_v37 = vshll.u32 %v9984_v24, 16  ;;  %v10318_v5 = vshrl.u32 %v9984_v24, 16  ;;  %v10245_v8 = vsel %vm16610_vm14, %v10240_v47, %v19166_v3  ;;  %v10263_v51 = vor.u32 %v10262_v59, %v10259_v60 }
 0x6cc   : > { %v10273_v17 = vor.u32 %v10272_v55, %v19177_v43  ;;  %v10255_v4 = vsel %vm16610_vm14, %v10250_v12, %v10254_v35  ;;  %v10300_v14 = vshll.u32 %v9982_v49, 16  ;;  %v10307_v23 = vrot.slane %v10305_v9, 4  ;;  %v9989_v55 = vld [vmem:[#allocation2 + $0x148] sm:$0xf] }
 0x6cd   : > { %14366 = vmatmul.mubr.msk.bf16.gmra.mrb[8].mxu0 %vm897_vm5, %v13251_v0  ;;  %v9979_v0 = vld [vmem:[#allocation2 + $0x100] sm:$0x1]  ;;  %v10310_v6 = vrot.slane %v10308_v41, 5  ;;  %v10329_v16 = vshrl.u32 %v9986_v10, 16  ;;  %v10332_v45 = vshll.u32 %v9986_v10, 16  ;;  %v10316_v38 = vrot.slane %v10314_v37, 5 }
 0x6ce   : > { %14369 = vmatprep.mubr.msk.bf16.mxu0 %vm897_vm5, %v13252_v27  ;;  %v10283_v27 = vrot.slane %v10281_v32, 4  ;;  %v10297_v32 = vor.u32 %v10296_v40, %v19179_v11  ;;  %v10320_v62 = vrot.slane %v10318_v5, 4  ;;  %v10338_v3 = vshll.u32 %v9987_v42, 16 }
 0x6cf   : > { %v10342_v60 = vshrl.u32 %v9987_v42, 16  ;;  %v13255_v59 = vcombine.low %v10221_v13, %v10231_v52  ;;  %v10264_v20 = vrot.slane %v10263_v51, 4  ;;  %v13256_v24 = vcombine.low %v10245_v8, %v10255_v4  ;;  %v9988_v13 = vld [vmem:[#allocation2 + $0x13c] sm:$0x1] }
 0x6d0   : > { %v10287_v21 = vor.u32 %v10286_v58, %v10283_v27  ;;  %v10302_v12 = vrot.slane %v10300_v14, 5  ;;  %v9990_v27 = vld [vmem:[#allocation2 + $0x14c] sm:$0xf]  ;;  %v10311_v58 = vor.u32 %v10310_v6, %v10307_v23  ;;  %v10324_v40 = vshll.u32 %v9985_v26, 16 }
 0x6d1   : > { %v10334_v49 = vrot.slane %v10332_v45, 5  ;;  %v10298_v9 = vrot.slane %v10297_v32, 4  ;;  %v10321_v41 = vor.u32 %v10320_v62, %v10316_v38  ;;  %v10340_v37 = vrot.slane %v10338_v3, 5  ;;  %v9991_v45 = vld [vmem:[#allocation2 + $0x150] sm:$0x1] }
 0x6d2   : > { %v10288_v35 = vrot.slane %v10287_v21, 4  ;;  %v10344_v5 = vrot.slane %v10342_v60, 4  ;;  %v10353_v52 = vshrl.u32 %v9989_v55, 16  ;;  %v10356_v10 = vshll.u32 %v9989_v55, 16 }
 0x6d3   : > { %v10362_v8 = vshll.u32 %v9990_v27, 16  ;;  %v10366_v51 = vshrl.u32 %v9990_v27, 16  ;;  %v10312_v4 = vrot.slane %v10311_v58, 4  ;;  %v10326_v21 = vrot.slane %v10324_v40, 5 }
 0x6d4   : > { %v10293_v42 = vsel %vm16610_vm14, %v10288_v35, %v19179_v11  ;;  %v10303_v14 = vsel %vm16610_vm14, %v10298_v9, %v10302_v12  ;;  %v10322_v23 = vrot.slane %v10321_v41, 4  ;;  %v10345_v6 = vor.u32 %v10344_v5, %v10340_v37 }
 0x6d5   : > { %14370 = vmatmul.mubr.msk.bf16.gmra.mrb[12].mxu0 %vm897_vm5, %v13253_v19  ;;  %v10276_v19 = vshll.u32 %v9979_v0, 16  ;;  %v10274_v0 = vrot.slane %v10273_v17, 4  ;;  %v10269_v17 = vsel %vm16610_vm14, %v10264_v20, %v19177_v43  ;;  %v10355_v26 = vrot.slane %v10353_v52, 4 }
 0x6d6   : > { %14373 = vmatprep.mubr.msk.bf16.mxu0 %vm897_vm5, %v13254_v46  ;;  %v10331_v46 = vrot.slane %v10329_v16, 4  ;;  %v10348_v16 = vshll.u32 %v9988_v13, 16  ;;  %v10358_v62 = vrot.slane %v10356_v10, 5  ;;  %v10364_v43 = vrot.slane %v10362_v8, 5 }
 0x6d7   : > { %v10278_v47 = vrot.slane %v10276_v19, 5  ;;  %v10368_v3 = vrot.slane %v10366_v51, 4  ;;  %v10728_v20 = vshrl.u32 %v18948_v39, 16  ;;  %v10737_v11 = vshrl.u32 %v18950_v63, 16 }
 0x6d8   : > { %v10335_v32 = vor.u32 %v10334_v49, %v10331_v46  ;;  %v10317_v55 = vsel %vm16610_vm14, %v10312_v4, %v10316_v38  ;;  %v10346_v35 = vrot.slane %v10345_v6, 4  ;;  %v10350_v12 = vrot.slane %v10348_v16, 5 }
 0x6d9   : > { %v10279_v19 = vsel %vm16610_vm14, %v10274_v0, %v10278_v47  ;;  %v13258_v47 = vcombine.low %v10293_v42, %v10303_v14  ;;  %v10327_v0 = vsel %vm16610_vm14, %v10322_v23, %v10326_v21  ;;  %v10372_v27 = vshll.u32 %v9991_v45, 16  ;;  %v10680_v23 = vld [vmem:[#allocation2 + $0x54] sm:$0x8] }
 0x6da   : > { %v13257_v60 = vcombine.low %v10269_v17, %v10279_v19  ;;  %v10359_v58 = vor.u32 %v10358_v62, %v10355_v26  ;;  %v10369_v40 = vor.u32 %v10368_v3, %v10364_v43  ;;  %v10730_v49 = vrot.slane %v10728_v20, 7  ;;  %v10677_v19 = vld [vmem:[#allocation2 + $0x40] sm:$0x8]  ;;  %v19226_v26 = vld [vmem:[#allocation2 + $0x15c] sm:$0xf] }
 0x6db   : > { %v10739_v9 = vrot.slane %v10737_v11, 7  ;;  %v13259_v41 = vcombine.low %v10317_v55, %v10327_v0  ;;  %v10351_v5 = vsel %vm16610_vm14, %v10346_v35, %v10350_v12  ;;  %v10374_v13 = vrot.slane %v10372_v27, 5  ;;  %v19228_v62 = vld [vmem:[#allocation2 + $0x160] sm:$0xf]  ;;  %v10683_v12 = vld [vmem:[#allocation2 + $0x68] sm:$0x8] }
 0x6dc   : > { %v10731_v52 = vshll.u32 %v18948_v39, 16  ;;  %v10740_v10 = vshll.u32 %v18950_v63, 16  ;;  %v10360_v8 = vrot.slane %v10359_v58, 4  ;;  %v10370_v51 = vrot.slane %v10369_v40, 4 }
 0x6dd   : > { %14374 = vmatmul.mubr.msk.bf16.gmra.mrb[16].mxu0 %vm897_vm5, %v13255_v59  ;;  %v10674_v59 = vld [vmem:[#allocation2 + $0x2c] sm:$0x8]  ;;  %v10750_v42 = vshrl.u32 %v18952_v33, 16  ;;  %v10735_v21 = vrot.slane %v10730_v49, 4  ;;  %v10759_v14 = vshrl.u32 %v18954_v56, 16  ;;  %v10772_v6 = vshrl.u32 %v18956_v34, 16 }
 0x6de   : > { %14377 = vmatprep.mubr.msk.bf16.mxu0 %vm897_vm5, %v13256_v24  ;;  %v10336_v24 = vrot.slane %v10335_v32, 4  ;;  %v10723_v46 = vshrl.u32 %v10674_v59, 16  ;;  %v10733_v4 = vor.u32 %v10731_v52, %v10730_v49  ;;  %v10742_v32 = vor.u32 %v10740_v10, %v10739_v9 }
 0x6df   : > { %v10745_v16 = vshrl.u32 %v10677_v19, 16  ;;  %v10781_v45 = vshrl.u32 %v18958_v22, 16  ;;  %v10365_v3 = vsel %vm16610_vm14, %v10360_v8, %v10364_v43  ;;  %v10753_v59 = vshll.u32 %v18952_v33, 16 }
 0x6e0   : > { %v10341_v38 = vsel %vm16610_vm14, %v10336_v24, %v10340_v37  ;;  %v13279_v17 = vrot.slane %v10723_v46, 11  ;;  %v13347_v20 = vcombine.low %v19226_v26, %v19228_v62  ;;  %v10375_v11 = vsel %vm16610_vm14, %v10370_v51, %v10374_v13 }
 0x6e1   : > { %v13260_v37 = vcombine.low %v10341_v38, %v10351_v5  ;;  %v10743_v55 = vsel %vm16047_vm11, %v10735_v21, %v10742_v32  ;;  %v10761_v24 = vrot.slane %v10759_v14, 7  ;;  %v10767_v0 = vshrl.u32 %v10680_v23, 16  ;;  %v10686_v23 = vld [vmem:[#allocation2 + $0x7c] sm:$0x8] }
 0x6e2   : > { %v10774_v35 = vrot.slane %v10772_v6, 7  ;;  %v10794_v43 = vshrl.u32 %v18960_v31, 16  ;;  %v10803_v27 = vshrl.u32 %v18962_v30, 16  ;;  %v13280_v58 = vrot.slane %v10745_v16, 11 }
 0x6e3   : > { %v10762_v40 = vshll.u32 %v18954_v56, 16  ;;  %v10783_v46 = vrot.slane %v10781_v45, 7  ;;  %v13261_v49 = vcombine.low %v10365_v3, %v10375_v11  ;;  %v10775_v38 = vshll.u32 %v18956_v34, 16 }
 0x6e4   : > { %v10784_v52 = vshll.u32 %v18958_v22, 16  ;;  %v10789_v10 = vshrl.u32 %v10683_v12, 16  ;;  %v13281_v8 = vrot.slane %v10767_v0, 11  ;;  %v10805_v19 = vrot.slane %v10803_v27, 7 }
 0x6e5   : > { %14378 = vmatmul.mubr.msk.bf16.gmra.mrb[20].mxu0 %vm897_vm5, %v13257_v60  ;;  %v10752_v60 = vrot.slane %v10750_v42, 7  ;;  %v10764_v13 = vor.u32 %v10762_v40, %v10761_v24  ;;  %v10777_v51 = vor.u32 %v10775_v38, %v10774_v35  ;;  %v10779_v42 = vrot.slane %v10774_v35, 4  ;;  %v10692_v40 = vld [vmem:[#allocation2 + $0xa4] sm:$0x8] }
 0x6e6   : > { %14381 = vmatprep.mubr.msk.bf16.mxu0 %vm897_vm5, %v13258_v47  ;;  %v10734_v47 = vsel %vm16047_vm11, %v13279_v17, %v10733_v4  ;;  %v10796_v17 = vrot.slane %v10794_v43, 7  ;;  %v10786_v4 = vor.u32 %v10784_v52, %v10783_v46  ;;  %v10816_v21 = vshrl.u32 %v18964_v61, 16  ;;  %v19270_v38 = vld [vmem:[%s19601_s4 + $0x40] sm:$0xff]  }
 0x6e7   : > { %v10755_v9 = vor.u32 %v10753_v59, %v10752_v60  ;;  %v13297_v5 = vcombine.low %v10734_v47, %v10743_v55  ;;  %v10825_v32 = vshrl.u32 %v18966_v7, 16  ;;  %v10797_v14 = vshll.u32 %v18960_v31, 16  ;;  %v10689_v47 = vld [vmem:[#allocation2 + $0x90] sm:$0x8]  ;;  %v11703_v31 = vld [vmem:[#allocation2 + $0x34] sm:$0xf] }
 0x6e8   : > { %v13282_v45 = vrot.slane %v10789_v10, 11  ;;  %v10778_v3 = vsel %vm16047_vm11, %v13281_v8, %v10777_v51  ;;  %v10801_v59 = vrot.slane %v10796_v17, 4  ;;  %v10787_v55 = vsel %vm16047_vm11, %v10779_v42, %v10786_v4 }
 0x6e9   : > { %v10756_v6 = vsel %vm16047_vm11, %v13280_v58, %v10755_v9  ;;  %v10811_v24 = vshrl.u32 %v10686_v23, 16  ;;  %v10818_v0 = vrot.slane %v10816_v21, 7  ;;  %v10827_v35 = vrot.slane %v10825_v32, 7 }
 0x6ea   : > { %v10819_v43 = vshll.u32 %v18964_v61, 16  ;;  %v10838_v27 = vshrl.u32 %v18968_v18, 16  ;;  %v10847_v58 = vshrl.u32 %v18970_v1, 16  ;;  %v10828_v46 = vshll.u32 %v18966_v7, 16 }
 0x6eb   : > { %v10860_v9 = vshrl.u32 %v18972_v28, 16  ;;  %v13283_v10 = vrot.slane %v10811_v24, 11  ;;  %v10823_v51 = vrot.slane %v10818_v0, 4  ;;  %v10855_v4 = vshrl.u32 %v10692_v40, 16 }
 0x6ec   : > { %v10821_v8 = vor.u32 %v10819_v43, %v10818_v0  ;;  %v10849_v42 = vrot.slane %v10847_v58, 7  ;;  %v10841_v23 = vshll.u32 %v18968_v18, 16 }
 0x6ed   : > { %14382 = vmatmul.mubr.msk.bf16.gmra.mrb[24].mxu0 %vm897_vm5, %v13259_v41  ;;  %v10757_v41 = vrot.slane %v10752_v60, 4  ;;  %v10799_v60 = vor.u32 %v10797_v14, %v10796_v17  ;;  %v10830_v17 = vor.u32 %v10828_v46, %v10827_v35  ;;  %v10862_v14 = vrot.slane %v10860_v9, 7 }
 0x6ee   : > { %14385 = vmatprep.mubr.msk.bf16.mxu0 %vm897_vm5, %v13260_v37  ;;  %v10806_v37 = vshll.u32 %v18962_v30, 16  ;;  %v13285_v0 = vrot.slane %v10855_v4, 11  ;;  %v10904_v9 = vshrl.u32 %v18980_v25, 16 }
 0x6ef   : > { %v10765_v16 = vsel %vm16047_vm11, %v10757_v41, %v10764_v13  ;;  %v10869_v41 = vshrl.u32 %v18974_v36, 16  ;;  %v10800_v13 = vsel %vm16047_vm11, %v13282_v45, %v10799_v60  ;;  %v10882_v45 = vshrl.u32 %v18976_v2, 16 }
 0x6f0   : > { %v10808_v11 = vor.u32 %v10806_v37, %v10805_v19  ;;  %v13298_v12 = vcombine.low %v10756_v6, %v10765_v16  ;;  %v10840_v19 = vrot.slane %v10838_v27, 7  ;;  %v10850_v6 = vshll.u32 %v18970_v1, 16  ;;  %v10695_v16 = vld [vmem:[#allocation2 + $0xb8] sm:$0x8] }
 0x6f1   : > { %v10871_v37 = vrot.slane %v10869_v41, 7  ;;  %v10831_v60 = vsel %vm16047_vm11, %v10823_v51, %v10830_v17  ;;  %v10877_v27 = vshrl.u32 %v10695_v16, 16  ;;  %v10884_v40 = vrot.slane %v10882_v45, 7  ;;  %v15231_v45 = vld [vmem:[#allocation2 + $0xd4] sm:$0xf] }
 0x6f2   : > { %v10809_v52 = vsel %vm16047_vm11, %v10801_v59, %v10808_v11  ;;  %v10863_v59 = vshll.u32 %v18972_v28, 16  ;;  %v10872_v11 = vshll.u32 %v18974_v36, 16  ;;  %v10852_v24 = vor.u32 %v10850_v6, %v10849_v42 }
 0x6f3   : > { %v13300_v21 = vcombine.low %v10800_v13, %v10809_v52  ;;  %v10913_v41 = vshrl.u32 %v18982_v29, 16  ;;  %v10885_v52 = vshll.u32 %v18976_v2, 16  ;;  %v13286_v17 = vrot.slane %v10877_v27, 11 }
 0x6f4   : > { %v10865_v35 = vor.u32 %v10863_v59, %v10862_v14  ;;  %v10874_v43 = vor.u32 %v10872_v11, %v10871_v37  ;;  %v10889_v4 = vrot.slane %v10884_v40, 4  ;;  %v10907_v37 = vshll.u32 %v18980_v25, 16 }
 0x6f5   : > { %14386 = vmatmul.mubr.msk.bf16.gmra.mrb[28].mxu0 %vm897_vm5, %v13261_v49  ;;  %v10833_v49 = vshrl.u32 %v10689_v47, 16  ;;  %v10843_v47 = vor.u32 %v10841_v23, %v10840_v19  ;;  %v10887_v42 = vor.u32 %v10885_v52, %v10884_v40  ;;  %v10926_v23 = vshrl.u32 %v18984_v48, 16 }
 0x6f6   : > { %14391 = vmatprep.mubr.msk.bf16.mxu0 %vm897_vm5, %v13297_v5  ;;  %v13299_v5 = vcombine.low %v10778_v3, %v10787_v55  ;;  %v10822_v3 = vsel %vm16047_vm11, %v13283_v10, %v10821_v8  ;;  %v10845_v55 = vrot.slane %v10840_v19, 4  ;;  %v10894_v10 = vshll.u32 %v18978_v54, 16 }
 0x6f7   : > { %v13284_v32 = vrot.slane %v10833_v49, 11  ;;  %v13301_v58 = vcombine.low %v10822_v3, %v10831_v60  ;;  %v10698_v49 = vld [vmem:[#allocation2 + $0xcc] sm:$0x8]  ;;  %v10866_v8 = vsel %vm16047_vm11, %v13285_v0, %v10865_v35  ;;  %v10701_v3 = vld [vmem:[#allocation2 + $0xe0] sm:$0x8]  ;;  %v10888_v11 = vsel %vm16047_vm11, %v13286_v17, %v10887_v42 }
 0x6f8   : > { %v10853_v13 = vsel %vm16047_vm11, %v10845_v55, %v10852_v24  ;;  %v10899_v19 = vshrl.u32 %v10698_v49, 16  ;;  %v15232_v60 = vld [vmem:[#allocation2 + $0xe8] sm:$0xf]  ;;  %v10928_v49 = vrot.slane %v10926_v23, 7 }
 0x6f9   : > { %v10935_v59 = vshrl.u32 %v15232_v60, 16  ;;  %v10938_v52 = vshll.u32 %v15232_v60, 16 }
 0x6fa   : > { %v13287_v55 = vrot.slane %v10899_v19, 11 }
 0x6fd   : > { %14392 = vmatmul.mubr.msk.bf16.vlgmr.msra.gmra.mrb[0].mxu0 %vm897_vm5, %v13298_v12  ;;  %v10867_v12 = vrot.slane %v10862_v14, 4  ;;  %v10906_v14 = vrot.slane %v10904_v9, 7  ;;  %v10937_v9 = vrot.slane %v10935_v59, 7  ;;  %v15238_v59 = vld [vmem:[#allocation2 + $0x120] sm:$0xf] }
 0x6fe   : > { %14424 = vmatpush3.bf16.msra.mxu0 %v19123_v44  ;;  %14395 = vmatprep.mubr.msk.bf16.mxu0 %vm897_vm5, %v13299_v5  ;;  %v10891_v44 = vshrl.u32 %v18978_v54, 16  ;;  %v10844_v5 = vsel %vm16047_vm11, %v13284_v32, %v10843_v47  ;;  %v10915_v32 = vrot.slane %v10913_v41, 7 }
 0x6ff   : > { %14457 = vmatprep.subr.bf16.mxu0 %v19270_v38  ;;  %v10875_v51 = vsel %vm16047_vm11, %v10867_v12, %v10874_v43  ;;  %v13302_v6 = vcombine.low %v10844_v5, %v10853_v13  ;;  %v10909_v24 = vor.u32 %v10907_v37, %v10906_v14  ;;  %v10911_v0 = vrot.slane %v10906_v14, 4  ;;  %v10704_v12 = vld [vmem:[#allocation2 + $0xf4] sm:$0x8]  ;;  %v15233_v43 = vld [vmem:[#allocation2 + $0xf8] sm:$0xf] }
 0x700   : > { %v10893_v46 = vrot.slane %v10891_v44, 7  ;;  %v13303_v16 = vcombine.low %v10866_v8, %v10875_v51  ;;  %v10916_v44 = vshll.u32 %v15231_v45, 16  ;;  %v10948_v27 = vshrl.u32 %v15233_v43, 16  ;;  %v15235_v5 = vld [vmem:[#allocation2 + $0xe4] sm:$0xf] }
 0x701   : > { %v10929_v13 = vshll.u32 %v15235_v5, 16  ;;  %v10910_v8 = vsel %vm16047_vm11, %v13287_v55, %v10909_v24  ;;  %v15236_v14 = vld [vmem:[#allocation2 + $0x10c] sm:$0xf]  ;;  %v10933_v37 = vrot.slane %v10928_v49, 4  ;;  %v10940_v23 = vor.u32 %v10938_v52, %v10937_v9  ;;  %v15237_v45 = vld [vmem:[#allocation2 + $0x110] sm:$0xf] }
 0x702   : > { %v10918_v35 = vor.u32 %v10916_v44, %v10915_v32  ;;  %v10950_v17 = vrot.slane %v10948_v27, 7  ;;  %v10970_v32 = vshrl.u32 %v15236_v14, 16  ;;  %v10979_v44 = vshrl.u32 %v15237_v45, 16 }
 0x703   : > { %v10982_v52 = vshll.u32 %v15237_v45, 16 }
 0x704   : > { %v10919_v51 = vsel %vm16047_vm11, %v10911_v0, %v10918_v35  ;;  %v10955_v55 = vrot.slane %v10950_v17, 4  ;;  %v10710_v0 = vld [vmem:[#allocation2 + $0x11c] sm:$0x8]  ;;  %v15239_v35 = vld [vmem:[#allocation2 + $0x124] sm:$0xf]  ;;  %v10972_v27 = vrot.slane %v10970_v32, 7 }
 0x705   : > { %14396 = vmatmul.mubr.msk.bf16.gmra.mrb[4].mxu0 %vm897_vm5, %v13300_v21  ;;  %v10896_v21 = vor.u32 %v10894_v10, %v10893_v46  ;;  %v10921_v46 = vshrl.u32 %v10701_v3, 16  ;;  %v10943_v10 = vshrl.u32 %v10704_v12, 16  ;;  %v13305_v3 = vcombine.low %v10910_v8, %v10919_v51  ;;  %v15240_v32 = vld [vmem:[#allocation2 + $0x134] sm:$0xf] }
 0x706   : > { %14399 = vmatprep.mubr.msk.bf16.mxu0 %vm897_vm5, %v13301_v58  ;;  %v15234_v58 = vld [vmem:[#allocation2 + $0xfc] sm:$0xf]  ;;  %v11001_v12 = vshrl.u32 %v15239_v35, 16  ;;  %v10987_v9 = vshrl.u32 %v10710_v0, 16 }
 0x707   : > { %v10897_v47 = vsel %vm16047_vm11, %v10889_v4, %v10896_v21  ;;  %v10957_v40 = vshrl.u32 %v15234_v58, 16  ;;  %v13288_v42 = vrot.slane %v10921_v46, 11  ;;  %v10931_v4 = vor.u32 %v10929_v13, %v10928_v49 }
 0x708   : > { %v13304_v41 = vcombine.low %v10888_v11, %v10897_v47  ;;  %v10951_v21 = vshll.u32 %v15233_v43, 16  ;;  %v13289_v60 = vrot.slane %v10943_v10, 11  ;;  %v10992_v11 = vshrl.u32 %v15238_v59, 16 }
 0x709   : > { %v10959_v19 = vrot.slane %v10957_v40, 7  ;;  %v10941_v40 = vsel %vm16047_vm11, %v10933_v37, %v10940_v23  ;;  %v10981_v46 = vrot.slane %v10979_v44, 7  ;;  %v10973_v49 = vshll.u32 %v15236_v14, 16  ;;  %v15241_v44 = vld [vmem:[#allocation2 + $0x138] sm:$0xf] }
 0x70a   : > { %v10953_v47 = vor.u32 %v10951_v21, %v10950_v17  ;;  %v11003_v10 = vrot.slane %v11001_v12, 7  ;;  %v11004_v21 = vshll.u32 %v15239_v35, 16  ;;  %v11014_v37 = vshrl.u32 %v15240_v32, 16 }
 0x70b   : > { %v10975_v17 = vor.u32 %v10973_v49, %v10972_v27  ;;  %v13291_v23 = vrot.slane %v10987_v9, 11 }
 0x70c   : > { %v10954_v5 = vsel %vm16047_vm11, %v13289_v60, %v10953_v47  ;;  %v11006_v45 = vor.u32 %v11004_v21, %v11003_v10  ;;  %v15242_v47 = vld [vmem:[#allocation2 + $0x148] sm:$0xf]  ;;  %v11058_v10 = vshrl.u32 %v19226_v26, 16 }
 0x70d   : > { %14400 = vmatmul.mubr.msk.bf16.gmra.mrb[8].mxu0 %vm897_vm5, %v13302_v6  ;;  %v10960_v6 = vshll.u32 %v15234_v58, 16  ;;  %v10932_v58 = vsel %vm16047_vm11, %v13288_v42, %v10931_v4  ;;  %v10977_v42 = vrot.slane %v10972_v27, 4  ;;  %v10984_v4 = vor.u32 %v10982_v52, %v10981_v46  ;;  %v10719_v52 = vld [vmem:[#allocation2 + $0x158] sm:$0x8] }
 0x70e   : > { %14403 = vmatprep.mubr.msk.bf16.mxu0 %vm897_vm5, %v13303_v16  ;;  %v10707_v16 = vld [vmem:[#allocation2 + $0x108] sm:$0x8]  ;;  %v13306_v8 = vcombine.low %v10932_v58, %v10941_v40  ;;  %v11017_v27 = vshll.u32 %v15240_v32, 16 }
 0x70f   : > { %v10962_v24 = vor.u32 %v10960_v6, %v10959_v19  ;;  %v10965_v43 = vshrl.u32 %v10707_v16, 16  ;;  %v10995_v19 = vshll.u32 %v15238_v59, 16  ;;  %v10713_v16 = vld [vmem:[#allocation2 + $0x130] sm:$0x8]  ;;  %v10985_v35 = vsel %vm16047_vm11, %v10977_v42, %v10984_v4 }
 0x710   : > { %v11009_v12 = vshrl.u32 %v10713_v16, 16  ;;  %v11053_v16 = vshrl.u32 %v10719_v52, 16 }
 0x711   : > { %v10963_v13 = vsel %vm16047_vm11, %v10955_v55, %v10962_v24  ;;  %v13290_v51 = vrot.slane %v10965_v43, 11  ;;  %v11036_v55 = vshrl.u32 %v15242_v47, 16  ;;  %v15243_v24 = vld [vmem:[#allocation2 + $0x14c] sm:$0xf]  ;;  %v11016_v43 = vrot.slane %v11014_v37, 7 }
 0x712   : > { %v13307_v14 = vcombine.low %v10954_v5, %v10963_v13  ;;  %v11045_v59 = vshrl.u32 %v15243_v24, 16  ;;  %v11026_v13 = vshll.u32 %v15241_v44, 16  ;;  %v11048_v42 = vshll.u32 %v15243_v24, 16 }
 0x713   : > { %v10976_v0 = vsel %vm16047_vm11, %v13290_v51, %v10975_v17  ;;  %v11038_v9 = vrot.slane %v11036_v55, 7  ;;  %v13292_v51 = vrot.slane %v11009_v12, 11  ;;  %v11019_v17 = vor.u32 %v11017_v27, %v11016_v43 }
 0x714   : > { %v13308_v5 = vcombine.low %v10976_v0, %v10985_v35  ;;  %v11021_v21 = vrot.slane %v11016_v43, 4 }
 0x715   : > { %14404 = vmatmul.mubr.msk.bf16.gmra.mrb[12].mxu0 %vm897_vm5, %v13304_v41  ;;  %v10994_v41 = vrot.slane %v10992_v11, 7  ;;  %v10716_v11 = vld [vmem:[#allocation2 + $0x144] sm:$0x8] }
 0x716   : > { %14407 = vmatprep.mubr.msk.bf16.mxu0 %vm897_vm5, %v13305_v3  ;;  %v11023_v3 = vshrl.u32 %v15241_v44, 16  ;;  %v11031_v40 = vshrl.u32 %v10716_v11, 16  ;;  %v11060_v44 = vrot.slane %v11058_v10, 7  ;;  %v11020_v11 = vsel %vm16047_vm11, %v13292_v51, %v11019_v17 }
 0x717   : > { %v10997_v6 = vor.u32 %v10995_v19, %v10994_v41  ;;  %v10999_v60 = vrot.slane %v10994_v41, 4  ;;  %v11047_v41 = vrot.slane %v11045_v59, 7  ;;  %v11039_v19 = vshll.u32 %v15242_v47, 16 }
 0x718   : > { %v11025_v58 = vrot.slane %v11023_v3, 7  ;;  %v13293_v37 = vrot.slane %v11031_v40, 11  ;;  %v11061_v3 = vshll.u32 %v19226_v26, 16  ;;  %v13294_v59 = vrot.slane %v11053_v16, 11  ;;  %v11723_v26 = vld [vmem:[#allocation2 + $0xbc] sm:$0xf] }
 0x719   : > { %v10998_v46 = vsel %vm16047_vm11, %v13291_v23, %v10997_v6  ;;  %v11007_v49 = vsel %vm16047_vm11, %v10999_v60, %v11006_v45  ;;  %v11043_v23 = vrot.slane %v11038_v9, 4  ;;  %v11050_v6 = vor.u32 %v11048_v42, %v11047_v41 }
 0x71a   : > { %v13309_v4 = vcombine.low %v10998_v46, %v11007_v49  ;;  %v11028_v32 = vor.u32 %v11026_v13, %v11025_v58  ;;  %v11070_v45 = vshll.u32 %v19228_v62, 16  ;;  %v11063_v0 = vor.u32 %v11061_v3, %v11060_v44  ;;  %v19704_v3 = vld [vmem:[#allocation9_spill] sm:$0xff] }
 0x71b   : > { %v11051_v24 = vsel %vm16047_vm11, %v11043_v23, %v11050_v6  ;;  %v11065_v35 = vrot.slane %v11060_v44, 4  ;;  %v19689_v49 = vcombine.low %v18948_v39, %v18950_v63  ;;  %v19691_v41 = vcombine.low %v18956_v34, %v18958_v22  ;;  %v11702_v22 = vld [vmem:[#allocation2 + $0x30] sm:$0xf]  ;;  %v19702_v23 = vld [vmem:[#allocation8_spill] sm:$0xff] }
 0x71c   : > { %v11029_v47 = vsel %vm16047_vm11, %v11021_v21, %v11028_v32  ;;  %v11064_v58 = vsel %vm16047_vm11, %v13294_v59, %v11063_v0  ;;  %v19693_v39 = vcombine.low %v18964_v61, %v18966_v7  ;;  %v19694_v63 = vcombine.low %v18968_v18, %v18970_v1  ;;  %v11705_v61 = vld [vmem:[#allocation2 + $0x44] sm:$0xf]  ;;  %v11708_v32 = vld [vmem:[#allocation2 + $0x58] sm:$0xf] }
 0x71d   : > { %14408 = vmatmul.mubr.msk.bf16.gmra.mrb[16].mxu0 %vm897_vm5, %v13306_v8  ;;  %v11067_v8 = vshrl.u32 %v19228_v62, 16  ;;  %v13310_v43 = vcombine.low %v11020_v11, %v11029_v47  ;;  %v19697_v34 = vcombine.low %v18980_v25, %v18982_v29  ;;  %v11751_v30 = vshrl.u32 %v11702_v22, 16  ;;  %v11704_v25 = vld [vmem:[#allocation2 + $0x38] sm:$0x1] }
 0x71e   : > { %14411 = vmatprep.mubr.msk.bf16.mxu0 %vm897_vm5, %v13307_v14  ;;  %v11041_v14 = vor.u32 %v11039_v19, %v11038_v9  ;;  %v19690_v9 = vcombine.low %v18952_v33, %v18954_v56  ;;  %v19695_v33 = vcombine.low %v18972_v28, %v18974_v36  ;;  %v19696_v56 = vcombine.low %v18976_v2, %v18978_v54  ;;  %v11706_v28 = vld [vmem:[#allocation2 + $0x48] sm:$0xf]  ;;  %v19699_v2 = vld [vmem:[#allocation6_spill] sm:$0xff]  ;;  %v11707_v19 = vld [vmem:[#allocation2 + $0x4c] sm:$0x1] }
 0x71f   : > { %v11069_v60 = vrot.slane %v11067_v8, 7  ;;  %v11754_v7 = vshll.u32 %v11702_v22, 16  ;;  %v11760_v18 = vshll.u32 %v11703_v31, 16  ;;  %v11764_v1 = vshrl.u32 %v11703_v31, 16 }
 0x720   : > { %v11042_v55 = vsel %vm16047_vm11, %v13293_v37, %v11041_v14  ;;  %v19698_v36 = vcombine.low %v18984_v48, %v18986_v15  ;;  %v19700_v54 = vcombine.low %v18988_v50, %v19699_v2  ;;  %v11753_v29 = vrot.slane %v11751_v30, 4  ;;  %v11709_v37 = vld [vmem:[#allocation2 + $0x5c] sm:$0xf]  ;;  %v19701_v14 = vld [vmem:[#allocation7_spill] sm:$0xff] }
 0x721   : > { %v11072_v12 = vor.u32 %v11070_v45, %v11069_v60  ;;  %v13311_v27 = vcombine.low %v11042_v55, %v11051_v24  ;;  %v11784_v13 = vshll.u32 %v11706_v28, 16  ;;  %v11756_v52 = vrot.slane %v11754_v7, 5  ;;  %v19705_v60 = vld [vmem:[#allocation10_spill] sm:$0xff]  ;;  %v19707_v7 = vld [vmem:[#allocation11_spill] sm:$0xff] }
 0x722   : > { %v11762_v10 = vrot.slane %v11760_v18, 5  ;;  %v11766_v8 = vrot.slane %v11764_v1, 4  ;;  %v11788_v51 = vshrl.u32 %v11706_v28, 16  ;;  %v11770_v17 = vshll.u32 %v11704_v25, 16  ;;  %v19708_v18 = vld [vmem:[#allocation12_spill] sm:$0xff]  ;;  %v19710_v25 = vld [vmem:[#allocation13_spill] sm:$0xff] }
 0x723   : > { %v11073_v40 = vsel %vm16047_vm11, %v11065_v35, %v11072_v12  ;;  %v11757_v15 = vor.u32 %v11756_v52, %v11753_v29  ;;  %v19402_v21 = vrot.slane %v11784_v13, 5  ;;  %v19703_v6 = vcombine.low %v19701_v14, %v19702_v23  ;;  %v19711_v29 = vld [vmem:[#allocation14_spill] sm:$0xff] }
 0x724   : > { %v13312_v46 = vcombine.low %v11064_v58, %v11073_v40  ;;  %v11790_v50 = vrot.slane %v11788_v51, 4  ;;  %v11772_v16 = vrot.slane %v11770_v17, 5  ;;  %v11794_v44 = vshll.u32 %v11707_v19, 16  ;;  %v11712_v58 = vld [vmem:[#allocation2 + $0x70] sm:$0xf] }
 0x725   : > { %14412 = vmatmul.mubr.msk.bf16.gmra.mrb[20].mxu0 %vm897_vm5, %v13308_v5  ;;  %v11778_v5 = vshll.u32 %v11705_v61, 16  ;;  %v19706_v45 = vcombine.low %v19704_v3, %v19705_v60  ;;  %v11799_v47 = vshrl.u32 %v11708_v32, 16  ;;  %v11802_v55 = vshll.u32 %v11708_v32, 16  ;;  %v11714_v40 = vld [vmem:[#allocation2 + $0x80] sm:$0xf] }
 0x726   : > { %14415 = vmatprep.mubr.msk.bf16.mxu0 %vm897_vm5, %v13309_v4  ;;  %v11767_v4 = vor.u32 %v11766_v8, %v11762_v10  ;;  %v11808_v24 = vshll.u32 %v11709_v37, 16  ;;  %v11758_v59 = vrot.slane %v11757_v15, 4  ;;  %v11791_v35 = vor.u32 %v11790_v50, %v19402_v21  ;;  %v11717_v17 = vld [vmem:[#allocation2 + $0x94] sm:$0xf]  ;;  %v11718_v19 = vld [vmem:[#allocation2 + $0x98] sm:$0xf] }
 0x727   : > { %v11780_v48 = vrot.slane %v11778_v5, 5  ;;  %v11812_v12 = vshrl.u32 %v11709_v37, 16  ;;  %v11832_v30 = vshll.u32 %v11712_v58, 16  ;;  %v19709_v1 = vcombine.low %v19707_v7, %v19708_v18  ;;  %v11720_v50 = vld [vmem:[#allocation2 + $0xa8] sm:$0xf] }
 0x728   : > { %v11768_v0 = vrot.slane %v11767_v4, 4  ;;  %v11847_v28 = vshrl.u32 %v11714_v40, 16  ;;  %v11713_v32 = vld [vmem:[#allocation2 + $0x74] sm:$0x1]  ;;  %v11871_v3 = vshrl.u32 %v11717_v17, 16  ;;  %v11874_v60 = vshll.u32 %v11717_v17, 16 }
 0x729   : > { %v19433_v15 = vrot.slane %v11832_v30, 5 }
 0x72a   : > { %v11849_v37 = vrot.slane %v11847_v28, 4  ;;  %v11722_v28 = vld [vmem:[#allocation2 + $0xb0] sm:$0x1] }
 0x72d   : > { %14416 = vmatmul.mubr.msk.bf16.gmra.mrb[24].mxu0 %vm897_vm5, %v13310_v43  ;;  %v11711_v43 = vld [vmem:[#allocation2 + $0x6c] sm:$0xf] }
 0x72e   : > { %14419 = vmatprep.mubr.msk.bf16.mxu0 %vm897_vm5, %v13311_v27  ;;  %v11796_v27 = vrot.slane %v11794_v44, 5  ;;  %v11823_v22 = vshrl.u32 %v11711_v43, 16  ;;  %v11826_v31 = vshll.u32 %v11711_v43, 16  ;;  %v11716_v44 = vld [vmem:[#allocation2 + $0x88] sm:$0x1] }
 0x735   : > { %14420 = vmatmul.mubr.msk.bf16.gmra.mrb[28].mxu0 %vm897_vm5, %v13312_v46 }
 0x736   : > { %14425 = vmatprep.mubr.msk.bf16.mxu0 %vm897_vm5, %v19689_v49  ;;  %v11801_v49 = vrot.slane %v11799_v47, 4  ;;  %v11721_v47 = vld [vmem:[#allocation2 + $0xac] sm:$0xf] }
 0x73d   : > { %14426 = vmatmul.mubr.msk.bf16.vlgmr.msra.gmra.mrb[0].mxu0 %vm897_vm5, %v19690_v9  ;;  %v11804_v9 = vrot.slane %v11802_v55, 5  ;;  %v11895_v55 = vshrl.u32 %v11720_v50, 16 }
 0x73e   : > { %14458 = vmatpush3.bf16.msra.mxu0 %v19270_v38  ;;  %14429 = vmatprep.mubr.msk.bf16.mxu0 %vm897_vm5, %v19691_v41  ;;  %v11775_v38 = vshrl.u32 %v11705_v61, 16  ;;  %v19413_v41 = vrot.slane %v11808_v24, 5  ;;  %v11836_v61 = vshrl.u32 %v11712_v58, 16  ;;  %v11898_v24 = vshll.u32 %v11720_v50, 16 }
 0x73f   : > { %v11805_v5 = vor.u32 %v11804_v9, %v11801_v49  ;;  %v11876_v49 = vrot.slane %v11874_v60, 5  ;;  %v11904_v9 = vshll.u32 %v11721_v47, 16 }
 0x740   : > { %v11777_v42 = vrot.slane %v11775_v38, 4  ;;  %v19712_v38 = vcombine.low %v19710_v25, %v19711_v29  ;;  %v11838_v4 = vrot.slane %v11836_v61, 4  ;;  %v11922_v25 = vshll.u32 %v11723_v26, 16 }
 0x742   : > { %v11781_v11 = vor.u32 %v11780_v48, %v11777_v42  ;;  %v11825_v42 = vrot.slane %v11823_v22, 4  ;;  %v11828_v48 = vrot.slane %v11826_v31, 5  ;;  %v11839_v43 = vor.u32 %v11838_v4, %v19433_v15  ;;  %v11719_v31 = vld [vmem:[#allocation2 + $0x9c] sm:$0x1] }
 0x744   : > { %v11782_v46 = vrot.slane %v11781_v11, 4  ;;  %v11884_v11 = vshrl.u32 %v11718_v19, 16  ;;  %v11840_v30 = vrot.slane %v11839_v43, 4 }
 0x745   : > { %14430 = vmatmul.mubr.msk.bf16.gmra.mrb[4].mxu0 %vm897_vm5, %v19692_v53  ;;  %v11715_v53 = vld [vmem:[#allocation2 + $0x84] sm:$0xf] }
 0x746   : > { %14433 = vmatprep.mubr.msk.bf16.mxu0 %vm897_vm5, %v19693_v39  ;;  %v11763_v39 = vsel %vm16610_vm14, %v11758_v59, %v11762_v10  ;;  %v11856_v2 = vshll.u32 %v11715_v53, 16  ;;  %v11787_v10 = vsel %vm16610_vm14, %v11782_v46, %v19402_v21  ;;  %v11806_v21 = vrot.slane %v11805_v5, 4 }
 0x747   : > { %v11873_v46 = vrot.slane %v11871_v3, 4 }
 0x748   : > { %v19435_v23 = vrot.slane %v11856_v2, 5  ;;  %v11811_v62 = vsel %vm16610_vm14, %v11806_v21, %v19413_v41 }
 0x749   : > { %v11877_v29 = vor.u32 %v11876_v49, %v11873_v46  ;;  %v11732_v49 = vld [vmem:[#allocation2 + $0xf8] sm:$0xf] }
 0x74d   : > { %14434 = vmatmul.mubr.msk.bf16.gmra.mrb[8].mxu0 %vm897_vm5, %v19694_v63  ;;  %v11773_v63 = vsel %vm16610_vm14, %v11768_v0, %v11772_v16 }
 0x74e   : > { %14437 = vmatprep.mubr.msk.bf16.mxu0 %vm897_vm5, %v19695_v33  ;;  %v11792_v33 = vrot.slane %v11791_v35, 4  ;;  %v13367_v52 = vcombine.low %v11763_v39, %v11773_v63  ;;  %v11829_v35 = vor.u32 %v11828_v48, %v11825_v42  ;;  %v11886_v63 = vrot.slane %v11884_v11, 4  ;;  %v11726_v42 = vld [vmem:[#allocation2 + $0xd0] sm:$0xf] }
 0x74f   : > { %v11943_v3 = vshrl.u32 %v11726_v42, 16  ;;  %v11946_v60 = vshll.u32 %v11726_v42, 16 }
 0x750   : > { %v11797_v8 = vsel %vm16610_vm14, %v11792_v33, %v11796_v27  ;;  %v11897_v33 = vrot.slane %v11895_v55, 4 }
 0x751   : > { %v13368_v59 = vcombine.low %v11787_v10, %v11797_v8 }
 0x755   : > { %14438 = vmatmul.mubr.msk.bf16.gmra.mrb[12].mxu0 %vm897_vm5, %v19696_v56  ;;  %v11710_v56 = vld [vmem:[#allocation2 + $0x60] sm:$0x1] }
 0x756   : > { %14441 = vmatprep.mubr.msk.bf16.mxu0 %vm897_vm5, %v19697_v34  ;;  %v11814_v34 = vrot.slane %v11812_v12, 4  ;;  %v11818_v13 = vshll.u32 %v11710_v56, 16  ;;  %v11842_v12 = vshll.u32 %v11713_v32, 16  ;;  %v11900_v56 = vrot.slane %v11898_v24, 5 }
 0x757   : > { %v11924_v32 = vrot.slane %v11922_v25, 5 }
 0x758   : > { %v11815_v51 = vor.u32 %v11814_v34, %v19413_v41  ;;  %v11820_v16 = vrot.slane %v11818_v13, 5  ;;  %v11830_v34 = vrot.slane %v11829_v35, 4  ;;  %v11844_v22 = vrot.slane %v11842_v12, 5  ;;  %v11730_v35 = vld [vmem:[#allocation2 + $0xe8] sm:$0xf] }
 0x759   : > { %v11901_v5 = vor.u32 %v11900_v56, %v11897_v33  ;;  %v11948_v33 = vrot.slane %v11946_v60, 5  ;;  %v11733_v56 = vld [vmem:[#allocation2 + $0xfc] sm:$0xf] }
 0x75a   : > { %v11816_v0 = vrot.slane %v11815_v51, 4  ;;  %v11835_v8 = vsel %vm16610_vm14, %v11830_v34, %v19433_v15  ;;  %v11845_v51 = vsel %vm16610_vm14, %v11840_v30, %v11844_v22  ;;  %v11878_v15 = vrot.slane %v11877_v29, 4 }
 0x75b   : > { %v11902_v21 = vrot.slane %v11901_v5, 4  ;;  %v11980_v34 = vshrl.u32 %v11730_v35, 16 }
 0x75d   : > { %14442 = vmatmul.mubr.msk.bf16.gmra.mrb[16].mxu0 %vm897_vm5, %v19698_v36  ;;  %v11850_v36 = vshll.u32 %v11714_v40, 16  ;;  %v11866_v40 = vshll.u32 %v11716_v44, 16  ;;  %v11982_v5 = vrot.slane %v11980_v34, 4  ;;  %v11737_v34 = vld [vmem:[#allocation2 + $0x114] sm:$0x1] }
 0x75e   : > { %14445 = vmatprep.mubr.msk.bf16.mxu0 %vm897_vm5, %v19700_v54  ;;  %v11860_v54 = vshrl.u32 %v11715_v53, 16  ;;  %v11908_v53 = vshrl.u32 %v11721_v47, 16  ;;  %v11725_v47 = vld [vmem:[#allocation2 + $0xc4] sm:$0x1] }
 0x75f   : > { %v11852_v14 = vrot.slane %v11850_v36, 5  ;;  %v11868_v18 = vrot.slane %v11866_v40, 5  ;;  %v19451_v36 = vrot.slane %v11904_v9, 5 }
 0x760   : > { %v11910_v2 = vrot.slane %v11908_v53, 4  ;;  %v11938_v53 = vshll.u32 %v11725_v47, 16 }
 0x761   : > { %v11853_v27 = vor.u32 %v11852_v14, %v11849_v37  ;;  %v11727_v37 = vld [vmem:[#allocation2 + $0xd4] sm:$0xf]  ;;  %v11907_v46 = vsel %vm16610_vm14, %v11902_v21, %v19451_v36 }
 0x762   : > { %v11911_v4 = vor.u32 %v11910_v2, %v19451_v36  ;;  %v11952_v55 = vshll.u32 %v11727_v37, 16  ;;  %v11956_v24 = vshrl.u32 %v11727_v37, 16  ;;  %v11940_v2 = vrot.slane %v11938_v53, 5 }
 0x763   : > { %v11854_v61 = vrot.slane %v11853_v27, 4 }
 0x765   : > { %14446 = vmatmul.mubr.msk.bf16.gmra.mrb[20].mxu0 %vm897_vm5, %v19703_v6  ;;  %v11862_v6 = vrot.slane %v11860_v54, 4  ;;  %v11919_v54 = vshrl.u32 %v11723_v26, 16  ;;  %v11859_v17 = vsel %vm16610_vm14, %v11854_v61, %v19435_v23  ;;  %v11728_v26 = vld [vmem:[#allocation2 + $0xd8] sm:$0x1] }
 0x766   : > { %14449 = vmatprep.mubr.msk.bf16.mxu0 %vm897_vm5, %v19706_v45  ;;  %v11880_v45 = vshll.u32 %v11718_v19, 16  ;;  %v11914_v19 = vshll.u32 %v11722_v28, 16  ;;  %v12004_v28 = vshrl.u32 %v11733_v56, 16  ;;  %v11962_v25 = vshll.u32 %v11728_v26, 16 }
 0x767   : > { %v11863_v58 = vor.u32 %v11862_v6, %v19435_v23  ;;  %v11921_v50 = vrot.slane %v11919_v54, 4 }
 0x768   : > { %v19444_v39 = vrot.slane %v11880_v45, 5  ;;  %v13370_v45 = vcombine.low %v11835_v8, %v11845_v51  ;;  %v11916_v11 = vrot.slane %v11914_v19, 5  ;;  %v11735_v51 = vld [vmem:[#allocation2 + $0x10c] sm:$0xf] }
 0x769   : > { %v11864_v7 = vrot.slane %v11863_v58, 4 }
 0x76a   : > { %v11887_v41 = vor.u32 %v11886_v63, %v19444_v39  ;;  %v11883_v58 = vsel %vm16610_vm14, %v11878_v15, %v19444_v39  ;;  %v11945_v63 = vrot.slane %v11943_v3, 4  ;;  %v11958_v39 = vrot.slane %v11956_v24, 4  ;;  %v11739_v3 = vld [vmem:[#allocation2 + $0x124] sm:$0xf] }
 0x76b   : > { %v11869_v48 = vsel %vm16610_vm14, %v11864_v7, %v11868_v18  ;;  %v11991_v7 = vshrl.u32 %v11732_v49, 16  ;;  %v11994_v18 = vshll.u32 %v11732_v49, 16  ;;  %v11964_v15 = vrot.slane %v11962_v25, 5  ;;  %v11744_v25 = vld [vmem:[#allocation2 + $0x148] sm:$0xf] }
 0x76c   : > { %v11888_v14 = vrot.slane %v11887_v41, 4  ;;  %v13371_v27 = vcombine.low %v11859_v17, %v11869_v48  ;;  %v11949_v54 = vor.u32 %v11948_v33, %v11945_v63  ;;  %v11731_v41 = vld [vmem:[#allocation2 + $0xec] sm:$0x1]  ;;  %v11736_v17 = vld [vmem:[#allocation2 + $0x110] sm:$0xf] }
 0x76d   : > { %14450 = vmatmul.mubr.msk.bf16.gmra.mrb[24].mxu0 %vm897_vm5, %v19709_v1  ;;  %v11724_v1 = vld [vmem:[#allocation2 + $0xc0] sm:$0xf]  ;;  %v11993_v19 = vrot.slane %v11991_v7, 4  ;;  %v11996_v42 = vrot.slane %v11994_v18, 5  ;;  %v12024_v60 = vshll.u32 %v11736_v17, 16 }
 0x76e   : > { %14453 = vmatprep.mubr.msk.bf16.mxu0 %vm897_vm5, %v19712_v38  ;;  %v11890_v38 = vshll.u32 %v11719_v31, 16  ;;  %v11932_v10 = vshrl.u32 %v11724_v1, 16  ;;  %v11950_v37 = vrot.slane %v11949_v54, 4 }
 0x76f   : > { %v11997_v24 = vor.u32 %v11996_v42, %v11993_v19  ;;  %v12090_v19 = vshll.u32 %v11744_v25, 16 }
 0x770   : > { %v11892_v6 = vrot.slane %v11890_v38, 5  ;;  %v11934_v23 = vrot.slane %v11932_v10, 4 }
 0x771   : > { %v11998_v26 = vrot.slane %v11997_v24, 4 }
 0x772   : > { %v11893_v40 = vsel %vm16610_vm14, %v11888_v14, %v11892_v6  ;;  %v11986_v14 = vshll.u32 %v11731_v41, 16  ;;  %v11734_v6 = vld [vmem:[#allocation2 + $0x100] sm:$0x1] }
 0x775   : > { %14454 = vmatmul.mubr.msk.bf16.gmra.mrb[28].mxu0 %vm897_vm5, %v13347_v20  ;;  %v11821_v20 = vsel %vm16610_vm14, %v11816_v0, %v11820_v16  ;;  %v11729_v16 = vld [vmem:[#allocation2 + $0xe4] sm:$0xf]  ;;  %v11925_v0 = vor.u32 %v11924_v32, %v11921_v50  ;;  %v11738_v50 = vld [vmem:[#allocation2 + $0x120] sm:$0xf] }
 0x776   : > { %14459 = vmatprep.mubr.msk.bf16.mxu0 %vm897_vm5, %v13367_v52  ;;  %v13369_v13 = vcombine.low %v11811_v62, %v11821_v20  ;;  %v11928_v52 = vshll.u32 %v11724_v1, 16  ;;  %v11967_v12 = vshrl.u32 %v11729_v16, 16  ;;  %v11970_v43 = vshll.u32 %v11729_v16, 16 }
 0x777   : > { %v19479_v62 = vrot.slane %v11952_v55, 5  ;;  %v11976_v20 = vshll.u32 %v11730_v35, 16  ;;  %v11926_v31 = vrot.slane %v11925_v0, 4  ;;  %v12000_v1 = vshll.u32 %v11733_v56, 16 }
 0x778   : > { %v19467_v44 = vrot.slane %v11928_v52, 5  ;;  %v11969_v30 = vrot.slane %v11967_v12, 4  ;;  %v11972_v61 = vrot.slane %v11970_v43, 5  ;;  %v12042_v47 = vshll.u32 %v11738_v50, 16 }
 0x779   : > { %v11959_v29 = vor.u32 %v11958_v39, %v19479_v62  ;;  %v19485_v38 = vrot.slane %v11976_v20, 5  ;;  %v19490_v48 = vrot.slane %v12000_v1, 5  ;;  %v12010_v0 = vshll.u32 %v11734_v6, 16  ;;  %v11742_v1 = vld [vmem:[#allocation2 + $0x138] sm:$0xf] }
 0x77a   : > { %v11935_v9 = vor.u32 %v11934_v23, %v19467_v44  ;;  %v11931_v10 = vsel %vm16610_vm14, %v11926_v31, %v19467_v44  ;;  %v11973_v8 = vor.u32 %v11972_v61, %v11969_v30  ;;  %v12015_v44 = vshrl.u32 %v11735_v51, 16  ;;  %v11741_v61 = vld [vmem:[#allocation2 + $0x134] sm:$0xf] }
 0x77b   : > { %v11960_v21 = vrot.slane %v11959_v29, 4  ;;  %v11983_v16 = vor.u32 %v11982_v5, %v19485_v38  ;;  %v12018_v23 = vshll.u32 %v11735_v51, 16  ;;  %v11955_v35 = vsel %vm16610_vm14, %v11950_v37, %v19479_v62  ;;  %v11745_v29 = vld [vmem:[#allocation2 + $0x14c] sm:$0xf] }
 0x77c   : > { %v11936_v36 = vrot.slane %v11935_v9, 4  ;;  %v11974_v55 = vrot.slane %v11973_v8, 4  ;;  %v11988_v12 = vrot.slane %v11986_v14, 5  ;;  %v12048_v43 = vshll.u32 %v11739_v3, 16 }
 0x77d   : > { %14460 = vmatmul.mubr.msk.bf16.vlgmr.msra.gmra.mrb[0].mxu0 %vm897_vm5, %v13368_v59  ;;  %v11912_v59 = vrot.slane %v11911_v4, 4  ;;  %v12006_v4 = vrot.slane %v12004_v28, 4  ;;  %v12020_v49 = vrot.slane %v12018_v23, 5  ;;  %v19503_v9 = vrot.slane %v12024_v60, 5 }
 0x77e   : > { %14463 = vmatprep.mubr.msk.bf16.mxu0 %vm897_vm5, %v13369_v13  ;;  %v13372_v13 = vcombine.low %v11883_v58, %v11893_v40  ;;  %v11941_v32 = vsel %vm16610_vm14, %v11936_v36, %v11940_v2  ;;  %v11965_v58 = vsel %vm16610_vm14, %v11960_v21, %v11964_v15  ;;  %v11984_v40 = vrot.slane %v11983_v16, 4  ;;  %v11747_v16 = vld [vmem:[#allocation2 + $0x15c] sm:$0xf] }
 0x77f   : > { %v11917_v22 = vsel %vm16610_vm14, %v11912_v59, %v11916_v11  ;;  %v12039_v11 = vshrl.u32 %v11738_v50, 16  ;;  %v12007_v59 = vor.u32 %v12006_v4, %v19490_v48  ;;  %v12044_v33 = vrot.slane %v12042_v47, 5 }
 0x780   : > { %v13373_v52 = vcombine.low %v11907_v46, %v11917_v22  ;;  %v12017_v46 = vrot.slane %v12015_v44, 4  ;;  %v13374_v56 = vcombine.low %v11931_v10, %v11941_v32  ;;  %v12012_v20 = vrot.slane %v12010_v0, 5  ;;  %v11740_v22 = vld [vmem:[#allocation2 + $0x128] sm:$0x1]  ;;  %v11748_v44 = vld [vmem:[#allocation2 + $0x160] sm:$0xf] }
 0x781   : > { %v12041_v63 = vrot.slane %v12039_v11, 4  ;;  %v12008_v39 = vrot.slane %v12007_v59, 4  ;;  %v13375_v62 = vcombine.low %v11955_v35, %v11965_v58  ;;  %v19505_v31 = vrot.slane %v12048_v43, 5  ;;  %v11743_v11 = vld [vmem:[#allocation2 + $0x13c] sm:$0x1] }
 0x782   : > { %v11979_v7 = vsel %vm16610_vm14, %v11974_v55, %v19485_v38  ;;  %v11989_v18 = vsel %vm16610_vm14, %v11984_v40, %v11988_v12  ;;  %v12021_v28 = vor.u32 %v12020_v49, %v12017_v46  ;;  %v12034_v2 = vshll.u32 %v11737_v34, 16  ;;  %v11746_v0 = vld [vmem:[#allocation2 + $0x150] sm:$0x1] }
 0x783   : > { %v12045_v54 = vor.u32 %v12044_v33, %v12041_v63  ;;  %v12003_v41 = vsel %vm16610_vm14, %v11998_v26, %v19490_v48  ;;  %v12013_v38 = vsel %vm16610_vm14, %v12008_v39, %v12012_v20  ;;  %v12058_v5 = vshll.u32 %v11740_v22, 16 }
 0x784   : > { %v12066_v10 = vshll.u32 %v11741_v61, 16  ;;  %v12072_v8 = vshll.u32 %v11742_v1, 16  ;;  %v12076_v51 = vshrl.u32 %v11742_v1, 16  ;;  %v12096_v42 = vshll.u32 %v11745_v29, 16 }
 0x785   : > { %14464 = vmatmul.mubr.msk.bf16.gmra.mrb[4].mxu0 %vm897_vm5, %v13370_v45  ;;  %v12028_v45 = vshrl.u32 %v11736_v17, 16  ;;  %v12087_v17 = vshrl.u32 %v11744_v25, 16  ;;  %v12100_v4 = vshrl.u32 %v11745_v29, 16  ;;  %v12022_v50 = vrot.slane %v12021_v28, 4 }
 0x786   : > { %14467 = vmatprep.mubr.msk.bf16.mxu0 %vm897_vm5, %v13371_v27  ;;  %v12052_v27 = vshrl.u32 %v11739_v3, 16  ;;  %v12036_v37 = vrot.slane %v12034_v2, 5  ;;  %v12046_v15 = vrot.slane %v12045_v54, 4  ;;  %v13376_v14 = vcombine.low %v11979_v7, %v11989_v18 }
 0x787   : > { %v12030_v53 = vrot.slane %v12028_v45, 4  ;;  %v13377_v48 = vcombine.low %v12003_v41, %v12013_v38  ;;  %v12060_v6 = vrot.slane %v12058_v5, 5  ;;  %v12068_v3 = vrot.slane %v12066_v10, 5 }
 0x788   : > { %v12054_v30 = vrot.slane %v12052_v27, 4  ;;  %v12074_v60 = vrot.slane %v12072_v8, 5  ;;  %v12078_v45 = vrot.slane %v12076_v51, 4  ;;  %v12089_v47 = vrot.slane %v12087_v17, 4 }
 0x789   : > { %v12031_v36 = vor.u32 %v12030_v53, %v19503_v9  ;;  %v12092_v55 = vrot.slane %v12090_v19, 5  ;;  %v12098_v24 = vrot.slane %v12096_v42, 5  ;;  %v12102_v59 = vrot.slane %v12100_v4, 4 }
 0x78a   : > { %v12111_v35 = vshrl.u32 %v11747_v16, 16  ;;  %v12114_v12 = vshll.u32 %v11747_v16, 16  ;;  %v12120_v43 = vshll.u32 %v11748_v44, 16  ;;  %v12124_v27 = vshrl.u32 %v11748_v44, 16 }
 0x78b   : > { %v12032_v32 = vrot.slane %v12031_v36, 4  ;;  %v12027_v58 = vsel %vm16610_vm14, %v12022_v50, %v19503_v9  ;;  %v12051_v46 = vsel %vm16610_vm14, %v12046_v15, %v19505_v31  ;;  %v12079_v53 = vor.u32 %v12078_v45, %v12074_v60 }
 0x78c   : > { %v12082_v63 = vshll.u32 %v11743_v11, 16  ;;  %v12103_v26 = vor.u32 %v12102_v59, %v12098_v24  ;;  %v12106_v39 = vshll.u32 %v11746_v0, 16  ;;  %v12113_v20 = vrot.slane %v12111_v35, 4 }
 0x78d   : > { %14468 = vmatmul.mubr.msk.bf16.gmra.mrb[8].mxu0 %vm897_vm5, %v13372_v13  ;;  %v12063_v13 = vshrl.u32 %v11741_v61, 16  ;;  %v12037_v40 = vsel %vm16610_vm14, %v12032_v32, %v12036_v37  ;;  %v12116_v34 = vrot.slane %v12114_v12, 5  ;;  %v12126_v9 = vrot.slane %v12124_v27, 4 }
 0x78e   : > { %14471 = vmatprep.mubr.msk.bf16.mxu0 %vm897_vm5, %v13373_v52  ;;  %v12055_v52 = vor.u32 %v12054_v30, %v19505_v31  ;;  %v13378_v22 = vcombine.low %v12027_v58, %v12037_v40  ;;  %v11749_v30 = vld [vmem:[#allocation2 + $0x164] sm:$0x1]  ;;  %v12080_v18 = vrot.slane %v12079_v53, 4  ;;  %v12084_v1 = vrot.slane %v12082_v63, 5 }
 0x78f   : > { %v12065_v21 = vrot.slane %v12063_v13, 4  ;;  %v12104_v28 = vrot.slane %v12103_v26, 4  ;;  %v12108_v36 = vrot.slane %v12106_v39, 5  ;;  %v12117_v2 = vor.u32 %v12116_v34, %v12113_v20 }
 0x790   : > { %v12056_v23 = vrot.slane %v12055_v52, 4  ;;  %v12130_v25 = vshll.u32 %v11749_v30, 16  ;;  %v12085_v41 = vsel %vm16610_vm14, %v12080_v18, %v12084_v1 }
 0x791   : > { %v12069_v49 = vor.u32 %v12068_v3, %v12065_v21  ;;  %v12109_v5 = vsel %vm16610_vm14, %v12104_v28, %v12108_v36  ;;  %v12118_v13 = vrot.slane %v12117_v2, 4 }
 0x792   : > { %v12061_v33 = vsel %vm16610_vm14, %v12056_v23, %v12060_v6  ;;  %v12132_v10 = vrot.slane %v12130_v25, 5 }
 0x793   : > { %v13379_v61 = vcombine.low %v12051_v46, %v12061_v33  ;;  %v12070_v7 = vrot.slane %v12069_v49, 4 }
 0x795   : > { %14472 = vmatmul.mubr.msk.bf16.gmra.mrb[12].mxu0 %vm897_vm5, %v13374_v56  ;;  %v12093_v56 = vor.u32 %v12092_v55, %v12089_v47  ;;  %v12075_v29 = vsel %vm16610_vm14, %v12070_v7, %v12074_v60 }
 0x796   : > { %14475 = vmatprep.mubr.msk.bf16.mxu0 %vm897_vm5, %v13375_v62  ;;  %v12122_v62 = vrot.slane %v12120_v43, 5  ;;  %v13380_v8 = vcombine.low %v12075_v29, %v12085_v41 }
 0x797   : > { %v12094_v31 = vrot.slane %v12093_v56, 4 }
 0x798   : > { %v12127_v54 = vor.u32 %v12126_v9, %v12122_v62  ;;  %v12123_v17 = vsel %vm16610_vm14, %v12118_v13, %v12122_v62 }
 0x799   : > { %v12099_v38 = vsel %vm16610_vm14, %v12094_v31, %v12098_v24 }
 0x79a   : > { %v12128_v52 = vrot.slane %v12127_v54, 4  ;;  %v13381_v51 = vcombine.low %v12099_v38, %v12109_v5 }
 0x79c   : > { %v12133_v19 = vsel %vm16610_vm14, %v12128_v52, %v12132_v10 }
 0x79d   : > { %14476 = vmatmul.mubr.msk.bf16.gmra.mrb[16].mxu0 %vm897_vm5, %v13376_v14  ;;  %v13382_v42 = vcombine.low %v12123_v17, %v12133_v19 }
 0x79e   : > { %14479 = vmatprep.mubr.msk.bf16.mxu0 %vm897_vm5, %v13377_v48 }
 0x7a5   : > { %14480 = vmatmul.mubr.msk.bf16.gmra.mrb[20].mxu0 %vm897_vm5, %v13378_v22 }
 0x7a6   : > { %14483 = vmatprep.mubr.msk.bf16.mxu0 %vm897_vm5, %v13379_v61 }
 0x7ad   : > { %14484 = vmatmul.mubr.msk.bf16.gmra.mrb[24].mxu0 %vm897_vm5, %v13380_v8 }
 0x7ae   : > { %14487 = vmatprep.mubr.msk.bf16.mxu0 %vm897_vm5, %v13381_v51 }
 0x7b5   : > { %14488 = vmatmul.mubr.msk.bf16.gmra.mrb[28].mxu0 %vm897_vm5, %v13382_v42 }
 0x850   : > { %v14461_v4 = vpop.f32.mrb[0].mxu0 }
 0x851   : > { %v12273_v50 = vpop.f32.mrb[1].mxu0 }
 0x852   : > { %12432 = vxpose.xlu0.b32.start [1/16] (narrow) %v12273_v50, 8  ;;  %v14462_v32 = vpop.f32.mrb[2].mxu0 }
 0x853   : > { %v12276_v37 = vpop.f32.mrb[3].mxu0 }
 0x856   : > { %12433 = vxpose.xlu0.b32.cont [2/16] (narrow) %v12276_v37, 8 }
 0x858   : > { %v14465_v15 = vpop.f32.mrb[4].mxu0 }
 0x859   : > { %v12289_v14 = vpop.f32.mrb[5].mxu0 }
 0x85a   : > { %12434 = vxpose.xlu0.b32.cont [3/16] (narrow) %v14461_v4, 8  ;;  %v14466_v48 = vpop.f32.mrb[6].mxu0 }
 0x85b   : > { %v12292_v6 = vpop.f32.mrb[7].mxu0 }
 0x85e   : > { %12435 = vxpose.xlu0.b32.cont [4/16] (narrow) %v14462_v32, 8 }
 0x860   : > { %v14469_v21 = vpop.f32.mrb[8].mxu0 }
 0x861   : > { %v12305_v16 = vpop.f32.mrb[9].mxu0 }
 0x862   : > { %12436 = vxpose.xlu0.b32.cont [5/16] (narrow) %v12289_v14, 8  ;;  %v14470_v57 = vpop.f32.mrb[10].mxu0 }
 0x863   : > { %v12308_v44 = vpop.f32.mrb[11].mxu0 }
 0x866   : > { %12437 = vxpose.xlu0.b32.cont [6/16] (narrow) %v12292_v6, 8 }
 0x868   : > { %v14473_v23 = vpop.f32.mrb[12].mxu0 }
 0x869   : > { %v12321_v3 = vpop.f32.mrb[13].mxu0 }
 0x86a   : > { %12438 = vxpose.xlu0.b32.cont [7/16] (narrow) %v14465_v15, 8  ;;  %v14474_v60 = vpop.f32.mrb[14].mxu0 }
 0x86b   : > { %v12324_v45 = vpop.f32.mrb[15].mxu0 }
 0x86e   : > { %12439 = vxpose.xlu0.b32.cont [8/16] (narrow) %v14466_v48, 8 }
 0x870   : > { %v14477_v11 = vpop.f32.mrb[16].mxu0 }
 0x871   : > { %v12337_v47 = vpop.f32.mrb[17].mxu0 }
 0x872   : > { %12440 = vxpose.xlu0.b32.cont [9/16] (narrow) %v12305_v16, 8  ;;  %12464 = vxpose.xlu1.b32.start [1/16] (narrow) %v12337_v47, 8  ;;  %v14478_v55 = vpop.f32.mrb[18].mxu0 }
 0x873   : > { %v12340_v24 = vpop.f32.mrb[19].mxu0 }
 0x876   : > { %12441 = vxpose.xlu0.b32.cont [10/16] (narrow) %v12308_v44, 8  ;;  %12465 = vxpose.xlu1.b32.cont [2/16] (narrow) %v12340_v24, 8 }
 0x878   : > { %v14481_v59 = vpop.f32.mrb[20].mxu0 }
 0x879   : > { %v12353_v0 = vpop.f32.mrb[21].mxu0 }
 0x87a   : > { %12442 = vxpose.xlu0.b32.cont [11/16] (narrow) %v14469_v21, 8  ;;  %12466 = vxpose.xlu1.b32.cont [3/16] (narrow) %v14477_v11, 8  ;;  %v14482_v35 = vpop.f32.mrb[22].mxu0 }
 0x87b   : > { %v12356_v12 = vpop.f32.mrb[23].mxu0 }
 0x87e   : > { %12443 = vxpose.xlu0.b32.cont [12/16] (narrow) %v14470_v57, 8  ;;  %12467 = vxpose.xlu1.b32.cont [4/16] (narrow) %v14478_v55, 8 }
 0x880   : > { %v14485_v43 = vpop.f32.mrb[24].mxu0 }
 0x881   : > { %v12369_v27 = vpop.f32.mrb[25].mxu0 }
 0x882   : > { %12444 = vxpose.xlu0.b32.cont [13/16] (narrow) %v12321_v3, 8  ;;  %12468 = vxpose.xlu1.b32.cont [5/16] (narrow) %v12353_v0, 8  ;;  %v14486_v58 = vpop.f32.mrb[26].mxu0 }
 0x883   : > { %v12372_v40 = vpop.f32.mrb[27].mxu0 }
 0x886   : > { %12445 = vxpose.xlu0.b32.cont [14/16] (narrow) %v12324_v45, 8  ;;  %12469 = vxpose.xlu1.b32.cont [6/16] (narrow) %v12356_v12, 8 }
 0x888   : > { %v14489_v46 = vpop.f32.mrb[28].mxu0 }
 0x889   : > { %v12385_v49 = vpop.f32.mrb[29].mxu0 }
 0x88a   : > { %12446 = vxpose.xlu0.b32.cont [15/16] (narrow) %v14473_v23, 8  ;;  %12470 = vxpose.xlu1.b32.cont [7/16] (narrow) %v14481_v59, 8  ;;  %v14490_v53 = vpop.f32.mrb[30].mxu0 }
 0x88b   : > { %v12388_v63 = vpop.f32.mrb[31].mxu0 }
 0x88e   : > { %12447 = vxpose.xlu0.b32.end [16/16] (narrow) %v14474_v60, 8  ;;  %12471 = vxpose.xlu1.b32.cont [8/16] (narrow) %v14482_v35, 8 }
 0x892   : > { %12472 = vxpose.xlu1.b32.cont [9/16] (narrow) %v12369_v27, 8 }
 0x896   : > { %12473 = vxpose.xlu1.b32.cont [10/16] (narrow) %v12372_v40, 8 }
 0x89a   : > { %12474 = vxpose.xlu1.b32.cont [11/16] (narrow) %v14485_v43, 8 }
 0x89e   : > { %12475 = vxpose.xlu1.b32.cont [12/16] (narrow) %v14486_v58, 8 }
 0x8a2   : > { %12476 = vxpose.xlu1.b32.cont [13/16] (narrow) %v12385_v49, 8 }
 0x8a6   : > { %12477 = vxpose.xlu1.b32.cont [14/16] (narrow) %v12388_v63, 8 }
 0x8aa   : > { %12478 = vxpose.xlu1.b32.cont [15/16] (narrow) %v14489_v46, 8 }
 0x8ae   : > { %12479 = vxpose.xlu1.b32.end [16/16] (narrow) %v14490_v53, 8 }
 0x8d2   : > { %v12448_v33 = vpop.trf.xlu0 }
 0x8f2   : > { %v12480_v56 = vpop.trf.xlu1 }
 0x8f3   : > { %v12498_v26 = vcombine.low %v12448_v33, %v12480_v56 }
 0x8f5   : > { %12500 = vst [vmem:[%s217_s6] sm:$0xff] %v12498_v26 }
 0x8f6   : > { %15257 = shalt.err (!%p15254_p3)
}
 0x8f7   : > { %s15258_s15 = scalar_lea.hbm %s19555_s9, 128  ;;  %s15262_s23 = scalar_lea.hbm %s19602_s5, 256 }
 0x8f8   : > { %p15259_p4 = scmp.ne.s32.totalorder %s19555_s9, %s15258_s15  ;;  %p15263_p9 = scmp.lt.u32.totalorder %s19555_s9, %s19602_s5 }
 0x8f9   : > { %p15264_p10 = scmp.lt.u32.totalorder %s15262_s23, %s15258_s15  ;;  %p15266_p12 = scmp.lt.u32.totalorder %s15258_s15, %s19555_s9 }
 0x8fa   : > { %p15260_p7 = pnand %p15259_p4, %p15378_p5 }
 0x8fb   : > { %p15265_p11 = por %p15264_p10, %p15263_p9 }
 0x8fc   : > { %p15261_p8 = pneg %p15260_p7 }
 0x8fd   : > { %p15267_p13 = por %p15266_p12, %p15265_p11 }
 0x8ff   : > { %p15268_p0 = pnand %p15267_p13, %p15261_p8 }
 0x901   : > { %15271 = shalt.err (!%p15268_p0)
}
 0x902   : > { %15037 = dma.vmem_to_hbm [thread:$0]  (%p15378_p5), %s19557_s7, 128, %s19555_s9, %s12502_s10  }
 0x903 PF: > { %p15043_p1 = scmp.ge.s32.totalorder %s15306_s21, 2  ;;  %s12528_s30 = sand.u32 1, %s15294_s18  }
 0x904   : > { %s12529_s6 = scalar_lea.sflag [#allocation4], %s12528_s30 }
 0x905   : > { %p15040_p2 = pnand %p15043_p1, %p15382_p6 }
 0x907   : > { %15289 = dma.done.wait (!%p15040_p2), %s12529_s6, 128  }
 0x908   : > { %15291 = vsyncadd (!%p15040_p2), %s12529_s6, 4294967168  ;;  %p15_p3 = scmp.ge.s32.totalorder %s15365_s24, 4   ;;  %s19713_s18 = smov %s15298_s19 }
 0x909   : > { %s19714_s19 = smov %s15302_s20  ;;  %s19715_s20 = smov %s15376_s27 }
 0x90a   : > { %s19716_s21 = smov %s15365_s24  ;;  %17 = sbr.rel (!%p15_p3) target bundleno = 3 (0x3), region = 94 }
 0x911   :  { %12534 = vsyncpa [#allocation4], 1 }
 0x912   :  { %12536 = vsyncpa [#allocation4 + $0x1], 1 }

</bundles_post_ra>
